<compile_context>
chip_gen: v7x
topology: tpu7x:2x2x1
jax: 0.10.0
libtpu: 0.0.40
codegen_flags: <defaults>
</compile_context>

<pallas_src>
import functools

import numpy as np

import jax
import jax.numpy as jnp
from jax.experimental import pallas as pl
from jax.experimental.pallas import tpu as pltpu


def _round_up(x, m):
    return (x + m - 1) // m * m


# -----------------------------------------------------------------------------
# Fused decoder kernel (one batch element per grid step, everything in VMEM)
# -----------------------------------------------------------------------------
def _decoder_kernel(x_ref, w1p_ref, w1l_ref, b1_ref, w2_ref, b2_ref,
                    w34_ref, b34_ref, o_ref, xb_ref, slab3_ref, p3_ref, *,
                    Hin, Win, WS, R, K1):
    f32 = jnp.float32
    bf16 = jnp.bfloat16
    C1p = w1l_ref.shape[2]
    XB = xb_ref.shape[0]

    # ---- stage 1: deconv1 (240->120, k5, s1, p2) --------------------------------
    # Input arrives pre-padded & flattened (row = h*WS + w) in f32.  For each kw we
    # restage a 16-row-aligned bf16 window once (so every bf16 MXU operand is
    # tile-aligned) and run the kh taps as 2 pair-packed (N = 2*C1p) dots plus one
    # single dot.  Accumulation stays in a value chain (f32) -- no VMEM round trips.
    acc = None
    for kw in range(K1):
        xb_ref[...] = x_ref[0, kw:kw + XB, :].astype(bf16)
        for g in range(2):                                   # kh pairs (0,1), (2,3)
            p = jnp.dot(xb_ref[2 * g * WS:2 * g * WS + R + WS, :],
                        w1p_ref[kw * 2 + g], preferred_element_type=f32)
            c = p[:R, :C1p] + p[WS:, C1p:]                   # aligned vreg selects
            acc = c if acc is None else acc + c
        acc = acc + jnp.dot(xb_ref[4 * WS:4 * WS + R, :], w1l_ref[kw],
                            preferred_element_type=f32)      # kh = 4

    # ---- stage 2: deconv2 (120->60, k2, s2) + ReLU ------------------------------
    h1 = jnp.maximum(acc + b1_ref[...], 0.0).astype(bf16)            # (R, C1p)
    m2 = jnp.dot(h1, w2_ref[...], preferred_element_type=f32) + b2_ref[...]
    m2 = jnp.maximum(m2, 0.0).astype(bf16)                           # (R, 4*C2b)

    # ---- stage 3: fused deconv3+deconv4 (60 -> 16 output phases) ----------------
    # One wide (K=256, N=144) bf16 matmul over the zero-padded phase slab; composed
    # 3x3 tap t lands in output lanes [16t, 16t+16).  Reduce with 9 shifted f32
    # slice-adds (off the MXU slot) and add the precomputed bias field.
    slab3_ref[...] = jnp.zeros(slab3_ref.shape, bf16)
    for i in range(Hin):
        r0 = 2 * WS + i * WS                                 # 16-aligned stores
        slab3_ref[r0:r0 + Win, :] = m2[i * WS:i * WS + Win, :]
    p3_ref[...] = jnp.dot(slab3_ref[...], w34_ref[...], preferred_element_type=f32)

    base = 2 * WS - 17
    acc3 = b34_ref[...]
    for di in range(3):
        for dj in range(3):
            t = di * 3 + dj
            off = base + di * WS + dj
            acc3 = acc3 + p3_ref[off:off + R, 16 * t:16 * t + 16]
    o_ref[0] = acc3


# -----------------------------------------------------------------------------
# One-time parameter prep (flips, channel padding, kh-pairing, deconv3+4 fusion)
# -----------------------------------------------------------------------------
def prepare_params(p, Hin, Win):
    w1 = np.asarray(p["w1"], np.float32); b1 = np.asarray(p["b1"], np.float32)
    w2 = np.asarray(p["w2"], np.float32); b2 = np.asarray(p["b2"], np.float32)
    w3 = np.asarray(p["w3"], np.float32); b3 = np.asarray(p["b3"], np.float32)
    w4 = np.asarray(p["w4"], np.float32); b4 = np.asarray(p["b4"], np.float32)

    C0, C1, K1, _ = w1.shape                  # 240, 120, 5, 5
    C2 = w2.shape[1]                          # 60
    C3 = w3.shape[1]                          # 2
    assert K1 == 5 and w2.shape[2:] == (2, 2) and w3.shape[2:] == (2, 2)
    assert w4.shape == (C3, 1, 5, 5)

    C0p = _round_up(C0, 128)                  # 256
    C1p = _round_up(C1, 128)                  # 128
    C2b = _round_up(C2, 64)                   # 64 per-phase channel block
    M2C = 4 * C2b                             # 256
    WS = _round_up(Win + K1 - 1, 16)          # row stride of the flat slabs (16)

    # deconv1 -> 25 regular-conv taps (spatially flipped).  kh pairs (0,1) and
    # (2,3) are concatenated along N (256-wide MXU); kh=4 stays single.
    def flip(kh, kw):
        return w1[:, :, K1 - 1 - kh, K1 - 1 - kw]

    w1pair = np.zeros((2 * K1, C0p, 2 * C1p), np.float32)     # index kw*2 + g
    w1last = np.zeros((K1, C0p, C1p), np.float32)
    for kw in range(K1):
        for g in range(2):
            for s in range(2):
                w1pair[kw * 2 + g, :C0, s * C1p:s * C1p + C1] = flip(2 * g + s, kw)
        w1last[kw, :C0, :C1] = flip(4, kw)
    b1p = np.zeros((1, C1p), np.float32)
    b1p[0, :C1] = b1

    # deconv2 -> per-pixel matmul; output column block (a, b) -> a*2*C2b + b*C2b.
    w2p = np.zeros((C1p, M2C), np.float32)
    b2p = np.zeros((1, M2C), np.float32)
    for a in range(2):
        for b in range(2):
            c0 = a * 2 * C2b + b * C2b
            w2p[:C1, c0:c0 + C2] = w2[:, :, a, b]
            b2p[0, c0:c0 + C2] = b2

    # deconv3 o deconv4 composed onto the Hin x Win grid (3x3 conv on the phase
    # layout); the 9 taps are concatenated along N -> (M2C, 144).
    w34p = np.zeros((9, M2C, 16), np.float32)
    for P in range(4):
        for dp in range(5):
            T = P + dp - 2
            DI, a2, rh = T // 4, (T // 2) % 2, T % 2
            for Q in range(4):
                for dq in range(5):
                    U = Q + dq - 2
                    DJ, b2i, rw = U // 4, (U // 2) % 2, U % 2
                    contrib = w3[:, :, rh, rw] @ w4[:, 0, K1 - 1 - dp, K1 - 1 - dq]
                    tap = (DI + 1) * 3 + (DJ + 1)
                    c0 = a2 * 2 * C2b + b2i * C2b
                    w34p[tap, c0:c0 + C2, P * 4 + Q] += contrib
    w34w = np.transpose(w34p, (1, 0, 2)).reshape(M2C, 9 * 16)

    # Bias field: b4 plus deconv4's conv applied to the constant-b3 map (border aware).
    Hout, Wout = 4 * Hin, 4 * Win
    s4 = np.einsum('c,cpq->pq', b3, w4[:, 0, ::-1, ::-1])
    du = np.arange(5)[None, :] - 2
    mh = ((np.arange(Hout)[:, None] + du >= 0) &
          (np.arange(Hout)[:, None] + du < Hout)).astype(np.float32)
    mw = ((np.arange(Wout)[:, None] + du >= 0) &
          (np.arange(Wout)[:, None] + du < Wout)).astype(np.float32)
    bias_field = b4[0] + np.einsum('up,vq,pq->uv', mh, mw, s4)        # (Hout, Wout)
    bfield = bias_field.reshape(Hin, 4, Win, 4).transpose(0, 2, 1, 3)  # (Hin,Win,P,Q)
    b34p = np.zeros((Hin, WS, 16), np.float32)
    b34p[:, :Win, :] = bfield.reshape(Hin, Win, 16)
    b34p = b34p.reshape(Hin * WS, 16)

    bf16 = jnp.bfloat16
    return dict(
        w1pair=jnp.asarray(w1pair, bf16),
        w1last=jnp.asarray(w1last, bf16),
        b1p=jnp.asarray(b1p),
        w2p=jnp.asarray(w2p, bf16),
        b2p=jnp.asarray(b2p),
        w34w=jnp.asarray(w34w, bf16),
        b34p=jnp.asarray(b34p),
    )


# -----------------------------------------------------------------------------
# Decoder forward (matches the PyTorch module, NCHW in / NCHW out)
# -----------------------------------------------------------------------------
def decoder_forward(x_nchw, pp):
    N, C0, Hin, Win = x_nchw.shape
    C0p = pp["w1pair"].shape[1]
    M2C = pp["w2p"].shape[1]
    K1 = 5
    WS = _round_up(Win + K1 - 1, 16)          # 16
    R = Hin * WS                              # 128 output rows (r = h*WS + w)
    S1 = (Hin + 5) * WS                       # 208-row padded input slab
    XB = (Hin + 4) * WS                       # 192-row per-kw bf16 restage window
    S3B = (Hin + 4) * WS                      # 192-row stage-3 phase slab
    assert pp["b34p"].shape[0] == R
    assert pp["w1pair"].shape[0] == 2 * K1

    # NCHW -> zero-padded, channel-padded, flattened (row = h*WS + w) f32 slab.
    x = jnp.transpose(x_nchw, (0, 2, 3, 1))
    x = jnp.pad(x, ((0, 0), (2, S1 // WS - Hin - 2),
                    (2, WS - Win - 2), (0, C0p - C0)))
    x = x.reshape(N, S1, C0p).astype(jnp.float32)

    kern = functools.partial(_decoder_kernel, Hin=Hin, Win=Win, WS=WS, R=R, K1=K1)
    out = pl.pallas_call(
        kern,
        out_shape=jax.ShapeDtypeStruct((N, R, 16), jnp.float32),
        grid=(N,),
        in_specs=[
            pl.BlockSpec((1, S1, C0p), lambda n: (n, 0, 0)),
            pl.BlockSpec(pp["w1pair"].shape, lambda n: (0, 0, 0)),
            pl.BlockSpec(pp["w1last"].shape, lambda n: (0, 0, 0)),
            pl.BlockSpec(pp["b1p"].shape, lambda n: (0, 0)),
            pl.BlockSpec(pp["w2p"].shape, lambda n: (0, 0)),
            pl.BlockSpec(pp["b2p"].shape, lambda n: (0, 0)),
            pl.BlockSpec(pp["w34w"].shape, lambda n: (0, 0)),
            pl.BlockSpec(pp["b34p"].shape, lambda n: (0, 0)),
        ],
        out_specs=pl.BlockSpec((1, R, 16), lambda n: (n, 0, 0)),
        scratch_shapes=[
            pltpu.VMEM((XB, C0p), jnp.bfloat16),   # per-kw aligned bf16 input window
            pltpu.VMEM((S3B, M2C), jnp.bfloat16),  # zero-padded stage-3 phase slab
            pltpu.VMEM((S3B, 9 * 16), jnp.float32),  # wide stage-3 matmul result
        ],
        compiler_params=pltpu.CompilerParams(
            dimension_semantics=("parallel",)),
    )(x, pp["w1pair"], pp["w1last"], pp["b1p"], pp["w2p"], pp["b2p"],
      pp["w34w"], pp["b34p"])

    # Valid rows + 4x4 phase un-shuffle (16 KB of pure-XLA glue).
    o = out.reshape(N, Hin, WS, 16)[:, :, :Win, :]
    o = o.reshape(N, Hin, Win, 4, 4)
    o = jnp.transpose(o, (0, 1, 3, 2, 4)).reshape(N, 4 * Hin, 4 * Win)
    return o[:, None, :, :]                                      # (N, 1, 4H, 4W)


# -----------------------------------------------------------------------------
# Pure-JAX (lax) reference for correctness checking
# -----------------------------------------------------------------------------
def _ref_conv_transpose(x, w, b, stride, padding):
    K = w.shape[2]
    w_oihw = jnp.transpose(w[:, :, ::-1, ::-1], (1, 0, 2, 3))
    pe = K - 1 - padding
    y = jax.lax.conv_general_dilated(
        x, w_oihw, window_strides=(1, 1),
        padding=[(pe, pe), (pe, pe)],
        lhs_dilation=(stride, stride),
        dimension_numbers=("NCHW", "OIHW", "NCHW"))
    return y + b.reshape(1, -1, 1, 1)


def decoder_ref(x, p):
    y = jax.nn.relu(_ref_conv_transpose(x, p["w1"], p["b1"], 1, 2))
    y = jax.nn.relu(_ref_conv_transpose(y, p["w2"], p["b2"], 2, 0))
    y = _ref_conv_transpose(y, p["w3"], p["b3"], 2, 0)
    y = _ref_conv_transpose(y, p["w4"], p["b4"], 1, 2)
    return y


# -----------------------------------------------------------------------------
if __name__ == "__main__":
    key = jax.random.PRNGKey(0)
    ks = jax.random.split(key, 9)
    channels = [240, 120, 60, 2, 1]

    # PyTorch ConvTranspose2d weight layout: (in_channels, out_channels, kH, kW).
    p = {
        "w1": 0.02 * jax.random.normal(ks[0], (channels[0], channels[1], 5, 5), jnp.float32),
        "b1": 0.02 * jax.random.normal(ks[1], (channels[1],), jnp.float32),
        "w2": 0.05 * jax.random.normal(ks[2], (channels[1], channels[2], 2, 2), jnp.float32),
        "b2": 0.05 * jax.random.normal(ks[3], (channels[2],), jnp.float32),
        "w3": 0.05 * jax.random.normal(ks[4], (channels[2], channels[3], 2, 2), jnp.float32),
        "b3": 0.05 * jax.random.normal(ks[5], (channels[3],), jnp.float32),
        "w4": 0.05 * jax.random.normal(ks[6], (channels[3], channels[4], 5, 5), jnp.float32),
        "b4": 0.05 * jax.random.normal(ks[7], (channels[4],), jnp.float32),
    }

    # Small input consistent with the module: batch=2, 240 channels, 8x8 spatial.
    x = jax.random.normal(ks[8], (2, channels[0], 8, 8), jnp.float32)

    pp = prepare_params(p, Hin=8, Win=8)          # one-time weight re-layout / fusion
    fwd = jax.jit(decoder_forward)

    out = jax.block_until_ready(fwd(x, pp))
    assert out.shape == (2, 1, 32, 32), out.shape

    ref = decoder_ref(x, p)
    err = float(jnp.max(jnp.abs(out - ref)))
    # bf16 weights/activations with f32 accumulation: expected max abs err ~5e-4.
    assert err < 3e-3, f"max abs err vs lax reference: {err}"

    print("KERNEL_OK")
</pallas_src>

<mosaic_0001>
module attributes {stable_mosaic.version = 11 : i64} {
  func.func @_decoder_kernel(%arg0: i32, %arg1: memref<1x208x256xf32, #tpu.memory_space<vmem>>, %arg2: memref<10x256x256xbf16, #tpu.memory_space<vmem>>, %arg3: memref<5x256x128xbf16, #tpu.memory_space<vmem>>, %arg4: memref<1x128xf32, #tpu.memory_space<vmem>>, %arg5: memref<128x256xbf16, #tpu.memory_space<vmem>>, %arg6: memref<1x256xf32, #tpu.memory_space<vmem>>, %arg7: memref<256x144xbf16, #tpu.memory_space<vmem>>, %arg8: memref<128x16xf32, #tpu.memory_space<vmem>>, %arg9: memref<1x128x16xf32, #tpu.memory_space<vmem>>, %arg10: memref<192x256xbf16, #tpu.memory_space<vmem>>, %arg11: memref<192x256xbf16, #tpu.memory_space<vmem>>, %arg12: memref<192x144xf32, #tpu.memory_space<vmem>>) attributes {dimension_semantics = [#tpu.dimension_semantics<parallel>], iteration_bounds = array<i64: 2>, scalar_prefetch = 0 : i64, scratch_operands = 3 : i64, tpu.core_type = #tpu.core_type<tc>, window_params = [{transform_indices = @transform_0, window_bounds = array<i64: 1, 208, 256>}, {pipeline_mode = #tpu.pipeline_mode<synchronous>, transform_indices = @transform_1, window_bounds = array<i64: 10, 256, 256>}, {pipeline_mode = #tpu.pipeline_mode<synchronous>, transform_indices = @transform_2, window_bounds = array<i64: 5, 256, 128>}, {pipeline_mode = #tpu.pipeline_mode<synchronous>, transform_indices = @transform_3, window_bounds = array<i64: 1, 128>}, {pipeline_mode = #tpu.pipeline_mode<synchronous>, transform_indices = @transform_4, window_bounds = array<i64: 128, 256>}, {pipeline_mode = #tpu.pipeline_mode<synchronous>, transform_indices = @transform_5, window_bounds = array<i64: 1, 256>}, {pipeline_mode = #tpu.pipeline_mode<synchronous>, transform_indices = @transform_6, window_bounds = array<i64: 256, 144>}, {pipeline_mode = #tpu.pipeline_mode<synchronous>, transform_indices = @transform_7, window_bounds = array<i64: 128, 16>}, {transform_indices = @transform_8, window_bounds = array<i64: 1, 128, 16>}]} {
    %c0 = arith.constant 0 : index
    %c0_0 = arith.constant 0 : index
    %c0_1 = arith.constant 0 : index
    %0 = vector.load %arg1[%c0, %c0_0, %c0_1] : memref<1x208x256xf32, #tpu.memory_space<vmem>>, vector<1x192x256xf32>
    %1 = vector.shape_cast %0 : vector<1x192x256xf32> to vector<192x256xf32>
    %2 = arith.truncf %1 : vector<192x256xf32> to vector<192x256xbf16>
    %c0_2 = arith.constant 0 : index
    %c0_3 = arith.constant 0 : index
    %3 = vector.load %arg10[%c0_2, %c0_3] : memref<192x256xbf16, #tpu.memory_space<vmem>>, vector<192x256xbf16>
    tpu.vector_store %arg10[%c0_2, %c0_3], %2 {strides = array<i32>} : memref<192x256xbf16, #tpu.memory_space<vmem>>, vector<192x256xbf16>,
    %c0_4 = arith.constant 0 : index
    %c0_5 = arith.constant 0 : index
    %4 = vector.load %arg10[%c0_4, %c0_5] : memref<192x256xbf16, #tpu.memory_space<vmem>>, vector<144x256xbf16>
    %c0_6 = arith.constant 0 : index
    %c0_7 = arith.constant 0 : index
    %c0_8 = arith.constant 0 : index
    %5 = vector.load %arg2[%c0_6, %c0_7, %c0_8] : memref<10x256x256xbf16, #tpu.memory_space<vmem>>, vector<1x256x256xbf16>
    %6 = vector.shape_cast %5 : vector<1x256x256xbf16> to vector<256x256xbf16>
    %cst = arith.constant dense<0.000000e+00> : vector<144x256xf32>
    %7 = tpu.matmul %4, %6, %cst {dimension_numbers = #tpu.dot_dimension_numbers<[1], [0], [0], [1], [0, 0, 1, 1], [], []>} : vector<144x256xbf16>, vector<256x256xbf16>, vector<144x256xf32> -> vector<144x256xf32>
    %8 = vector.extract_strided_slice %7 {offsets = [0, 0], sizes = [128, 128], strides = [1, 1]} : vector<144x256xf32> to vector<128x128xf32>
    %9 = vector.extract_strided_slice %7 {offsets = [16, 128], sizes = [128, 128], strides = [1, 1]} : vector<144x256xf32> to vector<128x128xf32>
    %10 = arith.addf %8, %9 : vector<128x128xf32>
    %c32 = arith.constant 32 : index
    %c0_9 = arith.constant 0 : index
    %11 = vector.load %arg10[%c32, %c0_9] : memref<192x256xbf16, #tpu.memory_space<vmem>>, vector<144x256xbf16>
    %c1 = arith.constant 1 : index
    %c0_10 = arith.constant 0 : index
    %c0_11 = arith.constant 0 : index
    %12 = vector.load %arg2[%c1, %c0_10, %c0_11] : memref<10x256x256xbf16, #tpu.memory_space<vmem>>, vector<1x256x256xbf16>
    %13 = vector.shape_cast %12 : vector<1x256x256xbf16> to vector<256x256xbf16>
    %cst_12 = arith.constant dense<0.000000e+00> : vector<144x256xf32>
    %14 = tpu.matmul %11, %13, %cst_12 {dimension_numbers = #tpu.dot_dimension_numbers<[1], [0], [0], [1], [0, 0, 1, 1], [], []>} : vector<144x256xbf16>, vector<256x256xbf16>, vector<144x256xf32> -> vector<144x256xf32>
    %15 = vector.extract_strided_slice %14 {offsets = [0, 0], sizes = [128, 128], strides = [1, 1]} : vector<144x256xf32> to vector<128x128xf32>
    %16 = vector.extract_strided_slice %14 {offsets = [16, 128], sizes = [128, 128], strides = [1, 1]} : vector<144x256xf32> to vector<128x128xf32>
    %17 = arith.addf %15, %16 : vector<128x128xf32>
    %18 = arith.addf %10, %17 : vector<128x128xf32>
    %c64 = arith.constant 64 : index
    %c0_13 = arith.constant 0 : index
    %19 = vector.load %arg10[%c64, %c0_13] : memref<192x256xbf16, #tpu.memory_space<vmem>>, vector<128x256xbf16>
    %c0_14 = arith.constant 0 : index
    %c0_15 = arith.constant 0 : index
    %c0_16 = arith.constant 0 : index
    %20 = vector.load %arg3[%c0_14, %c0_15, %c0_16] : memref<5x256x128xbf16, #tpu.memory_space<vmem>>, vector<1x256x128xbf16>
    %21 = vector.shape_cast %20 : vector<1x256x128xbf16> to vector<256x128xbf16>
    %cst_17 = arith.constant dense<0.000000e+00> : vector<128x128xf32>
    %22 = tpu.matmul %19, %21, %cst_17 {dimension_numbers = #tpu.dot_dimension_numbers<[1], [0], [0], [1], [0, 0, 1, 1], [], []>} : vector<128x256xbf16>, vector<256x128xbf16>, vector<128x128xf32> -> vector<128x128xf32>
    %23 = arith.addf %18, %22 : vector<128x128xf32>
    %c0_18 = arith.constant 0 : index
    %c1_19 = arith.constant 1 : index
    %c0_20 = arith.constant 0 : index
    %24 = vector.load %arg1[%c0_18, %c1_19, %c0_20] : memref<1x208x256xf32, #tpu.memory_space<vmem>>, vector<1x192x256xf32>
    %25 = vector.shape_cast %24 : vector<1x192x256xf32> to vector<192x256xf32>
    %26 = arith.truncf %25 : vector<192x256xf32> to vector<192x256xbf16>
    %c0_21 = arith.constant 0 : index
    %c0_22 = arith.constant 0 : index
    %27 = vector.load %arg10[%c0_21, %c0_22] : memref<192x256xbf16, #tpu.memory_space<vmem>>, vector<192x256xbf16>
    tpu.vector_store %arg10[%c0_21, %c0_22], %26 {strides = array<i32>} : memref<192x256xbf16, #tpu.memory_space<vmem>>, vector<192x256xbf16>,
    %c0_23 = arith.constant 0 : index
    %c0_24 = arith.constant 0 : index
    %28 = vector.load %arg10[%c0_23, %c0_24] : memref<192x256xbf16, #tpu.memory_space<vmem>>, vector<144x256xbf16>
    %c2 = arith.constant 2 : index
    %c0_25 = arith.constant 0 : index
    %c0_26 = arith.constant 0 : index
    %29 = vector.load %arg2[%c2, %c0_25, %c0_26] : memref<10x256x256xbf16, #tpu.memory_space<vmem>>, vector<1x256x256xbf16>
    %30 = vector.shape_cast %29 : vector<1x256x256xbf16> to vector<256x256xbf16>
    %cst_27 = arith.constant dense<0.000000e+00> : vector<144x256xf32>
    %31 = tpu.matmul %28, %30, %cst_27 {dimension_numbers = #tpu.dot_dimension_numbers<[1], [0], [0], [1], [0, 0, 1, 1], [], []>} : vector<144x256xbf16>, vector<256x256xbf16>, vector<144x256xf32> -> vector<144x256xf32>
    %32 = vector.extract_strided_slice %31 {offsets = [0, 0], sizes = [128, 128], strides = [1, 1]} : vector<144x256xf32> to vector<128x128xf32>
    %33 = vector.extract_strided_slice %31 {offsets = [16, 128], sizes = [128, 128], strides = [1, 1]} : vector<144x256xf32> to vector<128x128xf32>
    %34 = arith.addf %32, %33 : vector<128x128xf32>
    %35 = arith.addf %23, %34 : vector<128x128xf32>
    %c32_28 = arith.constant 32 : index
    %c0_29 = arith.constant 0 : index
    %36 = vector.load %arg10[%c32_28, %c0_29] : memref<192x256xbf16, #tpu.memory_space<vmem>>, vector<144x256xbf16>
    %c3 = arith.constant 3 : index
    %c0_30 = arith.constant 0 : index
    %c0_31 = arith.constant 0 : index
    %37 = vector.load %arg2[%c3, %c0_30, %c0_31] : memref<10x256x256xbf16, #tpu.memory_space<vmem>>, vector<1x256x256xbf16>
    %38 = vector.shape_cast %37 : vector<1x256x256xbf16> to vector<256x256xbf16>
    %cst_32 = arith.constant dense<0.000000e+00> : vector<144x256xf32>
    %39 = tpu.matmul %36, %38, %cst_32 {dimension_numbers = #tpu.dot_dimension_numbers<[1], [0], [0], [1], [0, 0, 1, 1], [], []>} : vector<144x256xbf16>, vector<256x256xbf16>, vector<144x256xf32> -> vector<144x256xf32>
    %40 = vector.extract_strided_slice %39 {offsets = [0, 0], sizes = [128, 128], strides = [1, 1]} : vector<144x256xf32> to vector<128x128xf32>
    %41 = vector.extract_strided_slice %39 {offsets = [16, 128], sizes = [128, 128], strides = [1, 1]} : vector<144x256xf32> to vector<128x128xf32>
    %42 = arith.addf %40, %41 : vector<128x128xf32>
    %43 = arith.addf %35, %42 : vector<128x128xf32>
    %c64_33 = arith.constant 64 : index
    %c0_34 = arith.constant 0 : index
    %44 = vector.load %arg10[%c64_33, %c0_34] : memref<192x256xbf16, #tpu.memory_space<vmem>>, vector<128x256xbf16>
    %c1_35 = arith.constant 1 : index
    %c0_36 = arith.constant 0 : index
    %c0_37 = arith.constant 0 : index
    %45 = vector.load %arg3[%c1_35, %c0_36, %c0_37] : memref<5x256x128xbf16, #tpu.memory_space<vmem>>, vector<1x256x128xbf16>
    %46 = vector.shape_cast %45 : vector<1x256x128xbf16> to vector<256x128xbf16>
    %cst_38 = arith.constant dense<0.000000e+00> : vector<128x128xf32>
    %47 = tpu.matmul %44, %46, %cst_38 {dimension_numbers = #tpu.dot_dimension_numbers<[1], [0], [0], [1], [0, 0, 1, 1], [], []>} : vector<128x256xbf16>, vector<256x128xbf16>, vector<128x128xf32> -> vector<128x128xf32>
    %48 = arith.addf %43, %47 : vector<128x128xf32>
    %c0_39 = arith.constant 0 : index
    %c2_40 = arith.constant 2 : index
    %c0_41 = arith.constant 0 : index
    %49 = vector.load %arg1[%c0_39, %c2_40, %c0_41] : memref<1x208x256xf32, #tpu.memory_space<vmem>>, vector<1x192x256xf32>
    %50 = vector.shape_cast %49 : vector<1x192x256xf32> to vector<192x256xf32>
    %51 = arith.truncf %50 : vector<192x256xf32> to vector<192x256xbf16>
    %c0_42 = arith.constant 0 : index
    %c0_43 = arith.constant 0 : index
    %52 = vector.load %arg10[%c0_42, %c0_43] : memref<192x256xbf16, #tpu.memory_space<vmem>>, vector<192x256xbf16>
    tpu.vector_store %arg10[%c0_42, %c0_43], %51 {strides = array<i32>} : memref<192x256xbf16, #tpu.memory_space<vmem>>, vector<192x256xbf16>,
    %c0_44 = arith.constant 0 : index
    %c0_45 = arith.constant 0 : index
    %53 = vector.load %arg10[%c0_44, %c0_45] : memref<192x256xbf16, #tpu.memory_space<vmem>>, vector<144x256xbf16>
    %c4 = arith.constant 4 : index
    %c0_46 = arith.constant 0 : index
    %c0_47 = arith.constant 0 : index
    %54 = vector.load %arg2[%c4, %c0_46, %c0_47] : memref<10x256x256xbf16, #tpu.memory_space<vmem>>, vector<1x256x256xbf16>
    %55 = vector.shape_cast %54 : vector<1x256x256xbf16> to vector<256x256xbf16>
    %cst_48 = arith.constant dense<0.000000e+00> : vector<144x256xf32>
    %56 = tpu.matmul %53, %55, %cst_48 {dimension_numbers = #tpu.dot_dimension_numbers<[1], [0], [0], [1], [0, 0, 1, 1], [], []>} : vector<144x256xbf16>, vector<256x256xbf16>, vector<144x256xf32> -> vector<144x256xf32>
    %57 = vector.extract_strided_slice %56 {offsets = [0, 0], sizes = [128, 128], strides = [1, 1]} : vector<144x256xf32> to vector<128x128xf32>
    %58 = vector.extract_strided_slice %56 {offsets = [16, 128], sizes = [128, 128], strides = [1, 1]} : vector<144x256xf32> to vector<128x128xf32>
    %59 = arith.addf %57, %58 : vector<128x128xf32>
    %60 = arith.addf %48, %59 : vector<128x128xf32>
    %c32_49 = arith.constant 32 : index
    %c0_50 = arith.constant 0 : index
    %61 = vector.load %arg10[%c32_49, %c0_50] : memref<192x256xbf16, #tpu.memory_space<vmem>>, vector<144x256xbf16>
    %c5 = arith.constant 5 : index
    %c0_51 = arith.constant 0 : index
    %c0_52 = arith.constant 0 : index
    %62 = vector.load %arg2[%c5, %c0_51, %c0_52] : memref<10x256x256xbf16, #tpu.memory_space<vmem>>, vector<1x256x256xbf16>
    %63 = vector.shape_cast %62 : vector<1x256x256xbf16> to vector<256x256xbf16>
    %cst_53 = arith.constant dense<0.000000e+00> : vector<144x256xf32>
    %64 = tpu.matmul %61, %63, %cst_53 {dimension_numbers = #tpu.dot_dimension_numbers<[1], [0], [0], [1], [0, 0, 1, 1], [], []>} : vector<144x256xbf16>, vector<256x256xbf16>, vector<144x256xf32> -> vector<144x256xf32>
    %65 = vector.extract_strided_slice %64 {offsets = [0, 0], sizes = [128, 128], strides = [1, 1]} : vector<144x256xf32> to vector<128x128xf32>
    %66 = vector.extract_strided_slice %64 {offsets = [16, 128], sizes = [128, 128], strides = [1, 1]} : vector<144x256xf32> to vector<128x128xf32>
    %67 = arith.addf %65, %66 : vector<128x128xf32>
    %68 = arith.addf %60, %67 : vector<128x128xf32>
    %c64_54 = arith.constant 64 : index
    %c0_55 = arith.constant 0 : index
    %69 = vector.load %arg10[%c64_54, %c0_55] : memref<192x256xbf16, #tpu.memory_space<vmem>>, vector<128x256xbf16>
    %c2_56 = arith.constant 2 : index
    %c0_57 = arith.constant 0 : index
    %c0_58 = arith.constant 0 : index
    %70 = vector.load %arg3[%c2_56, %c0_57, %c0_58] : memref<5x256x128xbf16, #tpu.memory_space<vmem>>, vector<1x256x128xbf16>
    %71 = vector.shape_cast %70 : vector<1x256x128xbf16> to vector<256x128xbf16>
    %cst_59 = arith.constant dense<0.000000e+00> : vector<128x128xf32>
    %72 = tpu.matmul %69, %71, %cst_59 {dimension_numbers = #tpu.dot_dimension_numbers<[1], [0], [0], [1], [0, 0, 1, 1], [], []>} : vector<128x256xbf16>, vector<256x128xbf16>, vector<128x128xf32> -> vector<128x128xf32>
    %73 = arith.addf %68, %72 : vector<128x128xf32>
    %c0_60 = arith.constant 0 : index
    %c3_61 = arith.constant 3 : index
    %c0_62 = arith.constant 0 : index
    %74 = vector.load %arg1[%c0_60, %c3_61, %c0_62] : memref<1x208x256xf32, #tpu.memory_space<vmem>>, vector<1x192x256xf32>
    %75 = vector.shape_cast %74 : vector<1x192x256xf32> to vector<192x256xf32>
    %76 = arith.truncf %75 : vector<192x256xf32> to vector<192x256xbf16>
    %c0_63 = arith.constant 0 : index
    %c0_64 = arith.constant 0 : index
    %77 = vector.load %arg10[%c0_63, %c0_64] : memref<192x256xbf16, #tpu.memory_space<vmem>>, vector<192x256xbf16>
    tpu.vector_store %arg10[%c0_63, %c0_64], %76 {strides = array<i32>} : memref<192x256xbf16, #tpu.memory_space<vmem>>, vector<192x256xbf16>,
    %c0_65 = arith.constant 0 : index
    %c0_66 = arith.constant 0 : index
    %78 = vector.load %arg10[%c0_65, %c0_66] : memref<192x256xbf16, #tpu.memory_space<vmem>>, vector<144x256xbf16>
    %c6 = arith.constant 6 : index
    %c0_67 = arith.constant 0 : index
    %c0_68 = arith.constant 0 : index
    %79 = vector.load %arg2[%c6, %c0_67, %c0_68] : memref<10x256x256xbf16, #tpu.memory_space<vmem>>, vector<1x256x256xbf16>
    %80 = vector.shape_cast %79 : vector<1x256x256xbf16> to vector<256x256xbf16>
    %cst_69 = arith.constant dense<0.000000e+00> : vector<144x256xf32>
    %81 = tpu.matmul %78, %80, %cst_69 {dimension_numbers = #tpu.dot_dimension_numbers<[1], [0], [0], [1], [0, 0, 1, 1], [], []>} : vector<144x256xbf16>, vector<256x256xbf16>, vector<144x256xf32> -> vector<144x256xf32>
    %82 = vector.extract_strided_slice %81 {offsets = [0, 0], sizes = [128, 128], strides = [1, 1]} : vector<144x256xf32> to vector<128x128xf32>
    %83 = vector.extract_strided_slice %81 {offsets = [16, 128], sizes = [128, 128], strides = [1, 1]} : vector<144x256xf32> to vector<128x128xf32>
    %84 = arith.addf %82, %83 : vector<128x128xf32>
    %85 = arith.addf %73, %84 : vector<128x128xf32>
    %c32_70 = arith.constant 32 : index
    %c0_71 = arith.constant 0 : index
    %86 = vector.load %arg10[%c32_70, %c0_71] : memref<192x256xbf16, #tpu.memory_space<vmem>>, vector<144x256xbf16>
    %c7 = arith.constant 7 : index
    %c0_72 = arith.constant 0 : index
    %c0_73 = arith.constant 0 : index
    %87 = vector.load %arg2[%c7, %c0_72, %c0_73] : memref<10x256x256xbf16, #tpu.memory_space<vmem>>, vector<1x256x256xbf16>
    %88 = vector.shape_cast %87 : vector<1x256x256xbf16> to vector<256x256xbf16>
    %cst_74 = arith.constant dense<0.000000e+00> : vector<144x256xf32>
    %89 = tpu.matmul %86, %88, %cst_74 {dimension_numbers = #tpu.dot_dimension_numbers<[1], [0], [0], [1], [0, 0, 1, 1], [], []>} : vector<144x256xbf16>, vector<256x256xbf16>, vector<144x256xf32> -> vector<144x256xf32>
    %90 = vector.extract_strided_slice %89 {offsets = [0, 0], sizes = [128, 128], strides = [1, 1]} : vector<144x256xf32> to vector<128x128xf32>
    %91 = vector.extract_strided_slice %89 {offsets = [16, 128], sizes = [128, 128], strides = [1, 1]} : vector<144x256xf32> to vector<128x128xf32>
    %92 = arith.addf %90, %91 : vector<128x128xf32>
    %93 = arith.addf %85, %92 : vector<128x128xf32>
    %c64_75 = arith.constant 64 : index
    %c0_76 = arith.constant 0 : index
    %94 = vector.load %arg10[%c64_75, %c0_76] : memref<192x256xbf16, #tpu.memory_space<vmem>>, vector<128x256xbf16>
    %c3_77 = arith.constant 3 : index
    %c0_78 = arith.constant 0 : index
    %c0_79 = arith.constant 0 : index
    %95 = vector.load %arg3[%c3_77, %c0_78, %c0_79] : memref<5x256x128xbf16, #tpu.memory_space<vmem>>, vector<1x256x128xbf16>
    %96 = vector.shape_cast %95 : vector<1x256x128xbf16> to vector<256x128xbf16>
    %cst_80 = arith.constant dense<0.000000e+00> : vector<128x128xf32>
    %97 = tpu.matmul %94, %96, %cst_80 {dimension_numbers = #tpu.dot_dimension_numbers<[1], [0], [0], [1], [0, 0, 1, 1], [], []>} : vector<128x256xbf16>, vector<256x128xbf16>, vector<128x128xf32> -> vector<128x128xf32>
    %98 = arith.addf %93, %97 : vector<128x128xf32>
    %c0_81 = arith.constant 0 : index
    %c4_82 = arith.constant 4 : index
    %c0_83 = arith.constant 0 : index
    %99 = vector.load %arg1[%c0_81, %c4_82, %c0_83] : memref<1x208x256xf32, #tpu.memory_space<vmem>>, vector<1x192x256xf32>
    %100 = vector.shape_cast %99 : vector<1x192x256xf32> to vector<192x256xf32>
    %101 = arith.truncf %100 : vector<192x256xf32> to vector<192x256xbf16>
    %c0_84 = arith.constant 0 : index
    %c0_85 = arith.constant 0 : index
    %102 = vector.load %arg10[%c0_84, %c0_85] : memref<192x256xbf16, #tpu.memory_space<vmem>>, vector<192x256xbf16>
    tpu.vector_store %arg10[%c0_84, %c0_85], %101 {strides = array<i32>} : memref<192x256xbf16, #tpu.memory_space<vmem>>, vector<192x256xbf16>,
    %c0_86 = arith.constant 0 : index
    %c0_87 = arith.constant 0 : index
    %103 = vector.load %arg10[%c0_86, %c0_87] : memref<192x256xbf16, #tpu.memory_space<vmem>>, vector<144x256xbf16>
    %c8 = arith.constant 8 : index
    %c0_88 = arith.constant 0 : index
    %c0_89 = arith.constant 0 : index
    %104 = vector.load %arg2[%c8, %c0_88, %c0_89] : memref<10x256x256xbf16, #tpu.memory_space<vmem>>, vector<1x256x256xbf16>
    %105 = vector.shape_cast %104 : vector<1x256x256xbf16> to vector<256x256xbf16>
    %cst_90 = arith.constant dense<0.000000e+00> : vector<144x256xf32>
    %106 = tpu.matmul %103, %105, %cst_90 {dimension_numbers = #tpu.dot_dimension_numbers<[1], [0], [0], [1], [0, 0, 1, 1], [], []>} : vector<144x256xbf16>, vector<256x256xbf16>, vector<144x256xf32> -> vector<144x256xf32>
    %107 = vector.extract_strided_slice %106 {offsets = [0, 0], sizes = [128, 128], strides = [1, 1]} : vector<144x256xf32> to vector<128x128xf32>
    %108 = vector.extract_strided_slice %106 {offsets = [16, 128], sizes = [128, 128], strides = [1, 1]} : vector<144x256xf32> to vector<128x128xf32>
    %109 = arith.addf %107, %108 : vector<128x128xf32>
    %110 = arith.addf %98, %109 : vector<128x128xf32>
    %c32_91 = arith.constant 32 : index
    %c0_92 = arith.constant 0 : index
    %111 = vector.load %arg10[%c32_91, %c0_92] : memref<192x256xbf16, #tpu.memory_space<vmem>>, vector<144x256xbf16>
    %c9 = arith.constant 9 : index
    %c0_93 = arith.constant 0 : index
    %c0_94 = arith.constant 0 : index
    %112 = vector.load %arg2[%c9, %c0_93, %c0_94] : memref<10x256x256xbf16, #tpu.memory_space<vmem>>, vector<1x256x256xbf16>
    %113 = vector.shape_cast %112 : vector<1x256x256xbf16> to vector<256x256xbf16>
    %cst_95 = arith.constant dense<0.000000e+00> : vector<144x256xf32>
    %114 = tpu.matmul %111, %113, %cst_95 {dimension_numbers = #tpu.dot_dimension_numbers<[1], [0], [0], [1], [0, 0, 1, 1], [], []>} : vector<144x256xbf16>, vector<256x256xbf16>, vector<144x256xf32> -> vector<144x256xf32>
    %115 = vector.extract_strided_slice %114 {offsets = [0, 0], sizes = [128, 128], strides = [1, 1]} : vector<144x256xf32> to vector<128x128xf32>
    %116 = vector.extract_strided_slice %114 {offsets = [16, 128], sizes = [128, 128], strides = [1, 1]} : vector<144x256xf32> to vector<128x128xf32>
    %117 = arith.addf %115, %116 : vector<128x128xf32>
    %118 = arith.addf %110, %117 : vector<128x128xf32>
    %c64_96 = arith.constant 64 : index
    %c0_97 = arith.constant 0 : index
    %119 = vector.load %arg10[%c64_96, %c0_97] : memref<192x256xbf16, #tpu.memory_space<vmem>>, vector<128x256xbf16>
    %c4_98 = arith.constant 4 : index
    %c0_99 = arith.constant 0 : index
    %c0_100 = arith.constant 0 : index
    %120 = vector.load %arg3[%c4_98, %c0_99, %c0_100] : memref<5x256x128xbf16, #tpu.memory_space<vmem>>, vector<1x256x128xbf16>
    %121 = vector.shape_cast %120 : vector<1x256x128xbf16> to vector<256x128xbf16>
    %cst_101 = arith.constant dense<0.000000e+00> : vector<128x128xf32>
    %122 = tpu.matmul %119, %121, %cst_101 {dimension_numbers = #tpu.dot_dimension_numbers<[1], [0], [0], [1], [0, 0, 1, 1], [], []>} : vector<128x256xbf16>, vector<256x128xbf16>, vector<128x128xf32> -> vector<128x128xf32>
    %123 = arith.addf %118, %122 : vector<128x128xf32>
    %c0_102 = arith.constant 0 : index
    %c0_103 = arith.constant 0 : index
    %124 = vector.load %arg4[%c0_102, %c0_103] : memref<1x128xf32, #tpu.memory_space<vmem>>, vector<1x128xf32>
    %125 = vector.broadcast %124 : vector<1x128xf32> to vector<128x128xf32>
    %126 = arith.addf %123, %125 : vector<128x128xf32>
    %cst_104 = arith.constant 0.000000e+00 : f32
    %127 = vector.broadcast %cst_104 : f32 to vector<128x128xf32>
    %128 = arith.maximumf %126, %127 : vector<128x128xf32>
    %129 = arith.truncf %128 : vector<128x128xf32> to vector<128x128xbf16>
    %c0_105 = arith.constant 0 : index
    %c0_106 = arith.constant 0 : index
    %130 = vector.load %arg5[%c0_105, %c0_106] : memref<128x256xbf16, #tpu.memory_space<vmem>>, vector<128x256xbf16>
    %cst_107 = arith.constant dense<0.000000e+00> : vector<128x256xf32>
    %131 = tpu.matmul %129, %130, %cst_107 {dimension_numbers = #tpu.dot_dimension_numbers<[1], [0], [0], [1], [0, 0, 1, 1], [], []>} : vector<128x128xbf16>, vector<128x256xbf16>, vector<128x256xf32> -> vector<128x256xf32>
    %c0_108 = arith.constant 0 : index
    %c0_109 = arith.constant 0 : index
    %132 = vector.load %arg6[%c0_108, %c0_109] : memref<1x256xf32, #tpu.memory_space<vmem>>, vector<1x256xf32>
    %133 = vector.broadcast %132 : vector<1x256xf32> to vector<128x256xf32>
    %134 = arith.addf %131, %133 : vector<128x256xf32>
    %cst_110 = arith.constant 0.000000e+00 : f32
    %135 = vector.broadcast %cst_110 : f32 to vector<128x256xf32>
    %136 = arith.maximumf %134, %135 : vector<128x256xf32>
    %137 = arith.truncf %136 : vector<128x256xf32> to vector<128x256xbf16>
    %cst_111 = arith.constant 0.000000e+00 : bf16
    %138 = vector.broadcast %cst_111 : bf16 to vector<192x256xbf16>
    %c0_112 = arith.constant 0 : index
    %c0_113 = arith.constant 0 : index
    %139 = vector.load %arg11[%c0_112, %c0_113] : memref<192x256xbf16, #tpu.memory_space<vmem>>, vector<192x256xbf16>
    tpu.vector_store %arg11[%c0_112, %c0_113], %138 {strides = array<i32>} : memref<192x256xbf16, #tpu.memory_space<vmem>>, vector<192x256xbf16>,
    %140 = vector.extract_strided_slice %137 {offsets = [0, 0], sizes = [8, 256], strides = [1, 1]} : vector<128x256xbf16> to vector<8x256xbf16>
    %c32_114 = arith.constant 32 : index
    %c0_115 = arith.constant 0 : index
    %141 = vector.load %arg11[%c32_114, %c0_115] : memref<192x256xbf16, #tpu.memory_space<vmem>>, vector<8x256xbf16>
    tpu.vector_store %arg11[%c32_114, %c0_115], %140 {strides = array<i32>} : memref<192x256xbf16, #tpu.memory_space<vmem>>, vector<8x256xbf16>,
    %142 = vector.extract_strided_slice %137 {offsets = [16, 0], sizes = [8, 256], strides = [1, 1]} : vector<128x256xbf16> to vector<8x256xbf16>
    %c48 = arith.constant 48 : index
    %c0_116 = arith.constant 0 : index
    %143 = vector.load %arg11[%c48, %c0_116] : memref<192x256xbf16, #tpu.memory_space<vmem>>, vector<8x256xbf16>
    tpu.vector_store %arg11[%c48, %c0_116], %142 {strides = array<i32>} : memref<192x256xbf16, #tpu.memory_space<vmem>>, vector<8x256xbf16>,
    %144 = vector.extract_strided_slice %137 {offsets = [32, 0], sizes = [8, 256], strides = [1, 1]} : vector<128x256xbf16> to vector<8x256xbf16>
    %c64_117 = arith.constant 64 : index
    %c0_118 = arith.constant 0 : index
    %145 = vector.load %arg11[%c64_117, %c0_118] : memref<192x256xbf16, #tpu.memory_space<vmem>>, vector<8x256xbf16>
    tpu.vector_store %arg11[%c64_117, %c0_118], %144 {strides = array<i32>} : memref<192x256xbf16, #tpu.memory_space<vmem>>, vector<8x256xbf16>,
    %146 = vector.extract_strided_slice %137 {offsets = [48, 0], sizes = [8, 256], strides = [1, 1]} : vector<128x256xbf16> to vector<8x256xbf16>
    %c80 = arith.constant 80 : index
    %c0_119 = arith.constant 0 : index
    %147 = vector.load %arg11[%c80, %c0_119] : memref<192x256xbf16, #tpu.memory_space<vmem>>, vector<8x256xbf16>
    tpu.vector_store %arg11[%c80, %c0_119], %146 {strides = array<i32>} : memref<192x256xbf16, #tpu.memory_space<vmem>>, vector<8x256xbf16>,
    %148 = vector.extract_strided_slice %137 {offsets = [64, 0], sizes = [8, 256], strides = [1, 1]} : vector<128x256xbf16> to vector<8x256xbf16>
    %c96 = arith.constant 96 : index
    %c0_120 = arith.constant 0 : index
    %149 = vector.load %arg11[%c96, %c0_120] : memref<192x256xbf16, #tpu.memory_space<vmem>>, vector<8x256xbf16>
    tpu.vector_store %arg11[%c96, %c0_120], %148 {strides = array<i32>} : memref<192x256xbf16, #tpu.memory_space<vmem>>, vector<8x256xbf16>,
    %150 = vector.extract_strided_slice %137 {offsets = [80, 0], sizes = [8, 256], strides = [1, 1]} : vector<128x256xbf16> to vector<8x256xbf16>
    %c112 = arith.constant 112 : index
    %c0_121 = arith.constant 0 : index
    %151 = vector.load %arg11[%c112, %c0_121] : memref<192x256xbf16, #tpu.memory_space<vmem>>, vector<8x256xbf16>
    tpu.vector_store %arg11[%c112, %c0_121], %150 {strides = array<i32>} : memref<192x256xbf16, #tpu.memory_space<vmem>>, vector<8x256xbf16>,
    %152 = vector.extract_strided_slice %137 {offsets = [96, 0], sizes = [8, 256], strides = [1, 1]} : vector<128x256xbf16> to vector<8x256xbf16>
    %c128 = arith.constant 128 : index
    %c0_122 = arith.constant 0 : index
    %153 = vector.load %arg11[%c128, %c0_122] : memref<192x256xbf16, #tpu.memory_space<vmem>>, vector<8x256xbf16>
    tpu.vector_store %arg11[%c128, %c0_122], %152 {strides = array<i32>} : memref<192x256xbf16, #tpu.memory_space<vmem>>, vector<8x256xbf16>,
    %154 = vector.extract_strided_slice %137 {offsets = [112, 0], sizes = [8, 256], strides = [1, 1]} : vector<128x256xbf16> to vector<8x256xbf16>
    %c144 = arith.constant 144 : index
    %c0_123 = arith.constant 0 : index
    %155 = vector.load %arg11[%c144, %c0_123] : memref<192x256xbf16, #tpu.memory_space<vmem>>, vector<8x256xbf16>
    tpu.vector_store %arg11[%c144, %c0_123], %154 {strides = array<i32>} : memref<192x256xbf16, #tpu.memory_space<vmem>>, vector<8x256xbf16>,
    %c0_124 = arith.constant 0 : index
    %c0_125 = arith.constant 0 : index
    %156 = vector.load %arg11[%c0_124, %c0_125] : memref<192x256xbf16, #tpu.memory_space<vmem>>, vector<192x256xbf16>
    %c0_126 = arith.constant 0 : index
    %c0_127 = arith.constant 0 : index
    %157 = vector.load %arg7[%c0_126, %c0_127] : memref<256x144xbf16, #tpu.memory_space<vmem>>, vector<256x144xbf16>
    %cst_128 = arith.constant dense<0.000000e+00> : vector<192x144xf32>
    %158 = tpu.matmul %156, %157, %cst_128 {dimension_numbers = #tpu.dot_dimension_numbers<[1], [0], [0], [1], [0, 0, 1, 1], [], []>} : vector<192x256xbf16>, vector<256x144xbf16>, vector<192x144xf32> -> vector<192x144xf32>
    %c0_129 = arith.constant 0 : index
    %c0_130 = arith.constant 0 : index
    %159 = vector.load %arg12[%c0_129, %c0_130] : memref<192x144xf32, #tpu.memory_space<vmem>>, vector<192x144xf32>
    tpu.vector_store %arg12[%c0_129, %c0_130], %158 {strides = array<i32>} : memref<192x144xf32, #tpu.memory_space<vmem>>, vector<192x144xf32>,
    %c0_131 = arith.constant 0 : index
    %c0_132 = arith.constant 0 : index
    %160 = vector.load %arg8[%c0_131, %c0_132] : memref<128x16xf32, #tpu.memory_space<vmem>>, vector<128x16xf32>
    %c15 = arith.constant 15 : index
    %c0_133 = arith.constant 0 : index
    %161 = vector.load %arg12[%c15, %c0_133] : memref<192x144xf32, #tpu.memory_space<vmem>>, vector<128x16xf32>
    %162 = arith.addf %160, %161 : vector<128x16xf32>
    %c16 = arith.constant 16 : index
    %c16_134 = arith.constant 16 : index
    %163 = vector.load %arg12[%c16, %c16_134] : memref<192x144xf32, #tpu.memory_space<vmem>>, vector<128x16xf32>
    %164 = arith.addf %162, %163 : vector<128x16xf32>
    %c17 = arith.constant 17 : index
    %c32_135 = arith.constant 32 : index
    %165 = vector.load %arg12[%c17, %c32_135] : memref<192x144xf32, #tpu.memory_space<vmem>>, vector<128x16xf32>
    %166 = arith.addf %164, %165 : vector<128x16xf32>
    %c31 = arith.constant 31 : index
    %c48_136 = arith.constant 48 : index
    %167 = vector.load %arg12[%c31, %c48_136] : memref<192x144xf32, #tpu.memory_space<vmem>>, vector<128x16xf32>
    %168 = arith.addf %166, %167 : vector<128x16xf32>
    %c32_137 = arith.constant 32 : index
    %c64_138 = arith.constant 64 : index
    %169 = vector.load %arg12[%c32_137, %c64_138] : memref<192x144xf32, #tpu.memory_space<vmem>>, vector<128x16xf32>
    %170 = arith.addf %168, %169 : vector<128x16xf32>
    %c33 = arith.constant 33 : index
    %c80_139 = arith.constant 80 : index
    %171 = vector.load %arg12[%c33, %c80_139] : memref<192x144xf32, #tpu.memory_space<vmem>>, vector<128x16xf32>
    %172 = arith.addf %170, %171 : vector<128x16xf32>
    %c47 = arith.constant 47 : index
    %c96_140 = arith.constant 96 : index
    %173 = vector.load %arg12[%c47, %c96_140] : memref<192x144xf32, #tpu.memory_space<vmem>>, vector<128x16xf32>
    %174 = arith.addf %172, %173 : vector<128x16xf32>
    %c48_141 = arith.constant 48 : index
    %c112_142 = arith.constant 112 : index
    %175 = vector.load %arg12[%c48_141, %c112_142] : memref<192x144xf32, #tpu.memory_space<vmem>>, vector<128x16xf32>
    %176 = arith.addf %174, %175 : vector<128x16xf32>
    %c49 = arith.constant 49 : index
    %c128_143 = arith.constant 128 : index
    %177 = vector.load %arg12[%c49, %c128_143] : memref<192x144xf32, #tpu.memory_space<vmem>>, vector<128x16xf32>
    %178 = arith.addf %176, %177 : vector<128x16xf32>
    %c0_144 = arith.constant 0 : index
    %c0_145 = arith.constant 0 : index
    %c0_146 = arith.constant 0 : index
    %179 = vector.load %arg9[%c0_144, %c0_145, %c0_146] : memref<1x128x16xf32, #tpu.memory_space<vmem>>, vector<1x128x16xf32>
    %180 = vector.shape_cast %179 : vector<1x128x16xf32> to vector<128x16xf32>
    %181 = vector.shape_cast %178 : vector<128x16xf32> to vector<1x128x16xf32>
    tpu.vector_store %arg9[%c0_144, %c0_145, %c0_146], %181 {strides = array<i32>} : memref<1x128x16xf32, #tpu.memory_space<vmem>>, vector<1x128x16xf32>,
    return
  }
  func.func @transform_0(%arg0: i32) -> (i32, i32, i32) {
    %c0_i32 = arith.constant 0 : i32
    %c0_i32_0 = arith.constant 0 : i32
    %c0_i32_1 = arith.constant 0 : i32
    return %arg0, %c0_i32, %c0_i32_0 : i32, i32, i32
  }
  func.func @transform_1(%arg0: i32) -> (i32, i32, i32) {
    %c0_i32 = arith.constant 0 : i32
    %c0_i32_0 = arith.constant 0 : i32
    %c0_i32_1 = arith.constant 0 : i32
    %c0_i32_2 = arith.constant 0 : i32
    return %c0_i32, %c0_i32_0, %c0_i32_1 : i32, i32, i32
  }
  func.func @transform_2(%arg0: i32) -> (i32, i32, i32) {
    %c0_i32 = arith.constant 0 : i32
    %c0_i32_0 = arith.constant 0 : i32
    %c0_i32_1 = arith.constant 0 : i32
    %c0_i32_2 = arith.constant 0 : i32
    return %c0_i32, %c0_i32_0, %c0_i32_1 : i32, i32, i32
  }
  func.func @transform_3(%arg0: i32) -> (i32, i32) {
    %c0_i32 = arith.constant 0 : i32
    %c0_i32_0 = arith.constant 0 : i32
    %c0_i32_1 = arith.constant 0 : i32
    return %c0_i32, %c0_i32_0 : i32, i32
  }
  func.func @transform_4(%arg0: i32) -> (i32, i32) {
    %c0_i32 = arith.constant 0 : i32
    %c0_i32_0 = arith.constant 0 : i32
    %c0_i32_1 = arith.constant 0 : i32
    return %c0_i32, %c0_i32_0 : i32, i32
  }
  func.func @transform_5(%arg0: i32) -> (i32, i32) {
    %c0_i32 = arith.constant 0 : i32
    %c0_i32_0 = arith.constant 0 : i32
    %c0_i32_1 = arith.constant 0 : i32
    return %c0_i32, %c0_i32_0 : i32, i32
  }
  func.func @transform_6(%arg0: i32) -> (i32, i32) {
    %c0_i32 = arith.constant 0 : i32
    %c0_i32_0 = arith.constant 0 : i32
    %c0_i32_1 = arith.constant 0 : i32
    return %c0_i32, %c0_i32_0 : i32, i32
  }
  func.func @transform_7(%arg0: i32) -> (i32, i32) {
    %c0_i32 = arith.constant 0 : i32
    %c0_i32_0 = arith.constant 0 : i32
    %c0_i32_1 = arith.constant 0 : i32
    return %c0_i32, %c0_i32_0 : i32, i32
  }
  func.func @transform_8(%arg0: i32) -> (i32, i32, i32) {
    %c0_i32 = arith.constant 0 : i32
    %c0_i32_0 = arith.constant 0 : i32
    %c0_i32_1 = arith.constant 0 : i32
    return %arg0, %c0_i32, %c0_i32_0 : i32, i32, i32
  }
}

</mosaic_0001>

<bundles_post_ra>
// kernel: decoder_forward.1
= control target key start
LH: loop header
LB: loop body
LE: loop exit
PB: predicated region body
PF: predicated region fallthrough
CT: control target
= control target key end

     0   :  { %13 = vsyncpa [#allocation6], 0  ;;  %s12270_s0 = inlined_call_operand.vmem [shape: f32[2,208,256], index: 0, kind: input, shape index: {}]   ;;  %s12271_s1 = inlined_call_operand.hbm [shape: bf16[10,256,256], index: 1, kind: input, shape index: {}]   ;;  %s12272_s2 = inlined_call_operand.hbm [shape: bf16[5,256,128], index: 2, kind: input, shape index: {}]   ;;  %s12273_s3 = inlined_call_operand.hbm [shape: f32[1,128], index: 3, kind: input, shape index: {}]   ;;  %s12274_s4 = inlined_call_operand.hbm [shape: bf16[128,256], index: 4, kind: input, shape index: {}]   ;;  %s12275_s5 = inlined_call_operand.hbm [shape: f32[1,256], index: 5, kind: input, shape index: {}]   ;;  %s12276_s6 = inlined_call_operand.vmem [shape: bf16[256,144], index: 6, kind: input, shape index: {}]   ;;  %s12277_s7 = inlined_call_operand.vmem [shape: f32[128,16], index: 7, kind: input, shape index: {}]   ;;  %s12278_s8 = inlined_call_operand.vmem [shape: f32[2,128,16], index: 8, kind: output, shape index: {}]  }
   0x1   :  { %14 = vsyncpa [#allocation8], 0 }
   0x2   :  { %15 = vsyncpa [#allocation11], 0  ;;  %s9839_s27 = smov 0  }
   0x3 LB: > { %s9777_s28 = smov [#allocation7]   ;;  %s9845_s30 = sadd.s32 4294967295, %s9775_s27   ;;  %s9775_s27 = sphi %s9839_s27, %s21_s27  }
   0x4   : > { %s250_s29 = sshll.u32 %s9777_s28, 4  ;;  %p8092_p0 = scmp.ge.s32.totalorder %s9775_s27, 1  ;;  %s9850_s29 = int_to_ptr.vmem [resolvable:$true] %s250_s29 }
   0x5   : > { %p225_p1 = scmp.lt.s32.totalorder %s9775_s27, 3  ;;  %p12279_p2 = scmp.eq.s32.totalorder %s9845_s30, 0 }
   0x6   : > { %s9778_s11 = smov [#allocation10]   ;;  %s9779_s13 = smov [#allocation5]  }
   0x7   : > { %p9852_p3 = pnand %p8092_p0, %p225_p1  ;;  %s274_s12 = sshll.u32 %s9778_s11, 4  ;;  %s9864_s12 = int_to_ptr.vmem [resolvable:$true] %s274_s12 }
   0x8   : > { %s237_s14 = sshll.u32 %s9779_s13, 4  ;;  %s9617_s17 = scalar_lea.hbm %s12272_s2, 10240  ;;  %s9866_s14 = int_to_ptr.vmem [resolvable:$true] %s237_s14 }
   0x9   : > { %s12292_s9 = scalar_select %p9852_p3, 1, 0 }
   0xa   : > { %p8933_p4 = pneg %p9852_p3  ;;  %p9618_p6 = scmp.ne.s32.totalorder %s12272_s2, %s9617_s17 }
   0xb   : > { %p9624_p10 = scmp.lt.u32.totalorder %s9617_s17, %s12272_s2 }
   0xc   : > { %p9860_p5 = pnand %p12279_p2, %p8933_p4 }
   0xe   : > { %p9876_p7 = pneg %p9860_p5 }
  0x10   : > { %p9620_p8 = pnand %p9876_p7, %p9618_p6 }
  0x12   : > { %p9621_p9 = pneg %p9620_p8 }
  0x14   : > { %p9626_p11 = pnand %p9624_p10, %p9621_p9 }
  0x16   : > { %9629 = shalt.err (!%p9626_p11)
}
  0x17   : > { %s9630_s23 = scalar_lea.vmem %s9850_s29, 10240  ;;  %p9638_p1 = scmp.lt.s32.totalorder %s9850_s29, %s9850_s29 }
  0x18   : > { %p9631_p12 = scmp.ne.s32.totalorder %s9850_s29, %s9630_s23  ;;  %p9639_p4 = scmp.lt.s32.totalorder %s9630_s23, %s9630_s23 }
  0x1a   : > { %p9633_p13 = pnand %p9631_p12, %p9876_p7  ;;  %p9640_p6 = por %p9639_p4, %p9638_p1 }
  0x1c   : > { %p9634_p0 = pneg %p9633_p13 }
  0x1e   : > { %p9641_p8 = pnand %p9640_p6, %p9634_p0 }
  0x20   : > { %9644 = shalt.err (!%p9641_p8)
}
  0x21   : > { %s9780_s24 = smov 64   ;;  %s9781_s25 = smov 4  }
  0x22   : > { %8939 = dma.hbm_to_vmem [thread:$0]  (!%p9860_p5), %s12272_s2, 10240, %s9850_s29, [#allocation8], %s9780_s24, %s9780_s24, %s9781_s25  }
  0x23   : > { %s9645_s15 = scalar_lea.hbm %s12274_s4, 2048 }
  0x24   : > { %p9646_p9 = scmp.ne.s32.totalorder %s12274_s4, %s9645_s15  ;;  %p9652_p12 = scmp.lt.u32.totalorder %s9645_s15, %s12274_s4 }
  0x26   : > { %p9648_p10 = pnand %p9646_p9, %p9876_p7 }
  0x28   : > { %p9649_p11 = pneg %p9648_p10 }
  0x2a   : > { %p9654_p13 = pnand %p9652_p12, %p9649_p11 }
  0x2c   : > { %9657 = shalt.err (!%p9654_p13)
}
  0x2d   : > { %s9658_s29 = scalar_lea.vmem %s9864_s12, 2048  ;;  %p9666_p6 = scmp.lt.s32.totalorder %s9864_s12, %s9864_s12 }
  0x2e   : > { %p9659_p0 = scmp.ne.s32.totalorder %s9864_s12, %s9658_s29  ;;  %p9667_p8 = scmp.lt.s32.totalorder %s9658_s29, %s9658_s29 }
  0x30   : > { %p9661_p1 = pnand %p9659_p0, %p9876_p7  ;;  %p9668_p9 = por %p9667_p8, %p9666_p6 }
  0x32   : > { %p9662_p4 = pneg %p9661_p1 }
  0x34   : > { %p9669_p10 = pnand %p9668_p9, %p9662_p4 }
  0x36   : > { %9672 = shalt.err (!%p9669_p10)
}
  0x37   : > { %s9782_s21 = smov 128   ;;  %s9783_s22 = smov 8  }
  0x38   : > { %8945 = dma.hbm_to_vmem [thread:$0]  (!%p9860_p5), %s12274_s4, 2048, %s9864_s12, [#allocation11], %s9782_s21, %s9782_s21, %s9783_s22  }
  0x39   : > { %s9673_s28 = scalar_lea.hbm %s12271_s1, 40960 }
  0x3a   : > { %p9674_p11 = scmp.ne.s32.totalorder %s12271_s1, %s9673_s28  ;;  %p9680_p0 = scmp.lt.u32.totalorder %s9673_s28, %s12271_s1 }
  0x3c   : > { %p9676_p12 = pnand %p9674_p11, %p9876_p7 }
  0x3e   : > { %p9677_p13 = pneg %p9676_p12 }
  0x40   : > { %p9682_p1 = pnand %p9680_p0, %p9677_p13 }
  0x42   : > { %9685 = shalt.err (!%p9682_p1)
}
  0x43   : > { %s9686_s12 = scalar_lea.vmem %s9866_s14, 40960  ;;  %p9694_p9 = scmp.lt.s32.totalorder %s9866_s14, %s9866_s14 }
  0x44   : > { %p9687_p4 = scmp.ne.s32.totalorder %s9866_s14, %s9686_s12  ;;  %p9695_p10 = scmp.lt.s32.totalorder %s9686_s12, %s9686_s12 }
  0x46   : > { %p9689_p6 = pnand %p9687_p4, %p9876_p7  ;;  %p9696_p11 = por %p9695_p10, %p9694_p9 }
  0x48   : > { %p9690_p8 = pneg %p9689_p6 }
  0x4a   : > { %p9697_p12 = pnand %p9696_p11, %p9690_p8 }
  0x4c   : > { %9700 = shalt.err (!%p9697_p12)
}
  0x4d   : > { %8936 = dma.hbm_to_vmem [thread:$0]  (!%p9860_p5), %s12271_s1, 40960, %s9866_s14, [#allocation6], %s9782_s21, %s9782_s21, %s9783_s22  }
  0x4e   : > { %s9784_s19 = smov [#allocation9]   ;;  %s9785_s23 = smov [#allocation12]  }
  0x4f   : > { %s264_s29 = sshll.u32 %s9784_s19, 4  ;;  %s288_s24 = sshll.u32 %s9785_s23, 4  ;;  %s265_s29 = int_to_ptr.vmem [resolvable:$true] %s264_s29  ;;  %s9943_s24 = int_to_ptr.vmem [resolvable:$true] %s288_s24 }
  0x50   : > { %s9701_s28 = scalar_lea.hbm %s12273_s3, 16 }
  0x51   : > { %p9702_p13 = scmp.ne.s32.totalorder %s12273_s3, %s9701_s28  ;;  %p9708_p4 = scmp.lt.u32.totalorder %s9701_s28, %s12273_s3 }
  0x53   : > { %p9704_p0 = pnand %p9702_p13, %p9876_p7 }
  0x55   : > { %p9705_p1 = pneg %p9704_p0 }
  0x57   : > { %p9710_p6 = pnand %p9708_p4, %p9705_p1 }
  0x59   : > { %9713 = shalt.err (!%p9710_p6)
}
  0x5a   : > { %s9714_s21 = scalar_lea.vmem %s265_s29, 16  ;;  %s9721_s22 = scalar_lea.vmem %s265_s29, 32 }
  0x5b   : > { %p9715_p8 = scmp.ne.s32.totalorder %s265_s29, %s9714_s21  ;;  %p9722_p11 = scmp.lt.s32.totalorder %s265_s29, %s265_s29 }
  0x5c   : > { %p9723_p12 = scmp.lt.s32.totalorder %s9721_s22, %s9714_s21 }
  0x5d   : > { %p9717_p9 = pnand %p9715_p8, %p9876_p7 }
  0x5e   : > { %p9724_p2 = por %p9723_p12, %p9722_p11 }
  0x5f   : > { %p9718_p10 = pneg %p9717_p9 }
  0x61   : > { %p9725_p3 = pnand %p9724_p2, %p9718_p10 }
  0x63   : > { %9728 = shalt.err (!%p9725_p3)
}
  0x64   : > { %8942 = dma.hbm_to_vmem [thread:$0]  (!%p9860_p5), %s12273_s3, 16, %s265_s29, [#allocation8]  }
  0x65   : > { %s9729_s19 = scalar_lea.hbm %s12275_s5, 32 }
  0x66   : > { %p9730_p13 = scmp.ne.s32.totalorder %s12275_s5, %s9729_s19  ;;  %p9736_p2 = scmp.lt.u32.totalorder %s9729_s19, %s12275_s5 }
  0x68   : > { %p9732_p0 = pnand %p9730_p13, %p9876_p7 }
  0x6a   : > { %p9733_p1 = pneg %p9732_p0 }
  0x6c   : > { %p9738_p3 = pnand %p9736_p2, %p9733_p1 }
  0x6e   : > { %9741 = shalt.err (!%p9738_p3)
}
  0x6f   : > { %s9742_s29 = scalar_lea.vmem %s9943_s24, 32  ;;  %p9750_p9 = scmp.lt.s32.totalorder %s9943_s24, %s9943_s24 }
  0x70   : > { %p9743_p4 = scmp.ne.s32.totalorder %s9943_s24, %s9742_s29  ;;  %p9751_p10 = scmp.lt.s32.totalorder %s9742_s29, %s9742_s29 }
  0x72   : > { %p9745_p6 = pnand %p9743_p4, %p9876_p7  ;;  %p9752_p11 = por %p9751_p10, %p9750_p9 }
  0x74   : > { %p9746_p8 = pneg %p9745_p6 }
  0x76   : > { %p9753_p12 = pnand %p9752_p11, %p9746_p8 }
  0x78   : > { %9756 = shalt.err (!%p9753_p12)
}
  0x79   : > { %8948 = dma.hbm_to_vmem [thread:$0]  (!%p9860_p5), %s12275_s5, 32, %s9943_s24, [#allocation11]  }
  0x7a   : > { %p12295_p13 = scmp.ne.s32.totalorder %s12292_s9, 0 }
  0x7c   : > { %315 = sbr.rel (%p12295_p13) target bundleno = 1700 (0x6a4), region = 52 }
  0x83   : > { %p12296_p0 = scmp.eq.s32.totalorder %s9845_s30, 0 }
  0x85   : > { %9762 = dma.done.wait (%p12296_p0), [#allocation6], 40960   ;;  %p12297_p7 = pmov %p12296_p0 }
  0x86   : > { %p12298_p1 = pmov %p12296_p0 }
  0x87   : > { %9764 = vsyncadd (%p12297_p7), [#allocation6], 4294926336 }
  0x88   : > { %9766 = dma.done.wait (%p12298_p1), [#allocation8], 10256   ;;  %p12299_p2 = pmov %p12296_p0 }
  0x89   : > { %p12300_p3 = pmov %p12296_p0 }
  0x8a   : > { %9768 = vsyncadd (%p12299_p2), [#allocation8], 4294957040 }
  0x8b   : > { %9770 = dma.done.wait (%p12300_p3), [#allocation11], 2080   ;;  %p12301_p5 = pmov %p12296_p0 }
  0x8c   : > { %v8984_v0 = vld [vmem:[#allocation5 + $0x4] ss:$8 sps:$4 sm:$0xff]   ;;  %v8988_v2 = vld [vmem:[#allocation5] ss:$8 sps:$4 sm:$0xff]   ;;  %v8990_v4 = vld [vmem:[#allocation5 + $0x14] ss:$8 sps:$4 sm:$0xff]  }
  0x8d   : > { %9772 = vsyncadd (%p12301_p5), [#allocation11], 4294965216  ;;  %v8986_v1 = vld [vmem:[#allocation5 + $0x104] ss:$8 sps:$4 sm:$0xff]   ;;  %682 = vmatprep.subr.bf16.mxu0 %v8984_v0  ;;  %v8989_v3 = vld [vmem:[#allocation5 + $0x100] ss:$8 sps:$4 sm:$0xff]  }
  0x8e   : > { %1028 = vmatprep.subr.bf16.mxu1 %v8986_v1  ;;  %683 = vmatpush1.bf16.msra.mxu0 %v8988_v2  ;;  %v8992_v5 = vld [vmem:[#allocation5 + $0x114] ss:$8 sps:$4 sm:$0xff]   ;;  %v8994_v6 = vld [vmem:[#allocation5 + $0x10] ss:$8 sps:$4 sm:$0xff]   ;;  %v8996_v8 = vld [vmem:[#allocation5 + $0x24] ss:$8 sps:$4 sm:$0xff]  }
  0x8f   : > { %1029 = vmatpush1.bf16.msra.mxu1 %v8989_v3  ;;  %684 = vmatprep.subr.bf16.mxu0 %v8990_v4  ;;  %v8995_v7 = vld [vmem:[#allocation5 + $0x110] ss:$8 sps:$4 sm:$0xff]   ;;  %v8998_v9 = vld [vmem:[#allocation5 + $0x124] ss:$8 sps:$4 sm:$0xff]   ;;  %v9000_v10 = vld [vmem:[#allocation5 + $0x20] ss:$8 sps:$4 sm:$0xff]  }
  0x90   : > { %1030 = vmatprep.subr.bf16.mxu1 %v8992_v5  ;;  %v9001_v11 = vld [vmem:[#allocation5 + $0x120] ss:$8 sps:$4 sm:$0xff]   ;;  %v9002_v12 = vld [vmem:[#allocation5 + $0x34] ss:$8 sps:$4 sm:$0xff]   ;;  %v9006_v14 = vld [vmem:[#allocation5 + $0x30] ss:$8 sps:$4 sm:$0xff]  }
  0x91   : > { %v9004_v13 = vld [vmem:[#allocation5 + $0x134] ss:$8 sps:$4 sm:$0xff]   ;;  %v9007_v15 = vld [vmem:[#allocation5 + $0x130] ss:$8 sps:$4 sm:$0xff]   ;;  %v9008_v16 = vld [vmem:[#allocation5 + $0x44] ss:$8 sps:$4 sm:$0xff]  }
  0x92   : > { %685 = vmatpush1.bf16.msra.mxu0 %v8994_v6  ;;  %v9010_v17 = vld [vmem:[#allocation5 + $0x144] ss:$8 sps:$4 sm:$0xff]   ;;  %v9012_v18 = vld [vmem:[#allocation5 + $0x40] ss:$8 sps:$4 sm:$0xff]   ;;  %v9014_v20 = vld [vmem:[#allocation5 + $0x54] ss:$8 sps:$4 sm:$0xff]  }
  0x93   : > { %1031 = vmatpush1.bf16.msra.mxu1 %v8995_v7  ;;  %686 = vmatprep.subr.bf16.mxu0 %v8996_v8  ;;  %v9013_v19 = vld [vmem:[#allocation5 + $0x140] ss:$8 sps:$4 sm:$0xff]   ;;  %v9016_v21 = vld [vmem:[#allocation5 + $0x154] ss:$8 sps:$4 sm:$0xff]   ;;  %v9018_v22 = vld [vmem:[#allocation5 + $0x50] ss:$8 sps:$4 sm:$0xff]  }
  0x94   : > { %1032 = vmatprep.subr.bf16.mxu1 %v8998_v9  ;;  %v9019_v23 = vld [vmem:[#allocation5 + $0x150] ss:$8 sps:$4 sm:$0xff]   ;;  %v9020_v24 = vld [vmem:[#allocation5 + $0x64] ss:$8 sps:$4 sm:$0xff]   ;;  %v9024_v26 = vld [vmem:[#allocation5 + $0x60] ss:$8 sps:$4 sm:$0xff]  }
  0x95   : > { %v9022_v25 = vld [vmem:[#allocation5 + $0x164] ss:$8 sps:$4 sm:$0xff]   ;;  %v9025_v27 = vld [vmem:[#allocation5 + $0x160] ss:$8 sps:$4 sm:$0xff]   ;;  %v9026_v28 = vld [vmem:[#allocation5 + $0x74] ss:$8 sps:$4 sm:$0xff]  }
  0x96   : > { %687 = vmatpush1.bf16.msra.mxu0 %v9000_v10  ;;  %v9028_v29 = vld [vmem:[#allocation5 + $0x174] ss:$8 sps:$4 sm:$0xff]   ;;  %v9030_v30 = vld [vmem:[#allocation5 + $0x70] ss:$8 sps:$4 sm:$0xff]   ;;  %p365_p4 = scmp.lt.s32.totalorder %s9845_s30, 1  ;;  %vm2845_vm2 = vcmask 1046528  }
  0x97   : > { %1033 = vmatpush1.bf16.msra.mxu1 %v9001_v11  ;;  %688 = vmatprep.subr.bf16.mxu0 %v9002_v12  ;;  %v9031_v31 = vld [vmem:[#allocation5 + $0x170] ss:$8 sps:$4 sm:$0xff]   ;;  %v9032_v32 = vld [vmem:[#allocation5 + $0x84] ss:$8 sps:$4 sm:$0xff]   ;;  %v9036_v34 = vld [vmem:[#allocation5 + $0x80] ss:$8 sps:$4 sm:$0xff]  }
  0x98   : > { %1034 = vmatprep.subr.bf16.mxu1 %v9004_v13  ;;  %v9034_v33 = vld [vmem:[#allocation5 + $0x184] ss:$8 sps:$4 sm:$0xff]   ;;  %v9037_v35 = vld [vmem:[#allocation5 + $0x180] ss:$8 sps:$4 sm:$0xff]   ;;  %s12322_s30 = smov (!%p365_p4, %s9845_s30), 1  ;;  %vm5367_vm3 = vcmask 1045504  }
  0x99   : > { %v9038_v36 = vld [vmem:[#allocation5 + $0x94] ss:$8 sps:$4 sm:$0xff]   ;;  %v9042_v38 = vld [vmem:[#allocation5 + $0x90] ss:$8 sps:$4 sm:$0xff]   ;;  %s8912_s9 = smul.u32 416, %s12322_s30  ;;  %vm7174_vm4 = vcmask 130048  }
  0x9a   : > { %689 = vmatpush1.bf16.msra.mxu0 %v9006_v14  ;;  %v9040_v37 = vld [vmem:[#allocation5 + $0x194] ss:$8 sps:$4 sm:$0xff]   ;;  %v9043_v39 = vld [vmem:[#allocation5 + $0x190] ss:$8 sps:$4 sm:$0xff]   ;;  %v9044_v40 = vld [vmem:[#allocation5 + $0xa4] ss:$8 sps:$4 sm:$0xff]  }
  0x9b   : > { %1035 = vmatpush1.bf16.msra.mxu1 %v9007_v15  ;;  %690 = vmatprep.subr.bf16.mxu0 %v9008_v16  ;;  %v9046_v41 = vld [vmem:[#allocation5 + $0x1a4] ss:$8 sps:$4 sm:$0xff]   ;;  %v9048_v42 = vld [vmem:[#allocation5 + $0xa0] ss:$8 sps:$4 sm:$0xff]   ;;  %s10008_s24 = scalar_lea.vmem %s12270_s0, %s8912_s9  ;;  %v9050_v44 = vld [vmem:[#allocation5 + $0xb4] ss:$8 sps:$4 sm:$0xff]  }
  0x9c   : > { %1036 = vmatprep.subr.bf16.mxu1 %v9010_v17  ;;  %v9049_v43 = vld [vmem:[#allocation5 + $0x1a0] ss:$8 sps:$4 sm:$0xff]   ;;  %v9052_v45 = vld [vmem:[#allocation5 + $0x1b4] ss:$8 sps:$4 sm:$0xff]   ;;  %v9054_v46 = vld [vmem:[#allocation5 + $0xb0] ss:$8 sps:$4 sm:$0xff]  }
  0x9d   : > { %v9055_v47 = vld [vmem:[#allocation5 + $0x1b0] ss:$8 sps:$4 sm:$0xff]   ;;  %v377_v48 = vld [vmem:[%s10008_s24 + $0x8] sm:$0xff]  ;;  %v384_v56 = vld [vmem:[%s10008_s24 + $0x40] sm:$0xff]  ;;  %vm1512_vm0 = vsmask.f32 7424 }
  0x9e   : > { %691 = vmatpush1.bf16.msra.mxu0 %v9012_v18  ;;  %v10012_v49 = vld [vmem:[%s10008_s24 + $0x18] sm:$0xff]  ;;  %v385_v50 = vld [vmem:[%s10008_s24 + $0x48] sm:$0xff]  ;;  %v386_v57 = vld [vmem:[%s10008_s24 + $0x50] sm:$0xff]  ;;  %vm4002_vm1 = vsmask.f32 6400  ;;  %s9787_s16 = smov 112  }
  0x9f   : > { %1037 = vmatpush1.bf16.msra.mxu1 %v9013_v19  ;;  %692 = vmatprep.subr.bf16.mxu0 %v9014_v20  ;;  %v387_v51 = vld [vmem:[%s10008_s24 + $0x58] sm:$0xff]  ;;  %v9056_v52 = vld [vmem:[#allocation5 + $0xc4] ss:$8 sps:$4 sm:$0xff]   ;;  %v425_v54 = vpack.c.bf16 %v10012_v49, %v377_v48  ;;  %v9060_v58 = vld [vmem:[#allocation5 + $0xc0] ss:$8 sps:$4 sm:$0xff]   ;;  %v10025_v1 = vpack.c.bf16 %v386_v57, %v384_v56  ;;  %vm7272_vm5 = vcmask 1040384  }
  0xa0   : > { %1038 = vmatprep.subr.bf16.mxu1 %v9016_v21  ;;  %v9058_v53 = vld [vmem:[#allocation5 + $0x1c4] ss:$8 sps:$4 sm:$0xff]   ;;  %v10017_v55 = vpack.c.bf16 %v387_v51, %v385_v50  ;;  %v9061_v59 = vld [vmem:[#allocation5 + $0x1c0] ss:$8 sps:$4 sm:$0xff]   ;;  %v9062_v60 = vld [vmem:[#allocation5 + $0xd4] ss:$8 sps:$4 sm:$0xff]  }
  0xa1   : > { %714 = vmatprep.mubr.bf16.mxu0 %v425_v54  ;;  %v381_v61 = vld [vmem:[%s10008_s24 + $0x28] sm:$0xff]  ;;  %v383_v62 = vld [vmem:[%s10008_s24 + $0x38] sm:$0xff]  ;;  %v380_v4 = vld [vmem:[%s10008_s24 + $0x20] sm:$0xff]  ;;  %v1541_v14 = vshll.u32 %v10025_v1, 16  ;;  %v1553_v20 = vshrl.u32 %v10025_v1, 16  ;;  %s9788_s12 = smov 96  }
  0xa2   : > { %693 = vmatpush1.bf16.msra.mxu0 %v9018_v22  ;;  %1060 = vmatprep.mubr.bf16.mxu1 %v10017_v55  ;;  %v1549_v63 = vshll.u32 %v10017_v55, 16  ;;  %v9064_v0 = vld [vmem:[#allocation5 + $0x1d4] ss:$8 sps:$4 sm:$0xff]   ;;  %v10027_v2 = vpack.c.bf16 %v383_v62, %v381_v61  ;;  %v389_v3 = vld [vmem:[%s10008_s24 + $0x68] sm:$0xff]  ;;  %v388_v7 = vld [vmem:[%s10008_s24 + $0x60] sm:$0xff]  ;;  %v1561_v8 = vshrl.u32 %v10017_v55, 16 }
  0xa3   : > { %1039 = vmatpush1.bf16.msra.mxu1 %v9019_v23  ;;  %694 = vmatprep.subr.bf16.mxu0 %v9020_v24  ;;  %v391_v5 = vld [vmem:[%s10008_s24 + $0x78] sm:$0xff]  ;;  %v382_v6 = vld [vmem:[%s10008_s24 + $0x30] sm:$0xff]  ;;  %v9068_v15 = vld [vmem:[#allocation5 + $0xe4] ss:$8 sps:$4 sm:$0xff]   ;;  %s9789_s17 = smov 64   ;;  %s9790_s18 = smov 80  }
  0xa4   : > { %1040 = vmatprep.subr.bf16.mxu1 %v9022_v25  ;;  %v9066_v9 = vld [vmem:[#allocation5 + $0xd0] ss:$8 sps:$4 sm:$0xff]   ;;  %v1533_v12 = vshll.u32 %v10027_v2, 16  ;;  %v1545_v13 = vshrl.u32 %v10027_v2, 16  ;;  %v10039_v16 = vpack.c.bf16 %v382_v6, %v380_v4  ;;  %v1551_v17 = vrot.slane %v1549_v63, 1  ;;  %v9081_v51 = vld [vmem:[#allocation7] sm:$0xff]  }
  0xa5   : > { %v9067_v10 = vld [vmem:[#allocation5 + $0x1d0] ss:$8 sps:$4 sm:$0xff]   ;;  %v10041_v18 = vpack.c.bf16 %v391_v5, %v389_v3  ;;  %v9070_v21 = vld [vmem:[#allocation5 + $0x1e4] ss:$8 sps:$4 sm:$0xff]   ;;  %v9089_v56 = vld [vmem:[#allocation5 + $0x214] ss:$8 sps:$4 sm:$0xff]  }
  0xa6   : > { %695 = vmatpush1.bf16.msra.mxu0 %v9024_v26  ;;  %v390_v11 = vld [vmem:[%s10008_s24 + $0x70] sm:$0xff]  ;;  %v10043_v19 = vrot.slane %v1533_v12, 1  ;;  %v1521_v23 = vshll.u32 %v10039_v16, 16  ;;  %v1537_v24 = vshrl.u32 %v10039_v16, 16  ;;  %v1543_v26 = vrot.slane %v1541_v14, 1  ;;  %v9086_v54 = vld [vmem:[#allocation7 + $0x8] sm:$0xff]  }
  0xa7   : > { %1041 = vmatpush1.bf16.msra.mxu1 %v9025_v27  ;;  %696 = vmatprep.subr.bf16.mxu0 %v9026_v28  ;;  %v10046_v22 = vpack.c.bf16 %v390_v11, %v388_v7  ;;  %v1563_v27 = vor.u32 %v1561_v8, %v1551_v17  ;;  %v1565_v28 = vshll.u32 %v10041_v18, 16  ;;  %v9084_v48 = vld [vmem:[#allocation5 + $0x204] ss:$8 sps:$4 sm:$0xff]   ;;  %v9090_v62 = vld [vmem:[#allocation5 + $0x220] ss:$8 sps:$4 sm:$0xff]   ;;  %v394_v3 = vld [vmem:[%s10008_s24 + $0x90] sm:$0xff] }
  0xa8   : > { %1042 = vmatprep.subr.bf16.mxu1 %v9028_v29  ;;  %v1547_v25 = vor.u32 %v1545_v13, %v10043_v19  ;;  %v9072_v29 = vld [vmem:[#allocation5 + $0xe0] ss:$8 sps:$4 sm:$0xff]   ;;  %v9092_v63 = vld [vmem:[#allocation5 + $0x224] ss:$8 sps:$4 sm:$0xff]   ;;  %v9101_v4 = vld [vmem:[#allocation7 + $0x58] sm:$0xff]   ;;  %s9791_s19 = smov 48  }
  0xa9   : > { %v393_v57 = vld [vmem:[%s10008_s24 + $0x88] sm:$0xff]  ;;  %v9097_v5 = vld [vmem:[#allocation5 + $0x234] ss:$8 sps:$4 sm:$0xff]   ;;  %v396_v14 = vld [vmem:[%s10008_s24 + $0xa0] sm:$0xff]  ;;  %s9792_s23 = smov 16   ;;  %s9793_s25 = smov 32  }
  0xaa   : > { %697 = vmatpush1.bf16.msra.mxu0 %v9030_v30  ;;  %v9073_v30 = vld [vmem:[#allocation5 + $0x1e0] ss:$8 sps:$4 sm:$0xff]   ;;  %v399_v7 = vld [vmem:[%s10008_s24 + $0xb8] sm:$0xff]  ;;  %v9100_v13 = vld [vmem:[#allocation5 + $0x244] ss:$8 sps:$4 sm:$0xff]   ;;  %s8559_s13 = sshll.u32 %s12322_s30, 7 }
  0xab   : > { %1043 = vmatpush1.bf16.msra.mxu1 %v9031_v31  ;;  %698 = vmatprep.subr.bf16.mxu0 %v9032_v32  ;;  %v10052_v31 = vrot.slane %v1521_v23, 1  ;;  %v1557_v32 = vshll.u32 %v10046_v22, 16  ;;  %v397_v6 = vld [vmem:[%s10008_s24 + $0xa8] sm:$0xff]  ;;  %v9102_v8 = vld [vmem:[#allocation7 + $0x18] sm:$0xff]   ;;  %s12017_s20 = scalar_lea.vmem %s12278_s8, %s8559_s13 }
  0xac   : > { %1044 = vmatprep.subr.bf16.mxu1 %v9034_v33  ;;  %v9074_v33 = vld [vmem:[#allocation5 + $0xf4] ss:$8 sps:$4 sm:$0xff]   ;;  %v10096_v12 = vpack.c.bf16 %v399_v7, %v397_v6  ;;  %v401_v23 = vld [vmem:[%s10008_s24 + $0xc8] sm:$0xff] }
  0xad   : > { %v413_v6 = vld [vmem:[%s10008_s24 + $0x128] sm:$0xff]  ;;  %v415_v7 = vld [vmem:[%s10008_s24 + $0x138] sm:$0xff] }
  0xae   : > { %699 = vmatpush1.bf16.msra.mxu0 %v9036_v34  ;;  %v10056_v34 = vsel %vm1512_vm0, %v1547_v25, %v1551_v17  ;;  %v398_v17 = vld [vmem:[%s10008_s24 + $0xb0] sm:$0xff]  ;;  %v9121_v25 = vld [vmem:[#allocation7 + $0x28] sm:$0xff]  }
  0xaf   : > { %1045 = vmatpush1.bf16.msra.mxu1 %v9037_v35  ;;  %700 = vmatprep.subr.bf16.mxu0 %v9038_v36  ;;  %v10058_v35 = vrot.slane %v1565_v28, 1  ;;  %v1555_v36 = vor.u32 %v1553_v20, %v1543_v26  ;;  %v9105_v20 = vld [vmem:[#allocation5 + $0x254] ss:$8 sps:$4 sm:$0xff]   ;;  %v9108_v28 = vld [vmem:[#allocation5 + $0x264] ss:$8 sps:$4 sm:$0xff]  }
  0xb0   : > { %1046 = vmatprep.subr.bf16.mxu1 %v9040_v37  ;;  %v9076_v37 = vld [vmem:[#allocation5 + $0x1f4] ss:$8 sps:$4 sm:$0xff]  }
  0xb2   : > { %701 = vmatpush1.bf16.msra.mxu0 %v9042_v38  ;;  %v1539_v38 = vor.u32 %v1537_v24, %v10052_v31  ;;  %v403_v24 = vld [vmem:[%s10008_s24 + $0xd8] sm:$0xff] }
  0xb3   : > { %1047 = vmatpush1.bf16.msra.mxu1 %v9043_v39  ;;  %702 = vmatprep.subr.bf16.mxu0 %v9044_v40  ;;  %v10063_v39 = vsel %vm1512_vm0, %v1563_v27, %v10058_v35  ;;  %v10065_v40 = vrot.slane %v1557_v32, 1  ;;  %v10108_v27 = vpack.c.bf16 %v403_v24, %v401_v23  ;;  %v402_v32 = vld [vmem:[%s10008_s24 + $0xd0] sm:$0xff]  ;;  %v419_v23 = vld [vmem:[%s10008_s24 + $0x158] sm:$0xff] }
  0xb4   : > { %1048 = vmatprep.subr.bf16.mxu1 %v9046_v41  ;;  %v9078_v41 = vld [vmem:[#allocation5 + $0xf0] ss:$8 sps:$4 sm:$0xff]  }
  0xb6   : > { %703 = vmatpush1.bf16.msra.mxu0 %v9048_v42  ;;  %v10068_v42 = vsel %vm1512_vm0, %v1539_v38, %v1543_v26  ;;  %v9128_v26 = vld [vmem:[#allocation7 + $0x70] sm:$0xff]   ;;  %v405_v38 = vld [vmem:[%s10008_s24 + $0xe8] sm:$0xff] }
  0xb7   : > { %1049 = vmatpush1.bf16.msra.mxu1 %v9049_v43  ;;  %704 = vmatprep.subr.bf16.mxu0 %v9050_v44  ;;  %v9079_v43 = vld [vmem:[#allocation5 + $0x1f0] ss:$8 sps:$4 sm:$0xff]   ;;  %v376_v44 = vld [vmem:[%s10008_s24] sm:$0xff] }
  0xb8   : > { %1050 = vmatprep.subr.bf16.mxu1 %v9052_v45  ;;  %v10072_v45 = vld [vmem:[%s10008_s24 + $0x10] sm:$0xff] }
  0xb9   : > { %v424_v50 = vpack.c.bf16 %v10072_v45, %v376_v44  ;;  %v9110_v44 = vld [vmem:[#allocation5 + $0x270] ss:$8 sps:$4 sm:$0xff]  }
  0xba   : > { %705 = vmatpush1.bf16.msra.mxu0 %v9054_v46  ;;  %v10076_v46 = vsel %vm1512_vm0, %v1555_v36, %v10065_v40  ;;  %v9112_v36 = vld [vmem:[#allocation5 + $0x274] ss:$8 sps:$4 sm:$0xff]  }
  0xbb   : > { %1051 = vmatpush1.bf16.msra.mxu1 %v9055_v47  ;;  %706 = vmatprep.subr.bf16.mxu0 %v9056_v52  ;;  %v9080_v47 = vld [vmem:[#allocation7 + $0x40] sm:$0xff]   ;;  %v9085_v52 = vld [vmem:[#allocation7 + $0x48] sm:$0xff]  }
  0xbc   : > { %1052 = vmatprep.subr.bf16.mxu1 %v9058_v53  ;;  %v9082_v53 = vld [vmem:[#allocation5 + $0x200] ss:$8 sps:$4 sm:$0xff]  }
  0xbe   : > { %707 = vmatpush1.bf16.msra.mxu0 %v9060_v58  ;;  %v395_v58 = vld [vmem:[%s10008_s24 + $0x98] sm:$0xff] }
  0xbf   : > { %1053 = vmatpush1.bf16.msra.mxu1 %v9061_v59  ;;  %708 = vmatprep.subr.bf16.mxu0 %v9062_v60  ;;  %v9093_v59 = vld [vmem:[#allocation7 + $0x50] sm:$0xff]   ;;  %v10084_v61 = vpack.c.bf16 %v395_v58, %v393_v57  ;;  %v409_v57 = vld [vmem:[%s10008_s24 + $0x108] sm:$0xff]  ;;  %v411_v58 = vld [vmem:[%s10008_s24 + $0x118] sm:$0xff] }
  0xc0   : > { %1054 = vmatprep.subr.bf16.mxu1 %v9064_v0  ;;  %v9087_v60 = vld [vmem:[#allocation5 + $0x210] ss:$8 sps:$4 sm:$0xff]  }
  0xc1   : > { %v9094_v0 = vld [vmem:[#allocation7 + $0x10] sm:$0xff]  }
  0xc2   : > { %709 = vmatpush1.bf16.msra.mxu0 %v9066_v9  ;;  %v9095_v9 = vld [vmem:[#allocation5 + $0x230] ss:$8 sps:$4 sm:$0xff]  }
  0xc3   : > { %1055 = vmatpush1.bf16.msra.mxu1 %v9067_v10  ;;  %710 = vmatprep.subr.bf16.mxu0 %v9068_v15  ;;  %v9109_v10 = vld [vmem:[#allocation7 + $0x60] sm:$0xff]  }
  0xc4   : > { %1056 = vmatprep.subr.bf16.mxu1 %v9070_v21  ;;  %v9098_v15 = vld [vmem:[#allocation5 + $0x240] ss:$8 sps:$4 sm:$0xff]   ;;  %v9103_v21 = vld [vmem:[#allocation5 + $0x250] ss:$8 sps:$4 sm:$0xff]  }
  0xc6   : > { %711 = vmatpush1.bf16.msra.mxu0 %v9072_v29  ;;  %v9129_v29 = vld [vmem:[#allocation7 + $0x30] sm:$0xff]  }
  0xc7   : > { %1057 = vmatpush1.bf16.msra.mxu1 %v9073_v30  ;;  %712 = vmatprep.subr.bf16.mxu0 %v9074_v33  ;;  %v400_v30 = vld [vmem:[%s10008_s24 + $0xc0] sm:$0xff] }
  0xc8   : > { %1058 = vmatprep.subr.bf16.mxu1 %v9076_v37  ;;  %v9106_v33 = vld [vmem:[#allocation5 + $0x260] ss:$8 sps:$4 sm:$0xff]   ;;  %v9136_v37 = vld [vmem:[#allocation7 + $0x78] sm:$0xff]  }
  0xca   : > { %713 = vmatpush1.bf16.msra.mxu0 %v9078_v41  ;;  %v407_v41 = vld [vmem:[%s10008_s24 + $0xf8] sm:$0xff] }
  0xcb   : > { %1059 = vmatpush1.bf16.msra.mxu1 %v9079_v43  ;;  %8560 = vmatprep.subr.bf16.mxu0 %v9080_v47  ;;  %v9137_v43 = vld [vmem:[#allocation7 + $0x38] sm:$0xff]   ;;  %v10118_v47 = vpack.c.bf16 %v402_v32, %v400_v30 }
  0xcc   : > { %1972 = vmatprep.subr.bf16.mxu1 %v9084_v48  ;;  %v10120_v48 = vpack.c.bf16 %v407_v41, %v405_v38  ;;  %v418_v38 = vld [vmem:[%s10008_s24 + $0x150] sm:$0xff] }
  0xcd   : > { %715 = vmatmul.mubr.bf16.vlgmr.msra.gmra.mrb[0].mxu0 %v424_v50  ;;  %v9146_v50 = vld [vmem:[#allocation5 + $0x304] ss:$8 sps:$4 sm:$0xff]  }
  0xce   : > { %1061 = vmatmul.mubr.bf16.vlgmr.msra.gmra.mrb[0].mxu1 %v10025_v1  ;;  %8561 = vmatpush3.bf16.msra.mxu0 %v9081_v51  ;;  %v9116_v51 = vld [vmem:[#allocation5 + $0x284] ss:$8 sps:$4 sm:$0xff]  }
  0xcf   : > { %722 = vmatprep.mubr.bf16.mxu0 %v10027_v2  ;;  %1068 = vmatprep.mubr.bf16.mxu1 %v10041_v18  ;;  %v392_v2 = vld [vmem:[%s10008_s24 + $0x80] sm:$0xff] }
  0xd0   : > { %8562 = vmatprep.subr.bf16.mxu0 %v9085_v52  ;;  %1973 = vmatpush1.bf16.msra.mxu1 %v9082_v53  ;;  %v10094_v11 = vpack.c.bf16 %v394_v3, %v392_v2  ;;  %v9114_v52 = vld [vmem:[#allocation5 + $0x280] ss:$8 sps:$4 sm:$0xff]   ;;  %v9119_v53 = vld [vmem:[#allocation5 + $0x294] ss:$8 sps:$4 sm:$0xff]  }
  0xd1   : > { %1974 = vmatprep.subr.bf16.mxu1 %v9089_v56  ;;  %v406_v56 = vld [vmem:[%s10008_s24 + $0xf0] sm:$0xff]  ;;  %v9122_v2 = vld [vmem:[#allocation5 + $0x2a0] ss:$8 sps:$4 sm:$0xff]  }
  0xd2   : > { %8563 = vmatpush3.bf16.msra.mxu0 %v9086_v54  ;;  %v404_v54 = vld [vmem:[%s10008_s24 + $0xe0] sm:$0xff]  ;;  %v9127_v3 = vld [vmem:[#allocation5 + $0x2b4] ss:$8 sps:$4 sm:$0xff]  }
  0xd3   : > { %8564 = vmatprep.subr.bf16.mxu0 %v9093_v59  ;;  %v9117_v59 = vld [vmem:[#allocation5 + $0x290] ss:$8 sps:$4 sm:$0xff]  }
  0xd4   : > { %1975 = vmatpush1.bf16.msra.mxu1 %v9087_v60  ;;  %v10130_v60 = vpack.c.bf16 %v406_v56, %v404_v54 }
  0xd5   : > { %723 = vmatmul.mubr.bf16.gmra.mrb[4].mxu0 %v10039_v16  ;;  %1976 = vmatprep.subr.bf16.mxu1 %v9092_v63  ;;  %v9120_v16 = vld [vmem:[#allocation7 + $0x68] sm:$0xff]  }
  0xd6   : > { %1069 = vmatmul.mubr.bf16.gmra.mrb[4].mxu1 %v10046_v22  ;;  %732 = vmatprep.mubr.bf16.mxu0 %v10017_v55  ;;  %v9113_v55 = vld [vmem:[#allocation7 + $0x20] sm:$0xff]  }
  0xd7   : > { %1078 = vmatprep.mubr.bf16.mxu1 %v10084_v61  ;;  %8565 = vmatpush3.bf16.msra.mxu0 %v9094_v0  ;;  %v9124_v63 = vld [vmem:[#allocation5 + $0x2a4] ss:$8 sps:$4 sm:$0xff]  }
  0xd8   : > { %1977 = vmatpush1.bf16.msra.mxu1 %v9090_v62  ;;  %8566 = vmatprep.subr.bf16.mxu0 %v9101_v4  ;;  %v10132_v62 = vpack.c.bf16 %v411_v58, %v409_v57  ;;  %v408_v0 = vld [vmem:[%s10008_s24 + $0x100] sm:$0xff]  ;;  %v410_v4 = vld [vmem:[%s10008_s24 + $0x110] sm:$0xff] }
  0xd9   : > { %1978 = vmatprep.subr.bf16.mxu1 %v9097_v5  ;;  %v9125_v5 = vld [vmem:[#allocation5 + $0x2b0] ss:$8 sps:$4 sm:$0xff]   ;;  %v9144_v57 = vld [vmem:[#allocation5 + $0x300] ss:$8 sps:$4 sm:$0xff]   ;;  %v9149_v58 = vld [vmem:[#allocation5 + $0x314] ss:$8 sps:$4 sm:$0xff]  }
  0xdb   : > { %8567 = vmatpush3.bf16.msra.mxu0 %v9102_v8  ;;  %v1437_v8 = vld [vmem:[%s10008_s24 + $0x8] sm:$0xfe] }
  0xdc   : > { %1979 = vmatpush1.bf16.msra.mxu1 %v9095_v9  ;;  %8568 = vmatprep.subr.bf16.mxu0 %v9109_v10  ;;  %v10143_v9 = vpack.c.bf16 %v410_v4, %v408_v0  ;;  %v10145_v10 = vpack.c.bf16 %v415_v7, %v413_v6  ;;  %v9152_v0 = vld [vmem:[#allocation5 + $0x324] ss:$8 sps:$4 sm:$0xff]   ;;  %v1577_v4 = vshrl.u32 %v10041_v18, 16  ;;  %v9187_v6 = vld [vmem:[#allocation7 + $0xd0] sm:$0xff]  }
  0xdd   : > { %733 = vmatmul.mubr.bf16.gmra.mrb[8].mxu0 %v10025_v1  ;;  %1980 = vmatprep.subr.bf16.mxu1 %v9100_v13  ;;  %v10106_v1 = vpack.c.bf16 %v398_v17, %v396_v14  ;;  %v9132_v13 = vld [vmem:[#allocation5 + $0x2c4] ss:$8 sps:$4 sm:$0xff]   ;;  %v9135_v17 = vld [vmem:[#allocation5 + $0x2d4] ss:$8 sps:$4 sm:$0xff]  }
  0xde   : > { %1079 = vmatmul.mubr.bf16.gmra.mrb[8].mxu1 %v10094_v11  ;;  %742 = vmatprep.mubr.bf16.mxu0 %v10041_v18  ;;  %v412_v14 = vld [vmem:[%s10008_s24 + $0x120] sm:$0xff]  ;;  %v9188_v7 = vld [vmem:[#allocation7 + $0x90] sm:$0xff]   ;;  %v1579_v18 = vor.u32 %v1577_v4, %v10058_v35  ;;  %v9193_v35 = vld [vmem:[#allocation7 + $0x98] sm:$0xff]  }
  0xdf   : > { %1088 = vmatprep.mubr.bf16.mxu1 %v10096_v12  ;;  %8569 = vmatpush3.bf16.msra.mxu0 %v9113_v55  ;;  %v1487_v55 = vpack.c.bf16 %v10012_v49, %v1437_v8  ;;  %v9133_v49 = vld [vmem:[#allocation5 + $0x2d0] ss:$8 sps:$4 sm:$0xff]  }
  0xe0   : > { %1981 = vmatpush1.bf16.msra.mxu1 %v9098_v15  ;;  %8570 = vmatprep.subr.bf16.mxu0 %v9120_v16  ;;  %v414_v15 = vld [vmem:[%s10008_s24 + $0x130] sm:$0xff]  ;;  %v9130_v16 = vld [vmem:[#allocation5 + $0x2c0] ss:$8 sps:$4 sm:$0xff]   ;;  %v9192_v8 = vld [vmem:[#allocation7 + $0xd8] sm:$0xff]  }
  0xe1   : > { %1982 = vmatprep.subr.bf16.mxu1 %v9105_v20  ;;  %v417_v20 = vld [vmem:[%s10008_s24 + $0x148] sm:$0xff]  ;;  %v1528_v24 = vshll.u32 %v1487_v55, 16  ;;  %v1526_v30 = vshrl.u32 %v1487_v55, 16  ;;  %v9209_v4 = vld [vmem:[#allocation7 + $0xf8] sm:$0xff]  }
  0xe3   : > { %8571 = vmatpush3.bf16.msra.mxu0 %v9121_v25  ;;  %v10157_v25 = vpack.c.bf16 %v414_v15, %v412_v14  ;;  %v1530_v32 = vrot.slane %v1528_v24, 1  ;;  %v9156_v14 = vld [vmem:[#allocation5 + $0x340] ss:$8 sps:$4 sm:$0xff]   ;;  %v1569_v15 = vshrl.u32 %v10046_v22, 16 }
  0xe4   : > { %1983 = vmatpush1.bf16.msra.mxu1 %v9103_v21  ;;  %8572 = vmatprep.subr.bf16.mxu0 %v9128_v26  ;;  %v1436_v21 = vld [vmem:[%s10008_s24] sm:$0xfe]  ;;  %v10159_v26 = vpack.c.bf16 %v419_v23, %v417_v20  ;;  %v1593_v20 = vshrl.u32 %v10084_v61, 16 }
  0xe5   : > { %743 = vmatmul.mubr.bf16.gmra.mrb[12].mxu0 %v10046_v22  ;;  %1984 = vmatprep.subr.bf16.mxu1 %v9108_v28  ;;  %v9140_v28 = vld [vmem:[#allocation5 + $0x2e4] ss:$8 sps:$4 sm:$0xff]   ;;  %v9159_v22 = vld [vmem:[#allocation5 + $0x350] ss:$8 sps:$4 sm:$0xff]   ;;  %v1571_v24 = vor.u32 %v1569_v15, %v10065_v40  ;;  %v9167_v40 = vld [vmem:[#allocation5 + $0x374] ss:$8 sps:$4 sm:$0xff]  }
  0xe6   : > { %1089 = vmatmul.mubr.bf16.gmra.mrb[12].mxu1 %v10106_v1  ;;  %752 = vmatprep.mubr.bf16.mxu0 %v10084_v61  ;;  %v9197_v23 = vld [vmem:[#allocation7 + $0xe0] sm:$0xff]   ;;  %v9181_v15 = vld [vmem:[#allocation5 + $0x3b4] ss:$8 sps:$4 sm:$0xff]  }
  0xe7   : > { %1098 = vmatprep.mubr.bf16.mxu1 %v10108_v27  ;;  %8573 = vmatpush3.bf16.msra.mxu0 %v9129_v29  ;;  %v1486_v29 = vpack.c.bf16 %v10072_v45, %v1436_v21  ;;  %v9141_v45 = vld [vmem:[#allocation5 + $0x2f0] ss:$8 sps:$4 sm:$0xff]   ;;  %v1597_v21 = vshll.u32 %v10096_v12, 16 }
  0xe8   : > { %1985 = vmatpush1.bf16.msra.mxu1 %v9106_v33  ;;  %8574 = vmatprep.subr.bf16.mxu0 %v9136_v37  ;;  %v9138_v33 = vld [vmem:[#allocation5 + $0x2e0] ss:$8 sps:$4 sm:$0xff]  }
  0xe9   : > { %1986 = vmatprep.subr.bf16.mxu1 %v9112_v36  ;;  %v9143_v36 = vld [vmem:[#allocation5 + $0x2f4] ss:$8 sps:$4 sm:$0xff]   ;;  %v416_v37 = vld [vmem:[%s10008_s24 + $0x140] sm:$0xff]  ;;  %v1516_v41 = vshll.u32 %v1486_v29, 16 }
  0xeb   : > { %8575 = vmatpush3.bf16.msra.mxu0 %v9137_v43  ;;  %v1531_v43 = vor.u32 %v1530_v32, %v1526_v30  ;;  %v9198_v30 = vld [vmem:[#allocation7 + $0xa0] sm:$0xff]  }
  0xec   : > { %1987 = vmatpush1.bf16.msra.mxu1 %v9110_v44  ;;  %2334 = vmatprep.subr.bf16.mxu0 %v9146_v50  ;;  %v10168_v44 = vpack.c.bf16 %v418_v38, %v416_v37  ;;  %v1514_v50 = vshrl.u32 %v1486_v29, 16  ;;  %v1599_v29 = vrot.slane %v1597_v21, 1  ;;  %v1589_v37 = vshll.u32 %v10106_v1, 16  ;;  %v9216_v21 = vld [vmem:[#allocation5 + $0x504] ss:$8 sps:$4 sm:$0xff]  }
  0xed   : > { %753 = vmatmul.mubr.bf16.gmra.mrb[16].mxu0 %v10094_v11  ;;  %1988 = vmatprep.subr.bf16.mxu1 %v9116_v51  ;;  %v1518_v51 = vrot.slane %v1516_v41, 1  ;;  %v1609_v41 = vshrl.u32 %v10096_v12, 16 }
  0xee   : > { %1099 = vmatmul.mubr.bf16.gmra.mrb[16].mxu1 %v10118_v47  ;;  %762 = vmatprep.mubr.bf16.mxu0 %v10096_v12 }
  0xef   : > { %1108 = vmatprep.mubr.bf16.mxu1 %v10120_v48  ;;  %v1519_v54 = vor.u32 %v1518_v51, %v1514_v50  ;;  %v9203_v50 = vld [vmem:[#allocation7 + $0xa8] sm:$0xff]  }
  0xf0   : > { %1989 = vmatpush1.bf16.msra.mxu1 %v9114_v52  ;;  %v1536_v52 = vsel %vm1512_vm0, %v1531_v43, %v10043_v19  ;;  %v9182_v19 = vld [vmem:[#allocation7 + $0xc8] sm:$0xff]   ;;  %v1613_v43 = vshll.u32 %v10108_v27, 16 }
  0xf1   : > { %1990 = vmatprep.subr.bf16.mxu1 %v9119_v53  ;;  %v9177_v53 = vld [vmem:[#allocation7 + $0xc0] sm:$0xff]   ;;  %v1524_v56 = vsel %vm1512_vm0, %v1519_v54, %v10052_v31  ;;  %v1611_v54 = vor.u32 %v1609_v41, %v1599_v29 }
  0xf2   : > { %v9150_v31 = vld [vmem:[#allocation5 + $0x320] ss:$8 sps:$4 sm:$0xff]  }
  0xf4   : > { %1991 = vmatpush1.bf16.msra.mxu1 %v9117_v59  ;;  %v9178_v59 = vld [vmem:[#allocation7 + $0x80] sm:$0xff]  }
  0xf5   : > { %763 = vmatmul.mubr.bf16.gmra.mrb[20].mxu0 %v10106_v1  ;;  %1992 = vmatprep.subr.bf16.mxu1 %v9124_v63  ;;  %v9147_v63 = vld [vmem:[#allocation5 + $0x310] ss:$8 sps:$4 sm:$0xff]  }
  0xf6   : > { %1109 = vmatmul.mubr.bf16.gmra.mrb[20].mxu1 %v10130_v60  ;;  %772 = vmatprep.mubr.bf16.mxu0 %v10108_v27 }
  0xf7   : > { %1118 = vmatprep.mubr.bf16.mxu1 %v10132_v62 }
  0xf8   : > { %1993 = vmatpush1.bf16.msra.mxu1 %v9122_v2  ;;  %v9183_v2 = vld [vmem:[#allocation7 + $0x88] sm:$0xff]  }
  0xf9   : > { %1994 = vmatprep.subr.bf16.mxu1 %v9127_v3  ;;  %v9155_v3 = vld [vmem:[#allocation5 + $0x334] ss:$8 sps:$4 sm:$0xff]  }
  0xfc   : > { %1995 = vmatpush1.bf16.msra.mxu1 %v9125_v5  ;;  %v1581_v5 = vshll.u32 %v10084_v61, 16 }
  0xfd   : > { %773 = vmatmul.mubr.bf16.gmra.mrb[24].mxu0 %v10118_v47  ;;  %1996 = vmatprep.subr.bf16.mxu1 %v9132_v13  ;;  %v9158_v13 = vld [vmem:[#allocation5 + $0x344] ss:$8 sps:$4 sm:$0xff]  }
  0xfe   : > { %1119 = vmatmul.mubr.bf16.gmra.mrb[24].mxu1 %v10143_v9  ;;  %782 = vmatprep.mubr.bf16.mxu0 %v10120_v48  ;;  %v1583_v55 = vrot.slane %v1581_v5, 1 }
  0xff   : > { %1128 = vmatprep.mubr.bf16.mxu1 %v10145_v10 }
 0x100   : > { %1997 = vmatpush1.bf16.msra.mxu1 %v9130_v16  ;;  %v9161_v16 = vld [vmem:[#allocation5 + $0x354] ss:$8 sps:$4 sm:$0xff]  }
 0x101   : > { %1998 = vmatprep.subr.bf16.mxu1 %v9135_v17  ;;  %v10190_v17 = vsel %vm1512_vm0, %v1579_v18, %v1583_v55  ;;  %v9174_v18 = vld [vmem:[#allocation5 + $0x3a0] ss:$8 sps:$4 sm:$0xff]  }
 0x104   : > { %1999 = vmatpush1.bf16.msra.mxu1 %v9133_v49 }
 0x105   : > { %783 = vmatmul.mubr.bf16.gmra.mrb[28].mxu0 %v10130_v60  ;;  %2000 = vmatprep.subr.bf16.mxu1 %v9140_v28  ;;  %v9164_v28 = vld [vmem:[#allocation5 + $0x364] ss:$8 sps:$4 sm:$0xff]  }
 0x106   : > { %1129 = vmatmul.mubr.bf16.gmra.mrb[28].mxu1 %v10157_v25  ;;  %792 = vmatprep.mubr.bf16.mxu0 %v10132_v62 }
 0x107   : > { %1138 = vmatprep.mubr.bf16.mxu1 %v10159_v26 }
 0x108   : > { %2001 = vmatpush1.bf16.msra.mxu1 %v9138_v33  ;;  %v9162_v33 = vld [vmem:[#allocation5 + $0x360] ss:$8 sps:$4 sm:$0xff]  }
 0x109   : > { %2002 = vmatprep.subr.bf16.mxu1 %v9143_v36  ;;  %v1585_v36 = vshrl.u32 %v10094_v11, 16 }
 0x10c   : > { %2003 = vmatpush1.bf16.msra.mxu1 %v9141_v45  ;;  %v9202_v45 = vld [vmem:[#allocation7 + $0xe8] sm:$0xff]  }
 0x10d   : > { %793 = vmatmul.mubr.bf16.gmra.mrb[32].mxu0 %v10143_v9  ;;  %8624 = vmatprep.subr.bf16.mxu1 %v9177_v53  ;;  %v9204_v53 = vld [vmem:[#allocation7 + $0xf0] sm:$0xff]  }
 0x10e   : > { %1139 = vmatmul.mubr.bf16.gmra.mrb[32].mxu1 %v10168_v44  ;;  %1355 = vmatprep.mubr.bf16.mxu0 %v10084_v61  ;;  %v1595_v61 = vor.u32 %v1593_v20, %v1583_v55  ;;  %v1617_v55 = vshrl.u32 %v10118_v47, 16  ;;  %v1645_v20 = vshll.u32 %v10132_v62, 16 }
 0x10f   : > { %2004 = vmatprep.mubr.bf16.mxu1 %v1536_v52  ;;  %v1591_v52 = vrot.slane %v1589_v37, 1 }
 0x110   : > { %v10205_v38 = vsel %vm1512_vm0, %v1595_v61, %v1599_v29  ;;  %v1633_v61 = vshrl.u32 %v10130_v60, 16  ;;  %v1637_v29 = vshll.u32 %v10143_v9, 16 }
 0x115   : > { %1356 = vmatmul.mubr.bf16.vlgmr.msra.gmra.mrb[36].mxu0 %v10094_v11 }
 0x116   : > { %2005 = vmatmul.mubr.bf16.vlgmr.msra.gmra.mrb[36].mxu1 %v1524_v56  ;;  %2335 = vmatpush1.bf16.msra.mxu0 %v9144_v57  ;;  %v1615_v56 = vrot.slane %v1613_v43, 1  ;;  %v422_v43 = vld [vmem:[%s10008_s24 + $0x170] sm:$0xff] }
 0x117   : > { %1363 = vmatprep.mubr.bf16.mxu0 %v10096_v12  ;;  %2336 = vmatprep.subr.bf16.mxu0 %v9149_v58  ;;  %v9170_v12 = vld [vmem:[#allocation5 + $0x384] ss:$8 sps:$4 sm:$0xff]   ;;  %v9168_v58 = vld [vmem:[#allocation5 + $0x380] ss:$8 sps:$4 sm:$0xff]  }
 0x118   : > { %2012 = vmatprep.mubr.bf16.mxu1 %v10056_v34  ;;  %8625 = vmatpush3.bf16.msra.mxu1 %v9178_v59  ;;  %v9153_v34 = vld [vmem:[#allocation5 + $0x330] ss:$8 sps:$4 sm:$0xff]   ;;  %v1601_v59 = vshrl.u32 %v10106_v1, 16 }
 0x119   : > { %8626 = vmatprep.subr.bf16.mxu1 %v9182_v19  ;;  %v1605_v19 = vshll.u32 %v10118_v47, 16 }
 0x11a   : > { %2337 = vmatpush1.bf16.msra.mxu0 %v9147_v63  ;;  %v9173_v63 = vld [vmem:[#allocation5 + $0x394] ss:$8 sps:$4 sm:$0xff]   ;;  %v1603_v5 = vor.u32 %v1601_v59, %v1591_v52 }
 0x11b   : > { %2338 = vmatprep.subr.bf16.mxu0 %v9152_v0  ;;  %v10219_v0 = vsel %vm1512_vm0, %v1611_v54, %v1615_v56  ;;  %v9194_v54 = vld [vmem:[#allocation5 + $0x3e0] ss:$8 sps:$4 sm:$0xff]  }
 0x11c   : > { %8627 = vmatpush3.bf16.msra.mxu1 %v9183_v2  ;;  %v1625_v2 = vshrl.u32 %v10108_v27, 16 }
 0x11d   : > { %1364 = vmatmul.mubr.bf16.gmra.mrb[40].mxu0 %v10106_v1  ;;  %8628 = vmatprep.subr.bf16.mxu1 %v9187_v6  ;;  %v9171_v1 = vld [vmem:[#allocation5 + $0x390] ss:$8 sps:$4 sm:$0xff]   ;;  %v1607_v6 = vrot.slane %v1605_v19, 1 }
 0x11e   : > { %2013 = vmatmul.mubr.bf16.gmra.mrb[40].mxu1 %v10068_v42  ;;  %2339 = vmatpush1.bf16.msra.mxu0 %v9150_v31  ;;  %v1573_v42 = vshll.u32 %v10094_v11, 16  ;;  %v9165_v11 = vld [vmem:[#allocation5 + $0x370] ss:$8 sps:$4 sm:$0xff]   ;;  %v1629_v31 = vshll.u32 %v10120_v48, 16 }
 0x11f   : > { %1371 = vmatprep.mubr.bf16.mxu0 %v10108_v27  ;;  %2340 = vmatprep.subr.bf16.mxu0 %v9155_v3  ;;  %v9208_v3 = vld [vmem:[#allocation7 + $0xb0] sm:$0xff]  }
 0x120   : > { %2022 = vmatprep.mubr.bf16.mxu1 %v10063_v39  ;;  %8629 = vmatpush3.bf16.msra.mxu1 %v9188_v7  ;;  %v1575_v49 = vrot.slane %v1573_v42, 1  ;;  %v9176_v7 = vld [vmem:[#allocation5 + $0x3a4] ss:$8 sps:$4 sm:$0xff]   ;;  %v1631_v27 = vrot.slane %v1629_v31, 1 }
 0x121   : > { %8630 = vmatprep.subr.bf16.mxu1 %v9192_v8  ;;  %v9210_v8 = vld [vmem:[#allocation7 + $0xb8] sm:$0xff]  }
 0x122   : > { %2341 = vmatpush1.bf16.msra.mxu0 %v9153_v34  ;;  %v10200_v32 = vsel %vm1512_vm0, %v1571_v24, %v1575_v49  ;;  %v1587_v51 = vor.u32 %v1585_v36, %v1575_v49  ;;  %v1627_v34 = vor.u32 %v1625_v2, %v1615_v56  ;;  %v421_v24 = vld [vmem:[%s10008_s24 + $0x168] sm:$0xff]  ;;  %v1649_v56 = vshrl.u32 %v10143_v9, 16 }
 0x123   : > { %2342 = vmatprep.subr.bf16.mxu0 %v9158_v13  ;;  %v10228_v13 = vsel %vm1512_vm0, %v1603_v5, %v1607_v6  ;;  %v9184_v36 = vld [vmem:[#allocation5 + $0x3c0] ss:$8 sps:$4 sm:$0xff]  }
 0x124   : > { %8631 = vmatpush3.bf16.msra.mxu1 %v9193_v35  ;;  %v10214_v57 = vsel %vm1512_vm0, %v1587_v51, %v1591_v52  ;;  %v10233_v42 = vsel %vm1512_vm0, %v1627_v34, %v1631_v27  ;;  %v1619_v35 = vor.u32 %v1617_v55, %v1607_v6  ;;  %v9196_v51 = vld [vmem:[#allocation5 + $0x3e4] ss:$8 sps:$4 sm:$0xff]   ;;  %v9214_v5 = vld [vmem:[#allocation5 + $0x500] ss:$8 sps:$4 sm:$0xff]   ;;  %v9225_v34 = vld [vmem:[#allocation5 + $0x434] ss:$8 sps:$4 sm:$0xff]  }
 0x125   : > { %1372 = vmatmul.mubr.bf16.gmra.mrb[44].mxu0 %v10118_v47  ;;  %8632 = vmatprep.subr.bf16.mxu1 %v9197_v23  ;;  %v9179_v47 = vld [vmem:[#allocation5 + $0x3b0] ss:$8 sps:$4 sm:$0xff]   ;;  %v9217_v6 = vld [vmem:[#allocation5 + $0x420] ss:$8 sps:$4 sm:$0xff]  }
 0x126   : > { %2023 = vmatmul.mubr.bf16.gmra.mrb[44].mxu1 %v10076_v46  ;;  %2343 = vmatpush1.bf16.msra.mxu0 %v9156_v14  ;;  %v1621_v14 = vshll.u32 %v10130_v60, 16  ;;  %v2748_v55 = vld [vmem:[%s10008_s24 + $0x28] sm:$0xff] }
 0x127   : > { %1379 = vmatprep.mubr.bf16.mxu0 %v10120_v48  ;;  %2344 = vmatprep.subr.bf16.mxu0 %v9161_v16  ;;  %v1641_v16 = vshrl.u32 %v10120_v48, 16  ;;  %v423_v48 = vld [vmem:[%s10008_s24 + $0x178] sm:$0xff] }
 0x128   : > { %2032 = vmatprep.mubr.bf16.mxu1 %v10190_v17  ;;  %8633 = vmatpush3.bf16.msra.mxu1 %v9198_v30  ;;  %v1623_v23 = vrot.slane %v1621_v14, 1  ;;  %v1657_v30 = vshrl.u32 %v10132_v62, 16  ;;  %v10250_v37 = vpack.c.bf16 %v423_v48, %v421_v24  ;;  %v2750_v14 = vld [vmem:[%s10008_s24 + $0x38] sm:$0xff]  ;;  %v2753_v24 = vld [vmem:[%s10008_s24 + $0x50] sm:$0xff] }
 0x129   : > { %8634 = vmatprep.subr.bf16.mxu1 %v9202_v45  ;;  %v1643_v49 = vor.u32 %v1641_v16, %v1631_v27  ;;  %v9228_v27 = vld [vmem:[#allocation5 + $0x524] ss:$8 sps:$4 sm:$0xff]   ;;  %v9237_v16 = vld [vmem:[#allocation5 + $0x454] ss:$8 sps:$4 sm:$0xff]   ;;  %v9235_v48 = vld [vmem:[#allocation5 + $0x450] ss:$8 sps:$4 sm:$0xff]  }
 0x12a   : > { %2345 = vmatpush1.bf16.msra.mxu0 %v9159_v22  ;;  %v9186_v22 = vld [vmem:[#allocation5 + $0x3c4] ss:$8 sps:$4 sm:$0xff]   ;;  %v1635_v45 = vor.u32 %v1633_v61, %v1623_v23 }
 0x12b   : > { %2346 = vmatprep.subr.bf16.mxu0 %v9164_v28  ;;  %v1647_v28 = vrot.slane %v1645_v20, 1  ;;  %v2752_v20 = vld [vmem:[%s10008_s24 + $0x48] sm:$0xff] }
 0x12c   : > { %8635 = vmatpush3.bf16.msra.mxu1 %v9203_v50  ;;  %v1639_v50 = vrot.slane %v1637_v29, 1  ;;  %v9240_v61 = vld [vmem:[#allocation5 + $0x544] ss:$8 sps:$4 sm:$0xff]  }
 0x12d   : > { %1380 = vmatmul.mubr.bf16.gmra.mrb[48].mxu0 %v10130_v60  ;;  %8636 = vmatprep.subr.bf16.mxu1 %v9204_v53  ;;  %v10253_v41 = vsel %vm1512_vm0, %v1643_v49, %v1647_v28  ;;  %v9189_v60 = vld [vmem:[#allocation5 + $0x3d0] ss:$8 sps:$4 sm:$0xff]   ;;  %v1659_v52 = vor.u32 %v1657_v30, %v1647_v28  ;;  %v9243_v29 = vld [vmem:[#allocation5 + $0x464] ss:$8 sps:$4 sm:$0xff]  }
 0x12e   : > { %2033 = vmatmul.mubr.bf16.gmra.mrb[48].mxu1 %v10200_v32  ;;  %2347 = vmatpush1.bf16.msra.mxu0 %v9162_v33  ;;  %v10248_v33 = vsel %vm1512_vm0, %v1619_v35, %v1623_v23  ;;  %v1651_v2 = vor.u32 %v1649_v56, %v1639_v50  ;;  %v2749_v35 = vld [vmem:[%s10008_s24 + $0x30] sm:$0xff] }
 0x12f   : > { %1387 = vmatprep.mubr.bf16.mxu0 %v10132_v62  ;;  %2348 = vmatprep.subr.bf16.mxu0 %v9167_v40  ;;  %v9191_v40 = vld [vmem:[#allocation5 + $0x3d4] ss:$8 sps:$4 sm:$0xff]   ;;  %v420_v62 = vld [vmem:[%s10008_s24 + $0x160] sm:$0xff]  ;;  %v9232_v23 = vld [vmem:[#allocation5 + $0x530] ss:$8 sps:$4 sm:$0xff]  }
 0x130   : > { %2042 = vmatprep.mubr.bf16.mxu1 %v10205_v38  ;;  %8637 = vmatpush3.bf16.msra.mxu1 %v9208_v3  ;;  %v10263_v53 = vpack.c.bf16 %v422_v43, %v420_v62  ;;  %v9205_v3 = vld [vmem:[#allocation5 + $0x400] ss:$8 sps:$4 sm:$0xff]  }
 0x131   : > { %8638 = vmatprep.subr.bf16.mxu1 %v9209_v4  ;;  %v9213_v4 = vld [vmem:[#allocation5 + $0x414] ss:$8 sps:$4 sm:$0xff]  }
 0x132   : > { %2349 = vmatpush1.bf16.msra.mxu0 %v9165_v11 }
 0x133   : > { %2350 = vmatprep.subr.bf16.mxu0 %v9170_v12  ;;  %v10267_v12 = vsel %vm1512_vm0, %v1635_v45, %v1639_v50  ;;  %v2757_v45 = vld [vmem:[%s10008_s24 + $0x70] sm:$0xff] }
 0x134   : > { %8639 = vmatpush3.bf16.msra.mxu1 %v9210_v8  ;;  %v9231_v8 = vld [vmem:[#allocation5 + $0x444] ss:$8 sps:$4 sm:$0xff]  }
 0x135   : > { %1388 = vmatmul.mubr.bf16.gmra.mrb[52].mxu0 %v10143_v9  ;;  %3517 = vmatprep.subr.bf16.mxu1 %v9216_v21  ;;  %v9207_v9 = vld [vmem:[#allocation5 + $0x404] ss:$8 sps:$4 sm:$0xff]   ;;  %v2754_v21 = vld [vmem:[%s10008_s24 + $0x58] sm:$0xff] }
 0x136   : > { %2043 = vmatmul.mubr.bf16.gmra.mrb[52].mxu1 %v10214_v57  ;;  %2351 = vmatpush1.bf16.msra.mxu0 %v9168_v58  ;;  %v9201_v58 = vld [vmem:[#allocation5 + $0x3f4] ss:$8 sps:$4 sm:$0xff]   ;;  %v10306_v30 = vpack.c.bf16 %v2754_v21, %v2752_v20  ;;  %v3927_v21 = vld [vmem:[%s10008_s24 + $0x8] sm:$0xf8] }
 0x137   : > { %1395 = vmatprep.mubr.bf16.mxu0 %v10145_v10  ;;  %2352 = vmatprep.subr.bf16.mxu0 %v9173_v63  ;;  %v9199_v63 = vld [vmem:[#allocation5 + $0x3f0] ss:$8 sps:$4 sm:$0xff]  }
 0x138   : > { %2052 = vmatprep.mubr.bf16.mxu1 %v10219_v0  ;;  %v4047_v62 = vshrl.u32 %v10306_v30, 16  ;;  %v4050_v43 = vshll.u32 %v10306_v30, 16 }
 0x13a   : > { %2353 = vmatpush1.bf16.msra.mxu0 %v9171_v1  ;;  %v9211_v1 = vld [vmem:[#allocation5 + $0x410] ss:$8 sps:$4 sm:$0xff]   ;;  %v4049_v56 = vrot.slane %v4047_v62, 1 }
 0x13b   : > { %2354 = vmatprep.subr.bf16.mxu0 %v9176_v7  ;;  %v9222_v7 = vld [vmem:[#allocation5 + $0x514] ss:$8 sps:$4 sm:$0xff]  }
 0x13d   : > { %1396 = vmatmul.mubr.bf16.gmra.mrb[56].mxu0 %v10157_v25 }
 0x13e   : > { %2053 = vmatmul.mubr.bf16.gmra.mrb[56].mxu1 %v10228_v13  ;;  %2355 = vmatpush1.bf16.msra.mxu0 %v9174_v18  ;;  %v9226_v18 = vld [vmem:[#allocation5 + $0x520] ss:$8 sps:$4 sm:$0xff]  }
 0x13f   : > { %1403 = vmatprep.mubr.bf16.mxu0 %v10159_v26  ;;  %2356 = vmatprep.subr.bf16.mxu0 %v9181_v15  ;;  %v1661_v26 = vshll.u32 %v10145_v10, 16  ;;  %v9234_v15 = vld [vmem:[#allocation5 + $0x534] ss:$8 sps:$4 sm:$0xff]  }
 0x140   : > { %2062 = vmatprep.mubr.bf16.mxu1 %v10233_v42 }
 0x141   : > { %v10260_v11 = vrot.slane %v1661_v26, 1 }
 0x142   : > { %2357 = vmatpush1.bf16.msra.mxu0 %v9179_v47  ;;  %v10296_v47 = vpack.c.bf16 %v2750_v14, %v2748_v55  ;;  %v9250_v55 = vld [vmem:[#allocation5 + $0x560] ss:$8 sps:$4 sm:$0xff]  }
 0x143   : > { %2358 = vmatprep.subr.bf16.mxu0 %v9186_v22  ;;  %v10272_v59 = vsel %vm1512_vm0, %v1659_v52, %v10260_v11  ;;  %v2751_v22 = vld [vmem:[%s10008_s24 + $0x40] sm:$0xff] }
 0x144   : > { %v4029_v49 = vshrl.u32 %v10296_v47, 16  ;;  %v4032_v28 = vshll.u32 %v10296_v47, 16  ;;  %v9253_v14 = vld [vmem:[#allocation5 + $0x480] ss:$8 sps:$4 sm:$0xff]  }
 0x145   : > { %1404 = vmatmul.mubr.bf16.gmra.mrb[60].mxu0 %v10168_v44  ;;  %v1653_v44 = vshll.u32 %v10157_v25, 16 }
 0x146   : > { %2063 = vmatmul.mubr.bf16.gmra.mrb[60].mxu1 %v10248_v33  ;;  %2359 = vmatpush1.bf16.msra.mxu0 %v9184_v36  ;;  %v9238_v36 = vld [vmem:[#allocation5 + $0x540] ss:$8 sps:$4 sm:$0xff]   ;;  %v4031_v50 = vrot.slane %v4029_v49, 1 }
 0x147   : > { %1411 = vmatprep.mubr.bf16.mxu0 %v10250_v37  ;;  %2360 = vmatprep.subr.bf16.mxu0 %v9191_v40  ;;  %v10276_v19 = vrot.slane %v1653_v44, 1  ;;  %v2755_v40 = vld [vmem:[%s10008_s24 + $0x60] sm:$0xff] }
 0x148   : > { %2072 = vmatprep.mubr.bf16.mxu1 %v10253_v41  ;;  %v9241_v44 = vld [vmem:[#allocation5 + $0x460] ss:$8 sps:$4 sm:$0xff]  }
 0x149   : > { %v10282_v31 = vsel %vm1512_vm0, %v1651_v2, %v10276_v19  ;;  %v9244_v2 = vld [vmem:[#allocation5 + $0x550] ss:$8 sps:$4 sm:$0xff]  }
 0x14a   : > { %2361 = vmatpush1.bf16.msra.mxu0 %v9189_v60 }
 0x14b   : > { %2362 = vmatprep.subr.bf16.mxu0 %v9196_v51  ;;  %v4034_v51 = vrot.slane %v4032_v28, 2 }
 0x14d   : > { %1412 = vmatmul.mubr.bf16.gmra.mrb[64].mxu0 %v10263_v53 }
 0x14e   : > { %2073 = vmatmul.mubr.bf16.gmra.mrb[64].mxu1 %v10267_v12  ;;  %2363 = vmatpush1.bf16.msra.mxu0 %v9194_v54  ;;  %v9246_v54 = vld [vmem:[#allocation5 + $0x554] ss:$8 sps:$4 sm:$0xff]  }
 0x14f   : > { %2082 = vmatprep.mubr.bf16.mxu1 %v10272_v59  ;;  %2364 = vmatprep.subr.bf16.mxu0 %v9201_v58  ;;  %v9249_v58 = vld [vmem:[#allocation5 + $0x474] ss:$8 sps:$4 sm:$0xff]  }
 0x150   : > { %2366 = vmatprep.mubr.bf16.mxu0 %v10063_v39  ;;  %v9219_v39 = vld [vmem:[#allocation5 + $0x424] ss:$8 sps:$4 sm:$0xff]  }
 0x152   : > { %2365 = vmatpush1.bf16.msra.mxu0 %v9199_v63  ;;  %v4052_v63 = vrot.slane %v4050_v43, 2 }
 0x153   : > { %3155 = vmatprep.subr.bf16.mxu0 %v9207_v9  ;;  %v9247_v9 = vld [vmem:[#allocation5 + $0x470] ss:$8 sps:$4 sm:$0xff]  }
 0x155   : > { %2367 = vmatmul.mubr.bf16.vlgmr.msra.gmra.mrb[68].mxu0 %v10076_v46  ;;  %v9220_v46 = vld [vmem:[#allocation5 + $0x510] ss:$8 sps:$4 sm:$0xff]  }
 0x156   : > { %2083 = vmatmul.mubr.bf16.gmra.mrb[68].mxu1 %v10282_v31  ;;  %3156 = vmatpush1.bf16.msra.mxu0 %v9205_v3  ;;  %v1477_v3 = vld [vmem:[%s10008_s24 + $0x148] sm:$0xff] }
 0x157   : > { %2374 = vmatprep.mubr.bf16.mxu0 %v10190_v17  ;;  %3157 = vmatprep.subr.bf16.mxu0 %v9213_v4  ;;  %v9223_v17 = vld [vmem:[#allocation5 + $0x430] ss:$8 sps:$4 sm:$0xff]  }
 0x158   : > { %2662 = vmatprep.mubr.bf16.mxu1 %v10205_v38  ;;  %v1479_v4 = vld [vmem:[%s10008_s24 + $0x158] sm:$0xff] }
 0x159   : > { %v10347_v20 = vpack.c.bf16 %v1479_v4, %v1477_v3  ;;  %v9259_v4 = vld [vmem:[#allocation5 + $0x580] ss:$8 sps:$4 sm:$0xff]  }
 0x15a   : > { %3158 = vmatpush1.bf16.msra.mxu0 %v9211_v1  ;;  %v10323_v1 = vpack.c.bf16 %v2757_v45, %v2755_v40  ;;  %v9264_v40 = vld [vmem:[#allocation5 + $0x494] ss:$8 sps:$4 sm:$0xff]  }
 0x15b   : > { %3159 = vmatprep.subr.bf16.mxu0 %v9219_v39 }
 0x15d   : > { %2375 = vmatmul.mubr.bf16.gmra.mrb[72].mxu0 %v10200_v32  ;;  %v9229_v32 = vld [vmem:[#allocation5 + $0x440] ss:$8 sps:$4 sm:$0xff]  }
 0x15e   : > { %2663 = vmatmul.mubr.bf16.vlgmr.msra.gmra.mrb[72].mxu1 %v10214_v57  ;;  %3160 = vmatpush1.bf16.msra.mxu0 %v9217_v6  ;;  %v10328_v6 = vor.u32 %v4034_v51, %v4031_v50  ;;  %v9261_v50 = vld [vmem:[#allocation5 + $0x584] ss:$8 sps:$4 sm:$0xff]   ;;  %v1673_v51 = vshrl.u32 %v10145_v10, 16 }
 0x15f   : > { %3518 = vmatpush1.bf16.msra.mxu1 %v9214_v5  ;;  %3161 = vmatprep.subr.bf16.mxu0 %v9225_v34 }
 0x160   : > { %3519 = vmatprep.subr.bf16.mxu1 %v9222_v7  ;;  %2384 = vmatprep.mubr.bf16.mxu0 %v10205_v38  ;;  %v2747_v38 = vld [vmem:[%s10008_s24 + $0x20] sm:$0xff] }
 0x161   : > { %2670 = vmatprep.mubr.bf16.mxu1 %v10219_v0  ;;  %v10308_v26 = vpack.c.bf16 %v2749_v35, %v2747_v38  ;;  %v3926_v38 = vld [vmem:[%s10008_s24] sm:$0xf8] }
 0x162   : > { %3162 = vmatpush1.bf16.msra.mxu0 %v9223_v17 }
 0x163   : > { %3520 = vmatpush1.bf16.msra.mxu1 %v9220_v46  ;;  %3163 = vmatprep.subr.bf16.mxu0 %v9231_v8  ;;  %v4012_v60 = vshrl.u32 %v10308_v26, 16  ;;  %v10330_v46 = vor.u32 %v4052_v63, %v4049_v56  ;;  %v9255_v8 = vld [vmem:[#allocation5 + $0x484] ss:$8 sps:$4 sm:$0xff]  }
 0x164   : > { %3521 = vmatprep.subr.bf16.mxu1 %v9228_v27  ;;  %v4056_v27 = vshrl.u32 %v10323_v1, 16 }
 0x165   : > { %2385 = vmatmul.mubr.bf16.gmra.mrb[76].mxu0 %v10214_v57  ;;  %v10311_v57 = vpack.c.bf16 %v2753_v24, %v2751_v22  ;;  %v4014_v7 = vrot.slane %v4012_v60, 1  ;;  %v1476_v22 = vld [vmem:[%s10008_s24 + $0x140] sm:$0xff]  ;;  %v1478_v24 = vld [vmem:[%s10008_s24 + $0x150] sm:$0xff] }
 0x166   : > { %2671 = vmatmul.mubr.bf16.gmra.mrb[76].mxu1 %v10228_v13  ;;  %3164 = vmatpush1.bf16.msra.mxu0 %v9229_v32  ;;  %v4059_v32 = vshll.u32 %v10323_v1, 16 }
 0x167   : > { %3522 = vmatpush1.bf16.msra.mxu1 %v9226_v18  ;;  %2394 = vmatprep.mubr.bf16.mxu0 %v10219_v0  ;;  %v4015_v0 = vshll.u32 %v10308_v26, 16  ;;  %v4038_v52 = vshrl.u32 %v10311_v57, 16  ;;  %v4041_v5 = vshll.u32 %v10311_v57, 16  ;;  %v10337_v18 = vsel %vm4002_vm1, %v10328_v6, %v10330_v46 }
 0x168   : > { %3523 = vmatprep.subr.bf16.mxu1 %v9234_v15  ;;  %2678 = vmatprep.mubr.bf16.mxu1 %v10233_v42  ;;  %v10342_v15 = vld [vmem:[%s10008_s24 + $0x18] sm:$0xff]  ;;  %v4061_v28 = vrot.slane %v4059_v32, 2  ;;  %v1693_v32 = vshll.u32 %v10250_v37, 16 }
 0x169   : > { %3165 = vmatprep.subr.bf16.mxu0 %v9237_v16  ;;  %v4040_v39 = vrot.slane %v4038_v52, 1  ;;  %v4017_v34 = vrot.slane %v4015_v0, 2  ;;  %v4043_v17 = vrot.slane %v4041_v5, 2  ;;  %v10345_v16 = vld [vmem:[%s10008_s24 + $0x10] sm:$0xff]  ;;  %v1677_v0 = vshll.u32 %v10347_v20, 16 }
 0x16a   : > { %3166 = vmatpush1.bf16.msra.mxu0 %v9235_v48  ;;  %v3977_v48 = vpack.c.bf16 %v10342_v15, %v3927_v21  ;;  %v3976_v49 = vpack.c.bf16 %v10345_v16, %v3926_v38  ;;  %v10362_v52 = vpack.c.bf16 %v1478_v24, %v1476_v22  ;;  %v9274_v21 = vld [vmem:[#allocation5 + $0x4b0] ss:$8 sps:$4 sm:$0xff]   ;;  %v9273_v38 = vld [vmem:[#allocation5 + $0x5a4] ss:$8 sps:$4 sm:$0xff]  }
 0x16b   : > { %3524 = vmatpush1.bf16.msra.mxu1 %v9232_v23  ;;  %3167 = vmatprep.subr.bf16.mxu0 %v9243_v29  ;;  %v4018_v35 = vor.u32 %v4017_v34, %v4014_v7  ;;  %v4058_v23 = vrot.slane %v4056_v27, 1  ;;  %v1679_v5 = vrot.slane %v1677_v0, 1  ;;  %v9268_v7 = vld [vmem:[#allocation5 + $0x4a0] ss:$8 sps:$4 sm:$0xff]   ;;  %v9286_v0 = vld [vmem:[#allocation5 + $0x4d0] ss:$8 sps:$4 sm:$0xff]  }
 0x16c   : > { %3525 = vmatprep.subr.bf16.mxu1 %v9240_v61  ;;  %v9258_v61 = vld [vmem:[#allocation5 + $0x574] ss:$8 sps:$4 sm:$0xff]   ;;  %v4021_v60 = vshrl.u32 %v3977_v48, 16  ;;  %v4024_v62 = vshll.u32 %v3977_v48, 16  ;;  %v4004_v43 = vshrl.u32 %v3976_v49, 16  ;;  %v4007_v45 = vshll.u32 %v3976_v49, 16 }
 0x16d   : > { %2395 = vmatmul.mubr.bf16.gmra.mrb[80].mxu0 %v10228_v13  ;;  %v9252_v13 = vld [vmem:[#allocation5 + $0x564] ss:$8 sps:$4 sm:$0xff]   ;;  %v1669_v34 = vshll.u32 %v10362_v52, 16  ;;  %v9271_v48 = vld [vmem:[#allocation5 + $0x5a0] ss:$8 sps:$4 sm:$0xff]   ;;  %v1685_v49 = vshll.u32 %v10263_v53, 16 }
 0x16e   : > { %2679 = vmatmul.mubr.bf16.gmra.mrb[80].mxu1 %v10248_v33  ;;  %3168 = vmatpush1.bf16.msra.mxu0 %v9241_v44  ;;  %v10364_v44 = vor.u32 %v4061_v28, %v4058_v23  ;;  %v4023_v56 = vrot.slane %v4021_v60, 1  ;;  %v4006_v63 = vrot.slane %v4004_v43, 1  ;;  %v1695_v23 = vrot.slane %v1693_v32, 1  ;;  %v9279_v28 = vld [vmem:[#allocation5 + $0x5b4] ss:$8 sps:$4 sm:$0xff]  }
 0x16f   : > { %3526 = vmatpush1.bf16.msra.mxu1 %v9238_v36  ;;  %2404 = vmatprep.mubr.bf16.mxu0 %v10233_v42  ;;  %v4044_v42 = vor.u32 %v4043_v17, %v4040_v39  ;;  %v9256_v36 = vld [vmem:[#allocation5 + $0x570] ss:$8 sps:$4 sm:$0xff]   ;;  %v1675_v39 = vor.u32 %v1673_v51, %v10260_v11  ;;  %v9276_v11 = vld [vmem:[#allocation5 + $0x4b4] ss:$8 sps:$4 sm:$0xff]  }
 0x170   : > { %3527 = vmatprep.subr.bf16.mxu1 %v9246_v54  ;;  %2686 = vmatprep.mubr.bf16.mxu1 %v10253_v41  ;;  %v9262_v54 = vld [vmem:[#allocation5 + $0x490] ss:$8 sps:$4 sm:$0xff]   ;;  %v9288_v60 = vld [vmem:[#allocation5 + $0x4d4] ss:$8 sps:$4 sm:$0xff]  }
 0x171   : > { %3169 = vmatprep.subr.bf16.mxu0 %v9249_v58  ;;  %v10356_v29 = vsel %vm4002_vm1, %v4018_v35, %v4044_v42  ;;  %v4026_v58 = vrot.slane %v4024_v62, 2  ;;  %v10369_v10 = vsel %vm4002_vm1, %v4044_v42, %v10364_v44  ;;  %v1671_v42 = vrot.slane %v1669_v34, 1  ;;  %v9277_v43 = vld [vmem:[#allocation5 + $0x5b0] ss:$8 sps:$4 sm:$0xff]   ;;  %v9292_v34 = vld [vmem:[#allocation5 + $0x4e0] ss:$8 sps:$4 sm:$0xff]  }
 0x172   : > { %3170 = vmatpush1.bf16.msra.mxu0 %v9247_v9  ;;  %v9300_v32 = vld [vmem:[#allocation5 + $0x4f4] ss:$8 sps:$4 sm:$0xff]  }
 0x173   : > { %3528 = vmatpush1.bf16.msra.mxu1 %v9244_v2  ;;  %3171 = vmatprep.subr.bf16.mxu0 %v9255_v8  ;;  %v4009_v2 = vrot.slane %v4007_v45, 2  ;;  %v4027_v9 = vor.u32 %v4026_v58, %v4023_v56  ;;  %v1689_v8 = vshrl.u32 %v10347_v20, 16 }
 0x174   : > { %3529 = vmatprep.subr.bf16.mxu1 %v9252_v13  ;;  %v9267_v13 = vld [vmem:[#allocation5 + $0x594] ss:$8 sps:$4 sm:$0xff]  }
 0x175   : > { %2405 = vmatmul.mubr.bf16.gmra.mrb[84].mxu0 %v10248_v33  ;;  %v9270_v33 = vld [vmem:[#allocation5 + $0x4a4] ss:$8 sps:$4 sm:$0xff]   ;;  %v4010_v3 = vor.u32 %v4009_v2, %v4006_v63  ;;  %v10377_v17 = vsel %vm4002_vm1, %v4027_v9, %v10328_v6  ;;  %v9265_v6 = vld [vmem:[#allocation5 + $0x590] ss:$8 sps:$4 sm:$0xff]  }
 0x176   : > { %2687 = vmatmul.mubr.bf16.gmra.mrb[84].mxu1 %v10267_v12  ;;  %3172 = vmatpush1.bf16.msra.mxu0 %v9253_v14  ;;  %v2744_v63 = vld [vmem:[%s10008_s24 + $0x8] sm:$0xfc] }
 0x177   : > { %3530 = vmatpush1.bf16.msra.mxu1 %v9250_v55  ;;  %2414 = vmatprep.mubr.bf16.mxu0 %v10253_v41  ;;  %v1665_v41 = vshrl.u32 %v10157_v25, 16  ;;  %v10380_v27 = vsel %vm4002_vm1, %v4010_v3, %v4018_v35  ;;  %v1680_v25 = vsel %vm1512_vm0, %v1675_v39, %v1679_v5  ;;  %v1485_v55 = vld [vmem:[%s10008_s24 + $0x188] sm:$0x1]  ;;  %v9282_v35 = vld [vmem:[#allocation5 + $0x4c4] ss:$8 sps:$4 sm:$0xff]   ;;  %v2758_v3 = vld [vmem:[%s10008_s24 + $0x78] sm:$0xff] }
 0x178   : > { %3531 = vmatprep.subr.bf16.mxu1 %v9258_v61  ;;  %2694 = vmatprep.mubr.bf16.mxu1 %v10272_v59  ;;  %v1511_v22 = vpack.c.bf16 %v1485_v55, %v1485_v55  ;;  %v1484_v61 = vld [vmem:[%s10008_s24 + $0x180] sm:$0x1]  ;;  %v2756_v2 = vld [vmem:[%s10008_s24 + $0x68] sm:$0xff]  ;;  %v9289_v39 = vld [vmem:[#allocation5 + $0x5d0] ss:$8 sps:$4 sm:$0xff]  }
 0x179   : > { %3173 = vmatprep.subr.bf16.mxu0 %v9264_v40  ;;  %v1667_v14 = vor.u32 %v1665_v41, %v10276_v19  ;;  %v1681_v19 = vshrl.u32 %v10362_v52, 16  ;;  %v1510_v51 = vpack.c.bf16 %v1484_v61, %v1484_v61  ;;  %v2794_v41 = vpack.c.bf16 %v10342_v15, %v2744_v63  ;;  %v2759_v61 = vld [vmem:[%s10008_s24 + $0x80] sm:$0xff] }
 0x17a   : > { %3174 = vmatpush1.bf16.msra.mxu0 %v9262_v54  ;;  %v1709_v62 = vshll.u32 %v1511_v22, 16  ;;  %v9283_v54 = vld [vmem:[#allocation5 + $0x5c0] ss:$8 sps:$4 sm:$0xff]   ;;  %v2850_v15 = vrot.slane %v10296_v47, 1  ;;  %v9303_v22 = vld [vmem:[#allocation5 + $0x5f4] ss:$8 sps:$4 sm:$0xff]  }
 0x17b   : > { %3532 = vmatpush1.bf16.msra.mxu1 %v9256_v36  ;;  %3175 = vmatprep.subr.bf16.mxu0 %v9270_v33  ;;  %v1672_v24 = vsel %vm1512_vm0, %v1667_v14, %v1671_v42  ;;  %v9280_v36 = vld [vmem:[#allocation5 + $0x4c0] ss:$8 sps:$4 sm:$0xff]   ;;  %v1683_v45 = vor.u32 %v1681_v19, %v1671_v42  ;;  %v1701_v9 = vshll.u32 %v1510_v51, 16  ;;  %v2849_v55 = vrot.slane %v2794_v41, 1 }
 0x17c   : > { %3533 = vmatprep.subr.bf16.mxu1 %v9261_v50  ;;  %v1687_v50 = vrot.slane %v1685_v49, 1  ;;  %v1711_v58 = vrot.slane %v1709_v62, 1  ;;  %v2760_v14 = vld [vmem:[%s10008_s24 + $0x88] sm:$0xff]  ;;  %v9304_v47 = vld [vmem:[#allocation7 + $0x140] sm:$0xff]  }
 0x17d   : > { %2415 = vmatmul.mubr.bf16.gmra.mrb[88].mxu0 %v10267_v12  ;;  %v1691_v12 = vor.u32 %v1689_v8, %v1679_v5  ;;  %v1703_v8 = vrot.slane %v1701_v9, 1  ;;  %v2764_v62 = vld [vmem:[%s10008_s24 + $0xa8] sm:$0xff] }
 0x17e   : > { %2695 = vmatmul.mubr.bf16.gmra.mrb[88].mxu1 %v10282_v31  ;;  %3176 = vmatpush1.bf16.msra.mxu0 %v9268_v7  ;;  %v1688_v33 = vsel %vm1512_vm0, %v1683_v45, %v1687_v50  ;;  %v9294_v7 = vld [vmem:[#allocation5 + $0x4e4] ss:$8 sps:$4 sm:$0xff]  }
 0x17f   : > { %3534 = vmatpush1.bf16.msra.mxu1 %v9259_v4  ;;  %2424 = vmatprep.mubr.bf16.mxu0 %v10272_v59  ;;  %v1705_v59 = vshrl.u32 %v10250_v37, 16  ;;  %v1696_v40 = vsel %vm1512_vm0, %v1691_v12, %v1695_v23  ;;  %v9285_v37 = vld [vmem:[#allocation5 + $0x5c4] ss:$8 sps:$4 sm:$0xff]   ;;  %v9291_v4 = vld [vmem:[#allocation5 + $0x5d4] ss:$8 sps:$4 sm:$0xff]  }
 0x180   : > { %3535 = vmatprep.subr.bf16.mxu1 %v9267_v13  ;;  %2702 = vmatprep.mubr.bf16.mxu1 %v1680_v25  ;;  %v2800_v13 = vpack.c.bf16 %v2758_v3, %v2756_v2  ;;  %v9298_v12 = vld [vmem:[#allocation5 + $0x4f0] ss:$8 sps:$4 sm:$0xff]   ;;  %v9309_v51 = vld [vmem:[#allocation7 + $0x148] sm:$0xff]   ;;  %v2763_v2 = vld [vmem:[%s10008_s24 + $0xa0] sm:$0xff] }
 0x181   : > { %3177 = vmatprep.subr.bf16.mxu0 %v9276_v11  ;;  %v1707_v56 = vor.u32 %v1705_v59, %v1695_v23  ;;  %v2856_v59 = vrot.slane %v10323_v1, 1  ;;  %v9317_v3 = vld [vmem:[#allocation7 + $0x150] sm:$0xff]  }
 0x182   : > { %3178 = vmatpush1.bf16.msra.mxu0 %v9274_v21  ;;  %v2858_v42 = vrot.slane %v2800_v13, 1  ;;  %v2762_v21 = vld [vmem:[%s10008_s24 + $0x98] sm:$0xff] }
 0x183   : > { %3536 = vmatpush1.bf16.msra.mxu1 %v9265_v6  ;;  %3179 = vmatprep.subr.bf16.mxu0 %v9282_v35  ;;  %v1712_v5 = vsel %vm1512_vm0, %v1707_v56, %v1711_v58  ;;  %v2854_v6 = vrot.slane %v10306_v30, 1  ;;  %v9295_v35 = vld [vmem:[#allocation5 + $0x5e0] ss:$8 sps:$4 sm:$0xff]   ;;  %v2802_v30 = vpack.c.bf16 %v2762_v21, %v2760_v14  ;;  %v9313_v58 = vld [vmem:[#allocation5 + $0x614] ss:$8 sps:$4 sm:$0xff]  }
 0x184   : > { %3537 = vmatprep.subr.bf16.mxu1 %v9273_v38  ;;  %v9310_v56 = vld [vmem:[#allocation7 + $0x108] sm:$0xff]   ;;  %v9321_v21 = vld [vmem:[#allocation5 + $0x634] ss:$8 sps:$4 sm:$0xff]  }
 0x185   : > { %2425 = vmatmul.mubr.bf16.gmra.mrb[92].mxu0 %v10282_v31  ;;  %v1697_v31 = vshrl.u32 %v10263_v53, 16  ;;  %v9297_v53 = vld [vmem:[#allocation5 + $0x5e4] ss:$8 sps:$4 sm:$0xff]   ;;  %v10413_v19 = vsel %vm2845_vm2, %v2854_v6, %v2858_v42 }
 0x186   : > { %2703 = vmatmul.mubr.bf16.gmra.mrb[92].mxu1 %v1672_v24  ;;  %2434 = vmatprep.mubr.bf16.mxu0 %v1680_v25  ;;  %v2743_v25 = vld [vmem:[%s10008_s24] sm:$0xfc] }
 0x187   : > { %3538 = vmatpush1.bf16.msra.mxu1 %v9271_v48  ;;  %2710 = vmatprep.mubr.bf16.mxu1 %v1696_v40  ;;  %v1699_v11 = vor.u32 %v1697_v31, %v1687_v50  ;;  %v2793_v23 = vpack.c.bf16 %v10345_v16, %v2743_v25  ;;  %v9301_v48 = vld [vmem:[#allocation5 + $0x5f0] ss:$8 sps:$4 sm:$0xff]   ;;  %v2847_v16 = vrot.slane %v10308_v26, 1  ;;  %v2855_v50 = vsel %vm2845_vm2, %v2850_v15, %v2854_v6 }
 0x188   : > { %3539 = vmatprep.subr.bf16.mxu1 %v9279_v28  ;;  %3180 = vmatpush1.bf16.msra.mxu0 %v9280_v36  ;;  %v2852_v28 = vrot.slane %v10311_v57, 1  ;;  %v2761_v36 = vld [vmem:[%s10008_s24 + $0x90] sm:$0xff]  ;;  %v9305_v57 = vld [vmem:[#allocation7 + $0x100] sm:$0xff]  }
 0x189   : > { %3181 = vmatprep.subr.bf16.mxu0 %v9288_v60  ;;  %v1704_v38 = vsel %vm1512_vm0, %v1699_v11, %v1703_v8  ;;  %v2846_v49 = vrot.slane %v2793_v23, 1  ;;  %v2862_v60 = vrot.slane %v2802_v30, 1  ;;  %v2801_v1 = vpack.c.bf16 %v2761_v36, %v2759_v61  ;;  %v9311_v31 = vld [vmem:[#allocation5 + $0x610] ss:$8 sps:$4 sm:$0xff]   ;;  %v2772_v30 = vld [vmem:[%s10008_s24 + $0xe8] sm:$0xff] }
 0x18a   : > { %v10425_v26 = vsel %vm2845_vm2, %v2852_v28, %v2856_v59  ;;  %v2853_v11 = vsel %vm2845_vm2, %v2847_v16, %v2852_v28  ;;  %v2769_v23 = vld [vmem:[%s10008_s24 + $0xd0] sm:$0xff] }
 0x18b   : > { %3540 = vmatpush1.bf16.msra.mxu1 %v9277_v43  ;;  %v2766_v43 = vld [vmem:[%s10008_s24 + $0xb8] sm:$0xff]  ;;  %v2848_v45 = vsel %vm2845_vm2, %v2846_v49, %v2847_v16  ;;  %v2860_v63 = vrot.slane %v2801_v1, 1  ;;  %v9333_v49 = vld [vmem:[#allocation7 + $0x160] sm:$0xff]  }
 0x18c   : > { %3541 = vmatprep.subr.bf16.mxu1 %v9285_v37  ;;  %3182 = vmatpush1.bf16.msra.mxu0 %v9286_v0  ;;  %v2804_v37 = vpack.c.bf16 %v2766_v43, %v2764_v62  ;;  %v10429_v0 = vsel %vm2845_vm2, %v2858_v42, %v2862_v60  ;;  %v9322_v1 = vld [vmem:[#allocation5 + $0x640] ss:$8 sps:$4 sm:$0xff]  }
 0x18d   : > { %2435 = vmatmul.mubr.bf16.gmra.mrb[96].mxu0 %v1672_v24  ;;  %3183 = vmatprep.subr.bf16.mxu0 %v9294_v7  ;;  %v2851_v24 = vsel %vm2845_vm2, %v2849_v55, %v2850_v15  ;;  %v2770_v7 = vld [vmem:[%s10008_s24 + $0xd8] sm:$0xff]  ;;  %v10439_v8 = vsel %vm2845_vm2, %v2856_v59, %v2860_v63  ;;  %v9314_v55 = vld [vmem:[#allocation5 + $0x620] ss:$8 sps:$4 sm:$0xff]   ;;  %v9318_v15 = vld [vmem:[#allocation7 + $0x110] sm:$0xff]  }
 0x18e   : > { %2711 = vmatmul.mubr.bf16.gmra.mrb[96].mxu1 %v1688_v33  ;;  %2444 = vmatprep.mubr.bf16.mxu0 %v1696_v40  ;;  %v9308_v40 = vld [vmem:[#allocation5 + $0x604] ss:$8 sps:$4 sm:$0xff]   ;;  %v2866_v9 = vrot.slane %v2804_v37, 1 }
 0x18f   : > { %3542 = vmatpush1.bf16.msra.mxu1 %v9283_v54  ;;  %2718 = vmatprep.mubr.bf16.mxu1 %v1712_v5  ;;  %v9306_v54 = vld [vmem:[#allocation5 + $0x600] ss:$8 sps:$4 sm:$0xff]  }
 0x190   : > { %3543 = vmatprep.subr.bf16.mxu1 %v9291_v4  ;;  %3184 = vmatpush1.bf16.msra.mxu0 %v9292_v34  ;;  %v2768_v5 = vld [vmem:[%s10008_s24 + $0xc8] sm:$0xff]  ;;  %v10442_v42 = vsel %vm2845_vm2, %v2862_v60, %v2866_v9 }
 0x191   : > { %3185 = vmatprep.subr.bf16.mxu0 %v9300_v32 }
 0x193   : > { %3544 = vmatpush1.bf16.msra.mxu1 %v9289_v39 }
 0x194   : > { %3545 = vmatprep.subr.bf16.mxu1 %v9297_v53  ;;  %3186 = vmatpush1.bf16.msra.mxu0 %v9298_v12  ;;  %v9316_v53 = vld [vmem:[#allocation5 + $0x624] ss:$8 sps:$4 sm:$0xff]  }
 0x195   : > { %2445 = vmatmul.mubr.bf16.gmra.mrb[100].mxu0 %v1688_v33  ;;  %8688 = vmatprep.subr.bf16.mxu0 %v9304_v47  ;;  %v2765_v33 = vld [vmem:[%s10008_s24 + $0xb0] sm:$0xff]  ;;  %v2767_v12 = vld [vmem:[%s10008_s24 + $0xc0] sm:$0xff] }
 0x196   : > { %2719 = vmatmul.mubr.bf16.gmra.mrb[100].mxu1 %v1704_v38  ;;  %3187 = vmatprep.mubr.bf16.mxu0 %v2851_v24  ;;  %v2803_v25 = vpack.c.bf16 %v2765_v33, %v2763_v2  ;;  %v2806_v38 = vpack.c.bf16 %v2770_v7, %v2768_v5  ;;  %v9319_v47 = vld [vmem:[#allocation5 + $0x630] ss:$8 sps:$4 sm:$0xff]   ;;  %v9329_v2 = vld [vmem:[#allocation5 + $0x654] ss:$8 sps:$4 sm:$0xff]   ;;  %v9344_v33 = vld [vmem:[#allocation7 + $0x168] sm:$0xff]  }
 0x197   : > { %3546 = vmatpush1.bf16.msra.mxu1 %v9295_v35  ;;  %3549 = vmatprep.mubr.bf16.mxu1 %v10413_v19  ;;  %v9325_v35 = vld [vmem:[#allocation7 + $0x158] sm:$0xff]   ;;  %v2776_v7 = vld [vmem:[%s10008_s24 + $0x108] sm:$0xff] }
 0x198   : > { %3547 = vmatprep.subr.bf16.mxu1 %v9303_v22  ;;  %v9326_v22 = vld [vmem:[#allocation7 + $0x118] sm:$0xff]   ;;  %v10449_v24 = vrot.slane %v2803_v25, 1  ;;  %v10453_v16 = vrot.slane %v2806_v38, 1 }
 0x199   : > { %v9327_v5 = vld [vmem:[#allocation5 + $0x650] ss:$8 sps:$4 sm:$0xff]  }
 0x19b   : > { %3548 = vmatpush1.bf16.msra.mxu1 %v9301_v48  ;;  %v2774_v48 = vld [vmem:[%s10008_s24 + $0xf8] sm:$0xff] }
 0x19c   : > { %4494 = vmatprep.subr.bf16.mxu1 %v9308_v40 }
 0x19d   : > { %3188 = vmatmul.mubr.bf16.vlgmr.msra.gmra.mrb[104].mxu0 %v2848_v45  ;;  %v10457_v45 = vsel %vm2845_vm2, %v2860_v63, %v10449_v24 }
 0x19e   : > { %3550 = vmatmul.mubr.bf16.vlgmr.msra.gmra.mrb[104].mxu1 %v10425_v26  ;;  %8689 = vmatpush3.bf16.msra.mxu0 %v9305_v57  ;;  %v2805_v57 = vpack.c.bf16 %v2769_v23, %v2767_v12  ;;  %v9330_v12 = vld [vmem:[#allocation5 + $0x660] ss:$8 sps:$4 sm:$0xff]   ;;  %v9360_v23 = vld [vmem:[#allocation7 + $0x178] sm:$0xff]  }
 0x19f   : > { %3195 = vmatprep.mubr.bf16.mxu0 %v2855_v50  ;;  %3557 = vmatprep.mubr.bf16.mxu1 %v10429_v0  ;;  %v9337_v50 = vld [vmem:[#allocation7 + $0x120] sm:$0xff]  }
 0x1a0   : > { %8690 = vmatprep.subr.bf16.mxu0 %v9309_v51  ;;  %v716_v4 = vpop.f32.mrb[0].mxu0  ;;  %4495 = vmatpush1.bf16.msra.mxu1 %v9306_v54  ;;  %v10461_v54 = vsel %vm2845_vm2, %v2866_v9, %v10453_v16 }
 0x1a1   : > { %v1062_v39 = vpop.f32.mrb[0].mxu1  ;;  %v718_v41 = vpop.f32.mrb[1].mxu0  ;;  %4496 = vmatprep.subr.bf16.mxu1 %v9313_v58 }
 0x1a2   : > { %v1064_v34 = vpop.f32.mrb[1].mxu1  ;;  %v719_v13 = vpop.f32.mrb[2].mxu0  ;;  %8691 = vmatpush3.bf16.msra.mxu0 %v9310_v56  ;;  %v2808_v56 = vpack.c.bf16 %v2774_v48, %v2772_v30  ;;  %v2778_v41 = vld [vmem:[%s10008_s24 + $0x118] sm:$0xff] }
 0x1a3   : > { %v1065_v32 = vpop.f32.mrb[2].mxu1  ;;  %v721_v6 = vpop.f32.mrb[3].mxu0  ;;  %8692 = vmatprep.subr.bf16.mxu0 %v9317_v3  ;;  %v2771_v3 = vld [vmem:[%s10008_s24 + $0xe0] sm:$0xff]  ;;  %v9345_v34 = vld [vmem:[#allocation7 + $0x128] sm:$0xff]   ;;  %v2810_v48 = vpack.c.bf16 %v2778_v41, %v2776_v7 }
 0x1a4   : > { %v1067_v14 = vpop.f32.mrb[3].mxu1  ;;  %4497 = vmatpush1.bf16.msra.mxu1 %v9311_v31 }
 0x1a5   : > { %3196 = vmatmul.mubr.bf16.gmra.mrb[108].mxu0 %v2853_v11  ;;  %4498 = vmatprep.subr.bf16.mxu1 %v9316_v53  ;;  %v9352_v53 = vld [vmem:[#allocation7 + $0x170] sm:$0xff]  }
 0x1a6   : > { %3558 = vmatmul.mubr.bf16.gmra.mrb[108].mxu1 %v10439_v8  ;;  %3205 = vmatprep.mubr.bf16.mxu0 %v10413_v19  ;;  %v9324_v19 = vld [vmem:[#allocation5 + $0x644] ss:$8 sps:$4 sm:$0xff]  }
 0x1a7   : > { %3567 = vmatprep.mubr.bf16.mxu1 %v10442_v42  ;;  %8693 = vmatpush3.bf16.msra.mxu0 %v9318_v15 }
 0x1a8   : > { %v724_v28 = vpop.f32.mrb[4].mxu0  ;;  %4499 = vmatpush1.bf16.msra.mxu1 %v9314_v55  ;;  %8694 = vmatprep.subr.bf16.mxu0 %v9325_v35  ;;  %v9353_v55 = vld [vmem:[#allocation7 + $0x130] sm:$0xff]  }
 0x1a9   : > { %v1070_v59 = vpop.f32.mrb[4].mxu1  ;;  %v726_v61 = vpop.f32.mrb[5].mxu0  ;;  %4500 = vmatprep.subr.bf16.mxu1 %v9321_v21 }
 0x1aa   : > { %v1072_v36 = vpop.f32.mrb[5].mxu1  ;;  %v801_v40 = vadd.f32 %v726_v61, %v716_v4  ;;  %v728_v62 = vpop.f32.mrb[6].mxu0  ;;  %v2773_v4 = vld [vmem:[%s10008_s24 + $0xf0] sm:$0xff] }
 0x1ab   : > { %v1147_v60 = vadd.f32 %v1072_v36, %v1062_v39  ;;  %v1074_v43 = vpop.f32.mrb[6].mxu1  ;;  %v730_v51 = vpop.f32.mrb[7].mxu0  ;;  %8695 = vmatpush3.bf16.msra.mxu0 %v9326_v22  ;;  %v10473_v39 = vrot.slane %v2805_v57, 1  ;;  %v2807_v35 = vpack.c.bf16 %v2773_v4, %v2771_v3  ;;  %v9334_v36 = vld [vmem:[#allocation5 + $0x670] ss:$8 sps:$4 sm:$0xff]   ;;  %v2780_v57 = vld [vmem:[%s10008_s24 + $0x128] sm:$0xff] }
 0x1ac   : > { %v1076_v37 = vpop.f32.mrb[7].mxu1  ;;  %v802_v31 = vadd.f32 %v730_v51, %v719_v13  ;;  %4501 = vmatpush1.bf16.msra.mxu1 %v9319_v47  ;;  %8696 = vmatprep.subr.bf16.mxu0 %v9333_v49  ;;  %v10477_v13 = vrot.slane %v2808_v56, 1  ;;  %v9338_v4 = vld [vmem:[#allocation5 + $0x680] ss:$8 sps:$4 sm:$0xff]  }
 0x1ad   : > { %v10463_v58 = vadd.f32 %v1147_v60, %v801_v40  ;;  %v1148_v63 = vadd.f32 %v1076_v37, %v1065_v32  ;;  %3206 = vmatmul.mubr.bf16.gmra.mrb[112].mxu0 %v10425_v26  ;;  %4502 = vmatprep.subr.bf16.mxu1 %v9324_v19  ;;  %v10482_v38 = vsel %vm2845_vm2, %v10449_v24, %v10473_v39  ;;  %v9336_v24 = vld [vmem:[#allocation5 + $0x674] ss:$8 sps:$4 sm:$0xff]   ;;  %v2775_v19 = vld [vmem:[%s10008_s24 + $0x100] sm:$0xff] }
 0x1ae   : > { %3568 = vmatmul.mubr.bf16.gmra.mrb[112].mxu1 %v10457_v45  ;;  %3215 = vmatprep.mubr.bf16.mxu0 %v10429_v0  ;;  %v9332_v0 = vld [vmem:[#allocation5 + $0x664] ss:$8 sps:$4 sm:$0xff]   ;;  %v10487_v30 = vsel %vm2845_vm2, %v10453_v16, %v10477_v13  ;;  %v2872_v16 = vrot.slane %v2807_v35, 1  ;;  %v2777_v40 = vld [vmem:[%s10008_s24 + $0x110] sm:$0xff]  ;;  %v9361_v60 = vld [vmem:[#allocation7 + $0x138] sm:$0xff]  }
 0x1af   : > { %v10469_v9 = vadd.f32 %v1148_v63, %v802_v31  ;;  %3577 = vmatprep.mubr.bf16.mxu1 %v10461_v54  ;;  %8697 = vmatpush3.bf16.msra.mxu0 %v9337_v50  ;;  %v9370_v50 = vld [vmem:[#allocation5 + $0x704] ss:$8 sps:$4 sm:$0xff]   ;;  %v2809_v3 = vpack.c.bf16 %v2777_v40, %v2775_v19 }
 0x1b0   : > { %v734_v26 = vpop.f32.mrb[8].mxu0  ;;  %4503 = vmatpush1.bf16.msra.mxu1 %v9322_v1  ;;  %8698 = vmatprep.subr.bf16.mxu0 %v9344_v33  ;;  %v2782_v1 = vld [vmem:[%s10008_s24 + $0x138] sm:$0xff]  ;;  %v10503_v33 = vsel %vm2845_vm2, %v10473_v39, %v2872_v16 }
 0x1b1   : > { %v1080_v11 = vpop.f32.mrb[8].mxu1  ;;  %v736_v32 = vpop.f32.mrb[9].mxu0  ;;  %4504 = vmatprep.subr.bf16.mxu1 %v9329_v2  ;;  %v9343_v39 = vld [vmem:[#allocation5 + $0x694] ss:$8 sps:$4 sm:$0xff]  }
 0x1b2   : > { %v1082_v25 = vpop.f32.mrb[9].mxu1  ;;  %v803_v15 = vadd.f32 %v736_v32, %v724_v28  ;;  %v738_v14 = vpop.f32.mrb[10].mxu0 }
 0x1b3   : > { %v1149_v6 = vadd.f32 %v1082_v25, %v1070_v59  ;;  %v1084_v21 = vpop.f32.mrb[10].mxu1  ;;  %v740_v22 = vpop.f32.mrb[11].mxu0  ;;  %8699 = vmatpush3.bf16.msra.mxu0 %v9345_v34  ;;  %v2876_v25 = vrot.slane %v2809_v3, 1 }
 0x1b4   : > { %v1086_v47 = vpop.f32.mrb[11].mxu1  ;;  %v804_v28 = vadd.f32 %v740_v22, %v728_v62  ;;  %4505 = vmatpush1.bf16.msra.mxu1 %v9327_v5  ;;  %8700 = vmatprep.subr.bf16.mxu0 %v9352_v53  ;;  %v2878_v62 = vrot.slane %v2810_v48, 1  ;;  %v9340_v5 = vld [vmem:[#allocation5 + $0x684] ss:$8 sps:$4 sm:$0xff]   ;;  %v2812_v53 = vpack.c.bf16 %v2782_v1, %v2780_v57 }
 0x1b5   : > { %v10489_v49 = vadd.f32 %v1149_v6, %v803_v15  ;;  %v1150_v59 = vadd.f32 %v1086_v47, %v1074_v43  ;;  %3216 = vmatmul.mubr.bf16.gmra.mrb[116].mxu0 %v10439_v8  ;;  %4506 = vmatprep.subr.bf16.mxu1 %v9332_v0  ;;  %v2781_v0 = vld [vmem:[%s10008_s24 + $0x130] sm:$0xff] }
 0x1b6   : > { %3578 = vmatmul.mubr.bf16.gmra.mrb[116].mxu1 %v10482_v38  ;;  %3225 = vmatprep.mubr.bf16.mxu0 %v10442_v42  ;;  %v10507_v34 = vsel %vm2845_vm2, %v10477_v13, %v2878_v62  ;;  %v2779_v13 = vld [vmem:[%s10008_s24 + $0x120] sm:$0xff]  ;;  %v2882_v15 = vrot.slane %v2812_v53, 1 }
 0x1b7   : > { %v10493_v61 = vadd.f32 %v1150_v59, %v804_v28  ;;  %3587 = vmatprep.mubr.bf16.mxu1 %v10487_v30  ;;  %8701 = vmatpush3.bf16.msra.mxu0 %v9353_v55  ;;  %v10520_v28 = vsel %vm2845_vm2, %v2872_v16, %v2876_v25  ;;  %v2811_v59 = vpack.c.bf16 %v2781_v0, %v2779_v13  ;;  %v9351_v16 = vld [vmem:[#allocation5 + $0x6b4] ss:$8 sps:$4 sm:$0xff]  }
 0x1b8   : > { %v744_v8 = vpop.f32.mrb[12].mxu0  ;;  %4507 = vmatpush1.bf16.msra.mxu1 %v9330_v12  ;;  %8702 = vmatprep.subr.bf16.mxu0 %v9360_v23 }
 0x1b9   : > { %v1090_v43 = vpop.f32.mrb[12].mxu1  ;;  %v746_v51 = vpop.f32.mrb[13].mxu0  ;;  %4508 = vmatprep.subr.bf16.mxu1 %v9336_v24  ;;  %v9346_v24 = vld [vmem:[#allocation5 + $0x6a0] ss:$8 sps:$4 sm:$0xff]  }
 0x1ba   : > { %v1092_v37 = vpop.f32.mrb[13].mxu1  ;;  %v805_v56 = vadd.f32 %v746_v51, %v734_v26  ;;  %v748_v63 = vpop.f32.mrb[14].mxu0  ;;  %v9349_v51 = vld [vmem:[#allocation5 + $0x6b0] ss:$8 sps:$4 sm:$0xff]  }
 0x1bb   : > { %v1151_v31 = vadd.f32 %v1092_v37, %v1080_v11  ;;  %v1094_v2 = vpop.f32.mrb[14].mxu1  ;;  %v750_v7 = vpop.f32.mrb[15].mxu0  ;;  %8703 = vmatpush3.bf16.msra.mxu0 %v9361_v60  ;;  %v10523_v60 = vsel %vm2845_vm2, %v2878_v62, %v2882_v15  ;;  %v2886_v62 = vrot.slane %v10347_v20, 1 }
 0x1bc   : > { %v1096_v41 = vpop.f32.mrb[15].mxu1  ;;  %v806_v26 = vadd.f32 %v750_v7, %v738_v14  ;;  %4509 = vmatpush1.bf16.msra.mxu1 %v9334_v36  ;;  %4856 = vmatprep.subr.bf16.mxu0 %v9370_v50  ;;  %v9348_v36 = vld [vmem:[#allocation5 + $0x6a4] ss:$8 sps:$4 sm:$0xff]  }
 0x1bd   : > { %v1152_v11 = vadd.f32 %v1096_v41, %v1084_v21  ;;  %v10509_v32 = vadd.f32 %v1151_v31, %v805_v56  ;;  %3226 = vmatmul.mubr.bf16.gmra.mrb[120].mxu0 %v10457_v45  ;;  %4510 = vmatprep.subr.bf16.mxu1 %v9340_v5  ;;  %v9341_v21 = vld [vmem:[#allocation5 + $0x690] ss:$8 sps:$4 sm:$0xff]   ;;  %v2788_v31 = vld [vmem:[%s10008_s24 + $0x168] sm:$0xff] }
 0x1be   : > { %3588 = vmatmul.mubr.bf16.gmra.mrb[120].mxu1 %v10503_v33  ;;  %3235 = vmatprep.mubr.bf16.mxu0 %v10461_v54 }
 0x1bf   : > { %3597 = vmatprep.mubr.bf16.mxu1 %v10507_v34  ;;  %v10517_v55 = vadd.f32 %v1152_v11, %v806_v26  ;;  %v10540_v11 = vsel %vm2845_vm2, %v2882_v15, %v2886_v62  ;;  %v2884_v15 = vrot.slane %v10362_v52, 1 }
 0x1c0   : > { %v754_v6 = vpop.f32.mrb[16].mxu0  ;;  %4511 = vmatpush1.bf16.msra.mxu1 %v9338_v4 }
 0x1c1   : > { %v1100_v14 = vpop.f32.mrb[16].mxu1  ;;  %v756_v35 = vpop.f32.mrb[17].mxu0  ;;  %4512 = vmatprep.subr.bf16.mxu1 %v9343_v39  ;;  %v9356_v39 = vld [vmem:[#allocation5 + $0x6c4] ss:$8 sps:$4 sm:$0xff]  }
 0x1c2   : > { %v1102_v12 = vpop.f32.mrb[17].mxu1  ;;  %v807_v23 = vadd.f32 %v756_v35, %v744_v8  ;;  %v758_v47 = vpop.f32.mrb[18].mxu0  ;;  %v9354_v35 = vld [vmem:[#allocation5 + $0x6c0] ss:$8 sps:$4 sm:$0xff]  }
 0x1c3   : > { %v1153_v22 = vadd.f32 %v1102_v12, %v1090_v43  ;;  %v1104_v48 = vpop.f32.mrb[18].mxu1  ;;  %v760_v19 = vpop.f32.mrb[19].mxu0  ;;  %v2880_v43 = vrot.slane %v2811_v59, 1  ;;  %v9357_v59 = vld [vmem:[#allocation5 + $0x6d0] ss:$8 sps:$4 sm:$0xff]  }
 0x1c4   : > { %v1106_v40 = vpop.f32.mrb[19].mxu1  ;;  %v808_v57 = vadd.f32 %v760_v19, %v748_v63  ;;  %4513 = vmatpush1.bf16.msra.mxu1 %v9341_v21  ;;  %v2790_v63 = vld [vmem:[%s10008_s24 + $0x178] sm:$0xff] }
 0x1c5   : > { %v1154_v1 = vadd.f32 %v1106_v40, %v1094_v2  ;;  %v10525_v8 = vadd.f32 %v1153_v22, %v807_v23  ;;  %3236 = vmatmul.mubr.bf16.gmra.mrb[124].mxu0 %v10482_v38  ;;  %4514 = vmatprep.subr.bf16.mxu1 %v9348_v36  ;;  %v10537_v53 = vsel %vm2845_vm2, %v2876_v25, %v2880_v43  ;;  %v9359_v25 = vld [vmem:[#allocation5 + $0x6d4] ss:$8 sps:$4 sm:$0xff]   ;;  %v2787_v23 = vld [vmem:[%s10008_s24 + $0x160] sm:$0xff] }
 0x1c6   : > { %3598 = vmatmul.mubr.bf16.gmra.mrb[124].mxu1 %v10520_v28  ;;  %3245 = vmatprep.mubr.bf16.mxu0 %v10487_v30  ;;  %v2816_v13 = vpack.c.bf16 %v2790_v63, %v2788_v31  ;;  %v2789_v22 = vld [vmem:[%s10008_s24 + $0x170] sm:$0xff]  ;;  %v10556_v52 = vsel %vm2845_vm2, %v2880_v43, %v2884_v15 }
 0x1c7   : > { %3607 = vmatprep.mubr.bf16.mxu1 %v10523_v60  ;;  %v10532_v50 = vadd.f32 %v1154_v1, %v808_v57  ;;  %v9367_v43 = vld [vmem:[#allocation5 + $0x6f4] ss:$8 sps:$4 sm:$0xff]  }
 0x1c8   : > { %v764_v37 = vpop.f32.mrb[20].mxu0  ;;  %4515 = vmatpush1.bf16.msra.mxu1 %v9346_v24  ;;  %v10551_v12 = vrot.slane %v2816_v13, 1 }
 0x1c9   : > { %v1110_v56 = vpop.f32.mrb[20].mxu1  ;;  %v766_v2 = vpop.f32.mrb[21].mxu0  ;;  %4516 = vmatprep.subr.bf16.mxu1 %v9351_v16  ;;  %v2815_v16 = vpack.c.bf16 %v2789_v22, %v2787_v23 }
 0x1ca   : > { %v1112_v3 = vpop.f32.mrb[21].mxu1  ;;  %v809_v4 = vadd.f32 %v766_v2, %v754_v6  ;;  %v768_v7 = vpop.f32.mrb[22].mxu0  ;;  %v10560_v63 = vsel %vm2845_vm2, %v2886_v62, %v10551_v12  ;;  %v9364_v2 = vld [vmem:[#allocation5 + $0x6e4] ss:$8 sps:$4 sm:$0xff]  }
 0x1cb   : > { %v1155_v5 = vadd.f32 %v1112_v3, %v1100_v14  ;;  %v1114_v41 = vpop.f32.mrb[22].mxu1  ;;  %v770_v20 = vpop.f32.mrb[23].mxu0  ;;  %v10568_v62 = vrot.slane %v2815_v16, 1 }
 0x1cc   : > { %v1116_v26 = vpop.f32.mrb[23].mxu1  ;;  %v810_v0 = vadd.f32 %v770_v20, %v758_v47  ;;  %4517 = vmatpush1.bf16.msra.mxu1 %v9349_v51  ;;  %v9365_v20 = vld [vmem:[#allocation5 + $0x6f0] ss:$8 sps:$4 sm:$0xff]  }
 0x1cd   : > { %v1156_v21 = vadd.f32 %v1116_v26, %v1104_v48  ;;  %v10542_v6 = vadd.f32 %v1155_v5, %v809_v4  ;;  %3246 = vmatmul.mubr.bf16.gmra.mrb[128].mxu0 %v10503_v33  ;;  %4518 = vmatprep.subr.bf16.mxu1 %v9356_v39  ;;  %v3939_v26 = vld [vmem:[%s10008_s24 + $0x68] sm:$0xff]  ;;  %v3941_v39 = vld [vmem:[%s10008_s24 + $0x78] sm:$0xff]  ;;  %v10576_v22 = vsel %vm2845_vm2, %v2884_v15, %v10568_v62 }
 0x1ce   : > { %3608 = vmatmul.mubr.bf16.gmra.mrb[128].mxu1 %v10537_v53  ;;  %3255 = vmatprep.mubr.bf16.mxu0 %v10507_v34 }
 0x1cf   : > { %3617 = vmatprep.mubr.bf16.mxu1 %v10540_v11  ;;  %v10549_v14 = vadd.f32 %v1156_v21, %v810_v0 }
 0x1d0   : > { %v774_v47 = vpop.f32.mrb[24].mxu0  ;;  %4519 = vmatpush1.bf16.msra.mxu1 %v9354_v35 }
 0x1d1   : > { %v1120_v48 = vpop.f32.mrb[24].mxu1  ;;  %v776_v24 = vpop.f32.mrb[25].mxu0  ;;  %4520 = vmatprep.subr.bf16.mxu1 %v9359_v25 }
 0x1d2   : > { %v1122_v36 = vpop.f32.mrb[25].mxu1  ;;  %v811_v19 = vadd.f32 %v776_v24, %v764_v37  ;;  %v778_v57 = vpop.f32.mrb[26].mxu0  ;;  %v9362_v37 = vld [vmem:[#allocation5 + $0x6e0] ss:$8 sps:$4 sm:$0xff]  }
 0x1d3   : > { %v1157_v40 = vadd.f32 %v1122_v36, %v1110_v56  ;;  %v1124_v1 = vpop.f32.mrb[26].mxu1  ;;  %v780_v51 = vpop.f32.mrb[27].mxu0  ;;  %v3983_v36 = vpack.c.bf16 %v3941_v39, %v3939_v26  ;;  %v9368_v39 = vld [vmem:[#allocation5 + $0x700] ss:$8 sps:$4 sm:$0xff]  }
 0x1d4   : > { %v1126_v31 = vpop.f32.mrb[27].mxu1  ;;  %v812_v3 = vadd.f32 %v780_v51, %v768_v7  ;;  %4521 = vmatpush1.bf16.msra.mxu1 %v9357_v59 }
 0x1d5   : > { %v1158_v4 = vadd.f32 %v1126_v31, %v1114_v41  ;;  %v10562_v56 = vadd.f32 %v1157_v40, %v811_v19  ;;  %3256 = vmatmul.mubr.bf16.gmra.mrb[132].mxu0 %v10520_v28  ;;  %4522 = vmatprep.subr.bf16.mxu1 %v9364_v2  ;;  %v9401_v19 = vld [vmem:[#allocation7 + $0x1c0] sm:$0xff]   ;;  %v4068_v2 = vshll.u32 %v3983_v36, 16 }
 0x1d6   : > { %3618 = vmatmul.mubr.bf16.gmra.mrb[132].mxu1 %v10556_v52  ;;  %3265 = vmatprep.mubr.bf16.mxu0 %v10523_v60 }
 0x1d7   : > { %3627 = vmatprep.mubr.bf16.mxu1 %v10560_v63  ;;  %v10570_v5 = vadd.f32 %v1158_v4, %v812_v3 }
 0x1d8   : > { %v784_v7 = vpop.f32.mrb[28].mxu0  ;;  %4523 = vmatpush1.bf16.msra.mxu1 %v9362_v37 }
 0x1d9   : > { %v1130_v41 = vpop.f32.mrb[28].mxu1  ;;  %v786_v13 = vpop.f32.mrb[29].mxu0  ;;  %4524 = vmatprep.subr.bf16.mxu1 %v9367_v43 }
 0x1da   : > { %v1132_v0 = vpop.f32.mrb[29].mxu1  ;;  %v813_v21 = vadd.f32 %v786_v13, %v774_v47  ;;  %v788_v25 = vpop.f32.mrb[30].mxu0  ;;  %v4065_v47 = vshrl.u32 %v3983_v36, 16  ;;  %v9373_v13 = vld [vmem:[#allocation5 + $0x714] ss:$8 sps:$4 sm:$0xff]   ;;  %v9402_v36 = vld [vmem:[#allocation7 + $0x180] sm:$0xff]  }
 0x1db   : > { %v1159_v35 = vadd.f32 %v1132_v0, %v1120_v48  ;;  %v1134_v23 = vpop.f32.mrb[30].mxu1  ;;  %v790_v59 = vpop.f32.mrb[31].mxu0 }
 0x1dc   : > { %v1136_v24 = vpop.f32.mrb[31].mxu1  ;;  %v814_v40 = vadd.f32 %v790_v59, %v778_v57  ;;  %4525 = vmatpush1.bf16.msra.mxu1 %v9365_v20  ;;  %v3943_v57 = vld [vmem:[%s10008_s24 + $0x88] sm:$0xff]  ;;  %v4067_v0 = vrot.slane %v4065_v47, 1 }
 0x1dd   : > { %v1160_v16 = vadd.f32 %v1136_v24, %v1124_v1  ;;  %v10578_v51 = vadd.f32 %v1159_v35, %v813_v21  ;;  %3266 = vmatmul.mubr.bf16.gmra.mrb[136].mxu0 %v10537_v53  ;;  %8752 = vmatprep.subr.bf16.mxu1 %v9401_v19  ;;  %v3945_v1 = vld [vmem:[%s10008_s24 + $0x98] sm:$0xff]  ;;  %v4070_v24 = vrot.slane %v4068_v2, 2 }
 0x1de   : > { %3628 = vmatmul.mubr.bf16.gmra.mrb[136].mxu1 %v10576_v22  ;;  %3845 = vmatprep.mubr.bf16.mxu0 %v10442_v42  ;;  %v3985_v21 = vpack.c.bf16 %v3945_v1, %v3943_v57  ;;  %v3949_v2 = vld [vmem:[%s10008_s24 + $0xb8] sm:$0xff]  ;;  %v9407_v1 = vld [vmem:[#allocation7 + $0x188] sm:$0xff]  }
 0x1df   : > { %4526 = vmatprep.mubr.bf16.mxu1 %v10377_v17  ;;  %v10584_v15 = vadd.f32 %v1160_v16, %v814_v40  ;;  %v3942_v40 = vld [vmem:[%s10008_s24 + $0x80] sm:$0xff]  ;;  %v3944_v16 = vld [vmem:[%s10008_s24 + $0x90] sm:$0xff] }
 0x1e0   : > { %v794_v48 = vpop.f32.mrb[32].mxu0 }
 0x1e1   : > { %v1140_v31 = vpop.f32.mrb[32].mxu1  ;;  %v795_v3 = vpop.f32.mrb[33].mxu0  ;;  %v4086_v48 = vshll.u32 %v3985_v21, 16 }
 0x1e2   : > { %v1141_v4 = vpop.f32.mrb[33].mxu1  ;;  %v815_v37 = vadd.f32 %v795_v3, %v784_v7  ;;  %v797_v20 = vpop.f32.mrb[34].mxu0  ;;  %v9406_v7 = vld [vmem:[#allocation7 + $0x1c8] sm:$0xff]  }
 0x1e3   : > { %v1161_v43 = vadd.f32 %v1141_v4, %v1130_v41  ;;  %v1143_v26 = vpop.f32.mrb[34].mxu1  ;;  %v798_v42 = vpop.f32.mrb[35].mxu0  ;;  %v9371_v41 = vld [vmem:[#allocation5 + $0x710] ss:$8 sps:$4 sm:$0xff]   ;;  %v3947_v31 = vld [vmem:[%s10008_s24 + $0xa8] sm:$0xff]  ;;  %v3984_v4 = vpack.c.bf16 %v3944_v16, %v3942_v40 }
 0x1e4   : > { %v1144_v17 = vpop.f32.mrb[35].mxu1  ;;  %v816_v35 = vadd.f32 %v798_v42, %v788_v25  ;;  %v9376_v25 = vld [vmem:[#allocation5 + $0x724] ss:$8 sps:$4 sm:$0xff]   ;;  %v3987_v26 = vpack.c.bf16 %v3949_v2, %v3947_v31  ;;  %v9379_v42 = vld [vmem:[#allocation5 + $0x734] ss:$8 sps:$4 sm:$0xff]  }
 0x1e5   : > { %v1162_v59 = vadd.f32 %v1144_v17, %v1134_v23  ;;  %v10588_v19 = vadd.f32 %v1161_v43, %v815_v37  ;;  %3846 = vmatmul.mubr.bf16.vlgmr.msra.gmra.mrb[140].mxu0 %v10457_v45  ;;  %v4083_v23 = vshrl.u32 %v3985_v21, 16  ;;  %v9382_v40 = vld [vmem:[#allocation5 + $0x744] ss:$8 sps:$4 sm:$0xff]   ;;  %v4074_v16 = vshrl.u32 %v3984_v4, 16  ;;  %v9416_v2 = vld [vmem:[#allocation7 + $0x1d8] sm:$0xff]  }
 0x1e6   : > { %4527 = vmatmul.mubr.bf16.vlgmr.msra.gmra.mrb[140].mxu1 %v10380_v27  ;;  %4857 = vmatpush1.bf16.msra.mxu0 %v9368_v39  ;;  %v10600_v27 = vor.u32 %v4070_v24, %v4067_v0  ;;  %v4088_v0 = vrot.slane %v4086_v48, 2  ;;  %v9412_v48 = vld [vmem:[#allocation7 + $0x190] sm:$0xff]  }
 0x1e7   : > { %3853 = vmatprep.mubr.bf16.mxu0 %v10461_v54  ;;  %v10595_v47 = vadd.f32 %v1162_v59, %v816_v35  ;;  %4858 = vmatprep.subr.bf16.mxu0 %v9373_v13  ;;  %v4085_v17 = vrot.slane %v4083_v23, 1  ;;  %v9377_v59 = vld [vmem:[#allocation5 + $0x730] ss:$8 sps:$4 sm:$0xff]   ;;  %v3951_v23 = vld [vmem:[%s10008_s24 + $0xc8] sm:$0xff] }
 0x1e8   : > { %4534 = vmatprep.mubr.bf16.mxu1 %v10337_v18  ;;  %v8576_v45 = vpop.f32.mrb[36].mxu0  ;;  %8753 = vmatpush3.bf16.msra.mxu1 %v9402_v36  ;;  %v9374_v18 = vld [vmem:[#allocation5 + $0x720] ss:$8 sps:$4 sm:$0xff]   ;;  %v10606_v24 = vsel %vm4002_vm1, %v10330_v46, %v10600_v27  ;;  %v4101_v46 = vshrl.u32 %v3987_v26, 16 }
 0x1e9   : > { %v2006_v57 = vpop.f32.mrb[36].mxu1  ;;  %v8577_v3 = vpop.f32.mrb[37].mxu0  ;;  %8754 = vmatprep.subr.bf16.mxu1 %v9406_v7  ;;  %v3946_v36 = vld [vmem:[%s10008_s24 + $0xa0] sm:$0xff]  ;;  %v3948_v7 = vld [vmem:[%s10008_s24 + $0xb0] sm:$0xff] }
 0x1ea   : > { %v2008_v54 = vpop.f32.mrb[37].mxu1  ;;  %v8578_v37 = vadd.f32 %v8577_v3, %v8576_v45  ;;  %v8579_v43 = vpop.f32.mrb[38].mxu0  ;;  %4859 = vmatpush1.bf16.msra.mxu0 %v9371_v41  ;;  %v9411_v41 = vld [vmem:[#allocation7 + $0x1d0] sm:$0xff]   ;;  %v10617_v45 = vor.u32 %v4088_v0, %v4085_v17  ;;  %v9380_v3 = vld [vmem:[#allocation5 + $0x740] ss:$8 sps:$4 sm:$0xff]   ;;  %v9417_v0 = vld [vmem:[#allocation7 + $0x198] sm:$0xff]  }
 0x1eb   : > { %v2009_v20 = vpop.f32.mrb[38].mxu1  ;;  %v8580_v39 = vpop.f32.mrb[39].mxu0  ;;  %4860 = vmatprep.subr.bf16.mxu0 %v9376_v25  ;;  %v4077_v25 = vshll.u32 %v3984_v4, 16 }
 0x1ec   : > { %v2011_v13 = vpop.f32.mrb[39].mxu1  ;;  %v1420_v21 = vadd.f32 %v8578_v37, %v10463_v58  ;;  %v8581_v35 = vadd.f32 %v8580_v39, %v8579_v43  ;;  %8755 = vmatpush3.bf16.msra.mxu1 %v9407_v1  ;;  %v3953_v58 = vld [vmem:[%s10008_s24 + $0xd8] sm:$0xff] }
 0x1ed   : > { %3854 = vmatmul.mubr.bf16.gmra.mrb[144].mxu0 %v10482_v38  ;;  %v4104_v38 = vshll.u32 %v3987_v26, 16  ;;  %8756 = vmatprep.subr.bf16.mxu1 %v9411_v41  ;;  %v9385_v37 = vld [vmem:[#allocation5 + $0x754] ss:$8 sps:$4 sm:$0xff]   ;;  %v4079_v43 = vrot.slane %v4077_v25, 2  ;;  %v4103_v26 = vrot.slane %v4101_v46, 1  ;;  %v3989_v17 = vpack.c.bf16 %v3953_v58, %v3951_v23  ;;  %v3955_v23 = vld [vmem:[%s10008_s24 + $0xe8] sm:$0xff] }
 0x1ee   : > { %4535 = vmatmul.mubr.bf16.gmra.mrb[144].mxu1 %v10356_v29  ;;  %v1421_v31 = vadd.f32 %v8581_v35, %v10469_v9  ;;  %4861 = vmatpush1.bf16.msra.mxu0 %v9374_v18  ;;  %v4076_v9 = vrot.slane %v4074_v16, 1  ;;  %v3986_v18 = vpack.c.bf16 %v3948_v7, %v3946_v36  ;;  %v10626_v36 = vsel %vm4002_vm1, %v10600_v27, %v10617_v45  ;;  %v3952_v46 = vld [vmem:[%s10008_s24 + $0xd0] sm:$0xff]  ;;  %v3957_v27 = vld [vmem:[%s10008_s24 + $0xf8] sm:$0xff] }
 0x1ef   : > { %3861 = vmatprep.mubr.bf16.mxu0 %v10487_v30  ;;  %4862 = vmatprep.subr.bf16.mxu0 %v9379_v42 }
 0x1f0   : > { %4544 = vmatprep.mubr.bf16.mxu1 %v10606_v24  ;;  %v8582_v29 = vpop.f32.mrb[40].mxu0  ;;  %8757 = vmatpush3.bf16.msra.mxu1 %v9412_v48  ;;  %v3950_v48 = vld [vmem:[%s10008_s24 + $0xc0] sm:$0xff] }
 0x1f1   : > { %v10619_v1 = vpop.f32.mrb[40].mxu1  ;;  %v8583_v54 = vpop.f32.mrb[41].mxu0  ;;  %8758 = vmatprep.subr.bf16.mxu1 %v9416_v2  ;;  %v4092_v2 = vshrl.u32 %v3986_v18, 16 }
 0x1f2   : > { %v2016_v4 = vpop.f32.mrb[41].mxu1  ;;  %v8584_v30 = vadd.f32 %v8583_v54, %v8582_v29  ;;  %v8585_v13 = vpop.f32.mrb[42].mxu0  ;;  %4863 = vmatpush1.bf16.msra.mxu0 %v9377_v59  ;;  %v9383_v59 = vld [vmem:[#allocation5 + $0x750] ss:$8 sps:$4 sm:$0xff]   ;;  %v4095_v29 = vshll.u32 %v3986_v18, 16  ;;  %v9421_v54 = vld [vmem:[#allocation7 + $0x1e0] sm:$0xff]  }
 0x1f3   : > { %v2091_v39 = vadd.f32 %v2016_v4, %v2006_v57  ;;  %v10621_v42 = vpop.f32.mrb[42].mxu1  ;;  %v8586_v35 = vpop.f32.mrb[43].mxu0  ;;  %4864 = vmatprep.subr.bf16.mxu0 %v9382_v40  ;;  %v4106_v57 = vrot.slane %v4104_v38, 2  ;;  %v9388_v40 = vld [vmem:[#allocation5 + $0x764] ss:$8 sps:$4 sm:$0xff]   ;;  %v4119_v38 = vshrl.u32 %v3989_v17, 16 }
 0x1f4   : > { %v2020_v41 = vpop.f32.mrb[43].mxu1  ;;  %v8587_v7 = vadd.f32 %v8586_v35, %v8585_v13  ;;  %v1422_v25 = vadd.f32 %v8584_v30, %v10489_v49  ;;  %v10639_v49 = vor.u32 %v4079_v43, %v4076_v9  ;;  %8759 = vmatpush3.bf16.msra.mxu1 %v9417_v0  ;;  %v4094_v9 = vrot.slane %v4092_v2, 1 }
 0x1f5   : > { %v2092_v16 = vadd.f32 %v2020_v41, %v2009_v20  ;;  %v10632_v58 = vadd.f32 %v2091_v39, %v1420_v21  ;;  %3862 = vmatmul.mubr.bf16.gmra.mrb[148].mxu0 %v10503_v33  ;;  %v10644_v33 = vor.u32 %v4106_v57, %v4103_v26  ;;  %v4122_v21 = vshll.u32 %v3989_v17, 16  ;;  %v9386_v39 = vld [vmem:[#allocation5 + $0x760] ss:$8 sps:$4 sm:$0xff]   ;;  %8760 = vmatprep.subr.bf16.mxu1 %v9421_v54 }
 0x1f6   : > { %4545 = vmatmul.mubr.bf16.gmra.mrb[148].mxu1 %v10369_v10  ;;  %4865 = vmatpush1.bf16.msra.mxu0 %v9380_v3  ;;  %v1423_v20 = vadd.f32 %v8587_v7, %v10493_v61  ;;  %v9422_v3 = vld [vmem:[#allocation7 + $0x1a0] sm:$0xff]   ;;  %v4097_v43 = vrot.slane %v4095_v29, 2  ;;  %v3988_v35 = vpack.c.bf16 %v3952_v46, %v3950_v48  ;;  %v10654_v17 = vsel %vm4002_vm1, %v10364_v44, %v10639_v49  ;;  %v9426_v7 = vld [vmem:[#allocation7 + $0x1e8] sm:$0xff]  }
 0x1f7   : > { %3869 = vmatprep.mubr.bf16.mxu0 %v10507_v34  ;;  %v10641_v4 = vadd.f32 %v2092_v16, %v1421_v31  ;;  %4866 = vmatprep.subr.bf16.mxu0 %v9385_v37  ;;  %v9391_v34 = vld [vmem:[#allocation5 + $0x774] ss:$8 sps:$4 sm:$0xff]   ;;  %v3991_v31 = vpack.c.bf16 %v3957_v27, %v3955_v23  ;;  %v4121_v0 = vrot.slane %v4119_v38, 1  ;;  %v4124_v46 = vrot.slane %v4122_v21, 2  ;;  %v9427_v23 = vld [vmem:[#allocation7 + $0x1a8] sm:$0xff]   ;;  %v3954_v54 = vld [vmem:[%s10008_s24 + $0xe0] sm:$0xff] }
 0x1f8   : > { %4554 = vmatprep.mubr.bf16.mxu1 %v10626_v36  ;;  %v8588_v30 = vpop.f32.mrb[44].mxu0  ;;  %v9389_v27 = vld [vmem:[#allocation5 + $0x770] ss:$8 sps:$4 sm:$0xff]   ;;  %8761 = vmatpush3.bf16.msra.mxu1 %v9422_v3  ;;  %v4113_v21 = vshll.u32 %v3988_v35, 16 }
 0x1f9   : > { %v10646_v18 = vpop.f32.mrb[44].mxu1  ;;  %v8589_v61 = vpop.f32.mrb[45].mxu0  ;;  %v3956_v38 = vld [vmem:[%s10008_s24 + $0xf0] sm:$0xff]  ;;  %v4140_v3 = vshll.u32 %v3991_v31, 16  ;;  %8762 = vmatprep.subr.bf16.mxu1 %v9426_v7 }
 0x1fa   : > { %v2026_v13 = vpop.f32.mrb[45].mxu1  ;;  %v8590_v37 = vadd.f32 %v8589_v61, %v8588_v30  ;;  %v8591_v26 = vpop.f32.mrb[46].mxu0  ;;  %4867 = vmatpush1.bf16.msra.mxu0 %v9383_v59  ;;  %v9431_v30 = vld [vmem:[#allocation7 + $0x1f0] sm:$0xff]  }
 0x1fb   : > { %v2093_v41 = vadd.f32 %v2026_v13, %v10619_v1  ;;  %v10649_v57 = vpop.f32.mrb[46].mxu1  ;;  %v8592_v16 = vpop.f32.mrb[47].mxu0  ;;  %4868 = vmatprep.subr.bf16.mxu0 %v9388_v40  ;;  %v10659_v1 = vsel %vm4002_vm1, %v10617_v45, %v10644_v33  ;;  %v9394_v45 = vld [vmem:[#allocation5 + $0x784] ss:$8 sps:$4 sm:$0xff]   ;;  %v4110_v40 = vshrl.u32 %v3988_v35, 16  ;;  %v4142_v7 = vrot.slane %v4140_v3, 2 }
 0x1fc   : > { %v2030_v48 = vpop.f32.mrb[47].mxu1  ;;  %v1424_v59 = vadd.f32 %v8590_v37, %v10509_v32  ;;  %v8593_v29 = vadd.f32 %v8592_v16, %v8591_v26  ;;  %v4137_v32 = vshrl.u32 %v3991_v31, 16  ;;  %v9392_v35 = vld [vmem:[#allocation5 + $0x780] ss:$8 sps:$4 sm:$0xff]   ;;  %v3961_v26 = vld [vmem:[%s10008_s24 + $0x118] sm:$0xff]  ;;  %8763 = vmatpush3.bf16.msra.mxu1 %v9427_v23  ;;  %v3960_v3 = vld [vmem:[%s10008_s24 + $0x110] sm:$0xff] }
 0x1fd   : > { %v10662_v2 = vadd.f32 %v2093_v41, %v1422_v25  ;;  %v2094_v44 = vadd.f32 %v2030_v48, %v10621_v42  ;;  %3870 = vmatmul.mubr.bf16.gmra.mrb[152].mxu0 %v10520_v28  ;;  %v10673_v42 = vor.u32 %v4097_v43, %v4094_v9  ;;  %v10676_v28 = vor.u32 %v4124_v46, %v4121_v0  ;;  %v3959_v41 = vld [vmem:[%s10008_s24 + $0x108] sm:$0xff] }
 0x1fe   : > { %4555 = vmatmul.mubr.bf16.gmra.mrb[152].mxu1 %v10654_v17  ;;  %v1425_v25 = vadd.f32 %v8593_v29, %v10517_v55  ;;  %4869 = vmatpush1.bf16.msra.mxu0 %v9386_v39  ;;  %v9397_v39 = vld [vmem:[#allocation5 + $0x794] ss:$8 sps:$4 sm:$0xff]   ;;  %v4112_v16 = vrot.slane %v4110_v40, 1  ;;  %v4139_v9 = vrot.slane %v4137_v32, 1  ;;  %v3990_v43 = vpack.c.bf16 %v3956_v38, %v3954_v54 }
 0x1ff   : > { %v10670_v61 = vadd.f32 %v2094_v44, %v1423_v20  ;;  %3877 = vmatprep.mubr.bf16.mxu0 %v10523_v60  ;;  %4870 = vmatprep.subr.bf16.mxu0 %v9391_v34  ;;  %v4115_v60 = vrot.slane %v4113_v21, 2  ;;  %v10688_v46 = vsel %vm4002_vm1, %v10639_v49, %v10673_v42  ;;  %v9432_v29 = vld [vmem:[#allocation7 + $0x1b0] sm:$0xff]   ;;  %v10693_v23 = vsel %vm4002_vm1, %v10644_v33, %v10676_v28  ;;  %v9436_v33 = vld [vmem:[#allocation7 + $0x1f8] sm:$0xff]  }
 0x200   : > { %4564 = vmatprep.mubr.bf16.mxu1 %v10659_v1  ;;  %v8594_v13 = vpop.f32.mrb[48].mxu0  ;;  %8764 = vmatprep.subr.bf16.mxu1 %v9431_v30 }
 0x201   : > { %v10678_v37 = vpop.f32.mrb[48].mxu1  ;;  %v8595_v55 = vpop.f32.mrb[49].mxu0  ;;  %v10701_v30 = vor.u32 %v4115_v60, %v4112_v16  ;;  %8765 = vmatpush3.bf16.msra.mxu1 %v9432_v29  ;;  %v9437_v16 = vld [vmem:[#allocation7 + $0x1b8] sm:$0xff]  }
 0x202   : > { %v2036_v20 = vpop.f32.mrb[49].mxu1  ;;  %v8596_v34 = vadd.f32 %v8595_v55, %v8594_v13  ;;  %v8597_v0 = vpop.f32.mrb[50].mxu0  ;;  %4871 = vmatpush1.bf16.msra.mxu0 %v9389_v27  ;;  %v9400_v13 = vld [vmem:[#allocation5 + $0x7a4] ss:$8 sps:$4 sm:$0xff]   ;;  %8766 = vmatprep.subr.bf16.mxu1 %v9436_v33 }
 0x203   : > { %v2095_v31 = vadd.f32 %v2036_v20, %v10646_v18  ;;  %v10683_v48 = vpop.f32.mrb[50].mxu1  ;;  %v8598_v44 = vpop.f32.mrb[51].mxu0  ;;  %4872 = vmatprep.subr.bf16.mxu0 %v9394_v45  ;;  %v3993_v18 = vpack.c.bf16 %v3961_v26, %v3959_v41  ;;  %v4128_v45 = vshrl.u32 %v3990_v43, 16  ;;  %v2792_v41 = vld [vmem:[%s10008_s24 + $0x188] sm:$0x3] }
 0x204   : > { %v2040_v40 = vpop.f32.mrb[51].mxu1  ;;  %v1426_v54 = vadd.f32 %v8596_v34, %v10525_v8  ;;  %v8599_v49 = vadd.f32 %v8598_v44, %v8597_v0  ;;  %v9395_v8 = vld [vmem:[#allocation5 + $0x790] ss:$8 sps:$4 sm:$0xff]   ;;  %v3963_v20 = vld [vmem:[%s10008_s24 + $0x128] sm:$0xff] }
 0x205   : > { %v10696_v27 = vadd.f32 %v2095_v31, %v1424_v59  ;;  %v2096_v38 = vadd.f32 %v2040_v40, %v10649_v57  ;;  %3878 = vmatmul.mubr.bf16.gmra.mrb[156].mxu0 %v10537_v53  ;;  %v10707_v57 = vor.u32 %v4142_v7, %v4139_v9  ;;  %v4131_v53 = vshll.u32 %v3990_v43, 16  ;;  %v3958_v59 = vld [vmem:[%s10008_s24 + $0x100] sm:$0xff]  ;;  %8767 = vmatpush3.bf16.msra.mxu1 %v9437_v16 }
 0x206   : > { %4565 = vmatmul.mubr.bf16.gmra.mrb[156].mxu1 %v10688_v46  ;;  %v1427_v21 = vadd.f32 %v8599_v49, %v10532_v50  ;;  %4873 = vmatpush1.bf16.msra.mxu0 %v9392_v35  ;;  %v4155_v26 = vshrl.u32 %v3993_v18, 16  ;;  %v4158_v50 = vshll.u32 %v3993_v18, 16  ;;  %v3965_v35 = vld [vmem:[%s10008_s24 + $0x138] sm:$0xff]  ;;  %v10718_v9 = vsel %vm4002_vm1, %v10673_v42, %v10701_v30  ;;  %v9398_v44 = vld [vmem:[#allocation5 + $0x7a0] ss:$8 sps:$4 sm:$0xff]  }
 0x207   : > { %v10704_v32 = vadd.f32 %v2096_v38, %v1425_v25  ;;  %3885 = vmatprep.mubr.bf16.mxu0 %v10540_v11  ;;  %4874 = vmatprep.subr.bf16.mxu0 %v9397_v39  ;;  %v4130_v39 = vrot.slane %v4128_v45, 1  ;;  %v3992_v43 = vpack.c.bf16 %v3960_v3, %v3958_v59  ;;  %v10726_v29 = vsel %vm4002_vm1, %v10676_v28, %v10707_v57  ;;  %v9405_v49 = vld [vmem:[#allocation5 + $0x7b4] ss:$8 sps:$4 sm:$0xff]   ;;  %v9443_v28 = vld [vmem:[#allocation5 + $0x904] ss:$8 sps:$4 sm:$0xff]  }
 0x208   : > { %4574 = vmatprep.mubr.bf16.mxu1 %v10693_v23  ;;  %v8600_v25 = vpop.f32.mrb[52].mxu0  ;;  %v4133_v40 = vrot.slane %v4131_v53, 2  ;;  %v2818_v38 = vpack.c.bf16 %v2792_v41, %v2792_v41  ;;  %v4157_v45 = vrot.slane %v4155_v26, 1  ;;  %v4160_v33 = vrot.slane %v4158_v50, 2  ;;  %v2791_v50 = vld [vmem:[%s10008_s24 + $0x180] sm:$0x3]  ;;  %6039 = vmatprep.subr.bf16.mxu1 %v9443_v28 }
 0x209   : > { %v2044_v55 = vpop.f32.mrb[52].mxu1  ;;  %v8601_v60 = vpop.f32.mrb[53].mxu0  ;;  %v3995_v59 = vpack.c.bf16 %v3965_v35, %v3963_v20  ;;  %v4146_v53 = vshrl.u32 %v3992_v43, 16 }
 0x20a   : > { %v2046_v11 = vpop.f32.mrb[53].mxu1  ;;  %v8602_v34 = vadd.f32 %v8601_v60, %v8600_v25  ;;  %v8603_v0 = vpop.f32.mrb[54].mxu0  ;;  %4875 = vmatpush1.bf16.msra.mxu0 %v9395_v8  ;;  %v10740_v20 = vor.u32 %v4160_v33, %v4157_v45  ;;  %v3962_v60 = vld [vmem:[%s10008_s24 + $0x120] sm:$0xff] }
 0x20b   : > { %v2097_v31 = vadd.f32 %v2046_v11, %v10678_v37  ;;  %v10721_v7 = vpop.f32.mrb[54].mxu1  ;;  %v8604_v18 = vpop.f32.mrb[55].mxu0  ;;  %4876 = vmatprep.subr.bf16.mxu0 %v9400_v13  ;;  %v4149_v13 = vshll.u32 %v3992_v43, 16  ;;  %v4173_v35 = vshrl.u32 %v3995_v59, 16  ;;  %v4176_v16 = vshll.u32 %v3995_v59, 16  ;;  %v3964_v11 = vld [vmem:[%s10008_s24 + $0x130] sm:$0xff] }
 0x20c   : > { %v2050_v42 = vpop.f32.mrb[55].mxu1  ;;  %v1428_v37 = vadd.f32 %v8602_v34, %v10542_v6  ;;  %v8605_v8 = vadd.f32 %v8604_v18, %v8603_v0  ;;  %v9403_v6 = vld [vmem:[#allocation5 + $0x7b0] ss:$8 sps:$4 sm:$0xff]   ;;  %v9415_v59 = vld [vmem:[#allocation5 + $0x7d4] ss:$8 sps:$4 sm:$0xff]  }
 0x20d   : > { %v10729_v3 = vadd.f32 %v2097_v31, %v1426_v54  ;;  %v2098_v25 = vadd.f32 %v2050_v42, %v10683_v48  ;;  %3886 = vmatmul.mubr.bf16.gmra.mrb[160].mxu0 %v10556_v52  ;;  %v4134_v54 = vor.u32 %v4133_v40, %v4130_v39  ;;  %v9410_v48 = vld [vmem:[#allocation5 + $0x7c4] ss:$8 sps:$4 sm:$0xff]   ;;  %v2894_v52 = vrot.slane %v2818_v38, 1 }
 0x20e   : > { %4575 = vmatmul.mubr.bf16.gmra.mrb[160].mxu1 %v10718_v9  ;;  %v1429_v41 = vadd.f32 %v8605_v8, %v10549_v14  ;;  %4877 = vmatpush1.bf16.msra.mxu0 %v9398_v44  ;;  %v2817_v31 = vpack.c.bf16 %v2791_v50, %v2791_v50  ;;  %v4151_v39 = vrot.slane %v4149_v13, 2  ;;  %v3994_v38 = vpack.c.bf16 %v3964_v11, %v3962_v60 }
 0x20f   : > { %v10735_v26 = vadd.f32 %v2098_v25, %v1427_v21  ;;  %3893 = vmatprep.mubr.bf16.mxu0 %v10560_v63  ;;  %4878 = vmatprep.subr.bf16.mxu0 %v9405_v49  ;;  %v4148_v63 = vrot.slane %v4146_v53, 1  ;;  %v10746_v42 = vsel %vm4002_vm1, %v10701_v30, %v4134_v54  ;;  %v9408_v49 = vld [vmem:[#allocation5 + $0x7c0] ss:$8 sps:$4 sm:$0xff]   ;;  %v2895_v8 = vsel %vm2845_vm2, %v10551_v12, %v2894_v52 }
 0x210   : > { %4584 = vmatprep.mubr.bf16.mxu1 %v10726_v29  ;;  %v8606_v14 = vpop.f32.mrb[56].mxu0  ;;  %v4175_v25 = vrot.slane %v4173_v35, 1  ;;  %v4178_v28 = vrot.slane %v4176_v16, 2  ;;  %v4164_v35 = vshrl.u32 %v3994_v38, 16 }
 0x211   : > { %v2054_v21 = vpop.f32.mrb[56].mxu1  ;;  %v8607_v43 = vpop.f32.mrb[57].mxu0  ;;  %v4152_v12 = vor.u32 %v4151_v39, %v4148_v63  ;;  %v9418_v63 = vld [vmem:[#allocation5 + $0x7e0] ss:$8 sps:$4 sm:$0xff]  }
 0x212   : > { %v2056_v34 = vpop.f32.mrb[57].mxu1  ;;  %v8608_v0 = vadd.f32 %v8607_v43, %v8606_v14  ;;  %v8609_v40 = vpop.f32.mrb[58].mxu0  ;;  %4879 = vmatpush1.bf16.msra.mxu0 %v9403_v6  ;;  %v4166_v39 = vrot.slane %v4164_v35, 1 }
 0x213   : > { %v2099_v44 = vadd.f32 %v2056_v34, %v2044_v55  ;;  %v2058_v18 = vpop.f32.mrb[58].mxu1  ;;  %v8610_v45 = vpop.f32.mrb[59].mxu0  ;;  %4880 = vmatprep.subr.bf16.mxu0 %v9410_v48  ;;  %v10753_v55 = vsel %vm4002_vm1, %v10707_v57, %v10740_v20  ;;  %v2892_v48 = vrot.slane %v2817_v31, 1  ;;  %v9413_v57 = vld [vmem:[#allocation5 + $0x7d0] ss:$8 sps:$4 sm:$0xff]  }
 0x214   : > { %v2060_v33 = vpop.f32.mrb[59].mxu1  ;;  %v1430_v53 = vadd.f32 %v8608_v0, %v10562_v56  ;;  %v8611_v13 = vadd.f32 %v8610_v45, %v8609_v40  ;;  %v4167_v56 = vshll.u32 %v3994_v38, 16 }
 0x215   : > { %v10756_v30 = vadd.f32 %v2099_v44, %v1428_v37  ;;  %v2100_v6 = vadd.f32 %v2060_v33, %v10721_v7  ;;  %3894 = vmatmul.mubr.bf16.gmra.mrb[164].mxu0 %v10576_v22  ;;  %v9420_v37 = vld [vmem:[#allocation5 + $0x7e4] ss:$8 sps:$4 sm:$0xff]   ;;  %v10765_v7 = vor.u32 %v4178_v28, %v4175_v25 }
 0x216   : > { %4585 = vmatmul.mubr.bf16.gmra.mrb[164].mxu1 %v10746_v42  ;;  %v1431_v50 = vadd.f32 %v8611_v13, %v10570_v5  ;;  %4881 = vmatpush1.bf16.msra.mxu0 %v9408_v49  ;;  %v2893_v5 = vsel %vm2845_vm2, %v10568_v62, %v2892_v48  ;;  %v4169_v0 = vrot.slane %v4167_v56, 2  ;;  %v9425_v49 = vld [vmem:[#allocation5 + $0x7f4] ss:$8 sps:$4 sm:$0xff]  }
 0x217   : > { %v10762_v52 = vadd.f32 %v2100_v6, %v1429_v41  ;;  %3901 = vmatprep.mubr.bf16.mxu0 %v2895_v8  ;;  %4882 = vmatprep.subr.bf16.mxu0 %v9415_v59  ;;  %v10770_v41 = vsel %vm4002_vm1, %v4134_v54, %v4152_v12  ;;  %v10775_v38 = vsel %vm4002_vm1, %v10740_v20, %v10765_v7  ;;  %v9423_v8 = vld [vmem:[#allocation5 + $0x7f0] ss:$8 sps:$4 sm:$0xff]  }
 0x218   : > { %4594 = vmatprep.mubr.bf16.mxu1 %v10753_v55  ;;  %v8612_v22 = vpop.f32.mrb[60].mxu0  ;;  %v10785_v25 = vor.u32 %v4169_v0, %v4166_v39 }
 0x219   : > { %v2064_v16 = vpop.f32.mrb[60].mxu1  ;;  %v8613_v60 = vpop.f32.mrb[61].mxu0 }
 0x21a   : > { %v2066_v11 = vpop.f32.mrb[61].mxu1  ;;  %v8614_v14 = vadd.f32 %v8613_v60, %v8612_v22  ;;  %v8615_v34 = vpop.f32.mrb[62].mxu0  ;;  %4883 = vmatpush1.bf16.msra.mxu0 %v9413_v57  ;;  %v9428_v57 = vld [vmem:[#allocation5 + $0x800] ss:$8 sps:$4 sm:$0xff]  }
 0x21b   : > { %v2101_v43 = vadd.f32 %v2066_v11, %v2054_v21  ;;  %v2068_v31 = vpop.f32.mrb[62].mxu1  ;;  %v8616_v44 = vpop.f32.mrb[63].mxu0  ;;  %4884 = vmatprep.subr.bf16.mxu0 %v9420_v37  ;;  %v9435_v37 = vld [vmem:[#allocation5 + $0x814] ss:$8 sps:$4 sm:$0xff]  }
 0x21c   : > { %v2070_v40 = vpop.f32.mrb[63].mxu1  ;;  %v1432_v62 = vadd.f32 %v8614_v14, %v10578_v51  ;;  %v8617_v21 = vadd.f32 %v8616_v44, %v8615_v34  ;;  %v9430_v51 = vld [vmem:[#allocation5 + $0x804] ss:$8 sps:$4 sm:$0xff]  }
 0x21d   : > { %v10778_v54 = vadd.f32 %v2101_v43, %v1430_v53  ;;  %v2102_v45 = vadd.f32 %v2070_v40, %v2058_v18  ;;  %3902 = vmatmul.mubr.bf16.gmra.mrb[168].mxu0 %v2893_v5 }
 0x21e   : > { %4595 = vmatmul.mubr.bf16.gmra.mrb[168].mxu1 %v10770_v41  ;;  %v1433_v33 = vadd.f32 %v8617_v21, %v10584_v15  ;;  %4885 = vmatpush1.bf16.msra.mxu0 %v9418_v63 }
 0x21f   : > { %v10782_v59 = vadd.f32 %v2102_v45, %v1431_v50  ;;  %4604 = vmatprep.mubr.bf16.mxu1 %v10775_v38  ;;  %4886 = vmatprep.subr.bf16.mxu0 %v9425_v49  ;;  %v10790_v50 = vsel %vm4002_vm1, %v4152_v12, %v10785_v25  ;;  %v9433_v12 = vld [vmem:[#allocation5 + $0x810] ss:$8 sps:$4 sm:$0xff]   ;;  %v9446_v49 = vld [vmem:[#allocation5 + $0x834] ss:$8 sps:$4 sm:$0xff]  }
 0x220   : > { %4888 = vmatprep.mubr.bf16.mxu0 %v10606_v24  ;;  %v8618_v20 = vpop.f32.mrb[64].mxu0 }
 0x221   : > { %v2074_v28 = vpop.f32.mrb[64].mxu1  ;;  %v8619_v18 = vpop.f32.mrb[65].mxu0 }
 0x222   : > { %v2076_v53 = vpop.f32.mrb[65].mxu1  ;;  %v8620_v13 = vadd.f32 %v8619_v18, %v8618_v20  ;;  %v8621_v48 = vpop.f32.mrb[66].mxu0  ;;  %4887 = vmatpush1.bf16.msra.mxu0 %v9423_v8  ;;  %v9447_v8 = vld [vmem:[#allocation5 + $0x910] ss:$8 sps:$4 sm:$0xff]   ;;  %v9455_v20 = vld [vmem:[#allocation5 + $0x924] ss:$8 sps:$4 sm:$0xff]  }
 0x223   : > { %v2103_v6 = vadd.f32 %v2076_v53, %v2064_v16  ;;  %v2078_v15 = vpop.f32.mrb[66].mxu1  ;;  %v8622_v35 = vpop.f32.mrb[67].mxu0  ;;  %5677 = vmatprep.subr.bf16.mxu0 %v9430_v51  ;;  %v9452_v51 = vld [vmem:[#allocation5 + $0x844] ss:$8 sps:$4 sm:$0xff]  }
 0x224   : > { %v2080_v56 = vpop.f32.mrb[67].mxu1  ;;  %v1434_v24 = vadd.f32 %v8620_v13, %v10588_v19  ;;  %v8623_v60 = vadd.f32 %v8622_v35, %v8621_v48  ;;  %v9440_v19 = vld [vmem:[#allocation5 + $0x824] ss:$8 sps:$4 sm:$0xff]   ;;  %v9453_v35 = vld [vmem:[#allocation5 + $0x920] ss:$8 sps:$4 sm:$0xff]  }
 0x225   : > { %v10793_v22 = vadd.f32 %v2103_v6, %v1432_v62  ;;  %v2104_v11 = vadd.f32 %v2080_v56, %v2068_v31  ;;  %4889 = vmatmul.mubr.bf16.vlgmr.msra.gmra.mrb[172].mxu0 %v10369_v10  ;;  %v9438_v10 = vld [vmem:[#allocation5 + $0x820] ss:$8 sps:$4 sm:$0xff]   ;;  %v9449_v62 = vld [vmem:[#allocation5 + $0x914] ss:$8 sps:$4 sm:$0xff]  }
 0x226   : > { %4605 = vmatmul.mubr.bf16.gmra.mrb[172].mxu1 %v10790_v50  ;;  %v1435_v16 = vadd.f32 %v8623_v60, %v10595_v47  ;;  %5678 = vmatpush1.bf16.msra.mxu0 %v9428_v57  ;;  %v9441_v47 = vld [vmem:[#allocation5 + $0x900] ss:$8 sps:$4 sm:$0xff]  }
 0x227   : > { %v10798_v5 = vadd.f32 %v2104_v11, %v1433_v33  ;;  %4896 = vmatprep.mubr.bf16.mxu0 %v10626_v36  ;;  %5679 = vmatprep.subr.bf16.mxu0 %v9435_v37  ;;  %v9444_v33 = vld [vmem:[#allocation5 + $0x830] ss:$8 sps:$4 sm:$0xff]   ;;  %v9450_v57 = vld [vmem:[#allocation5 + $0x840] ss:$8 sps:$4 sm:$0xff]  }
 0x228   : > { %5184 = vmatprep.mubr.bf16.mxu1 %v10659_v1  ;;  %v2368_v43 = vpop.f32.mrb[68].mxu0 }
 0x229   : > { %v2084_v14 = vpop.f32.mrb[68].mxu1  ;;  %v2370_v31 = vpop.f32.mrb[69].mxu0 }
 0x22a   : > { %v2085_v34 = vpop.f32.mrb[69].mxu1  ;;  %v2371_v0 = vpop.f32.mrb[70].mxu0  ;;  %5680 = vmatpush1.bf16.msra.mxu0 %v9433_v12  ;;  %v9456_v14 = vld [vmem:[#allocation5 + $0x930] ss:$8 sps:$4 sm:$0xff]  }
 0x22b   : > { %v2105_v63 = vadd.f32 %v2085_v34, %v2074_v28  ;;  %v2087_v39 = vpop.f32.mrb[70].mxu1  ;;  %v2373_v40 = vpop.f32.mrb[71].mxu0  ;;  %5681 = vmatprep.subr.bf16.mxu0 %v9440_v19  ;;  %v9464_v34 = vld [vmem:[#allocation5 + $0x944] ss:$8 sps:$4 sm:$0xff]  }
 0x22c   : > { %v2088_v44 = vpop.f32.mrb[71].mxu1 }
 0x22d   : > { %v10802_v36 = vadd.f32 %v2105_v63, %v1434_v24  ;;  %v2106_v21 = vadd.f32 %v2088_v44, %v2078_v15  ;;  %4897 = vmatmul.mubr.bf16.gmra.mrb[176].mxu0 %v10654_v17  ;;  %v9458_v24 = vld [vmem:[#allocation5 + $0x934] ss:$8 sps:$4 sm:$0xff]  }
 0x22e   : > { %5185 = vmatmul.mubr.bf16.vlgmr.msra.gmra.mrb[176].mxu1 %v10688_v46  ;;  %5682 = vmatpush1.bf16.msra.mxu0 %v9438_v10 }
 0x22f   : > { %v10806_v45 = vadd.f32 %v2106_v21, %v1435_v16  ;;  %6040 = vmatpush1.bf16.msra.mxu1 %v9441_v47  ;;  %5683 = vmatprep.subr.bf16.mxu0 %v9446_v49  ;;  %v9461_v16 = vld [vmem:[#allocation5 + $0x854] ss:$8 sps:$4 sm:$0xff]   ;;  %v3967_v49 = vld [vmem:[%s10008_s24 + $0x148] sm:$0xff] }
 0x230   : > { %6041 = vmatprep.subr.bf16.mxu1 %v9449_v62  ;;  %v2376_v28 = vpop.f32.mrb[72].mxu0  ;;  %4906 = vmatprep.mubr.bf16.mxu0 %v10659_v1  ;;  %v3969_v62 = vld [vmem:[%s10008_s24 + $0x158] sm:$0xff] }
 0x231   : > { %v8640_v18 = vpop.f32.mrb[72].mxu1  ;;  %5192 = vmatprep.mubr.bf16.mxu1 %v10693_v23  ;;  %v2378_v53 = vpop.f32.mrb[73].mxu0 }
 0x232   : > { %v8641_v17 = vpop.f32.mrb[73].mxu1  ;;  %v2453_v13 = vadd.f32 %v2378_v53, %v2368_v43  ;;  %v2380_v6 = vpop.f32.mrb[74].mxu0  ;;  %5684 = vmatpush1.bf16.msra.mxu0 %v9444_v33  ;;  %v9459_v43 = vld [vmem:[#allocation5 + $0x850] ss:$8 sps:$4 sm:$0xff]  }
 0x233   : > { %v8642_v48 = vadd.f32 %v8641_v17, %v8640_v18  ;;  %v8643_v15 = vpop.f32.mrb[74].mxu1  ;;  %6042 = vmatpush1.bf16.msra.mxu1 %v9447_v8  ;;  %v2382_v56 = vpop.f32.mrb[75].mxu0  ;;  %5685 = vmatprep.subr.bf16.mxu0 %v9452_v51  ;;  %v9470_v8 = vld [vmem:[#allocation5 + $0x954] ss:$8 sps:$4 sm:$0xff]   ;;  %v9468_v53 = vld [vmem:[#allocation5 + $0x950] ss:$8 sps:$4 sm:$0xff]   ;;  %v10825_v17 = vpack.c.bf16 %v3969_v62, %v3967_v49 }
 0x234   : > { %v8644_v37 = vpop.f32.mrb[75].mxu1  ;;  %6043 = vmatprep.subr.bf16.mxu1 %v9455_v20  ;;  %v2469_v60 = vadd.f32 %v2453_v13, %v10632_v58  ;;  %v2454_v1 = vadd.f32 %v2382_v56, %v2371_v0  ;;  %v9467_v58 = vld [vmem:[#allocation5 + $0x864] ss:$8 sps:$4 sm:$0xff]   ;;  %v9462_v0 = vld [vmem:[#allocation5 + $0x940] ss:$8 sps:$4 sm:$0xff]  }
 0x235   : > { %v8645_v11 = vadd.f32 %v8644_v37, %v8643_v15  ;;  %4907 = vmatmul.mubr.bf16.gmra.mrb[180].mxu0 %v10688_v46  ;;  %v9471_v15 = vld [vmem:[#allocation5 + $0x870] ss:$8 sps:$4 sm:$0xff]  }
 0x236   : > { %5193 = vmatmul.mubr.bf16.gmra.mrb[180].mxu1 %v10718_v9  ;;  %v2470_v12 = vadd.f32 %v2454_v1, %v10641_v4  ;;  %v10814_v19 = vadd.f32 %v8642_v48, %v2469_v60  ;;  %5686 = vmatpush1.bf16.msra.mxu0 %v9450_v57  ;;  %v9479_v57 = vld [vmem:[#allocation5 + $0x884] ss:$8 sps:$4 sm:$0xff]  }
 0x237   : > { %6044 = vmatpush1.bf16.msra.mxu1 %v9453_v35  ;;  %4916 = vmatprep.mubr.bf16.mxu0 %v10693_v23  ;;  %v9465_v23 = vld [vmem:[#allocation5 + $0x860] ss:$8 sps:$4 sm:$0xff]  }
 0x238   : > { %6045 = vmatprep.subr.bf16.mxu1 %v9458_v24  ;;  %v10817_v31 = vadd.f32 %v8645_v11, %v2470_v12  ;;  %v2386_v46 = vpop.f32.mrb[76].mxu0  ;;  %5687 = vmatprep.subr.bf16.mxu0 %v9461_v16  ;;  %v3973_v24 = vld [vmem:[%s10008_s24 + $0x178] sm:$0xff]  ;;  %v4191_v11 = vshrl.u32 %v10825_v17, 16  ;;  %v4194_v16 = vshll.u32 %v10825_v17, 16 }
 0x239   : > { %v8646_v63 = vpop.f32.mrb[76].mxu1  ;;  %5200 = vmatprep.mubr.bf16.mxu1 %v10726_v29  ;;  %v2388_v4 = vpop.f32.mrb[77].mxu0 }
 0x23a   : > { %v8647_v39 = vpop.f32.mrb[77].mxu1  ;;  %v2455_v10 = vadd.f32 %v2388_v4, %v2376_v28  ;;  %v2390_v47 = vpop.f32.mrb[78].mxu0  ;;  %5688 = vmatpush1.bf16.msra.mxu0 %v9459_v43  ;;  %v9473_v28 = vld [vmem:[#allocation5 + $0x874] ss:$8 sps:$4 sm:$0xff]   ;;  %v4193_v49 = vrot.slane %v4191_v11, 1  ;;  %v4196_v62 = vrot.slane %v4194_v16, 2 }
 0x23b   : > { %v8648_v44 = vadd.f32 %v8647_v39, %v8646_v63  ;;  %v8649_v40 = vpop.f32.mrb[78].mxu1  ;;  %6046 = vmatpush1.bf16.msra.mxu1 %v9456_v14  ;;  %v2392_v21 = vpop.f32.mrb[79].mxu0  ;;  %5689 = vmatprep.subr.bf16.mxu0 %v9467_v58  ;;  %v9474_v58 = vld [vmem:[#allocation5 + $0x960] ss:$8 sps:$4 sm:$0xff]  }
 0x23c   : > { %v8650_v33 = vpop.f32.mrb[79].mxu1  ;;  %6047 = vmatprep.subr.bf16.mxu1 %v9464_v34  ;;  %v2471_v51 = vadd.f32 %v2455_v10, %v10662_v2  ;;  %v2456_v20 = vadd.f32 %v2392_v21, %v2380_v6  ;;  %v3966_v2 = vld [vmem:[%s10008_s24 + $0x140] sm:$0xff]  ;;  %v3968_v6 = vld [vmem:[%s10008_s24 + $0x150] sm:$0xff] }
 0x23d   : > { %v8651_v18 = vadd.f32 %v8650_v33, %v8649_v40  ;;  %4917 = vmatmul.mubr.bf16.gmra.mrb[184].mxu0 %v10718_v9  ;;  %v9476_v9 = vld [vmem:[#allocation5 + $0x964] ss:$8 sps:$4 sm:$0xff]   ;;  %v10840_v12 = vpack.c.bf16 %v3968_v6, %v3966_v2  ;;  %v9477_v63 = vld [vmem:[#allocation5 + $0x880] ss:$8 sps:$4 sm:$0xff]  }
 0x23e   : > { %5201 = vmatmul.mubr.bf16.gmra.mrb[184].mxu1 %v10746_v42  ;;  %v2472_v13 = vadd.f32 %v2456_v20, %v10670_v61  ;;  %v10828_v48 = vadd.f32 %v8648_v44, %v2471_v51  ;;  %5690 = vmatpush1.bf16.msra.mxu0 %v9465_v23  ;;  %v3971_v61 = vld [vmem:[%s10008_s24 + $0x168] sm:$0xff] }
 0x23f   : > { %6048 = vmatpush1.bf16.msra.mxu1 %v9462_v0  ;;  %4926 = vmatprep.mubr.bf16.mxu0 %v10726_v29  ;;  %v9482_v0 = vld [vmem:[#allocation5 + $0x974] ss:$8 sps:$4 sm:$0xff]   ;;  %v10844_v10 = vpack.c.bf16 %v3973_v24, %v3971_v61  ;;  %v4182_v21 = vshrl.u32 %v10840_v12, 16  ;;  %v4185_v33 = vshll.u32 %v10840_v12, 16  ;;  %v9488_v20 = vld [vmem:[#allocation5 + $0x984] ss:$8 sps:$4 sm:$0xff]  }
 0x240   : > { %6049 = vmatprep.subr.bf16.mxu1 %v9470_v8  ;;  %v10833_v35 = vadd.f32 %v8651_v18, %v2472_v13  ;;  %v2396_v56 = vpop.f32.mrb[80].mxu0  ;;  %5691 = vmatprep.subr.bf16.mxu0 %v9473_v28  ;;  %v3970_v28 = vld [vmem:[%s10008_s24 + $0x160] sm:$0xff] }
 0x241   : > { %v8652_v37 = vpop.f32.mrb[80].mxu1  ;;  %5208 = vmatprep.mubr.bf16.mxu1 %v10753_v55  ;;  %v2398_v60 = vpop.f32.mrb[81].mxu0  ;;  %v4209_v18 = vshrl.u32 %v10844_v10, 16  ;;  %v4187_v61 = vrot.slane %v4185_v33, 2  ;;  %v9489_v16 = vld [vmem:[#allocation5 + $0x8a0] ss:$8 sps:$4 sm:$0xff]  }
 0x242   : > { %v8653_v1 = vpop.f32.mrb[81].mxu1  ;;  %v2457_v29 = vadd.f32 %v2398_v60, %v2386_v46  ;;  %v10842_v14 = vpop.f32.mrb[82].mxu0  ;;  %5692 = vmatpush1.bf16.msra.mxu0 %v9471_v15  ;;  %v9485_v46 = vld [vmem:[#allocation5 + $0x894] ss:$8 sps:$4 sm:$0xff]  }
 0x243   : > { %v8654_v43 = vadd.f32 %v8653_v1, %v8652_v37  ;;  %v8655_v34 = vpop.f32.mrb[82].mxu1  ;;  %6050 = vmatpush1.bf16.msra.mxu1 %v9468_v53  ;;  %v2402_v4 = vpop.f32.mrb[83].mxu0  ;;  %5693 = vmatprep.subr.bf16.mxu0 %v9479_v57  ;;  %v3972_v53 = vld [vmem:[%s10008_s24 + $0x170] sm:$0xff]  ;;  %v9486_v57 = vld [vmem:[#allocation5 + $0x980] ss:$8 sps:$4 sm:$0xff]   ;;  %v10862_v37 = vor.u32 %v4196_v62, %v4193_v49 }
 0x244   : > { %v8656_v39 = vpop.f32.mrb[83].mxu1  ;;  %6051 = vmatprep.subr.bf16.mxu1 %v9476_v9  ;;  %v2473_v44 = vadd.f32 %v2457_v29, %v10696_v27  ;;  %v2458_v40 = vadd.f32 %v2402_v4, %v2390_v47  ;;  %v9480_v27 = vld [vmem:[#allocation5 + $0x970] ss:$8 sps:$4 sm:$0xff]   ;;  %v10866_v29 = vpack.c.bf16 %v3972_v53, %v3970_v28  ;;  %v4211_v4 = vrot.slane %v4209_v18, 1 }
 0x245   : > { %v8657_v23 = vadd.f32 %v8656_v39, %v8655_v34  ;;  %4927 = vmatmul.mubr.bf16.gmra.mrb[188].mxu0 %v10746_v42  ;;  %v9483_v47 = vld [vmem:[#allocation5 + $0x890] ss:$8 sps:$4 sm:$0xff]   ;;  %v9491_v42 = vld [vmem:[#allocation5 + $0x8a4] ss:$8 sps:$4 sm:$0xff]  }
 0x246   : > { %5209 = vmatmul.mubr.bf16.gmra.mrb[188].mxu1 %v10770_v41  ;;  %v2474_v8 = vadd.f32 %v2458_v40, %v10704_v32  ;;  %v10852_v51 = vadd.f32 %v8654_v43, %v2473_v44  ;;  %5694 = vmatpush1.bf16.msra.mxu0 %v9477_v63  ;;  %v4212_v32 = vshll.u32 %v10844_v10, 16  ;;  %v3975_v43 = vld [vmem:[%s10008_s24 + $0x188] sm:$0x7]  ;;  %v9494_v63 = vld [vmem:[#allocation5 + $0x994] ss:$8 sps:$4 sm:$0xff]   ;;  %v4200_v33 = vshrl.u32 %v10866_v29, 16 }
 0x247   : > { %6052 = vmatpush1.bf16.msra.mxu1 %v9474_v58  ;;  %4936 = vmatprep.mubr.bf16.mxu0 %v10753_v55  ;;  %v4184_v55 = vrot.slane %v4182_v21, 1  ;;  %v9497_v44 = vld [vmem:[#allocation5 + $0x8b4] ss:$8 sps:$4 sm:$0xff]   ;;  %v4001_v62 = vpack.c.bf16 %v3975_v43, %v3975_v43  ;;  %v9501_v43 = vld [vmem:[#allocation5 + $0x8c0] ss:$8 sps:$4 sm:$0xff]  }
 0x248   : > { %6053 = vmatprep.subr.bf16.mxu1 %v9482_v0  ;;  %v10858_v13 = vadd.f32 %v8657_v23, %v2474_v8  ;;  %v2406_v15 = vpop.f32.mrb[84].mxu0  ;;  %5216 = vmatprep.mubr.bf16.mxu1 %v10775_v38  ;;  %v4214_v40 = vrot.slane %v4212_v32, 2  ;;  %v9492_v23 = vld [vmem:[#allocation5 + $0x990] ss:$8 sps:$4 sm:$0xff]   ;;  %v3974_v8 = vld [vmem:[%s10008_s24 + $0x180] sm:$0x7] }
 0x249   : > { %v8658_v2 = vpop.f32.mrb[84].mxu1  ;;  %5695 = vmatprep.subr.bf16.mxu0 %v9485_v46  ;;  %v2408_v6 = vpop.f32.mrb[85].mxu0  ;;  %v4198_v46 = vsel %vm4002_vm1, %v10765_v7, %v10862_v37  ;;  %v10876_v49 = vor.u32 %v4187_v61, %v4184_v55  ;;  %v9503_v7 = vld [vmem:[#allocation5 + $0x8c4] ss:$8 sps:$4 sm:$0xff]   ;;  %v4000_v32 = vpack.c.bf16 %v3974_v8, %v3974_v8  ;;  %v9498_v61 = vld [vmem:[#allocation5 + $0x9a0] ss:$8 sps:$4 sm:$0xff]  }
 0x24a   : > { %v8659_v9 = vpop.f32.mrb[85].mxu1  ;;  %v2459_v24 = vadd.f32 %v2408_v6, %v2396_v56  ;;  %v10864_v60 = vpop.f32.mrb[86].mxu0  ;;  %5696 = vmatpush1.bf16.msra.mxu0 %v9483_v47  ;;  %v5274_v8 = vld [vmem:[%s10008_s24 + $0x48] sm:$0xff] }
 0x24b   : > { %v8660_v1 = vadd.f32 %v8659_v9, %v8658_v2  ;;  %v8661_v11 = vpop.f32.mrb[86].mxu1  ;;  %6054 = vmatpush1.bf16.msra.mxu1 %v9480_v27  ;;  %v2412_v34 = vpop.f32.mrb[87].mxu0  ;;  %5697 = vmatprep.subr.bf16.mxu0 %v9491_v42  ;;  %v9500_v27 = vld [vmem:[#allocation5 + $0x9a4] ss:$8 sps:$4 sm:$0xff]   ;;  %v10889_v42 = vor.u32 %v4214_v40, %v4211_v4  ;;  %v10894_v53 = vsel %vm4002_vm1, %v10785_v25, %v10876_v49  ;;  %v4227_v2 = vshrl.u32 %v4001_v62, 16 }
 0x24c   : > { %v8662_v58 = vpop.f32.mrb[87].mxu1  ;;  %6055 = vmatprep.subr.bf16.mxu1 %v9488_v20  ;;  %v2475_v39 = vadd.f32 %v2459_v24, %v10729_v3  ;;  %v2460_v56 = vadd.f32 %v2412_v34, %v10842_v14  ;;  %v9495_v14 = vld [vmem:[#allocation5 + $0x8b0] ss:$8 sps:$4 sm:$0xff]   ;;  %v4202_v24 = vrot.slane %v4200_v33, 1  ;;  %v9506_v25 = vld [vmem:[#allocation5 + $0x9b4] ss:$8 sps:$4 sm:$0xff]  }
 0x24d   : > { %v8663_v0 = vadd.f32 %v8662_v58, %v8661_v11  ;;  %4937 = vmatmul.mubr.bf16.gmra.mrb[192].mxu0 %v10770_v41  ;;  %v4203_v41 = vshll.u32 %v10866_v29, 16  ;;  %v10903_v4 = vsel %vm4002_vm1, %v10862_v37, %v10889_v42  ;;  %v4221_v40 = vshll.u32 %v4000_v32, 16  ;;  %v5270_v33 = vld [vmem:[%s10008_s24 + $0x28] sm:$0xff] }
 0x24e   : > { %5217 = vmatmul.mubr.bf16.gmra.mrb[192].mxu1 %v10790_v50  ;;  %v2476_v3 = vadd.f32 %v2460_v56, %v10735_v26  ;;  %v10879_v21 = vadd.f32 %v8660_v1, %v2475_v39  ;;  %5698 = vmatpush1.bf16.msra.mxu0 %v9489_v16  ;;  %v9512_v39 = vld [vmem:[#allocation5 + $0x8d4] ss:$8 sps:$4 sm:$0xff]   ;;  %v9509_v56 = vld [vmem:[#allocation5 + $0x9c4] ss:$8 sps:$4 sm:$0xff]  }
 0x24f   : > { %6056 = vmatpush1.bf16.msra.mxu1 %v9486_v57  ;;  %4946 = vmatprep.mubr.bf16.mxu0 %v10775_v38  ;;  %v4230_v38 = vshll.u32 %v4001_v62, 16  ;;  %v4205_v1 = vrot.slane %v4203_v41, 2  ;;  %v9518_v62 = vld [vmem:[#allocation5 + $0x8e4] ss:$8 sps:$4 sm:$0xff]   ;;  %v5272_v41 = vld [vmem:[%s10008_s24 + $0x38] sm:$0xff] }
 0x250   : > { %6057 = vmatprep.subr.bf16.mxu1 %v9494_v63  ;;  %v10885_v47 = vadd.f32 %v8663_v0, %v2476_v3  ;;  %v10887_v20 = vpop.f32.mrb[88].mxu0  ;;  %5224 = vmatprep.mubr.bf16.mxu1 %v4198_v46  ;;  %v9504_v63 = vld [vmem:[#allocation5 + $0x9b0] ss:$8 sps:$4 sm:$0xff]   ;;  %v5266_v3 = vld [vmem:[%s10008_s24 + $0x8] sm:$0xf0] }
 0x251   : > { %v8664_v26 = vpop.f32.mrb[88].mxu1  ;;  %5699 = vmatprep.subr.bf16.mxu0 %v9497_v44  ;;  %v2418_v18 = vpop.f32.mrb[89].mxu0  ;;  %v9510_v0 = vld [vmem:[#allocation5 + $0x8d0] ss:$8 sps:$4 sm:$0xff]   ;;  %v4218_v44 = vshrl.u32 %v4000_v32, 16 }
 0x252   : > { %v8665_v28 = vpop.f32.mrb[89].mxu1  ;;  %v2461_v6 = vadd.f32 %v2418_v18, %v2406_v15  ;;  %v10896_v9 = vpop.f32.mrb[90].mxu0  ;;  %5700 = vmatpush1.bf16.msra.mxu0 %v9495_v14  ;;  %v5268_v14 = vld [vmem:[%s10008_s24 + $0x18] sm:$0xff] }
 0x253   : > { %v8666_v57 = vadd.f32 %v8665_v28, %v8664_v26  ;;  %v8667_v55 = vpop.f32.mrb[90].mxu1  ;;  %6058 = vmatpush1.bf16.msra.mxu1 %v9492_v23  ;;  %v2422_v11 = vpop.f32.mrb[91].mxu0  ;;  %5701 = vmatprep.subr.bf16.mxu0 %v9503_v7  ;;  %v5278_v26 = vld [vmem:[%s10008_s24 + $0x68] sm:$0xff]  ;;  %v5280_v18 = vld [vmem:[%s10008_s24 + $0x78] sm:$0xff]  ;;  %v4220_v32 = vrot.slane %v4218_v44, 1 }
 0x254   : > { %v8668_v16 = vpop.f32.mrb[91].mxu1  ;;  %6059 = vmatprep.subr.bf16.mxu1 %v9500_v27  ;;  %v2477_v34 = vadd.f32 %v2461_v6, %v10756_v30  ;;  %v2462_v58 = vadd.f32 %v2422_v11, %v10864_v60  ;;  %v4229_v30 = vrot.slane %v4227_v2, 1  ;;  %v4232_v60 = vrot.slane %v4230_v38, 2  ;;  %v9507_v11 = vld [vmem:[#allocation5 + $0x9c0] ss:$8 sps:$4 sm:$0xff]  }
 0x255   : > { %v8669_v15 = vadd.f32 %v8668_v16, %v8667_v55  ;;  %4947 = vmatmul.mubr.bf16.gmra.mrb[196].mxu0 %v10790_v50  ;;  %v10910_v50 = vor.u32 %v4205_v1, %v4202_v24  ;;  %v4223_v6 = vrot.slane %v4221_v40, 2  ;;  %v5316_v16 = vpack.c.bf16 %v5268_v14, %v5266_v3  ;;  %v9524_v44 = vld [vmem:[#allocation5 + $0x8f4] ss:$8 sps:$4 sm:$0xff]   ;;  %v9521_v40 = vld [vmem:[#allocation5 + $0x9e4] ss:$8 sps:$4 sm:$0xff]  }
 0x256   : > { %5225 = vmatmul.mubr.bf16.gmra.mrb[196].mxu1 %v10894_v53  ;;  %v2478_v23 = vadd.f32 %v2462_v58, %v10762_v52  ;;  %v10908_v37 = vadd.f32 %v8666_v57, %v2477_v34  ;;  %4956 = vmatprep.mubr.bf16.mxu0 %v4198_v46  ;;  %v5276_v46 = vld [vmem:[%s10008_s24 + $0x58] sm:$0xff]  ;;  %v4233_v38 = vor.u32 %v4232_v60, %v4229_v30  ;;  %v9516_v58 = vld [vmem:[#allocation5 + $0x8e0] ss:$8 sps:$4 sm:$0xff]  }
 0x257   : > { %6060 = vmatpush1.bf16.msra.mxu1 %v9498_v61  ;;  %5702 = vmatpush1.bf16.msra.mxu0 %v9501_v43  ;;  %v10931_v1 = vsel %vm4002_vm1, %v10876_v49, %v10910_v50  ;;  %v9515_v34 = vld [vmem:[#allocation5 + $0x9d4] ss:$8 sps:$4 sm:$0xff]   ;;  %v9513_v49 = vld [vmem:[#allocation5 + $0x9d0] ss:$8 sps:$4 sm:$0xff]   ;;  %v5269_v14 = vld [vmem:[%s10008_s24 + $0x20] sm:$0xff] }
 0x258   : > { %6061 = vmatprep.subr.bf16.mxu1 %v9506_v25  ;;  %v10917_v27 = vadd.f32 %v8669_v15, %v2478_v23  ;;  %v10919_v52 = vpop.f32.mrb[92].mxu0  ;;  %5232 = vmatprep.mubr.bf16.mxu1 %v10903_v4  ;;  %v5320_v15 = vpack.c.bf16 %v5276_v46, %v5274_v8  ;;  %v9522_v23 = vld [vmem:[#allocation5 + $0x8f0] ss:$8 sps:$4 sm:$0xff]  }
 0x259   : > { %v8670_v7 = vpop.f32.mrb[92].mxu1  ;;  %5703 = vmatprep.subr.bf16.mxu0 %v9512_v39  ;;  %v2428_v28 = vpop.f32.mrb[93].mxu0  ;;  %v5322_v39 = vpack.c.bf16 %v5280_v18, %v5278_v26  ;;  %v5275_v46 = vld [vmem:[%s10008_s24 + $0x50] sm:$0xff] }
 0x25a   : > { %v8671_v2 = vpop.f32.mrb[93].mxu1  ;;  %v2463_v57 = vadd.f32 %v2428_v28, %v10887_v20  ;;  %v10926_v55 = vpop.f32.mrb[94].mxu0  ;;  %v5318_v20 = vpack.c.bf16 %v5272_v41, %v5270_v33  ;;  %v5271_v33 = vld [vmem:[%s10008_s24 + $0x30] sm:$0xff]  ;;  %v5273_v41 = vld [vmem:[%s10008_s24 + $0x40] sm:$0xff]  ;;  %v10950_v8 = vrot.slane %v5320_v15, 2 }
 0x25b   : > { %v8672_v61 = vadd.f32 %v8671_v2, %v8670_v7  ;;  %v8673_v24 = vpop.f32.mrb[94].mxu1  ;;  %6062 = vmatpush1.bf16.msra.mxu1 %v9504_v63  ;;  %v2432_v43 = vpop.f32.mrb[95].mxu0  ;;  %5704 = vmatpush1.bf16.msra.mxu0 %v9510_v0  ;;  %v4224_v0 = vor.u32 %v4223_v6, %v4220_v32  ;;  %v10952_v7 = vrot.slane %v5322_v39, 2  ;;  %v5279_v26 = vld [vmem:[%s10008_s24 + $0x70] sm:$0xff]  ;;  %v9528_v2 = vld [vmem:[#allocation7 + $0x240] sm:$0xff]  }
 0x25c   : > { %v8674_v25 = vpop.f32.mrb[95].mxu1  ;;  %6063 = vmatprep.subr.bf16.mxu1 %v9509_v56  ;;  %v2479_v63 = vadd.f32 %v2463_v57, %v10778_v54  ;;  %v2464_v30 = vadd.f32 %v2432_v43, %v10896_v9  ;;  %5705 = vmatprep.subr.bf16.mxu0 %v9518_v62  ;;  %v4234_v56 = vsel %vm4002_vm1, %v10889_v42, %v4233_v38  ;;  %v5265_v54 = vld [vmem:[%s10008_s24] sm:$0xf0]  ;;  %v5267_v9 = vld [vmem:[%s10008_s24 + $0x10] sm:$0xff]  ;;  %v10948_v42 = vrot.slane %v5318_v20, 2 }
 0x25d   : > { %v8675_v60 = vadd.f32 %v8674_v25, %v8673_v24  ;;  %4957 = vmatmul.mubr.bf16.gmra.mrb[200].mxu0 %v10894_v53  ;;  %v5371_v53 = vrot.slane %v5316_v16, 2  ;;  %v4225_v6 = vsel %vm4002_vm1, %v10910_v50, %v4224_v0  ;;  %v5315_v57 = vpack.c.bf16 %v5267_v9, %v5265_v54  ;;  %v5282_v24 = vld [vmem:[%s10008_s24 + $0x88] sm:$0xff] }
 0x25e   : > { %5233 = vmatmul.mubr.bf16.gmra.mrb[200].mxu1 %v10931_v1  ;;  %v2480_v62 = vadd.f32 %v2464_v30, %v10782_v59  ;;  %v10942_v3 = vadd.f32 %v8672_v61, %v2479_v63  ;;  %4966 = vmatprep.mubr.bf16.mxu0 %v10903_v4  ;;  %v5277_v59 = vld [vmem:[%s10008_s24 + $0x60] sm:$0xff]  ;;  %v5317_v61 = vpack.c.bf16 %v5271_v33, %v5269_v14  ;;  %v9527_v30 = vld [vmem:[#allocation5 + $0x9f4] ss:$8 sps:$4 sm:$0xff]  }
 0x25f   : > { %6064 = vmatpush1.bf16.msra.mxu1 %v9507_v11  ;;  %5706 = vmatpush1.bf16.msra.mxu0 %v9516_v58  ;;  %v5284_v11 = vld [vmem:[%s10008_s24 + $0x98] sm:$0xff]  ;;  %v9519_v58 = vld [vmem:[#allocation5 + $0x9e0] ss:$8 sps:$4 sm:$0xff]   ;;  %v5319_v20 = vpack.c.bf16 %v5275_v46, %v5273_v41  ;;  %v5321_v15 = vpack.c.bf16 %v5279_v26, %v5277_v59  ;;  %v5373_v50 = vsel %vm5367_vm3, %v5371_v53, %v10948_v42  ;;  %v5368_v0 = vrot.slane %v5315_v57, 2  ;;  %v5283_v53 = vld [vmem:[%s10008_s24 + $0x90] sm:$0xff] }
 0x260   : > { %6065 = vmatprep.subr.bf16.mxu1 %v9515_v34  ;;  %v10957_v18 = vadd.f32 %v8675_v60, %v2480_v62  ;;  %v2436_v4 = vpop.f32.mrb[96].mxu0  ;;  %5240 = vmatprep.mubr.bf16.mxu1 %v4234_v56  ;;  %v10969_v60 = vsel %vm5367_vm3, %v10950_v8, %v10952_v7  ;;  %v5324_v56 = vpack.c.bf16 %v5284_v11, %v5282_v24  ;;  %v5281_v62 = vld [vmem:[%s10008_s24 + $0x80] sm:$0xff]  ;;  %v5286_v46 = vld [vmem:[%s10008_s24 + $0xa8] sm:$0xff] }
 0x261   : > { %v8676_v28 = vpop.f32.mrb[96].mxu1  ;;  %5707 = vmatprep.subr.bf16.mxu0 %v9524_v44  ;;  %v2438_v38 = vpop.f32.mrb[97].mxu0  ;;  %v5378_v9 = vrot.slane %v5321_v15, 2  ;;  %v9529_v57 = vld [vmem:[#allocation7 + $0x200] sm:$0xff]   ;;  %v5323_v24 = vpack.c.bf16 %v5283_v53, %v5281_v62 }
 0x262   : > { %v8677_v32 = vpop.f32.mrb[97].mxu1  ;;  %v2465_v16 = vadd.f32 %v2438_v38, %v10919_v52  ;;  %v2440_v43 = vpop.f32.mrb[98].mxu0  ;;  %v5384_v41 = vrot.slane %v5324_v56, 2  ;;  %v5290_v56 = vld [vmem:[%s10008_s24 + $0xc8] sm:$0xff] }
 0x263   : > { %v8678_v25 = vadd.f32 %v8677_v32, %v8676_v28  ;;  %v8679_v34 = vpop.f32.mrb[98].mxu1  ;;  %6066 = vmatpush1.bf16.msra.mxu1 %v9513_v49  ;;  %v2442_v39 = vpop.f32.mrb[99].mxu0  ;;  %5708 = vmatpush1.bf16.msra.mxu0 %v9522_v23 }
 0x264   : > { %v8680_v63 = vpop.f32.mrb[99].mxu1  ;;  %6067 = vmatprep.subr.bf16.mxu1 %v9521_v40  ;;  %v2481_v52 = vadd.f32 %v2465_v16, %v10793_v22  ;;  %v2466_v49 = vadd.f32 %v2442_v39, %v10926_v55  ;;  %8816 = vmatprep.subr.bf16.mxu0 %v9528_v2  ;;  %v5369_v40 = vrot.slane %v5317_v61, 2  ;;  %v9525_v22 = vld [vmem:[#allocation5 + $0x9f0] ss:$8 sps:$4 sm:$0xff]   ;;  %v5374_v55 = vrot.slane %v5319_v20, 2 }
 0x265   : > { %v8681_v44 = vadd.f32 %v8680_v63, %v8679_v34  ;;  %4967 = vmatmul.mubr.bf16.gmra.mrb[204].mxu0 %v10931_v1  ;;  %v9530_v34 = vld [vmem:[#allocation7 + $0x248] sm:$0xff]   ;;  %v10994_v39 = vsel %vm5367_vm3, %v10952_v7, %v5384_v41  ;;  %v5287_v7 = vld [vmem:[%s10008_s24 + $0xb0] sm:$0xff] }
 0x266   : > { %5241 = vmatmul.mubr.bf16.gmra.mrb[204].mxu1 %v4225_v6  ;;  %v2482_v23 = vadd.f32 %v2466_v49, %v10798_v5  ;;  %v10975_v54 = vadd.f32 %v8678_v25, %v2481_v52  ;;  %5709 = vmatprep.mubr.bf16.mxu0 %v5373_v50  ;;  %v5288_v5 = vld [vmem:[%s10008_s24 + $0xb8] sm:$0xff]  ;;  %v5370_v28 = vsel %vm5367_vm3, %v5368_v0, %v5369_v40  ;;  %v9532_v50 = vld [vmem:[#allocation7 + $0x250] sm:$0xff]  }
 0x267   : > { %6068 = vmatpush1.bf16.msra.mxu1 %v9519_v58  ;;  %6071 = vmatprep.mubr.bf16.mxu1 %v10969_v60  ;;  %v10986_v61 = vsel %vm5367_vm3, %v5374_v55, %v5378_v9  ;;  %v5377_v25 = vsel %vm5367_vm3, %v10948_v42, %v10950_v8  ;;  %v5326_v58 = vpack.c.bf16 %v5288_v5, %v5286_v46  ;;  %v5382_v8 = vrot.slane %v5323_v24, 2  ;;  %v5296_v24 = vld [vmem:[%s10008_s24 + $0xf8] sm:$0xff] }
 0x268   : > { %6069 = vmatprep.subr.bf16.mxu1 %v9527_v30  ;;  %v10980_v1 = vadd.f32 %v8681_v44, %v2482_v23  ;;  %v2446_v14 = vpop.f32.mrb[100].mxu0  ;;  %v5285_v30 = vld [vmem:[%s10008_s24 + $0xa0] sm:$0xff]  ;;  %v5375_v62 = vsel %vm5367_vm3, %v5369_v40, %v5374_v55 }
 0x269   : > { %v8682_v33 = vpop.f32.mrb[100].mxu1  ;;  %v2447_v59 = vpop.f32.mrb[101].mxu0  ;;  %v11009_v53 = vsel %vm5367_vm3, %v5378_v9, %v5382_v8  ;;  %v5289_v9 = vld [vmem:[%s10008_s24 + $0xc0] sm:$0xff] }
 0x26a   : > { %v8683_v26 = vpop.f32.mrb[101].mxu1  ;;  %v2467_v2 = vadd.f32 %v2447_v59, %v2436_v4  ;;  %v2449_v38 = vpop.f32.mrb[102].mxu0 }
 0x26b   : > { %v8684_v32 = vadd.f32 %v8683_v26, %v8682_v33  ;;  %v8685_v6 = vpop.f32.mrb[102].mxu1  ;;  %6070 = vmatpush1.bf16.msra.mxu1 %v9525_v22  ;;  %v2450_v11 = vpop.f32.mrb[103].mxu0  ;;  %v5325_v33 = vpack.c.bf16 %v5287_v7, %v5285_v30  ;;  %v9533_v26 = vld [vmem:[#allocation7 + $0x210] sm:$0xff]  }
 0x26c   : > { %v8686_v16 = vpop.f32.mrb[103].mxu1  ;;  %v2483_v4 = vadd.f32 %v2467_v2, %v10802_v36  ;;  %v2468_v20 = vadd.f32 %v2450_v11, %v2440_v43  ;;  %v9531_v36 = vld [vmem:[#allocation7 + $0x208] sm:$0xff]   ;;  %v5388_v43 = vrot.slane %v5326_v58, 2  ;;  %v9534_v2 = vld [vmem:[#allocation7 + $0x258] sm:$0xff]   ;;  %v5291_v38 = vld [vmem:[%s10008_s24 + $0xd0] sm:$0xff] }
 0x26d   : > { %v8687_v15 = vadd.f32 %v8686_v16, %v8685_v6  ;;  %5710 = vmatmul.mubr.bf16.vlgmr.msra.gmra.mrb[208].mxu0 %v5370_v28  ;;  %v5386_v40 = vrot.slane %v5325_v33, 2  ;;  %v9536_v11 = vld [vmem:[#allocation7 + $0x260] sm:$0xff]  }
 0x26e   : > { %6072 = vmatmul.mubr.bf16.vlgmr.msra.gmra.mrb[208].mxu1 %v10986_v61  ;;  %v2484_v63 = vadd.f32 %v2468_v20, %v10806_v45  ;;  %v10998_v42 = vadd.f32 %v8684_v32, %v2483_v4  ;;  %8817 = vmatpush3.bf16.msra.mxu0 %v9529_v57  ;;  %v5292_v45 = vld [vmem:[%s10008_s24 + $0xd8] sm:$0xff]  ;;  %v11012_v59 = vsel %vm5367_vm3, %v5384_v41, %v5388_v43  ;;  %v5294_v57 = vld [vmem:[%s10008_s24 + $0xe8] sm:$0xff] }
 0x26f   : > { %5717 = vmatprep.mubr.bf16.mxu0 %v5377_v25  ;;  %6079 = vmatprep.mubr.bf16.mxu1 %v10994_v39  ;;  %v5328_v28 = vpack.c.bf16 %v5292_v45, %v5290_v56  ;;  %v9535_v41 = vld [vmem:[#allocation7 + $0x218] sm:$0xff]   ;;  %v11022_v20 = vsel %vm5367_vm3, %v5382_v8, %v5386_v40  ;;  %v5330_v7 = vpack.c.bf16 %v5296_v24, %v5294_v57 }
 0x270   : > { %8818 = vmatprep.subr.bf16.mxu0 %v9530_v34  ;;  %v11003_v52 = vadd.f32 %v8687_v15, %v2484_v63  ;;  %v3189_v49 = vpop.f32.mrb[104].mxu0  ;;  %v5327_v15 = vpack.c.bf16 %v5291_v38, %v5289_v9 }
 0x271   : > { %v3551_v44 = vpop.f32.mrb[104].mxu1  ;;  %v3191_v0 = vpop.f32.mrb[105].mxu0  ;;  %v5392_v55 = vrot.slane %v5328_v28, 2 }
 0x272   : > { %v3553_v23 = vpop.f32.mrb[105].mxu1  ;;  %v3192_v22 = vpop.f32.mrb[106].mxu0  ;;  %8819 = vmatpush3.bf16.msra.mxu0 %v9531_v36  ;;  %v5390_v0 = vrot.slane %v5327_v15, 2 }
 0x273   : > { %v3554_v14 = vpop.f32.mrb[106].mxu1  ;;  %v3194_v46 = vpop.f32.mrb[107].mxu0  ;;  %8820 = vmatprep.subr.bf16.mxu0 %v9532_v50  ;;  %v11025_v30 = vsel %vm5367_vm3, %v5388_v43, %v5392_v55  ;;  %v9537_v50 = vld [vmem:[#allocation7 + $0x220] sm:$0xff]  }
 0x274   : > { %v3556_v5 = vpop.f32.mrb[107].mxu1  ;;  %v5293_v23 = vld [vmem:[%s10008_s24 + $0xe0] sm:$0xff]  ;;  %v5298_v46 = vld [vmem:[%s10008_s24 + $0x108] sm:$0xff] }
 0x275   : > { %5718 = vmatmul.mubr.bf16.gmra.mrb[212].mxu0 %v5375_v62  ;;  %v9539_v62 = vld [vmem:[#allocation7 + $0x228] sm:$0xff]   ;;  %v5300_v5 = vld [vmem:[%s10008_s24 + $0x118] sm:$0xff] }
 0x276   : > { %6080 = vmatmul.mubr.bf16.gmra.mrb[212].mxu1 %v11009_v53  ;;  %5727 = vmatprep.mubr.bf16.mxu0 %v10969_v60 }
 0x277   : > { %6089 = vmatprep.mubr.bf16.mxu1 %v11012_v59  ;;  %8821 = vmatpush3.bf16.msra.mxu0 %v9533_v26 }
 0x278   : > { %v3197_v32 = vpop.f32.mrb[108].mxu0  ;;  %8822 = vmatprep.subr.bf16.mxu0 %v9534_v2 }
 0x279   : > { %v3559_v6 = vpop.f32.mrb[108].mxu1  ;;  %v3199_v16 = vpop.f32.mrb[109].mxu0 }
 0x27a   : > { %v3561_v25 = vpop.f32.mrb[109].mxu1  ;;  %v3274_v34 = vadd.f32 %v3199_v16, %v3189_v49  ;;  %v3201_v58 = vpop.f32.mrb[110].mxu0 }
 0x27b   : > { %v3636_v4 = vadd.f32 %v3561_v25, %v3551_v44  ;;  %v3563_v60 = vpop.f32.mrb[110].mxu1  ;;  %v3203_v63 = vpop.f32.mrb[111].mxu0  ;;  %8823 = vmatpush3.bf16.msra.mxu0 %v9535_v41  ;;  %v9538_v44 = vld [vmem:[#allocation7 + $0x268] sm:$0xff]   ;;  %v11042_v41 = vsel %vm5367_vm3, %v5386_v40, %v5390_v0  ;;  %v5332_v25 = vpack.c.bf16 %v5300_v5, %v5298_v46 }
 0x27c   : > { %v3565_v36 = vpop.f32.mrb[111].mxu1  ;;  %v3290_v56 = vadd.f32 %v3274_v34, %v10814_v19  ;;  %v3275_v49 = vadd.f32 %v3203_v63, %v3192_v22  ;;  %8824 = vmatprep.subr.bf16.mxu0 %v9536_v11  ;;  %v5396_v19 = vrot.slane %v5330_v7, 2  ;;  %v5295_v22 = vld [vmem:[%s10008_s24 + $0xf0] sm:$0xff] }
 0x27d   : > { %v3637_v45 = vadd.f32 %v3565_v36, %v3554_v14  ;;  %5728 = vmatmul.mubr.bf16.gmra.mrb[216].mxu0 %v10986_v61  ;;  %v5329_v57 = vpack.c.bf16 %v5295_v22, %v5293_v23  ;;  %v9541_v34 = vld [vmem:[#allocation7 + $0x230] sm:$0xff]   ;;  %v9543_v36 = vld [vmem:[#allocation7 + $0x238] sm:$0xff]  }
 0x27e   : > { %6090 = vmatmul.mubr.bf16.gmra.mrb[216].mxu1 %v11022_v20  ;;  %v3291_v8 = vadd.f32 %v3275_v49, %v10817_v31  ;;  %v11031_v43 = vadd.f32 %v3636_v4, %v3290_v56  ;;  %5737 = vmatprep.mubr.bf16.mxu0 %v10994_v39  ;;  %v9540_v31 = vld [vmem:[#allocation7 + $0x270] sm:$0xff]   ;;  %v11045_v16 = vsel %vm5367_vm3, %v5392_v55, %v5396_v19  ;;  %v5302_v56 = vld [vmem:[%s10008_s24 + $0x128] sm:$0xff]  ;;  %v5304_v49 = vld [vmem:[%s10008_s24 + $0x138] sm:$0xff] }
 0x27f   : > { %6099 = vmatprep.mubr.bf16.mxu1 %v11025_v30  ;;  %8825 = vmatpush3.bf16.msra.mxu0 %v9537_v50  ;;  %v5394_v63 = vrot.slane %v5329_v57, 2 }
 0x280   : > { %v11037_v14 = vadd.f32 %v3637_v45, %v3291_v8  ;;  %v3207_v61 = vpop.f32.mrb[112].mxu0  ;;  %8826 = vmatprep.subr.bf16.mxu0 %v9538_v44 }
 0x281   : > { %v3569_v33 = vpop.f32.mrb[112].mxu1  ;;  %v3209_v26 = vpop.f32.mrb[113].mxu0 }
 0x282   : > { %v3571_v28 = vpop.f32.mrb[113].mxu1  ;;  %v3276_v2 = vadd.f32 %v3209_v26, %v3197_v32  ;;  %v3211_v39 = vpop.f32.mrb[114].mxu0 }
 0x283   : > { %v3638_v9 = vadd.f32 %v3571_v28, %v3559_v6  ;;  %v3573_v38 = vpop.f32.mrb[114].mxu1  ;;  %v3213_v24 = vpop.f32.mrb[115].mxu0  ;;  %8827 = vmatpush3.bf16.msra.mxu0 %v9539_v62  ;;  %v9542_v6 = vld [vmem:[#allocation7 + $0x278] sm:$0xff]   ;;  %v11062_v62 = vsel %vm5367_vm3, %v5390_v0, %v5394_v63  ;;  %v5334_v28 = vpack.c.bf16 %v5304_v49, %v5302_v56 }
 0x284   : > { %v3575_v11 = vpop.f32.mrb[115].mxu1  ;;  %v3292_v4 = vadd.f32 %v3276_v2, %v10828_v48  ;;  %v3277_v32 = vadd.f32 %v3213_v24, %v3201_v58  ;;  %8828 = vmatprep.subr.bf16.mxu0 %v9540_v31  ;;  %v5400_v48 = vrot.slane %v5332_v25, 2  ;;  %v5297_v58 = vld [vmem:[%s10008_s24 + $0x100] sm:$0xff] }
 0x285   : > { %v3639_v15 = vadd.f32 %v3575_v11, %v3563_v60  ;;  %5738 = vmatmul.mubr.bf16.gmra.mrb[220].mxu0 %v11009_v53  ;;  %v5299_v60 = vld [vmem:[%s10008_s24 + $0x110] sm:$0xff]  ;;  %v5404_v57 = vrot.slane %v5334_v28, 2  ;;  %v5301_v24 = vld [vmem:[%s10008_s24 + $0x120] sm:$0xff] }
 0x286   : > { %6100 = vmatmul.mubr.bf16.gmra.mrb[220].mxu1 %v11042_v41  ;;  %v3293_v40 = vadd.f32 %v3277_v32, %v10833_v35  ;;  %v11051_v55 = vadd.f32 %v3638_v9, %v3292_v4  ;;  %5747 = vmatprep.mubr.bf16.mxu0 %v11012_v59  ;;  %v5331_v46 = vpack.c.bf16 %v5299_v60, %v5297_v58  ;;  %v5303_v11 = vld [vmem:[%s10008_s24 + $0x130] sm:$0xff] }
 0x287   : > { %6109 = vmatprep.mubr.bf16.mxu1 %v11045_v16  ;;  %8829 = vmatpush3.bf16.msra.mxu0 %v9541_v34  ;;  %v11065_v26 = vsel %vm5367_vm3, %v5396_v19, %v5400_v48 }
 0x288   : > { %v11057_v7 = vadd.f32 %v3639_v15, %v3293_v40  ;;  %v3217_v53 = vpop.f32.mrb[116].mxu0  ;;  %8830 = vmatprep.subr.bf16.mxu0 %v9542_v6  ;;  %v5398_v19 = vrot.slane %v5331_v46, 2  ;;  %v5333_v40 = vpack.c.bf16 %v5303_v11, %v5301_v24 }
 0x289   : > { %v3579_v50 = vpop.f32.mrb[116].mxu1  ;;  %v3219_v35 = vpop.f32.mrb[117].mxu0 }
 0x28a   : > { %v3581_v45 = vpop.f32.mrb[117].mxu1  ;;  %v3278_v44 = vadd.f32 %v3219_v35, %v3207_v61  ;;  %v3221_v8 = vpop.f32.mrb[118].mxu0  ;;  %v11080_v6 = vsel %vm5367_vm3, %v5394_v63, %v5398_v19  ;;  %v5402_v63 = vrot.slane %v5333_v40, 2 }
 0x28b   : > { %v3640_v23 = vadd.f32 %v3581_v45, %v3569_v33  ;;  %v3583_v22 = vpop.f32.mrb[118].mxu1  ;;  %v3223_v5 = vpop.f32.mrb[119].mxu0  ;;  %8831 = vmatpush3.bf16.msra.mxu0 %v9543_v36  ;;  %v11083_v36 = vsel %vm5367_vm3, %v5400_v48, %v5404_v57  ;;  %v5408_v48 = vrot.slane %v10825_v17, 2 }
 0x28c   : > { %v3585_v31 = vpop.f32.mrb[119].mxu1  ;;  %v3294_v2 = vadd.f32 %v3278_v44, %v10852_v51  ;;  %v3279_v9 = vadd.f32 %v3223_v5, %v3211_v39 }
 0x28d   : > { %v3641_v61 = vadd.f32 %v3585_v31, %v3573_v38  ;;  %5748 = vmatmul.mubr.bf16.gmra.mrb[224].mxu0 %v11022_v20 }
 0x28e   : > { %6110 = vmatmul.mubr.bf16.gmra.mrb[224].mxu1 %v11062_v62  ;;  %v3295_v0 = vadd.f32 %v3279_v9, %v10858_v13  ;;  %v11071_v33 = vadd.f32 %v3640_v23, %v3294_v2  ;;  %5757 = vmatprep.mubr.bf16.mxu0 %v11025_v30  ;;  %v11100_v9 = vsel %vm5367_vm3, %v5404_v57, %v5408_v48  ;;  %v5412_v57 = vrot.slane %v10844_v10, 2 }
 0x28f   : > { %6119 = vmatprep.mubr.bf16.mxu1 %v11065_v26 }
 0x290   : > { %v11077_v25 = vadd.f32 %v3641_v61, %v3295_v0  ;;  %v3227_v51 = vpop.f32.mrb[120].mxu0 }
 0x291   : > { %v3589_v39 = vpop.f32.mrb[120].mxu1  ;;  %v3229_v38 = vpop.f32.mrb[121].mxu0 }
 0x292   : > { %v3591_v34 = vpop.f32.mrb[121].mxu1  ;;  %v3280_v4 = vadd.f32 %v3229_v38, %v3217_v53  ;;  %v3231_v32 = vpop.f32.mrb[122].mxu0 }
 0x293   : > { %v3642_v15 = vadd.f32 %v3591_v34, %v3579_v50  ;;  %v3593_v13 = vpop.f32.mrb[122].mxu1  ;;  %v3233_v58 = vpop.f32.mrb[123].mxu0 }
 0x294   : > { %v3595_v60 = vpop.f32.mrb[123].mxu1  ;;  %v3296_v56 = vadd.f32 %v3280_v4, %v10879_v21  ;;  %v3281_v49 = vadd.f32 %v3233_v58, %v3221_v8 }
 0x295   : > { %v3643_v35 = vadd.f32 %v3595_v60, %v3583_v22  ;;  %5758 = vmatmul.mubr.bf16.gmra.mrb[228].mxu0 %v11042_v41 }
 0x296   : > { %6120 = vmatmul.mubr.bf16.gmra.mrb[228].mxu1 %v11080_v6  ;;  %v3297_v53 = vadd.f32 %v3281_v49, %v10885_v47  ;;  %v11089_v50 = vadd.f32 %v3642_v15, %v3296_v56  ;;  %5767 = vmatprep.mubr.bf16.mxu0 %v11045_v16  ;;  %v11097_v47 = vsel %vm5367_vm3, %v5398_v19, %v5402_v63  ;;  %v5406_v19 = vrot.slane %v10840_v12, 2 }
 0x297   : > { %6129 = vmatprep.mubr.bf16.mxu1 %v11083_v36  ;;  %v11120_v12 = vsel %vm5367_vm3, %v5408_v48, %v5412_v57 }
 0x298   : > { %v11094_v45 = vadd.f32 %v3643_v35, %v3297_v53  ;;  %v3237_v21 = vpop.f32.mrb[124].mxu0 }
 0x299   : > { %v3599_v44 = vpop.f32.mrb[124].mxu1  ;;  %v3239_v8 = vpop.f32.mrb[125].mxu0 }
 0x29a   : > { %v3601_v23 = vpop.f32.mrb[125].mxu1  ;;  %v3282_v22 = vadd.f32 %v3239_v8, %v3227_v51  ;;  %v3241_v46 = vpop.f32.mrb[126].mxu0 }
 0x29b   : > { %v3644_v5 = vadd.f32 %v3601_v23, %v3589_v39  ;;  %v3603_v31 = vpop.f32.mrb[126].mxu1  ;;  %v3243_v28 = vpop.f32.mrb[127].mxu0 }
 0x29c   : > { %v3605_v2 = vpop.f32.mrb[127].mxu1  ;;  %v3298_v17 = vadd.f32 %v3282_v22, %v10908_v37  ;;  %v3283_v61 = vadd.f32 %v3243_v28, %v3231_v32 }
 0x29d   : > { %v3645_v0 = vadd.f32 %v3605_v2, %v3593_v13  ;;  %5768 = vmatmul.mubr.bf16.gmra.mrb[232].mxu0 %v11062_v62  ;;  %v11115_v13 = vsel %vm5367_vm3, %v5402_v63, %v5406_v19  ;;  %v5410_v63 = vrot.slane %v10866_v29, 2 }
 0x29e   : > { %6130 = vmatmul.mubr.bf16.gmra.mrb[232].mxu1 %v11097_v47  ;;  %v3299_v24 = vadd.f32 %v3283_v61, %v10917_v27  ;;  %v11106_v11 = vadd.f32 %v3644_v5, %v3298_v17  ;;  %5777 = vmatprep.mubr.bf16.mxu0 %v11065_v26 }
 0x29f   : > { %6139 = vmatprep.mubr.bf16.mxu1 %v11100_v9 }
 0x2a0   : > { %v11112_v51 = vadd.f32 %v3645_v0, %v3299_v24  ;;  %v3247_v37 = vpop.f32.mrb[128].mxu0 }
 0x2a1   : > { %v3609_v39 = vpop.f32.mrb[128].mxu1  ;;  %v3249_v38 = vpop.f32.mrb[129].mxu0 }
 0x2a2   : > { %v3611_v34 = vpop.f32.mrb[129].mxu1  ;;  %v3284_v4 = vadd.f32 %v3249_v38, %v3237_v21  ;;  %v3251_v32 = vpop.f32.mrb[130].mxu0 }
 0x2a3   : > { %v3646_v15 = vadd.f32 %v3611_v34, %v3599_v44  ;;  %v3613_v27 = vpop.f32.mrb[130].mxu1  ;;  %v3253_v40 = vpop.f32.mrb[131].mxu0 }
 0x2a4   : > { %v3615_v58 = vpop.f32.mrb[131].mxu1  ;;  %v3300_v60 = vadd.f32 %v3284_v4, %v10942_v3  ;;  %v3285_v56 = vadd.f32 %v3253_v40, %v3241_v46 }
 0x2a5   : > { %v3647_v49 = vadd.f32 %v3615_v58, %v3603_v31  ;;  %5778 = vmatmul.mubr.bf16.gmra.mrb[236].mxu0 %v11080_v6 }
 0x2a6   : > { %6140 = vmatmul.mubr.bf16.gmra.mrb[236].mxu1 %v11115_v13  ;;  %v3301_v35 = vadd.f32 %v3285_v56, %v10957_v18  ;;  %v11126_v53 = vadd.f32 %v3646_v15, %v3300_v60  ;;  %5787 = vmatprep.mubr.bf16.mxu0 %v11083_v36  ;;  %v11136_v18 = vsel %vm5367_vm3, %v5406_v19, %v5410_v63 }
 0x2a7   : > { %6149 = vmatprep.mubr.bf16.mxu1 %v11120_v12 }
 0x2a8   : > { %v11131_v48 = vadd.f32 %v3647_v49, %v3301_v35  ;;  %v3257_v21 = vpop.f32.mrb[132].mxu0 }
 0x2a9   : > { %v3619_v3 = vpop.f32.mrb[132].mxu1  ;;  %v3259_v44 = vpop.f32.mrb[133].mxu0 }
 0x2aa   : > { %v3621_v8 = vpop.f32.mrb[133].mxu1  ;;  %v3286_v23 = vadd.f32 %v3259_v44, %v3247_v37  ;;  %v3261_v22 = vpop.f32.mrb[134].mxu0 }
 0x2ab   : > { %v3648_v46 = vadd.f32 %v3621_v8, %v3609_v39  ;;  %v3623_v5 = vpop.f32.mrb[134].mxu1  ;;  %v3263_v31 = vpop.f32.mrb[135].mxu0 }
 0x2ac   : > { %v3625_v28 = vpop.f32.mrb[135].mxu1  ;;  %v3302_v2 = vadd.f32 %v3286_v23, %v10975_v54  ;;  %v3287_v17 = vadd.f32 %v3263_v31, %v3251_v32 }
 0x2ad   : > { %v3649_v61 = vadd.f32 %v3625_v28, %v3613_v27  ;;  %5788 = vmatmul.mubr.bf16.gmra.mrb[240].mxu0 %v11097_v47 }
 0x2ae   : > { %6150 = vmatmul.mubr.bf16.gmra.mrb[240].mxu1 %v11136_v18  ;;  %v3303_v0 = vadd.f32 %v3287_v17, %v10980_v1  ;;  %v11142_v24 = vadd.f32 %v3648_v46, %v3302_v2  ;;  %6367 = vmatprep.mubr.bf16.mxu0 %v11012_v59 }
 0x2b0   : > { %v11145_v37 = vadd.f32 %v3649_v61, %v3303_v0  ;;  %v3267_v19 = vpop.f32.mrb[136].mxu0 }
 0x2b1   : > { %v3629_v39 = vpop.f32.mrb[136].mxu1  ;;  %v3268_v38 = vpop.f32.mrb[137].mxu0 }
 0x2b2   : > { %v3630_v34 = vpop.f32.mrb[137].mxu1  ;;  %v3288_v4 = vadd.f32 %v3268_v38, %v3257_v21  ;;  %v3270_v54 = vpop.f32.mrb[138].mxu0 }
 0x2b3   : > { %v3650_v32 = vadd.f32 %v3630_v34, %v3619_v3  ;;  %v3632_v15 = vpop.f32.mrb[138].mxu1  ;;  %v3271_v27 = vpop.f32.mrb[139].mxu0 }
 0x2b4   : > { %v3633_v40 = vpop.f32.mrb[139].mxu1  ;;  %v3304_v58 = vadd.f32 %v3288_v4, %v10998_v42  ;;  %v3289_v60 = vadd.f32 %v3271_v27, %v3261_v22 }
 0x2b5   : > { %v3651_v1 = vadd.f32 %v3633_v40, %v3623_v5  ;;  %6368 = vmatmul.mubr.bf16.vlgmr.msra.gmra.mrb[244].mxu0 %v11022_v20 }
 0x2b6   : > { %v3305_v59 = vadd.f32 %v3289_v60, %v11003_v52  ;;  %v11150_v56 = vadd.f32 %v3650_v32, %v3304_v58  ;;  %6375 = vmatprep.mubr.bf16.mxu0 %v11025_v30 }
 0x2b8   : > { %v11153_v49 = vadd.f32 %v3651_v1, %v3305_v59  ;;  %v8704_v35 = vpop.f32.mrb[140].mxu0 }
 0x2b9   : > { %v4528_v21 = vpop.f32.mrb[140].mxu1  ;;  %v8705_v3 = vpop.f32.mrb[141].mxu0 }
 0x2ba   : > { %v4530_v44 = vpop.f32.mrb[141].mxu1  ;;  %v8706_v8 = vadd.f32 %v8705_v3, %v8704_v35  ;;  %v8707_v23 = vpop.f32.mrb[142].mxu0 }
 0x2bb   : > { %v4531_v46 = vpop.f32.mrb[142].mxu1  ;;  %v8708_v42 = vpop.f32.mrb[143].mxu0 }
 0x2bc   : > { %v4533_v22 = vpop.f32.mrb[143].mxu1  ;;  %v3910_v5 = vadd.f32 %v8706_v8, %v11031_v43  ;;  %v8709_v20 = vadd.f32 %v8708_v42, %v8707_v23  ;;  %v9544_v23 = vld [vmem:[#allocation10] ss:$8 sps:$4 sm:$0xff]  }
 0x2bd   : > { %6376 = vmatmul.mubr.bf16.gmra.mrb[248].mxu0 %v11042_v41 }
 0x2be   : > { %v3911_v52 = vadd.f32 %v8709_v20, %v11037_v14  ;;  %6383 = vmatprep.mubr.bf16.mxu0 %v11045_v16 }
 0x2c0   : > { %v8710_v30 = vpop.f32.mrb[144].mxu0 }
 0x2c1   : > { %v4536_v31 = vpop.f32.mrb[144].mxu1  ;;  %v8711_v28 = vpop.f32.mrb[145].mxu0 }
 0x2c2   : > { %v4538_v2 = vpop.f32.mrb[145].mxu1  ;;  %v8712_v17 = vadd.f32 %v8711_v28, %v8710_v30  ;;  %v8713_v0 = vpop.f32.mrb[146].mxu0 }
 0x2c3   : > { %v4613_v61 = vadd.f32 %v4538_v2, %v4528_v21  ;;  %v4540_v19 = vpop.f32.mrb[146].mxu1  ;;  %v8714_v39 = vpop.f32.mrb[147].mxu0 }
 0x2c4   : > { %v4542_v38 = vpop.f32.mrb[147].mxu1  ;;  %v3912_v34 = vadd.f32 %v8712_v17, %v11051_v55  ;;  %v8715_v4 = vadd.f32 %v8714_v39, %v8713_v0  ;;  %v9547_v39 = vld [vmem:[#allocation10 + $0x10] ss:$8 sps:$4 sm:$0xff]  }
 0x2c5   : > { %v11160_v43 = vadd.f32 %v4613_v61, %v3910_v5  ;;  %v4614_v41 = vadd.f32 %v4542_v38, %v4531_v46  ;;  %6384 = vmatmul.mubr.bf16.gmra.mrb[252].mxu0 %v11062_v62  ;;  %v9546_v46 = vld [vmem:[#allocation10 + $0x4] ss:$8 sps:$4 sm:$0xff]   ;;  %v9549_v38 = vld [vmem:[#allocation10 + $0x14] ss:$8 sps:$4 sm:$0xff]  }
 0x2c6   : > { %v3913_v14 = vadd.f32 %v8715_v4, %v11057_v7  ;;  %6391 = vmatprep.mubr.bf16.mxu0 %v11065_v26  ;;  %6603 = vmatprep.subr.bf16.mxu1 %v9546_v46  ;;  %v5314_v61 = vld [vmem:[%s10008_s24 + $0x188] sm:$0xf] }
 0x2c7   : > { %v11164_v16 = vadd.f32 %v4614_v41, %v3911_v52  ;;  %6604 = vmatpush1.bf16.msra.mxu1 %v9544_v23 }
 0x2c8   : > { %v8716_v54 = vpop.f32.mrb[148].mxu0  ;;  %6605 = vmatprep.subr.bf16.mxu1 %v9549_v38 }
 0x2c9   : > { %v4546_v32 = vpop.f32.mrb[148].mxu1  ;;  %v8717_v15 = vpop.f32.mrb[149].mxu0 }
 0x2ca   : > { %v4548_v27 = vpop.f32.mrb[149].mxu1  ;;  %v8718_v40 = vadd.f32 %v8717_v15, %v8716_v54  ;;  %v8719_v60 = vpop.f32.mrb[150].mxu0 }
 0x2cb   : > { %v4615_v58 = vadd.f32 %v4548_v27, %v4536_v31  ;;  %v4550_v55 = vpop.f32.mrb[150].mxu1  ;;  %v8720_v1 = vpop.f32.mrb[151].mxu0  ;;  %6606 = vmatpush1.bf16.msra.mxu1 %v9547_v39 }
 0x2cc   : > { %v4552_v59 = vpop.f32.mrb[151].mxu1  ;;  %v3914_v35 = vadd.f32 %v8718_v40, %v11071_v33  ;;  %v8721_v62 = vadd.f32 %v8720_v1, %v8719_v60 }
 0x2cd   : > { %v11168_v21 = vadd.f32 %v4615_v58, %v3912_v34  ;;  %v4616_v7 = vadd.f32 %v4552_v59, %v4540_v19  ;;  %6392 = vmatmul.mubr.bf16.gmra.mrb[0].mxu0 %v11080_v6 }
 0x2ce   : > { %v3915_v26 = vadd.f32 %v8721_v62, %v11077_v25  ;;  %6399 = vmatprep.mubr.bf16.mxu0 %v11083_v36  ;;  %v9550_v62 = vld [vmem:[#allocation10 + $0x20] ss:$8 sps:$4 sm:$0xff]  }
 0x2cf   : > { %v11172_v3 = vadd.f32 %v4616_v7, %v3913_v14  ;;  %v9552_v7 = vld [vmem:[#allocation10 + $0x24] ss:$8 sps:$4 sm:$0xff]  }
 0x2d0   : > { %v8722_v44 = vpop.f32.mrb[152].mxu0  ;;  %6607 = vmatprep.subr.bf16.mxu1 %v9552_v7 }
 0x2d1   : > { %v4556_v8 = vpop.f32.mrb[152].mxu1  ;;  %v8723_v42 = vpop.f32.mrb[153].mxu0  ;;  %6608 = vmatpush1.bf16.msra.mxu1 %v9550_v62 }
 0x2d2   : > { %v4558_v22 = vpop.f32.mrb[153].mxu1  ;;  %v8724_v5 = vadd.f32 %v8723_v42, %v8722_v44  ;;  %v8725_v20 = vpop.f32.mrb[154].mxu0 }
 0x2d3   : > { %v4617_v33 = vadd.f32 %v4558_v22, %v4546_v32  ;;  %v4560_v52 = vpop.f32.mrb[154].mxu1  ;;  %v8726_v30 = vpop.f32.mrb[155].mxu0 }
 0x2d4   : > { %v4562_v6 = vpop.f32.mrb[155].mxu1  ;;  %v3916_v25 = vadd.f32 %v8724_v5, %v11089_v50  ;;  %v8727_v36 = vadd.f32 %v8726_v30, %v8725_v20 }
 0x2d5   : > { %v11176_v31 = vadd.f32 %v4617_v33, %v3914_v35  ;;  %v4618_v28 = vadd.f32 %v4562_v6, %v4550_v55  ;;  %6400 = vmatmul.mubr.bf16.gmra.mrb[4].mxu0 %v11097_v47  ;;  %v5313_v55 = vld [vmem:[%s10008_s24 + $0x180] sm:$0xf] }
 0x2d6   : > { %v3917_v2 = vadd.f32 %v8727_v36, %v11094_v45  ;;  %6407 = vmatprep.mubr.bf16.mxu0 %v11100_v9  ;;  %v5340_v45 = vpack.c.bf16 %v5314_v61, %v5314_v61  ;;  %v5339_v44 = vpack.c.bf16 %v5313_v55, %v5313_v55 }
 0x2d7   : > { %v11180_v17 = vadd.f32 %v4618_v28, %v3915_v26 }
 0x2d8   : > { %v8728_v0 = vpop.f32.mrb[156].mxu0  ;;  %v5416_v1 = vrot.slane %v5340_v45, 2 }
 0x2d9   : > { %v4566_v19 = vpop.f32.mrb[156].mxu1  ;;  %v8729_v34 = vpop.f32.mrb[157].mxu0 }
 0x2da   : > { %v4568_v4 = vpop.f32.mrb[157].mxu1  ;;  %v8730_v50 = vadd.f32 %v8729_v34, %v8728_v0  ;;  %v8731_v14 = vpop.f32.mrb[158].mxu0 }
 0x2db   : > { %v4619_v41 = vadd.f32 %v4568_v4, %v4556_v8  ;;  %v4570_v54 = vpop.f32.mrb[158].mxu1  ;;  %v8732_v47 = vpop.f32.mrb[159].mxu0  ;;  %v9553_v4 = vld [vmem:[#allocation10 + $0x30] ss:$8 sps:$4 sm:$0xff]  }
 0x2dc   : > { %v4572_v32 = vpop.f32.mrb[159].mxu1  ;;  %v3918_v15 = vadd.f32 %v8730_v50, %v11106_v11  ;;  %v8733_v27 = vadd.f32 %v8732_v47, %v8731_v14  ;;  %v9555_v50 = vld [vmem:[#allocation10 + $0x34] ss:$8 sps:$4 sm:$0xff]  }
 0x2dd   : > { %v11185_v9 = vadd.f32 %v4619_v41, %v3916_v25  ;;  %v4620_v40 = vadd.f32 %v4572_v32, %v4560_v52  ;;  %6408 = vmatmul.mubr.bf16.gmra.mrb[8].mxu0 %v11115_v13  ;;  %v5414_v52 = vrot.slane %v5339_v44, 2  ;;  %6609 = vmatprep.subr.bf16.mxu1 %v9555_v50 }
 0x2de   : > { %v3919_v58 = vadd.f32 %v8733_v27, %v11112_v51  ;;  %6415 = vmatprep.mubr.bf16.mxu0 %v11120_v12  ;;  %v5417_v12 = vsel %vm5367_vm3, %v5412_v57, %v5416_v1  ;;  %6610 = vmatpush1.bf16.msra.mxu1 %v9553_v4 }
 0x2df   : > { %v11189_v60 = vadd.f32 %v4620_v40, %v3917_v2  ;;  %v5415_v57 = vsel %vm5367_vm3, %v5410_v63, %v5414_v52 }
 0x2e0   : > { %v8734_v59 = vpop.f32.mrb[160].mxu0 }
 0x2e1   : > { %v4576_v35 = vpop.f32.mrb[160].mxu1  ;;  %v8735_v26 = vpop.f32.mrb[161].mxu0 }
 0x2e2   : > { %v4578_v11 = vpop.f32.mrb[161].mxu1  ;;  %v8736_v8 = vadd.f32 %v8735_v26, %v8734_v59  ;;  %v8737_v46 = vpop.f32.mrb[162].mxu0  ;;  %v9556_v59 = vld [vmem:[#allocation10 + $0x40] ss:$8 sps:$4 sm:$0xff]  }
 0x2e3   : > { %v4621_v23 = vadd.f32 %v4578_v11, %v4566_v19  ;;  %v4580_v42 = vpop.f32.mrb[162].mxu1  ;;  %v8738_v13 = vpop.f32.mrb[163].mxu0 }
 0x2e4   : > { %v4582_v51 = vpop.f32.mrb[163].mxu1  ;;  %v3920_v22 = vadd.f32 %v8736_v8, %v11126_v53  ;;  %v8739_v33 = vadd.f32 %v8738_v13, %v8737_v46 }
 0x2e5   : > { %v11197_v5 = vadd.f32 %v4621_v23, %v3918_v15  ;;  %v4622_v20 = vadd.f32 %v4582_v51, %v4570_v54  ;;  %6416 = vmatmul.mubr.bf16.gmra.mrb[12].mxu0 %v11136_v18 }
 0x2e6   : > { %v3921_v30 = vadd.f32 %v8739_v33, %v11131_v48  ;;  %6423 = vmatprep.mubr.bf16.mxu0 %v5417_v12  ;;  %v9559_v33 = vld [vmem:[#allocation10 + $0x50] ss:$8 sps:$4 sm:$0xff]  }
 0x2e7   : > { %v11201_v6 = vadd.f32 %v4622_v20, %v3919_v58 }
 0x2e8   : > { %v8740_v25 = vpop.f32.mrb[164].mxu0 }
 0x2e9   : > { %v4586_v36 = vpop.f32.mrb[164].mxu1  ;;  %v8741_v10 = vpop.f32.mrb[165].mxu0 }
 0x2ea   : > { %v4588_v28 = vpop.f32.mrb[165].mxu1  ;;  %v8742_v53 = vadd.f32 %v8741_v10, %v8740_v25  ;;  %v8743_v61 = vpop.f32.mrb[166].mxu0 }
 0x2eb   : > { %v4623_v2 = vadd.f32 %v4588_v28, %v4576_v35  ;;  %v4590_v0 = vpop.f32.mrb[166].mxu1  ;;  %v8744_v19 = vpop.f32.mrb[167].mxu0  ;;  %v9558_v35 = vld [vmem:[#allocation10 + $0x44] ss:$8 sps:$4 sm:$0xff]  }
 0x2ec   : > { %v4592_v18 = vpop.f32.mrb[167].mxu1  ;;  %v3922_v39 = vadd.f32 %v8742_v53, %v11142_v24  ;;  %v8745_v38 = vadd.f32 %v8744_v19, %v8743_v61  ;;  %6611 = vmatprep.subr.bf16.mxu1 %v9558_v35  ;;  %v9567_v35 = vld [vmem:[#allocation10 + $0x74] ss:$8 sps:$4 sm:$0xff]  }
 0x2ed   : > { %v11207_v48 = vadd.f32 %v4623_v2, %v3920_v22  ;;  %v4624_v34 = vadd.f32 %v4592_v18, %v4580_v42  ;;  %6424 = vmatmul.mubr.bf16.gmra.mrb[16].mxu0 %v5415_v57  ;;  %6612 = vmatpush1.bf16.msra.mxu1 %v9556_v59 }
 0x2ee   : > { %v3923_v41 = vadd.f32 %v8745_v38, %v11145_v37  ;;  %v9562_v38 = vld [vmem:[#allocation10 + $0x60] ss:$8 sps:$4 sm:$0xff]  }
 0x2ef   : > { %v11210_v29 = vadd.f32 %v4624_v34, %v3921_v30  ;;  %v9564_v34 = vld [vmem:[#allocation10 + $0x64] ss:$8 sps:$4 sm:$0xff]  }
 0x2f0   : > { %v8746_v63 = vpop.f32.mrb[168].mxu0 }
 0x2f1   : > { %v4596_v14 = vpop.f32.mrb[168].mxu1  ;;  %v8747_v54 = vpop.f32.mrb[169].mxu0 }
 0x2f2   : > { %v4598_v47 = vpop.f32.mrb[169].mxu1  ;;  %v8748_v32 = vadd.f32 %v8747_v54, %v8746_v63  ;;  %v8749_v24 = vpop.f32.mrb[170].mxu0 }
 0x2f3   : > { %v4625_v45 = vadd.f32 %v4598_v47, %v4586_v36  ;;  %v4600_v15 = vpop.f32.mrb[170].mxu1  ;;  %v8750_v27 = vpop.f32.mrb[171].mxu0 }
 0x2f4   : > { %v4602_v40 = vpop.f32.mrb[171].mxu1  ;;  %v3924_v58 = vadd.f32 %v8748_v32, %v11150_v56  ;;  %v8751_v1 = vadd.f32 %v8750_v27, %v8749_v24 }
 0x2f5   : > { %v11213_v55 = vadd.f32 %v4625_v45, %v3922_v39  ;;  %v4626_v37 = vadd.f32 %v4602_v40, %v4590_v0 }
 0x2f6   : > { %v3925_v62 = vadd.f32 %v8751_v1, %v11153_v49  ;;  %v9561_v49 = vld [vmem:[#allocation10 + $0x54] ss:$8 sps:$4 sm:$0xff]  }
 0x2f7   : > { %v11216_v7 = vadd.f32 %v4626_v37, %v3923_v41  ;;  %6613 = vmatprep.subr.bf16.mxu1 %v9561_v49 }
 0x2f8   : > { %v4890_v11 = vpop.f32.mrb[172].mxu0  ;;  %6614 = vmatpush1.bf16.msra.mxu1 %v9559_v33 }
 0x2f9   : > { %v4606_v26 = vpop.f32.mrb[172].mxu1  ;;  %v4892_v8 = vpop.f32.mrb[173].mxu0  ;;  %6615 = vmatprep.subr.bf16.mxu1 %v9564_v34 }
 0x2fa   : > { %v4607_v44 = vpop.f32.mrb[173].mxu1  ;;  %v4893_v42 = vpop.f32.mrb[174].mxu0 }
 0x2fb   : > { %v4627_v23 = vadd.f32 %v4607_v44, %v4596_v14  ;;  %v4609_v46 = vpop.f32.mrb[174].mxu1  ;;  %v4895_v13 = vpop.f32.mrb[175].mxu0 }
 0x2fc   : > { %v4610_v56 = vpop.f32.mrb[175].mxu1  ;;  %6616 = vmatpush1.bf16.msra.mxu1 %v9562_v38 }
 0x2fd   : > { %v11218_v51 = vadd.f32 %v4627_v23, %v3924_v58  ;;  %v4628_v12 = vadd.f32 %v4610_v56, %v4600_v15  ;;  %6617 = vmatprep.subr.bf16.mxu1 %v9567_v35 }
 0x2ff   : > { %v11220_v22 = vadd.f32 %v4628_v12, %v3925_v62  ;;  %v12281_v12 = vmov 0  }
 0x300   : > { %v4898_v20 = vpop.f32.mrb[176].mxu0  ;;  %6635 = vmatprep.mubr.bf16.mxu1 %v12281_v12  ;;  %6764 = vst [vmem:[#allocation3] sm:$0xff] %v12281_v12  ;;  %6768 = vst [vmem:[#allocation3 + $0x20] sm:$0xff] %v12281_v12  ;;  %7052 = vmatprep.mubr.bf16.mxu0 %v12281_v12 }
 0x301   : > { %v8768_v52 = vpop.f32.mrb[176].mxu1  ;;  %v4900_v30 = vpop.f32.mrb[177].mxu0  ;;  %6769 = vst [vmem:[#allocation3 + $0x28] sm:$0xff] %v12281_v12  ;;  %6770 = vst [vmem:[#allocation3 + $0x30] sm:$0xff] %v12281_v12 }
 0x302   : > { %v8769_v25 = vpop.f32.mrb[177].mxu1  ;;  %v4975_v36 = vadd.f32 %v4900_v30, %v4890_v11  ;;  %v4902_v10 = vpop.f32.mrb[178].mxu0  ;;  %v9565_v11 = vld [vmem:[#allocation10 + $0x70] ss:$8 sps:$4 sm:$0xff]   ;;  %6771 = vst [vmem:[#allocation3 + $0x38] sm:$0xff] %v12281_v12  ;;  %6772 = vst [vmem:[#allocation3 + $0x40] sm:$0xff] %v12281_v12 }
 0x303   : > { %v8770_v28 = vadd.f32 %v8769_v25, %v8768_v52  ;;  %v8771_v57 = vpop.f32.mrb[178].mxu1  ;;  %v4904_v53 = vpop.f32.mrb[179].mxu0  ;;  %6618 = vmatpush1.bf16.msra.mxu1 %v9565_v11  ;;  %6773 = vst [vmem:[#allocation3 + $0x48] sm:$0xff] %v12281_v12  ;;  %6774 = vst [vmem:[#allocation3 + $0x50] sm:$0xff] %v12281_v12 }
 0x304   : > { %v8772_v2 = vpop.f32.mrb[179].mxu1  ;;  %v4991_v61 = vadd.f32 %v4975_v36, %v11160_v43  ;;  %v4976_v0 = vadd.f32 %v4904_v53, %v4893_v42  ;;  %6775 = vst [vmem:[#allocation3 + $0x58] sm:$0xff] %v12281_v12  ;;  %6776 = vst [vmem:[#allocation3 + $0x60] sm:$0xff] %v12281_v12 }
 0x305   : > { %v8773_v19 = vadd.f32 %v8772_v2, %v8771_v57  ;;  %6777 = vst [vmem:[#allocation3 + $0x68] sm:$0xff] %v12281_v12  ;;  %6778 = vst [vmem:[#allocation3 + $0x70] sm:$0xff] %v12281_v12 }
 0x306   : > { %v4992_v18 = vadd.f32 %v4976_v0, %v11164_v16  ;;  %v11224_v39 = vadd.f32 %v8770_v28, %v4991_v61  ;;  %6779 = vst [vmem:[#allocation3 + $0x78] sm:$0xff] %v12281_v12  ;;  %6780 = vst [vmem:[#allocation3 + $0x80] sm:$0xff] %v12281_v12 }
 0x307   : > { %6781 = vst [vmem:[#allocation3 + $0x88] sm:$0xff] %v12281_v12  ;;  %6782 = vst [vmem:[#allocation3 + $0x90] sm:$0xff] %v12281_v12 }
 0x308   : > { %v11226_v4 = vadd.f32 %v8773_v19, %v4992_v18  ;;  %v4908_v50 = vpop.f32.mrb[180].mxu0  ;;  %6783 = vst [vmem:[#allocation3 + $0x98] sm:$0xff] %v12281_v12 }
 0x309   : > { %v8774_v41 = vpop.f32.mrb[180].mxu1  ;;  %v4910_v63 = vpop.f32.mrb[181].mxu0 }
 0x30a   : > { %v8775_v14 = vpop.f32.mrb[181].mxu1  ;;  %v4977_v54 = vadd.f32 %v4910_v63, %v4898_v20  ;;  %v4912_v47 = vpop.f32.mrb[182].mxu0 }
 0x30b   : > { %v8776_v32 = vadd.f32 %v8775_v14, %v8774_v41  ;;  %v8777_v43 = vpop.f32.mrb[182].mxu1  ;;  %v4914_v45 = vpop.f32.mrb[183].mxu0 }
 0x30c   : > { %v8778_v24 = vpop.f32.mrb[183].mxu1  ;;  %v4993_v16 = vadd.f32 %v4977_v54, %v11168_v21  ;;  %v4978_v15 = vadd.f32 %v4914_v45, %v4902_v10 }
 0x30d   : > { %v8779_v27 = vadd.f32 %v8778_v24, %v8777_v43 }
 0x30e   : > { %v4994_v40 = vadd.f32 %v4978_v15, %v11172_v3  ;;  %v11230_v58 = vadd.f32 %v8776_v32, %v4993_v16 }
 0x310   : > { %v11232_v1 = vadd.f32 %v8779_v27, %v4994_v40  ;;  %v4918_v37 = vpop.f32.mrb[184].mxu0 }
 0x311   : > { %v8780_v59 = vpop.f32.mrb[184].mxu1  ;;  %v4920_v62 = vpop.f32.mrb[185].mxu0 }
 0x312   : > { %v8781_v26 = vpop.f32.mrb[185].mxu1  ;;  %v4979_v44 = vadd.f32 %v4920_v62, %v4908_v50  ;;  %v4922_v8 = vpop.f32.mrb[186].mxu0 }
 0x313   : > { %v8782_v23 = vadd.f32 %v8781_v26, %v8780_v59  ;;  %v8783_v46 = vpop.f32.mrb[186].mxu1  ;;  %v4924_v21 = vpop.f32.mrb[187].mxu0 }
 0x314   : > { %v8784_v42 = vpop.f32.mrb[187].mxu1  ;;  %v4995_v3 = vadd.f32 %v4979_v44, %v11176_v31  ;;  %v4980_v56 = vadd.f32 %v4924_v21, %v4912_v47 }
 0x315   : > { %v8785_v13 = vadd.f32 %v8784_v42, %v8783_v46 }
 0x316   : > { %v4996_v31 = vadd.f32 %v4980_v56, %v11180_v17  ;;  %v11255_v33 = vadd.f32 %v8782_v23, %v4995_v3 }
 0x318   : > { %v11257_v49 = vadd.f32 %v8785_v13, %v4996_v31  ;;  %v4928_v20 = vpop.f32.mrb[188].mxu0 }
 0x319   : > { %v8786_v52 = vpop.f32.mrb[188].mxu1  ;;  %v4930_v30 = vpop.f32.mrb[189].mxu0 }
 0x31a   : > { %v8787_v25 = vpop.f32.mrb[189].mxu1  ;;  %v4981_v36 = vadd.f32 %v4930_v30, %v4918_v37  ;;  %v4932_v10 = vpop.f32.mrb[190].mxu0 }
 0x31b   : > { %v8788_v28 = vadd.f32 %v8787_v25, %v8786_v52  ;;  %v8789_v57 = vpop.f32.mrb[190].mxu1  ;;  %v4934_v53 = vpop.f32.mrb[191].mxu0 }
 0x31c   : > { %v8790_v2 = vpop.f32.mrb[191].mxu1  ;;  %v4997_v61 = vadd.f32 %v4981_v36, %v11185_v9  ;;  %v4982_v0 = vadd.f32 %v4934_v53, %v4922_v8 }
 0x31d   : > { %v8791_v19 = vadd.f32 %v8790_v2, %v8789_v57  ;;  %v11284_v2 = vld [vmem:[%s12276_s6] ss:$8 sps:$4 sm:$0xff]  }
 0x31e   : > { %v4998_v17 = vadd.f32 %v4982_v0, %v11189_v60  ;;  %v11261_v18 = vadd.f32 %v8788_v28, %v4997_v61 }
 0x320   : > { %v11263_v38 = vadd.f32 %v8791_v19, %v4998_v17  ;;  %v4938_v34 = vpop.f32.mrb[192].mxu0  ;;  %v11293_v19 = vld [vmem:[%s12276_s6 + $0x14] ss:$8 sps:$4 sm:$0xff]  }
 0x321   : > { %v8792_v50 = vpop.f32.mrb[192].mxu1  ;;  %v4940_v41 = vpop.f32.mrb[193].mxu0 }
 0x322   : > { %v8793_v63 = vpop.f32.mrb[193].mxu1  ;;  %v4983_v14 = vadd.f32 %v4940_v41, %v4928_v20  ;;  %v4942_v54 = vpop.f32.mrb[194].mxu0 }
 0x323   : > { %v8794_v47 = vadd.f32 %v8793_v63, %v8792_v50  ;;  %v8795_v32 = vpop.f32.mrb[194].mxu1  ;;  %v4944_v43 = vpop.f32.mrb[195].mxu0  ;;  %v11300_v50 = vld [vmem:[%s12276_s6 + $0x10] ss:$8 sps:$4 sm:$0xff]  }
 0x324   : > { %v8796_v45 = vpop.f32.mrb[195].mxu1  ;;  %v4999_v9 = vadd.f32 %v4983_v14, %v11197_v5  ;;  %v4984_v24 = vadd.f32 %v4944_v43, %v4932_v10 }
 0x325   : > { %v8797_v16 = vadd.f32 %v8796_v45, %v8795_v32  ;;  %v11307_v45 = vld [vmem:[%s12276_s6 + $0x24] ss:$8 sps:$4 sm:$0xff]  }
 0x326   : > { %v5000_v60 = vadd.f32 %v4984_v24, %v11201_v6  ;;  %v11267_v15 = vadd.f32 %v8794_v47, %v4999_v9 }
 0x328   : > { %v11269_v27 = vadd.f32 %v8797_v16, %v5000_v60  ;;  %v4948_v40 = vpop.f32.mrb[196].mxu0  ;;  %v11313_v60 = vld [vmem:[%s12276_s6 + $0x20] ss:$8 sps:$4 sm:$0xff]  }
 0x329   : > { %v8798_v37 = vpop.f32.mrb[196].mxu1  ;;  %v4950_v59 = vpop.f32.mrb[197].mxu0 }
 0x32a   : > { %v8799_v35 = vpop.f32.mrb[197].mxu1  ;;  %v4985_v62 = vadd.f32 %v4950_v59, %v4938_v34  ;;  %v4952_v26 = vpop.f32.mrb[198].mxu0  ;;  %v11323_v59 = vld [vmem:[%s12276_s6 + $0x34] ss:$8 sps:$4 sm:$0xff]  }
 0x32b   : > { %v8800_v11 = vadd.f32 %v8799_v35, %v8798_v37  ;;  %v8801_v44 = vpop.f32.mrb[198].mxu1  ;;  %v4954_v8 = vpop.f32.mrb[199].mxu0 }
 0x32c   : > { %v8802_v23 = vpop.f32.mrb[199].mxu1  ;;  %v5001_v5 = vadd.f32 %v4985_v62, %v11207_v48  ;;  %v4986_v46 = vadd.f32 %v4954_v8, %v4942_v54  ;;  %v9570_v48 = vld [vmem:[%s12276_s6 + $0x4] ss:$8 sps:$4 sm:$0xff]  }
 0x32d   : > { %v8803_v21 = vadd.f32 %v8802_v23, %v8801_v44  ;;  %7020 = vmatprep.subr.bf16.mxu0 %v9570_v48  ;;  %8880 = vmatprep.subr.bf16.mxu1 %v9570_v48 }
 0x32e   : > { %v5002_v6 = vadd.f32 %v4986_v46, %v11210_v29  ;;  %v11273_v42 = vadd.f32 %v8800_v11, %v5001_v5  ;;  %7021 = vmatpush1.bf16.msra.mxu0 %v11284_v2  ;;  %v11337_v46 = vld [vmem:[%s12276_s6 + $0x44] ss:$8 sps:$4 sm:$0xff]  }
 0x32f   : > { %7022 = vmatprep.subr.bf16.mxu0 %v11293_v19 }
 0x330   : > { %v11275_v3 = vadd.f32 %v8803_v21, %v5002_v6  ;;  %v4958_v56 = vpop.f32.mrb[200].mxu0  ;;  %v11342_v21 = vld [vmem:[%s12276_s6 + $0x40] ss:$8 sps:$4 sm:$0xff]   ;;  %v11349_v6 = vld [vmem:[%s12276_s6 + $0x54] ss:$8 sps:$4 sm:$0xff]  }
 0x331   : > { %v8804_v13 = vpop.f32.mrb[200].mxu1  ;;  %v4960_v31 = vpop.f32.mrb[201].mxu0 }
 0x332   : > { %v8805_v20 = vpop.f32.mrb[201].mxu1  ;;  %v4987_v52 = vadd.f32 %v4960_v31, %v4948_v40  ;;  %v4962_v30 = vpop.f32.mrb[202].mxu0  ;;  %7023 = vmatpush1.bf16.msra.mxu0 %v11300_v50  ;;  %v11354_v31 = vld [vmem:[%s12276_s6 + $0x50] ss:$8 sps:$4 sm:$0xff]  }
 0x333   : > { %v8806_v25 = vadd.f32 %v8805_v20, %v8804_v13  ;;  %v8807_v36 = vpop.f32.mrb[202].mxu1  ;;  %v4964_v10 = vpop.f32.mrb[203].mxu0  ;;  %7024 = vmatprep.subr.bf16.mxu0 %v11307_v45 }
 0x334   : > { %v8808_v28 = vpop.f32.mrb[203].mxu1  ;;  %v5003_v29 = vadd.f32 %v4987_v52, %v11213_v55  ;;  %v4988_v57 = vadd.f32 %v4964_v10, %v4952_v26  ;;  %v11330_v26 = vld [vmem:[%s12276_s6 + $0x30] ss:$8 sps:$4 sm:$0xff]  }
 0x335   : > { %v8809_v53 = vadd.f32 %v8808_v28, %v8807_v36 }
 0x336   : > { %v5004_v61 = vadd.f32 %v4988_v57, %v11216_v7  ;;  %v11287_v0 = vadd.f32 %v8806_v25, %v5003_v29  ;;  %7025 = vmatpush1.bf16.msra.mxu0 %v11313_v60  ;;  %v11361_v29 = vld [vmem:[%s12276_s6 + $0x64] ss:$8 sps:$4 sm:$0xff]  }
 0x337   : > { %7026 = vmatprep.subr.bf16.mxu0 %v11323_v59 }
 0x338   : > { %v11295_v55 = vadd.f32 %v8809_v53, %v5004_v61  ;;  %v4968_v17 = vpop.f32.mrb[204].mxu0 }
 0x339   : > { %v8810_v34 = vpop.f32.mrb[204].mxu1  ;;  %v4969_v41 = vpop.f32.mrb[205].mxu0  ;;  %v11367_v17 = vld [vmem:[%s12276_s6 + $0x60] ss:$8 sps:$4 sm:$0xff]  }
 0x33a   : > { %v8811_v7 = vpop.f32.mrb[205].mxu1  ;;  %v4989_v63 = vadd.f32 %v4969_v41, %v4958_v56  ;;  %v4971_v14 = vpop.f32.mrb[206].mxu0  ;;  %7027 = vmatpush1.bf16.msra.mxu0 %v11330_v26 }
 0x33b   : > { %v8812_v54 = vadd.f32 %v8811_v7, %v8810_v34  ;;  %v8813_v47 = vpop.f32.mrb[206].mxu1  ;;  %v4972_v32 = vpop.f32.mrb[207].mxu0  ;;  %7028 = vmatprep.subr.bf16.mxu0 %v11337_v46  ;;  %v11372_v34 = vld [vmem:[%s12276_s6 + $0x74] ss:$8 sps:$4 sm:$0xff]  }
 0x33c   : > { %v8814_v43 = vpop.f32.mrb[207].mxu1  ;;  %v5005_v9 = vadd.f32 %v4989_v63, %v11218_v51  ;;  %v4990_v24 = vadd.f32 %v4972_v32, %v4962_v30  ;;  %v11388_v63 = vld [vmem:[%s12276_s6 + $0x84] ss:$8 sps:$4 sm:$0xff]  }
 0x33d   : > { %v8815_v16 = vadd.f32 %v8814_v43, %v8813_v47 }
 0x33e   : > { %v5006_v40 = vadd.f32 %v4990_v24, %v11220_v22  ;;  %v11317_v37 = vadd.f32 %v8812_v54, %v5005_v9  ;;  %7029 = vmatpush1.bf16.msra.mxu0 %v11342_v21 }
 0x33f   : > { %7030 = vmatprep.subr.bf16.mxu0 %v11349_v6 }
 0x340   : > { %v11325_v51 = vadd.f32 %v8815_v16, %v5006_v40  ;;  %v5711_v35 = vpop.f32.mrb[208].mxu0  ;;  %v11396_v40 = vld [vmem:[%s12276_s6 + $0x80] ss:$8 sps:$4 sm:$0xff]  }
 0x341   : > { %v6073_v62 = vpop.f32.mrb[208].mxu1  ;;  %v5713_v11 = vpop.f32.mrb[209].mxu0 }
 0x342   : > { %v6075_v22 = vpop.f32.mrb[209].mxu1  ;;  %v5714_v44 = vpop.f32.mrb[210].mxu0  ;;  %7031 = vmatpush1.bf16.msra.mxu0 %v11354_v31  ;;  %v11402_v11 = vld [vmem:[%s12276_s6 + $0x94] ss:$8 sps:$4 sm:$0xff]  }
 0x343   : > { %v6076_v8 = vpop.f32.mrb[210].mxu1  ;;  %v5716_v23 = vpop.f32.mrb[211].mxu0  ;;  %7032 = vmatprep.subr.bf16.mxu0 %v11361_v29 }
 0x344   : > { %v6078_v5 = vpop.f32.mrb[211].mxu1 }
 0x346   : > { %7033 = vmatpush1.bf16.msra.mxu0 %v11367_v17 }
 0x347   : > { %7034 = vmatprep.subr.bf16.mxu0 %v11372_v34 }
 0x348   : > { %v5719_v56 = vpop.f32.mrb[212].mxu0 }
 0x349   : > { %v6081_v13 = vpop.f32.mrb[212].mxu1  ;;  %v5721_v20 = vpop.f32.mrb[213].mxu0 }
 0x34a   : > { %v6083_v52 = vpop.f32.mrb[213].mxu1  ;;  %v5796_v30 = vadd.f32 %v5721_v20, %v5711_v35  ;;  %v5723_v25 = vpop.f32.mrb[214].mxu0 }
 0x34b   : > { %v6158_v36 = vadd.f32 %v6083_v52, %v6073_v62  ;;  %v6085_v10 = vpop.f32.mrb[214].mxu1  ;;  %v5725_v28 = vpop.f32.mrb[215].mxu0 }
 0x34c   : > { %v6087_v48 = vpop.f32.mrb[215].mxu1  ;;  %v5812_v57 = vadd.f32 %v5796_v30, %v11224_v39  ;;  %v5797_v53 = vadd.f32 %v5725_v28, %v5714_v44  ;;  %v11382_v39 = vld [vmem:[%s12276_s6 + $0x70] ss:$8 sps:$4 sm:$0xff]  }
 0x34d   : > { %v6159_v61 = vadd.f32 %v6087_v48, %v6076_v8  ;;  %7035 = vmatpush1.bf16.msra.mxu0 %v11382_v39  ;;  %v11426_v48 = vld [vmem:[%s12276_s6 + $0xa0] ss:$8 sps:$4 sm:$0xff]  }
 0x34e   : > { %v5813_v41 = vadd.f32 %v5797_v53, %v11226_v4  ;;  %v11376_v7 = vadd.f32 %v6158_v36, %v5812_v57  ;;  %7036 = vmatprep.subr.bf16.mxu0 %v11388_v63 }
 0x350   : > { %v11390_v14 = vadd.f32 %v6159_v61, %v5813_v41  ;;  %v5729_v54 = vpop.f32.mrb[216].mxu0  ;;  %v11432_v61 = vld [vmem:[%s12276_s6 + $0xb4] ss:$8 sps:$4 sm:$0xff]  }
 0x351   : > { %v6091_v4 = vpop.f32.mrb[216].mxu1  ;;  %v5731_v47 = vpop.f32.mrb[217].mxu0  ;;  %7037 = vmatpush1.bf16.msra.mxu0 %v11396_v40 }
 0x352   : > { %v6093_v32 = vpop.f32.mrb[217].mxu1  ;;  %v5798_v43 = vadd.f32 %v5731_v47, %v5719_v56  ;;  %v5733_v9 = vpop.f32.mrb[218].mxu0  ;;  %v11412_v56 = vld [vmem:[%s12276_s6 + $0x90] ss:$8 sps:$4 sm:$0xff]   ;;  %7038 = vmatprep.subr.bf16.mxu0 %v11402_v11 }
 0x353   : > { %v6160_v24 = vadd.f32 %v6093_v32, %v6081_v13  ;;  %v6095_v16 = vpop.f32.mrb[218].mxu1  ;;  %v5735_v35 = vpop.f32.mrb[219].mxu0  ;;  %v11418_v13 = vld [vmem:[%s12276_s6 + $0xa4] ss:$8 sps:$4 sm:$0xff]  }
 0x354   : > { %v6097_v62 = vpop.f32.mrb[219].mxu1  ;;  %v5814_v22 = vadd.f32 %v5798_v43, %v11230_v58  ;;  %v5799_v44 = vadd.f32 %v5735_v35, %v5723_v25  ;;  %v11442_v43 = vld [vmem:[%s12276_s6 + $0xb0] ss:$8 sps:$4 sm:$0xff]  }
 0x355   : > { %v6161_v8 = vadd.f32 %v6097_v62, %v6085_v10  ;;  %7039 = vmatpush1.bf16.msra.mxu0 %v11412_v56  ;;  %12302 = vst [vmem:[#allocation16_spill] sm:$0xff] %v11442_v43 }
 0x356   : > { %v5815_v23 = vadd.f32 %v5799_v44, %v11232_v1  ;;  %v11406_v5 = vadd.f32 %v6160_v24, %v5814_v22  ;;  %7040 = vmatprep.subr.bf16.mxu0 %v11418_v13  ;;  %v11448_v24 = vld [vmem:[%s12276_s6 + $0xc4] ss:$8 sps:$4 sm:$0xff]  }
 0x357   : > { %12303 = vst [vmem:[#allocation17_spill] sm:$0xff] %v11448_v24 }
 0x358   : > { %v11420_v58 = vadd.f32 %v6161_v8, %v5815_v23  ;;  %v5739_v20 = vpop.f32.mrb[220].mxu0  ;;  %v11456_v23 = vld [vmem:[%s12276_s6 + $0xc0] ss:$8 sps:$4 sm:$0xff]  }
 0x359   : > { %v6101_v1 = vpop.f32.mrb[220].mxu1  ;;  %v5741_v52 = vpop.f32.mrb[221].mxu0  ;;  %7041 = vmatpush1.bf16.msra.mxu0 %v11426_v48  ;;  %12304 = vst [vmem:[#allocation18_spill] sm:$0xff] %v11456_v23 }
 0x35a   : > { %v6103_v30 = vpop.f32.mrb[221].mxu1  ;;  %v5800_v25 = vadd.f32 %v5741_v52, %v5729_v54  ;;  %v5743_v36 = vpop.f32.mrb[222].mxu0  ;;  %7042 = vmatprep.subr.bf16.mxu0 %v11432_v61 }
 0x35b   : > { %v6162_v10 = vadd.f32 %v6103_v30, %v6091_v4  ;;  %v6105_v28 = vpop.f32.mrb[222].mxu1  ;;  %v5745_v57 = vpop.f32.mrb[223].mxu0 }
 0x35c   : > { %v6107_v53 = vpop.f32.mrb[223].mxu1  ;;  %v5816_v41 = vadd.f32 %v5800_v25, %v11255_v33  ;;  %v5801_v54 = vadd.f32 %v5745_v57, %v5733_v9  ;;  %v11462_v25 = vld [vmem:[%s12276_s6 + $0xd4] ss:$8 sps:$4 sm:$0xff]  }
 0x35d   : > { %v6163_v4 = vadd.f32 %v6107_v53, %v6095_v16  ;;  %7043 = vmatpush1.bf16.msra.mxu0 %v11442_v43  ;;  %12305 = vst [vmem:[#allocation19_spill] sm:$0xff] %v11462_v25 }
 0x35e   : > { %v5817_v47 = vadd.f32 %v5801_v54, %v11257_v49  ;;  %v11436_v32 = vadd.f32 %v6162_v10, %v5816_v41  ;;  %7044 = vmatprep.subr.bf16.mxu0 %v11448_v24  ;;  %v11472_v41 = vld [vmem:[%s12276_s6 + $0xd0] ss:$8 sps:$4 sm:$0xff]   ;;  %v11478_v54 = vld [vmem:[%s12276_s6 + $0xe4] ss:$8 sps:$4 sm:$0xff]  }
 0x35f   : > { %12306 = vst [vmem:[#allocation20_spill] sm:$0xff] %v11472_v41  ;;  %12307 = vst [vmem:[#allocation21_spill] sm:$0xff] %v11478_v54 }
 0x360   : > { %v11450_v33 = vadd.f32 %v6163_v4, %v5817_v47  ;;  %v5749_v9 = vpop.f32.mrb[224].mxu0 }
 0x361   : > { %v6111_v49 = vpop.f32.mrb[224].mxu1  ;;  %v5751_v16 = vpop.f32.mrb[225].mxu0  ;;  %7045 = vmatpush1.bf16.msra.mxu0 %v11456_v23 }
 0x362   : > { %v6113_v35 = vpop.f32.mrb[225].mxu1  ;;  %v5802_v62 = vadd.f32 %v5751_v16, %v5739_v20  ;;  %v5753_v22 = vpop.f32.mrb[226].mxu0  ;;  %7046 = vmatprep.subr.bf16.mxu0 %v11462_v25 }
 0x363   : > { %v6164_v44 = vadd.f32 %v6113_v35, %v6101_v1  ;;  %v6115_v8 = vpop.f32.mrb[226].mxu1  ;;  %v5755_v52 = vpop.f32.mrb[227].mxu0 }
 0x364   : > { %v6117_v30 = vpop.f32.mrb[227].mxu1  ;;  %v5818_v20 = vadd.f32 %v5802_v62, %v11261_v18  ;;  %v5803_v1 = vadd.f32 %v5755_v52, %v5743_v36 }
 0x365   : > { %v6165_v10 = vadd.f32 %v6117_v30, %v6105_v28  ;;  %7047 = vmatpush1.bf16.msra.mxu0 %v11472_v41  ;;  %v12311_v41 = vmov 0  }
 0x366   : > { %v5819_v57 = vadd.f32 %v5803_v1, %v11263_v38  ;;  %v11466_v53 = vadd.f32 %v6164_v44, %v5818_v20  ;;  %v11486_v44 = vld [vmem:[%s12276_s6 + $0xe0] ss:$8 sps:$4 sm:$0xff]   ;;  %7048 = vmatprep.subr.bf16.mxu0 %v11478_v54  ;;  %v11492_v20 = vld [vmem:[%s12276_s6 + $0xf4] ss:$8 sps:$4 sm:$0xff]  }
 0x367   : > { %12308 = vst [vmem:[#allocation22_spill] sm:$0xff] %v11486_v44  ;;  %12309 = vst [vmem:[#allocation23_spill] sm:$0xff] %v11492_v20 }
 0x368   : > { %v11480_v18 = vadd.f32 %v6165_v10, %v5819_v57  ;;  %v5759_v36 = vpop.f32.mrb[228].mxu0 }
 0x369   : > { %v6121_v38 = vpop.f32.mrb[228].mxu1  ;;  %v5761_v28 = vpop.f32.mrb[229].mxu0  ;;  %7049 = vmatpush1.bf16.msra.mxu0 %v11486_v44 }
 0x36a   : > { %v6123_v4 = vpop.f32.mrb[229].mxu1  ;;  %v5804_v47 = vadd.f32 %v5761_v28, %v5749_v9  ;;  %v5763_v16 = vpop.f32.mrb[230].mxu0  ;;  %v11502_v28 = vld [vmem:[%s12276_s6 + $0xf0] ss:$8 sps:$4 sm:$0xff]   ;;  %7050 = vmatprep.subr.bf16.mxu0 %v11492_v20 }
 0x36b   : > { %v6166_v35 = vadd.f32 %v6123_v4, %v6111_v49  ;;  %v6125_v62 = vpop.f32.mrb[230].mxu1  ;;  %v5765_v52 = vpop.f32.mrb[231].mxu0  ;;  %12310 = vst [vmem:[#allocation24_spill] sm:$0xff] %v11502_v28 }
 0x36c   : > { %v6127_v30 = vpop.f32.mrb[231].mxu1  ;;  %v5820_v9 = vadd.f32 %v5804_v47, %v11267_v15  ;;  %v5805_v49 = vadd.f32 %v5765_v52, %v5753_v22 }
 0x36d   : > { %v6167_v1 = vadd.f32 %v6127_v30, %v6115_v8  ;;  %7051 = vmatpush1.bf16.msra.mxu0 %v11502_v28 }
 0x36e   : > { %v5821_v10 = vadd.f32 %v5805_v49, %v11269_v27  ;;  %v11496_v57 = vadd.f32 %v6166_v35, %v5820_v9 }
 0x370   : > { %v11505_v4 = vadd.f32 %v6167_v1, %v5821_v10  ;;  %v5769_v12 = vpop.f32.mrb[232].mxu0  ;;  %7053 = vmatmul.mubr.bf16.vlgmr.msra.gmra.mrb[20].mxu0 %v12311_v41 }
 0x371   : > { %v6131_v54 = vpop.f32.mrb[232].mxu1  ;;  %v5771_v15 = vpop.f32.mrb[233].mxu0  ;;  %7062 = vmatprep.mubr.bf16.mxu0 %v12311_v41 }
 0x372   : > { %v6133_v22 = vpop.f32.mrb[233].mxu1  ;;  %v5806_v8 = vadd.f32 %v5771_v15, %v5759_v36  ;;  %v5773_v47 = vpop.f32.mrb[234].mxu0 }
 0x373   : > { %v6168_v27 = vadd.f32 %v6133_v22, %v6121_v38  ;;  %v6135_v35 = vpop.f32.mrb[234].mxu1  ;;  %v5775_v52 = vpop.f32.mrb[235].mxu0 }
 0x374   : > { %v6137_v30 = vpop.f32.mrb[235].mxu1  ;;  %v5822_v9 = vadd.f32 %v5806_v8, %v11273_v42  ;;  %v5807_v49 = vadd.f32 %v5775_v52, %v5763_v16 }
 0x375   : > { %v6169_v44 = vadd.f32 %v6137_v30, %v6125_v62 }
 0x376   : > { %v5823_v1 = vadd.f32 %v5807_v49, %v11275_v3  ;;  %v11511_v10 = vadd.f32 %v6168_v27, %v5822_v9 }
 0x378   : > { %v11514_v36 = vadd.f32 %v6169_v44, %v5823_v1  ;;  %v5779_v38 = vpop.f32.mrb[236].mxu0  ;;  %7063 = vmatmul.mubr.bf16.gmra.mrb[24].mxu0 %v12311_v41 }
 0x379   : > { %v6141_v15 = vpop.f32.mrb[236].mxu1  ;;  %v5781_v22 = vpop.f32.mrb[237].mxu0 }
 0x37a   : > { %v6143_v28 = vpop.f32.mrb[237].mxu1  ;;  %v5808_v20 = vadd.f32 %v5781_v22, %v5769_v12  ;;  %v5783_v25 = vpop.f32.mrb[238].mxu0 }
 0x37b   : > { %v6170_v23 = vadd.f32 %v6143_v28, %v6131_v54  ;;  %v6145_v42 = vpop.f32.mrb[238].mxu1  ;;  %v5785_v16 = vpop.f32.mrb[239].mxu0 }
 0x37c   : > { %v6147_v62 = vpop.f32.mrb[239].mxu1  ;;  %v5824_v8 = vadd.f32 %v5808_v20, %v11287_v0  ;;  %v5809_v52 = vadd.f32 %v5785_v16, %v5773_v47 }
 0x37d   : > { %v6171_v3 = vadd.f32 %v6147_v62, %v6135_v35 }
 0x37e   : > { %v5825_v27 = vadd.f32 %v5809_v52, %v11295_v55  ;;  %v11519_v44 = vadd.f32 %v6170_v23, %v5824_v8 }
 0x380   : > { %v11521_v30 = vadd.f32 %v6171_v3, %v5825_v27  ;;  %v5789_v9 = vpop.f32.mrb[240].mxu0 }
 0x381   : > { %v6151_v49 = vpop.f32.mrb[240].mxu1  ;;  %v5790_v12 = vpop.f32.mrb[241].mxu0 }
 0x382   : > { %v6152_v1 = vpop.f32.mrb[241].mxu1  ;;  %v5810_v54 = vadd.f32 %v5790_v12, %v5779_v38  ;;  %v5792_v28 = vpop.f32.mrb[242].mxu0  ;;  %v11529_v38 = vld [vmem:[#allocation9] ss:$0 sm:$0xff] }
 0x383   : > { %v6172_v22 = vadd.f32 %v6152_v1, %v6141_v15  ;;  %v6154_v24 = vpop.f32.mrb[242].mxu1  ;;  %v5793_v43 = vpop.f32.mrb[243].mxu0 }
 0x384   : > { %v6155_v0 = vpop.f32.mrb[243].mxu1  ;;  %v5826_v20 = vadd.f32 %v5810_v54, %v11317_v37  ;;  %v5811_v47 = vadd.f32 %v5793_v43, %v5783_v25 }
 0x385   : > { %v6173_v35 = vadd.f32 %v6155_v0, %v6145_v42 }
 0x386   : > { %v5827_v55 = vadd.f32 %v5811_v47, %v11325_v51  ;;  %v11525_v23 = vadd.f32 %v6172_v22, %v5826_v20 }
 0x388   : > { %v11527_v16 = vadd.f32 %v6173_v35, %v5827_v55  ;;  %v8832_v62 = vpop.f32.mrb[244].mxu0 }
 0x389   : > { %v8833_v8 = vpop.f32.mrb[245].mxu0 }
 0x38a   : > { %v8834_v52 = vadd.f32 %v8833_v8, %v8832_v62  ;;  %v8835_v3 = vpop.f32.mrb[246].mxu0 }
 0x38b   : > { %v8836_v15 = vpop.f32.mrb[247].mxu0 }
 0x38c   : > { %v6432_v24 = vadd.f32 %v8834_v52, %v11376_v7  ;;  %v8837_v27 = vadd.f32 %v8836_v15, %v8835_v3 }
 0x38e   : > { %v6455_v37 = vadd.f32 %v11529_v38, %v6432_v24  ;;  %v6433_v43 = vadd.f32 %v8837_v27, %v11390_v14 }
 0x390   : > { %v6456_v51 = vadd.f32 %v11529_v38, %v6433_v43  ;;  %v8838_v25 = vpop.f32.mrb[248].mxu0  ;;  %v6471_v9 = vmax.f32 %v6455_v37, 0.0 }
 0x391   : > { %v8839_v42 = vpop.f32.mrb[249].mxu0 }
 0x392   : > { %v6472_v49 = vmax.f32 %v6456_v51, 0.0  ;;  %v8840_v12 = vadd.f32 %v8839_v42, %v8838_v25  ;;  %v8841_v1 = vpop.f32.mrb[250].mxu0 }
 0x393   : > { %v8842_v54 = vpop.f32.mrb[251].mxu0 }
 0x394   : > { %v6487_v28 = vpack.c.bf16 %v6472_v49, %v6471_v9  ;;  %v6434_v22 = vadd.f32 %v8840_v12, %v11406_v5  ;;  %v8843_v0 = vadd.f32 %v8842_v54, %v8841_v1 }
 0x396   : > { %v6457_v7 = vadd.f32 %v11529_v38, %v6434_v22  ;;  %v6435_v20 = vadd.f32 %v8843_v0, %v11420_v58  ;;  %6636 = vmatmul.mubr.bf16.vlgmr.msra.gmra.mrb[244].mxu1 %v6487_v28 }
 0x397   : > { %6645 = vmatprep.mubr.bf16.mxu1 %v12311_v41  ;;  %8896 = vmatpush1.bf16.msra.mxu1 %v11284_v2 }
 0x398   : > { %v6458_v14 = vadd.f32 %v11529_v38, %v6435_v20  ;;  %v8844_v47 = vpop.f32.mrb[252].mxu0  ;;  %8881 = vmatprep.subr.bf16.mxu1 %v11293_v19  ;;  %v6473_v55 = vmax.f32 %v6457_v7, 0.0 }
 0x399   : > { %v8845_v35 = vpop.f32.mrb[253].mxu0 }
 0x39a   : > { %v6474_v62 = vmax.f32 %v6458_v14, 0.0  ;;  %v8846_v8 = vadd.f32 %v8845_v35, %v8844_v47  ;;  %v8847_v5 = vpop.f32.mrb[254].mxu0 }
 0x39b   : > { %v8848_v52 = vpop.f32.mrb[255].mxu0  ;;  %8897 = vmatpush1.bf16.msra.mxu1 %v11300_v50 }
 0x39c   : > { %v6436_v58 = vadd.f32 %v8846_v8, %v11436_v32  ;;  %v8849_v3 = vadd.f32 %v8848_v52, %v8847_v5  ;;  %v6488_v15 = vpack.c.bf16 %v6474_v62, %v6473_v55  ;;  %8882 = vmatprep.subr.bf16.mxu1 %v11307_v45 }
 0x39e   : > { %v6459_v2 = vadd.f32 %v11529_v38, %v6436_v58  ;;  %v6437_v24 = vadd.f32 %v8849_v3, %v11450_v33  ;;  %6646 = vmatmul.mubr.bf16.gmra.mrb[248].mxu1 %v6488_v15 }
 0x39f   : > { %6655 = vmatprep.mubr.bf16.mxu1 %v12311_v41  ;;  %8898 = vmatpush1.bf16.msra.mxu1 %v11313_v60 }
 0x3a0   : > { %v6460_v19 = vadd.f32 %v11529_v38, %v6437_v24  ;;  %v8850_v27 = vpop.f32.mrb[0].mxu0  ;;  %8883 = vmatprep.subr.bf16.mxu1 %v11323_v59  ;;  %v6475_v32 = vmax.f32 %v6459_v2, 0.0 }
 0x3a1   : > { %v8851_v50 = vpop.f32.mrb[1].mxu0 }
 0x3a2   : > { %v6476_v37 = vmax.f32 %v6460_v19, 0.0  ;;  %v8852_v43 = vadd.f32 %v8851_v50, %v8850_v27  ;;  %v8853_v51 = vpop.f32.mrb[2].mxu0 }
 0x3a3   : > { %v8854_v45 = vpop.f32.mrb[3].mxu0  ;;  %8899 = vmatpush1.bf16.msra.mxu1 %v11330_v26 }
 0x3a4   : > { %v6438_v33 = vadd.f32 %v8852_v43, %v11466_v53  ;;  %v8855_v25 = vadd.f32 %v8854_v45, %v8853_v51  ;;  %v6489_v42 = vpack.c.bf16 %v6476_v37, %v6475_v32  ;;  %8884 = vmatprep.subr.bf16.mxu1 %v11337_v46  ;;  %v12312_v32 = vld [vmem:[#allocation16_spill] sm:$0xff]  ;;  %v12313_v51 = vld [vmem:[#allocation17_spill] sm:$0xff] }
 0x3a6   : > { %v6461_v60 = vadd.f32 %v11529_v38, %v6438_v33  ;;  %v6439_v9 = vadd.f32 %v8855_v25, %v11480_v18  ;;  %6656 = vmatmul.mubr.bf16.gmra.mrb[252].mxu1 %v6489_v42  ;;  %v12315_v25 = vld [vmem:[#allocation19_spill] sm:$0xff] }
 0x3a7   : > { %6665 = vmatprep.mubr.bf16.mxu1 %v12311_v41  ;;  %8900 = vmatpush1.bf16.msra.mxu1 %v11342_v21 }
 0x3a8   : > { %v6462_v59 = vadd.f32 %v11529_v38, %v6439_v9  ;;  %v8856_v49 = vpop.f32.mrb[4].mxu0  ;;  %8885 = vmatprep.subr.bf16.mxu1 %v11349_v6  ;;  %v6477_v53 = vmax.f32 %v6461_v60, 0.0  ;;  %v12316_v9 = vld [vmem:[#allocation20_spill] sm:$0xff] }
 0x3a9   : > { %v8857_v26 = vpop.f32.mrb[5].mxu0 }
 0x3aa   : > { %v6478_v12 = vmax.f32 %v6462_v59, 0.0  ;;  %v8858_v1 = vadd.f32 %v8857_v26, %v8856_v49  ;;  %v8859_v54 = vpop.f32.mrb[6].mxu0  ;;  %v12317_v59 = vld [vmem:[#allocation21_spill] sm:$0xff]  ;;  %v12318_v49 = vld [vmem:[#allocation22_spill] sm:$0xff]  ;;  %v12320_v26 = vld [vmem:[#allocation24_spill] sm:$0xff] }
 0x3ab   : > { %v8860_v46 = vpop.f32.mrb[7].mxu0  ;;  %8901 = vmatpush1.bf16.msra.mxu1 %v11354_v31 }
 0x3ac   : > { %v6490_v28 = vpack.c.bf16 %v6478_v12, %v6477_v53  ;;  %v6440_v18 = vadd.f32 %v8858_v1, %v11496_v57  ;;  %v8861_v22 = vadd.f32 %v8860_v46, %v8859_v54  ;;  %8886 = vmatprep.subr.bf16.mxu1 %v11361_v29 }
 0x3ae   : > { %v6463_v21 = vadd.f32 %v11529_v38, %v6440_v18  ;;  %v6441_v0 = vadd.f32 %v8861_v22, %v11505_v4  ;;  %6666 = vmatmul.mubr.bf16.gmra.mrb[0].mxu1 %v6490_v28 }
 0x3af   : > { %6675 = vmatprep.mubr.bf16.mxu1 %v12311_v41  ;;  %8902 = vmatpush1.bf16.msra.mxu1 %v11367_v17 }
 0x3b0   : > { %v6464_v6 = vadd.f32 %v11529_v38, %v6441_v0  ;;  %v8862_v7 = vpop.f32.mrb[8].mxu0  ;;  %8887 = vmatprep.subr.bf16.mxu1 %v11372_v34  ;;  %v6479_v20 = vmax.f32 %v6463_v21, 0.0 }
 0x3b1   : > { %v8863_v31 = vpop.f32.mrb[9].mxu0 }
 0x3b2   : > { %v6480_v57 = vmax.f32 %v6464_v6, 0.0  ;;  %v8864_v14 = vadd.f32 %v8863_v31, %v8862_v7  ;;  %v8865_v47 = vpop.f32.mrb[10].mxu0  ;;  %v6513_v31 = vlaneseq }
 0x3b3   : > { %v8866_v29 = vpop.f32.mrb[11].mxu0  ;;  %8903 = vmatpush1.bf16.msra.mxu1 %v11382_v39 }
 0x3b4   : > { %v6491_v35 = vpack.c.bf16 %v6480_v57, %v6479_v20  ;;  %v6442_v4 = vadd.f32 %v8864_v14, %v11511_v10  ;;  %v8867_v55 = vadd.f32 %v8866_v29, %v8865_v47  ;;  %8888 = vmatprep.subr.bf16.mxu1 %v11388_v63  ;;  %v6514_v57 = vshrl.u32 %v6513_v31, 7  ;;  %v6511_v47 = vld [vmem:[#allocation12] sm:$0x3] }
 0x3b6   : > { %v6465_v17 = vadd.f32 %v11529_v38, %v6442_v4  ;;  %v6443_v62 = vadd.f32 %v8867_v55, %v11514_v36  ;;  %6676 = vmatmul.mubr.bf16.gmra.mrb[4].mxu1 %v6491_v35  ;;  %v6515_v14 = vsub.s32 0, %v6514_v57  ;;  %v6519_v29 = vsub.s32 1, %v6514_v57 }
 0x3b7   : > { %6685 = vmatprep.mubr.bf16.mxu1 %v12311_v41  ;;  %8904 = vmatpush1.bf16.msra.mxu1 %v11396_v40 }
 0x3b8   : > { %v6466_v34 = vadd.f32 %v11529_v38, %v6443_v62  ;;  %v8868_v8 = vpop.f32.mrb[12].mxu0  ;;  %8889 = vmatprep.subr.bf16.mxu1 %v11402_v11  ;;  %v6481_v5 = vmax.f32 %v6465_v17, 0.0  ;;  %v11625_v35 = vrot.slane %v6511_v47, %v6515_v14  ;;  %v11627_v4 = vrot.slane %v6511_v47, %v6519_v29 }
 0x3b9   : > { %v8869_v39 = vpop.f32.mrb[13].mxu0 }
 0x3ba   : > { %v6482_v10 = vmax.f32 %v6466_v34, 0.0  ;;  %v8870_v52 = vadd.f32 %v8869_v39, %v8868_v8  ;;  %v8871_v58 = vpop.f32.mrb[14].mxu0 }
 0x3bb   : > { %v8872_v63 = vpop.f32.mrb[15].mxu0  ;;  %8905 = vmatpush1.bf16.msra.mxu1 %v11412_v56 }
 0x3bc   : > { %v6492_v3 = vpack.c.bf16 %v6482_v10, %v6481_v5  ;;  %v6444_v36 = vadd.f32 %v8870_v52, %v11519_v44  ;;  %v8873_v15 = vadd.f32 %v8872_v63, %v8871_v58  ;;  %8890 = vmatprep.subr.bf16.mxu1 %v11418_v13 }
 0x3be   : > { %v6467_v40 = vadd.f32 %v11529_v38, %v6444_v36  ;;  %v6445_v2 = vadd.f32 %v8873_v15, %v11521_v30  ;;  %6686 = vmatmul.mubr.bf16.gmra.mrb[8].mxu1 %v6492_v3 }
 0x3bf   : > { %6695 = vmatprep.mubr.bf16.mxu1 %v12311_v41  ;;  %8906 = vmatpush1.bf16.msra.mxu1 %v11426_v48 }
 0x3c0   : > { %v6468_v11 = vadd.f32 %v11529_v38, %v6445_v2  ;;  %v8874_v24 = vpop.f32.mrb[16].mxu0  ;;  %8891 = vmatprep.subr.bf16.mxu1 %v11432_v61  ;;  %v6483_v19 = vmax.f32 %v6467_v40, 0.0  ;;  %v12314_v61 = vld [vmem:[#allocation18_spill] sm:$0xff] }
 0x3c1   : > { %v8875_v56 = vpop.f32.mrb[17].mxu0 }
 0x3c2   : > { %v6484_v44 = vmax.f32 %v6468_v11, 0.0  ;;  %v8876_v27 = vadd.f32 %v8875_v56, %v8874_v24  ;;  %v8877_v50 = vpop.f32.mrb[18].mxu0 }
 0x3c3   : > { %v8878_v13 = vpop.f32.mrb[19].mxu0  ;;  %8907 = vmatpush1.bf16.msra.mxu1 %v12312_v32 }
 0x3c4   : > { %v6493_v37 = vpack.c.bf16 %v6484_v44, %v6483_v19  ;;  %v6446_v30 = vadd.f32 %v8876_v27, %v11525_v23  ;;  %v8879_v43 = vadd.f32 %v8878_v13, %v8877_v50  ;;  %8892 = vmatprep.subr.bf16.mxu1 %v12313_v51 }
 0x3c6   : > { %v6469_v48 = vadd.f32 %v11529_v38, %v6446_v30  ;;  %v6447_v45 = vadd.f32 %v8879_v43, %v11527_v16  ;;  %6696 = vmatmul.mubr.bf16.gmra.mrb[12].mxu1 %v6493_v37  ;;  %v12319_v16 = vld [vmem:[#allocation23_spill] sm:$0xff] }
 0x3c7   : > { %6705 = vmatprep.mubr.bf16.mxu1 %v12311_v41  ;;  %8908 = vmatpush1.bf16.msra.mxu1 %v12314_v61 }
 0x3c8   : > { %v6470_v33 = vadd.f32 %v11529_v38, %v6447_v45  ;;  %8893 = vmatprep.subr.bf16.mxu1 %v12315_v25  ;;  %v6485_v42 = vmax.f32 %v6469_v48, 0.0 }
 0x3ca   : > { %v6486_v60 = vmax.f32 %v6470_v33, 0.0 }
 0x3cb   : > { %8909 = vmatpush1.bf16.msra.mxu1 %v12316_v9 }
 0x3cc   : > { %v6494_v23 = vpack.c.bf16 %v6486_v60, %v6485_v42  ;;  %8894 = vmatprep.subr.bf16.mxu1 %v12317_v59 }
 0x3ce   : > { %6706 = vmatmul.mubr.bf16.gmra.mrb[16].mxu1 %v6494_v23 }
 0x3cf   : > { %8910 = vmatpush1.bf16.msra.mxu1 %v12318_v49 }
 0x3d0   : > { %8895 = vmatprep.subr.bf16.mxu1 %v12319_v16 }
 0x3d3   : > { %8911 = vmatpush1.bf16.msra.mxu1 %v12320_v26 }
 0x443   : > { %v7054_v41 = vpop.f32.mrb[20].mxu0 }
 0x444   : > { %v7056_v53 = vpop.f32.mrb[21].mxu0 }
 0x445   : > { %v7058_v38 = vpop.f32.mrb[22].mxu0 }
 0x446   : > { %7176 = vst [vmem:[#allocation4 + $0x10] sm:$0xff] %v7058_v38  ;;  %v7060_v12 = vpop.f32.mrb[23].mxu0 }
 0x44b   : > { %v11601_v1 = vpop.f32.mrb[24].mxu0 }
 0x44c   : > { %7178 = vst [vmem:[#allocation4 + $0x20] sm:$0xff] %v11601_v1  ;;  %v7066_v54 = vpop.f32.mrb[25].mxu0  ;;  %7340 = vrot.lane.b32.xlu0 %v11601_v1, %s9787_s16  ;;  %v7274_v46 = vrot.slane %v11601_v1, 7 }
 0x44d   : > { %v11607_v28 = vpop.f32.mrb[26].mxu0 }
 0x44e   : > { %7180 = vst [vmem:[#allocation4 + $0x30] sm:$0xff] %v11607_v28  ;;  %v7276_v18 = vrot.slane %v11607_v28, 7  ;;  %v7070_v22 = vpop.f32.mrb[27].mxu0  ;;  %v7410_v0 = vrot.slane %v11607_v28, 1 }
 0x450   : > { %7342 = vrot.lane.b32.xlu0 %v11607_v28, %s9787_s16  ;;  %v11618_v21 = vsel %vm7272_vm5, %v7274_v46, %v7276_v18 }
 0x453   : > { %v7404_v6 = vld [vmem:[#allocation4 + $0x20] sm:$0xfe] }
 0x454   : > { %v7409_v7 = vrot.slane %v7404_v6, 1 }
 0x456   : > { %v7411_v20 = vsel %vm2845_vm2, %v7409_v7, %v7410_v0 }
 0x457   : > { %7442 = vrot.lane.b32.xlu0 %v7411_v20, %s9788_s12 }
 0x469   : > { %v6637_v55 = vpop.f32.mrb[244].mxu1 }
 0x46a   : > { %v6638_v17 = vadd.f32 %v6637_v55, %v11625_v35  ;;  %v6639_v62 = vpop.f32.mrb[245].mxu1 }
 0x46b   : > { %v6640_v34 = vadd.f32 %v6639_v62, %v11627_v4  ;;  %v6641_v8 = vpop.f32.mrb[246].mxu1 }
 0x46c   : > { %v6642_v39 = vadd.f32 %v6641_v8, %v11625_v35  ;;  %v6643_v5 = vpop.f32.mrb[247].mxu1  ;;  %v6716_v52 = vmax.f32 %v6638_v17, 0.0 }
 0x46d   : > { %v6644_v10 = vadd.f32 %v6643_v5, %v11627_v4  ;;  %v6717_v63 = vmax.f32 %v6640_v34, 0.0 }
 0x46e   : > { %v6718_v58 = vmax.f32 %v6642_v39, 0.0 }
 0x46f   : > { %v6719_v3 = vmax.f32 %v6644_v10, 0.0 }
 0x470   : > { %v6748_v36 = vpack.c.bf16 %v6718_v58, %v6716_v52 }
 0x471   : > { %v6749_v15 = vpack.c.bf16 %v6719_v3, %v6717_v63  ;;  %v6647_v40 = vpop.f32.mrb[248].mxu1 }
 0x472   : > { %6788 = vst [vmem:[#allocation3 + $0x20] sm:$0xf] %v6748_v36  ;;  %v6648_v2 = vadd.f32 %v6647_v40, %v11625_v35  ;;  %v6649_v11 = vpop.f32.mrb[249].mxu1 }
 0x473   : > { %6789 = vst [vmem:[#allocation3 + $0x28] sm:$0xf] %v6749_v15  ;;  %v6650_v24 = vadd.f32 %v6649_v11, %v11627_v4  ;;  %v6651_v56 = vpop.f32.mrb[250].mxu1 }
 0x474   : > { %v6652_v19 = vadd.f32 %v6651_v56, %v11625_v35  ;;  %v6653_v44 = vpop.f32.mrb[251].mxu1  ;;  %v6720_v50 = vmax.f32 %v6648_v2, 0.0 }
 0x475   : > { %v6654_v27 = vadd.f32 %v6653_v44, %v11627_v4  ;;  %v6721_v32 = vmax.f32 %v6650_v24, 0.0 }
 0x476   : > { %v6722_v13 = vmax.f32 %v6652_v19, 0.0 }
 0x477   : > { %v6723_v37 = vmax.f32 %v6654_v27, 0.0 }
 0x478   : > { %v6750_v30 = vpack.c.bf16 %v6722_v13, %v6720_v50 }
 0x479   : > { %v6751_v43 = vpack.c.bf16 %v6723_v37, %v6721_v32  ;;  %v6657_v51 = vpop.f32.mrb[252].mxu1  ;;  %v6808_v42 = vld [vmem:[#allocation3 + $0x20] sm:$0xff] }
 0x47a   : > { %6790 = vst [vmem:[#allocation3 + $0x30] sm:$0xf] %v6750_v30  ;;  %v6658_v48 = vadd.f32 %v6657_v51, %v11625_v35  ;;  %v6659_v45 = vpop.f32.mrb[253].mxu1  ;;  %v6809_v61 = vld [vmem:[#allocation3 + $0x28] sm:$0xff] }
 0x47b   : > { %6791 = vst [vmem:[#allocation3 + $0x38] sm:$0xf] %v6751_v43  ;;  %v6660_v33 = vadd.f32 %v6659_v45, %v11627_v4  ;;  %v6661_v25 = vpop.f32.mrb[254].mxu1  ;;  %7072 = vmatprep.mubr.bf16.mxu0 %v6809_v61 }
 0x47c   : > { %v6662_v60 = vadd.f32 %v6661_v25, %v11625_v35  ;;  %v6663_v9 = vpop.f32.mrb[255].mxu1  ;;  %7073 = vmatmul.mubr.bf16.gmra.mrb[28].mxu0 %v6808_v42  ;;  %v6724_v59 = vmax.f32 %v6658_v48, 0.0 }
 0x47d   : > { %v6664_v23 = vadd.f32 %v6663_v9, %v11627_v4  ;;  %v6725_v16 = vmax.f32 %v6660_v33, 0.0 }
 0x47e   : > { %v6726_v49 = vmax.f32 %v6662_v60, 0.0 }
 0x47f   : > { %v6727_v26 = vmax.f32 %v6664_v23, 0.0 }
 0x480   : > { %v6752_v41 = vpack.c.bf16 %v6726_v49, %v6724_v59 }
 0x481   : > { %v6753_v53 = vpack.c.bf16 %v6727_v26, %v6725_v16  ;;  %v6667_v38 = vpop.f32.mrb[0].mxu1  ;;  %v6810_v31 = vld [vmem:[#allocation3 + $0x30] sm:$0xff] }
 0x482   : > { %6792 = vst [vmem:[#allocation3 + $0x40] sm:$0xf] %v6752_v41  ;;  %v6668_v12 = vadd.f32 %v6667_v38, %v11625_v35  ;;  %v6669_v54 = vpop.f32.mrb[1].mxu1  ;;  %v6811_v22 = vld [vmem:[#allocation3 + $0x38] sm:$0xff] }
 0x483   : > { %6793 = vst [vmem:[#allocation3 + $0x48] sm:$0xf] %v6753_v53  ;;  %v6670_v6 = vadd.f32 %v6669_v54, %v11627_v4  ;;  %v6671_v7 = vpop.f32.mrb[2].mxu1  ;;  %7082 = vmatprep.mubr.bf16.mxu0 %v6811_v22 }
 0x484   : > { %v6672_v20 = vadd.f32 %v6671_v7, %v11625_v35  ;;  %v6673_v57 = vpop.f32.mrb[3].mxu1  ;;  %7083 = vmatmul.mubr.bf16.gmra.mrb[32].mxu0 %v6810_v31  ;;  %v6728_v47 = vmax.f32 %v6668_v12, 0.0 }
 0x485   : > { %v6674_v14 = vadd.f32 %v6673_v57, %v11627_v4  ;;  %v6729_v55 = vmax.f32 %v6670_v6, 0.0 }
 0x486   : > { %v6730_v29 = vmax.f32 %v6672_v20, 0.0 }
 0x487   : > { %v6731_v17 = vmax.f32 %v6674_v14, 0.0 }
 0x488   : > { %v6754_v62 = vpack.c.bf16 %v6730_v29, %v6728_v47 }
 0x489   : > { %v6755_v34 = vpack.c.bf16 %v6731_v17, %v6729_v55  ;;  %v6677_v8 = vpop.f32.mrb[4].mxu1  ;;  %v6812_v63 = vld [vmem:[#allocation3 + $0x40] sm:$0xff] }
 0x48a   : > { %6794 = vst [vmem:[#allocation3 + $0x50] sm:$0xf] %v6754_v62  ;;  %v6678_v39 = vadd.f32 %v6677_v8, %v11625_v35  ;;  %v6679_v5 = vpop.f32.mrb[5].mxu1  ;;  %v6813_v10 = vld [vmem:[#allocation3 + $0x48] sm:$0xff] }
 0x48b   : > { %6795 = vst [vmem:[#allocation3 + $0x58] sm:$0xf] %v6755_v34  ;;  %v6680_v52 = vadd.f32 %v6679_v5, %v11627_v4  ;;  %v6681_v58 = vpop.f32.mrb[6].mxu1  ;;  %7092 = vmatprep.mubr.bf16.mxu0 %v6813_v10 }
 0x48c   : > { %v6682_v3 = vadd.f32 %v6681_v58, %v11625_v35  ;;  %v6683_v36 = vpop.f32.mrb[7].mxu1  ;;  %7093 = vmatmul.mubr.bf16.gmra.mrb[36].mxu0 %v6812_v63  ;;  %v6732_v40 = vmax.f32 %v6678_v39, 0.0 }
 0x48d   : > { %v6684_v15 = vadd.f32 %v6683_v36, %v11627_v4  ;;  %v6733_v11 = vmax.f32 %v6680_v52, 0.0 }
 0x48e   : > { %v6734_v2 = vmax.f32 %v6682_v3, 0.0 }
 0x48f   : > { %v6735_v24 = vmax.f32 %v6684_v15, 0.0 }
 0x490   : > { %v6756_v56 = vpack.c.bf16 %v6734_v2, %v6732_v40 }
 0x491   : > { %v6757_v19 = vpack.c.bf16 %v6735_v24, %v6733_v11  ;;  %v6687_v44 = vpop.f32.mrb[8].mxu1  ;;  %v6814_v30 = vld [vmem:[#allocation3 + $0x50] sm:$0xff] }
 0x492   : > { %6796 = vst [vmem:[#allocation3 + $0x60] sm:$0xf] %v6756_v56  ;;  %v6688_v27 = vadd.f32 %v6687_v44, %v11625_v35  ;;  %v6689_v50 = vpop.f32.mrb[9].mxu1  ;;  %v6815_v13 = vld [vmem:[#allocation3 + $0x58] sm:$0xff] }
 0x493   : > { %6797 = vst [vmem:[#allocation3 + $0x68] sm:$0xf] %v6757_v19  ;;  %v6690_v32 = vadd.f32 %v6689_v50, %v11627_v4  ;;  %v6691_v37 = vpop.f32.mrb[10].mxu1  ;;  %7102 = vmatprep.mubr.bf16.mxu0 %v6815_v13 }
 0x494   : > { %v6692_v43 = vadd.f32 %v6691_v37, %v11625_v35  ;;  %v6693_v51 = vpop.f32.mrb[11].mxu1  ;;  %7103 = vmatmul.mubr.bf16.gmra.mrb[40].mxu0 %v6814_v30  ;;  %v6736_v45 = vmax.f32 %v6688_v27, 0.0 }
 0x495   : > { %v6694_v48 = vadd.f32 %v6693_v51, %v11627_v4  ;;  %v6737_v33 = vmax.f32 %v6690_v32, 0.0 }
 0x496   : > { %v6738_v61 = vmax.f32 %v6692_v43, 0.0 }
 0x497   : > { %v6739_v25 = vmax.f32 %v6694_v48, 0.0 }
 0x498   : > { %v6758_v42 = vpack.c.bf16 %v6738_v61, %v6736_v45 }
 0x499   : > { %v6759_v60 = vpack.c.bf16 %v6739_v25, %v6737_v33  ;;  %v6697_v9 = vpop.f32.mrb[12].mxu1  ;;  %v6816_v41 = vld [vmem:[#allocation3 + $0x60] sm:$0xff] }
 0x49a   : > { %6798 = vst [vmem:[#allocation3 + $0x70] sm:$0xf] %v6758_v42  ;;  %v6698_v23 = vadd.f32 %v6697_v9, %v11625_v35  ;;  %v6699_v59 = vpop.f32.mrb[13].mxu1  ;;  %v6817_v49 = vld [vmem:[#allocation3 + $0x68] sm:$0xff] }
 0x49b   : > { %6799 = vst [vmem:[#allocation3 + $0x78] sm:$0xf] %v6759_v60  ;;  %v6700_v16 = vadd.f32 %v6699_v59, %v11627_v4  ;;  %v6701_v26 = vpop.f32.mrb[14].mxu1  ;;  %7112 = vmatprep.mubr.bf16.mxu1 %v6817_v49 }
 0x49c   : > { %v6702_v53 = vadd.f32 %v6701_v26, %v11625_v35  ;;  %v6703_v38 = vpop.f32.mrb[15].mxu1  ;;  %7113 = vmatmul.mubr.bf16.vlgmr.msra.gmra.mrb[20].mxu1 %v6816_v41  ;;  %v6740_v54 = vmax.f32 %v6698_v23, 0.0 }
 0x49d   : > { %v6704_v12 = vadd.f32 %v6703_v38, %v11627_v4  ;;  %v6741_v6 = vmax.f32 %v6700_v16, 0.0 }
 0x49e   : > { %v6742_v22 = vmax.f32 %v6702_v53, 0.0 }
 0x49f   : > { %v6743_v7 = vmax.f32 %v6704_v12, 0.0 }
 0x4a0   : > { %v6760_v31 = vpack.c.bf16 %v6742_v22, %v6740_v54 }
 0x4a1   : > { %v6761_v20 = vpack.c.bf16 %v6743_v7, %v6741_v6  ;;  %v6707_v57 = vpop.f32.mrb[16].mxu1  ;;  %v6818_v62 = vld [vmem:[#allocation3 + $0x70] sm:$0xff] }
 0x4a2   : > { %6800 = vst [vmem:[#allocation3 + $0x80] sm:$0xf] %v6760_v31  ;;  %v6708_v14 = vadd.f32 %v6707_v57, %v11625_v35  ;;  %v6709_v47 = vpop.f32.mrb[17].mxu1  ;;  %v6819_v29 = vld [vmem:[#allocation3 + $0x78] sm:$0xff] }
 0x4a3   : > { %6801 = vst [vmem:[#allocation3 + $0x88] sm:$0xf] %v6761_v20  ;;  %v6710_v55 = vadd.f32 %v6709_v47, %v11627_v4  ;;  %v6711_v17 = vpop.f32.mrb[18].mxu1  ;;  %7122 = vmatprep.mubr.bf16.mxu1 %v6819_v29 }
 0x4a4   : > { %v6712_v34 = vadd.f32 %v6711_v17, %v11625_v35  ;;  %v6713_v8 = vpop.f32.mrb[19].mxu1  ;;  %7123 = vmatmul.mubr.bf16.gmra.mrb[24].mxu1 %v6818_v62  ;;  %v6744_v5 = vmax.f32 %v6708_v14, 0.0  ;;  %v9616_v35 = vld [vmem:[#allocation3] sm:$0xff] }
 0x4a5   : > { %v6714_v39 = vadd.f32 %v6713_v8, %v11627_v4  ;;  %v6745_v52 = vmax.f32 %v6710_v55, 0.0  ;;  %v7506_v4 = vld [vmem:[#allocation4 + $0x30] sm:$0x80] }
 0x4a6   : > { %v6746_v10 = vmax.f32 %v6712_v34, 0.0  ;;  %v7512_v11 = vrot.slane %v7506_v4, 7 }
 0x4a7   : > { %v6747_v58 = vmax.f32 %v6714_v39, 0.0 }
 0x4a8   : > { %v6762_v63 = vpack.c.bf16 %v6746_v10, %v6744_v5 }
 0x4a9   : > { %v6763_v3 = vpack.c.bf16 %v6747_v58, %v6745_v52  ;;  %v6820_v15 = vld [vmem:[#allocation3 + $0x80] sm:$0xff] }
 0x4aa   : > { %6802 = vst [vmem:[#allocation3 + $0x90] sm:$0xf] %v6762_v63  ;;  %v6821_v36 = vld [vmem:[#allocation3 + $0x88] sm:$0xff] }
 0x4ab   : > { %6803 = vst [vmem:[#allocation3 + $0x98] sm:$0xf] %v6763_v3  ;;  %7132 = vmatprep.mubr.bf16.mxu1 %v6821_v36 }
 0x4ac   : > { %7133 = vmatmul.mubr.bf16.gmra.mrb[28].mxu1 %v6820_v15 }
 0x4b1   : > { %v6822_v2 = vld [vmem:[#allocation3 + $0x90] sm:$0xff] }
 0x4b2   : > { %v6823_v40 = vld [vmem:[#allocation3 + $0x98] sm:$0xff] }
 0x4b3   : > { %7142 = vmatprep.mubr.bf16.mxu1 %v6823_v40 }
 0x4b4   : > { %7143 = vmatmul.mubr.bf16.gmra.mrb[32].mxu1 %v6822_v2 }
 0x4b5   : > { %7152 = vmatprep.mubr.bf16.mxu1 %v9616_v35 }
 0x4bc   : > { %7153 = vmatmul.mubr.bf16.gmra.mrb[36].mxu1 %v9616_v35 }
 0x4bd   : > { %7162 = vmatprep.mubr.bf16.mxu1 %v9616_v35 }
 0x4c4   : > { %7163 = vmatmul.mubr.bf16.gmra.mrb[40].mxu1 %v9616_v35 }
 0x54f   : > { %v7074_v24 = vpop.f32.mrb[28].mxu0 }
 0x550   : > { %7182 = vst [vmem:[#allocation4 + $0x40] sm:$0xff] %v7074_v24  ;;  %v7076_v56 = vpop.f32.mrb[29].mxu0  ;;  %7586 = vrot.lane.b32.xlu0 %v7074_v24, %s9789_s17  ;;  %7344 = vrot.lane.b32.xlu1 %v7074_v24, %s9787_s16  ;;  %v7278_v19 = vrot.slane %v7074_v24, 7  ;;  %v7412_v13 = vrot.slane %v7074_v24, 1 }
 0x551   : > { %v7078_v44 = vpop.f32.mrb[30].mxu0 }
 0x552   : > { %7184 = vst [vmem:[#allocation4 + $0x50] sm:$0xff] %v7078_v44  ;;  %v7080_v27 = vpop.f32.mrb[31].mxu0  ;;  %v7513_v50 = vsel %vm7272_vm5, %v7512_v11, %v7278_v19  ;;  %v7414_v32 = vrot.slane %v7078_v44, 1  ;;  %v7280_v37 = vrot.slane %v7078_v44, 7  ;;  %v11667_v30 = vsel %vm7272_vm5, %v7276_v18, %v7278_v19 }
 0x553   : > { %v7413_v49 = vsel %vm2845_vm2, %v7410_v0, %v7412_v13 }
 0x554   : > { %7520 = vrot.lane.b32.xlu0 %v7513_v50, %s9790_s18  ;;  %7346 = vrot.lane.b32.xlu1 %v7078_v44, %s9787_s16  ;;  %v7415_v43 = vsel %vm2845_vm2, %v7412_v13, %v7414_v32  ;;  %v11673_v51 = vsel %vm7272_vm5, %v7278_v19, %v7280_v37 }
 0x557   : > { %v7084_v48 = vpop.f32.mrb[32].mxu0  ;;  %v7650_v45 = vld [vmem:[#allocation4 + $0x40] sm:$0xfe] }
 0x558   : > { %v7086_v61 = vpop.f32.mrb[33].mxu0  ;;  %7588 = vrot.lane.b32.xlu1 %v7078_v44, %s9789_s17  ;;  %7446 = vrot.lane.b32.xlu0 %v7415_v43, %s9788_s12  ;;  %v7654_v33 = vrot.slane %v7650_v45, 1  ;;  %v7282_v18 = vrot.slane %v7084_v48, 7  ;;  %v7416_v25 = vrot.slane %v7084_v48, 1 }
 0x559   : > { %7187 = vst.msk [vmem:[#allocation4 + $0x68] sm:$0xff] %vm7174_vm4, %v7086_v61  ;;  %v7088_v42 = vpop.f32.mrb[34].mxu0  ;;  %v7726_v55 = vld [vmem:[#allocation4 + $0x50] sm:$0x80] }
 0x55a   : > { %v7090_v60 = vpop.f32.mrb[35].mxu0  ;;  %v7655_v9 = vsel %vm2845_vm2, %v7654_v33, %v7414_v32  ;;  %v11680_v23 = vsel %vm7272_vm5, %v7280_v37, %v7282_v18  ;;  %v11683_v59 = vsel %vm2845_vm2, %v7414_v32, %v7416_v25  ;;  %v7418_v16 = vrot.slane %v7088_v42, 1 }
 0x55b   : > { %7189 = vst.msk [vmem:[#allocation4 + $0x78] sm:$0xff] %vm7174_vm4, %v7090_v60  ;;  %v7284_v26 = vrot.slane %v7088_v42, 7  ;;  %v7732_v58 = vrot.slane %v7726_v55, 7 }
 0x55c   : > { %7444 = vrot.lane.b32.xlu1 %v7413_v49, %s9788_s12  ;;  %7662 = vrot.lane.b32.xlu0 %v7655_v9, %s9791_s19  ;;  %v7419_v41 = vsel %vm2845_vm2, %v7416_v25, %v7418_v16 }
 0x55d   : > { %v11693_v53 = vsel %vm7272_vm5, %v7282_v18, %v7284_v26  ;;  %v7733_v15 = vsel %vm7272_vm5, %v7732_v58, %v7282_v18 }
 0x55f   : > { %v11695_v38 = vpop.f32.mrb[36].mxu0 }
 0x560   : > { %v7096_v12 = vpop.f32.mrb[37].mxu0  ;;  %7522 = vrot.lane.b32.xlu1 %v11673_v51, %s9790_s18  ;;  %7348 = vrot.lane.b32.xlu0 %v7084_v48, %s9787_s16  ;;  %v7286_v28 = vrot.slane %v11695_v38, 7  ;;  %v7420_v0 = vrot.slane %v11695_v38, 1 }
 0x561   : > { %7191 = vst.msk [vmem:[#allocation4 + $0x88] sm:$0xff] %vm7174_vm4, %v7096_v12  ;;  %v11703_v54 = vpop.f32.mrb[38].mxu0 }
 0x562   : > { %v7100_v22 = vpop.f32.mrb[39].mxu0  ;;  %v11706_v6 = vsel %vm7272_vm5, %v7284_v26, %v7286_v28  ;;  %v11709_v7 = vsel %vm2845_vm2, %v7418_v16, %v7420_v0  ;;  %v7422_v31 = vrot.slane %v11703_v54, 1  ;;  %v7288_v20 = vrot.slane %v11703_v54, 7 }
 0x563   : > { %7193 = vst.msk [vmem:[#allocation4 + $0x98] sm:$0xff] %vm7174_vm4, %v7100_v22 }
 0x564   : > { %7590 = vrot.lane.b32.xlu0 %v7084_v48, %s9789_s17  ;;  %7350 = vrot.lane.b32.xlu1 %v7088_v42, %s9787_s16  ;;  %v11717_v57 = vsel %vm2845_vm2, %v7420_v0, %v7422_v31  ;;  %v11720_v14 = vsel %vm7272_vm5, %v7286_v28, %v7288_v20 }
 0x567   : > { %v11722_v47 = vpop.f32.mrb[40].mxu0 }
 0x568   : > { %v7106_v29 = vpop.f32.mrb[41].mxu0  ;;  %7806 = vrot.lane.b32.xlu0 %v7084_v48, %s9792_s23  ;;  %7592 = vrot.lane.b32.xlu1 %v7088_v42, %s9789_s17  ;;  %v7290_v17 = vrot.slane %v11722_v47, 7  ;;  %v7424_v62 = vrot.slane %v11722_v47, 1 }
 0x569   : > { %7195 = vst.msk [vmem:[#allocation4 + $0xa8] sm:$0xff] %vm7174_vm4, %v7106_v29  ;;  %v11729_v34 = vpop.f32.mrb[42].mxu0 }
 0x56a   : > { %v7110_v8 = vpop.f32.mrb[43].mxu0  ;;  %v11732_v39 = vsel %vm7272_vm5, %v7288_v20, %v7290_v17  ;;  %v11735_v5 = vsel %vm2845_vm2, %v7422_v31, %v7424_v62  ;;  %v7426_v10 = vrot.slane %v11729_v34, 1  ;;  %v7292_v52 = vrot.slane %v11729_v34, 7 }
 0x56b   : > { %7197 = vst.msk [vmem:[#allocation4 + $0xb8] sm:$0xff] %vm7174_vm4, %v7110_v8 }
 0x56c   : > { %7524 = vrot.lane.b32.xlu0 %v11680_v23, %s9790_s18  ;;  %7808 = vrot.lane.b32.xlu1 %v7088_v42, %s9792_s23  ;;  %v11744_v63 = vsel %vm2845_vm2, %v7424_v62, %v7426_v10  ;;  %v11747_v3 = vsel %vm7272_vm5, %v7290_v17, %v7292_v52 }
 0x56f   : > { %v11749_v36 = vpop.f32.mrb[20].mxu1 }
 0x570   : > { %v7116_v40 = vpop.f32.mrb[21].mxu1  ;;  %7740 = vrot.lane.b32.xlu0 %v7733_v15, %s9793_s25  ;;  %7448 = vrot.lane.b32.xlu1 %v11683_v59, %s9788_s12  ;;  %v7294_v2 = vrot.slane %v11749_v36, 7  ;;  %v7428_v35 = vrot.slane %v11749_v36, 1 }
 0x571   : > { %7199 = vst.msk [vmem:[#allocation4 + $0xc8] sm:$0xff] %vm7174_vm4, %v7116_v40  ;;  %v11758_v4 = vpop.f32.mrb[22].mxu1 }
 0x572   : > { %v7120_v11 = vpop.f32.mrb[23].mxu1  ;;  %v11761_v24 = vsel %vm7272_vm5, %v7292_v52, %v7294_v2  ;;  %v11764_v56 = vsel %vm2845_vm2, %v7426_v10, %v7428_v35  ;;  %v7430_v19 = vrot.slane %v11758_v4, 1  ;;  %v7296_v44 = vrot.slane %v11758_v4, 7 }
 0x573   : > { %7201 = vst.msk [vmem:[#allocation4 + $0xd8] sm:$0xff] %vm7174_vm4, %v7120_v11 }
 0x574   : > { %7664 = vrot.lane.b32.xlu1 %v11683_v59, %s9791_s19  ;;  %7450 = vrot.lane.b32.xlu0 %v7419_v41, %s9788_s12  ;;  %v11773_v27 = vsel %vm2845_vm2, %v7428_v35, %v7430_v19  ;;  %v11776_v50 = vsel %vm7272_vm5, %v7294_v2, %v7296_v44 }
 0x577   : > { %v11778_v13 = vpop.f32.mrb[24].mxu1 }
 0x578   : > { %v7126_v32 = vpop.f32.mrb[25].mxu1  ;;  %7666 = vrot.lane.b32.xlu0 %v7419_v41, %s9791_s19  ;;  %7526 = vrot.lane.b32.xlu1 %v11693_v53, %s9790_s18  ;;  %v7298_v37 = vrot.slane %v11778_v13, 7  ;;  %v7432_v43 = vrot.slane %v11778_v13, 1 }
 0x579   : > { %7203 = vst.msk [vmem:[#allocation4 + $0xe8] sm:$0xff] %vm7174_vm4, %v7126_v32  ;;  %v11786_v48 = vpop.f32.mrb[26].mxu1 }
 0x57a   : > { %v7130_v45 = vpop.f32.mrb[27].mxu1  ;;  %v11789_v61 = vsel %vm7272_vm5, %v7296_v44, %v7298_v37  ;;  %v11792_v33 = vsel %vm2845_vm2, %v7430_v19, %v7432_v43  ;;  %v7434_v18 = vrot.slane %v11786_v48, 1  ;;  %v7300_v25 = vrot.slane %v11786_v48, 7 }
 0x57b   : > { %7205 = vst.msk [vmem:[#allocation4 + $0xf8] sm:$0xff] %vm7174_vm4, %v7130_v45  ;;  %v7238_v45 = vld [vmem:[#allocation4 + $0x10] sm:$0x80] }
 0x57c   : > { %7742 = vrot.lane.b32.xlu1 %v11693_v53, %s9793_s25  ;;  %7352 = vrot.lane.b32.xlu0 %v11695_v38, %s9787_s16  ;;  %v11802_v42 = vsel %vm2845_vm2, %v7432_v43, %v7434_v18  ;;  %v11805_v60 = vsel %vm7272_vm5, %v7298_v37, %v7300_v25 }
 0x57f   : > { %v11807_v9 = vpop.f32.mrb[28].mxu1 }
 0x580   : > { %v7136_v59 = vpop.f32.mrb[29].mxu1  ;;  %7594 = vrot.lane.b32.xlu0 %v11695_v38, %s9789_s17  ;;  %7354 = vrot.lane.b32.xlu1 %v11703_v54, %s9787_s16  ;;  %v11814_v49 = vrot.slane %v11807_v9, 7  ;;  %v7436_v16 = vrot.slane %v11807_v9, 1 }
 0x581   : > { %7207 = vst.msk [vmem:[#allocation4 + $0x108] sm:$0xff] %vm7174_vm4, %v7136_v59  ;;  %v11818_v26 = vpop.f32.mrb[30].mxu1  ;;  %v7222_v59 = vld [vmem:[%s12277_s7] sm:$0xff] }
 0x582   : > { %7208 = vst [vmem:[#allocation4 + $0x110] sm:$0xff] %v11818_v26  ;;  %v7140_v41 = vpop.f32.mrb[31].mxu1  ;;  %v11823_v12 = vsel %vm7272_vm5, %v7300_v25, %v11814_v49  ;;  %v11826_v28 = vsel %vm2845_vm2, %v7434_v18, %v7436_v16  ;;  %v11829_v0 = vrot.slane %v11818_v26, 1  ;;  %v7514_v22 = vrot.slane %v11818_v26, 7 }
 0x583   : > { %7209 = vst.msk [vmem:[#allocation4 + $0x118] sm:$0xff] %vm7174_vm4, %v7140_v41 }
 0x584   : > { %7810 = vrot.lane.b32.xlu0 %v11695_v38, %s9792_s23  ;;  %7596 = vrot.lane.b32.xlu1 %v11703_v54, %s9789_s17  ;;  %v11839_v31 = vsel %vm2845_vm2, %v7436_v16, %v11829_v0  ;;  %v11843_v20 = vsel %vm7272_vm5, %v11814_v49, %v7514_v22 }
 0x587   : > { %v11845_v29 = vpop.f32.mrb[32].mxu1 }
 0x588   : > { %7210 = vst [vmem:[#allocation4 + $0x120] sm:$0xff] %v11845_v29  ;;  %v7146_v55 = vpop.f32.mrb[33].mxu1  ;;  %7528 = vrot.lane.b32.xlu0 %v11706_v6, %s9790_s18  ;;  %7812 = vrot.lane.b32.xlu1 %v11703_v54, %s9792_s23  ;;  %v11853_v38 = vrot.slane %v11845_v29, 7  ;;  %v7656_v17 = vrot.slane %v11845_v29, 1 }
 0x589   : > { %7211 = vst.msk [vmem:[#allocation4 + $0x128] sm:$0xff] %vm7174_vm4, %v7146_v55  ;;  %v11857_v62 = vpop.f32.mrb[34].mxu1 }
 0x58a   : > { %7212 = vst [vmem:[#allocation4 + $0x130] sm:$0xff] %v11857_v62  ;;  %v7150_v8 = vpop.f32.mrb[35].mxu1  ;;  %v7658_v10 = vrot.slane %v11857_v62, 1  ;;  %v7734_v52 = vrot.slane %v11857_v62, 7  ;;  %v11864_v58 = vsel %vm7272_vm5, %v7514_v22, %v11853_v38  ;;  %v11868_v54 = vsel %vm2845_vm2, %v11829_v0, %v7656_v17 }
 0x58b   : > { %7213 = vst.msk [vmem:[#allocation4 + $0x138] sm:$0xff] %vm7174_vm4, %v7150_v8 }
 0x58c   : > { %7744 = vrot.lane.b32.xlu0 %v11706_v6, %s9793_s25  ;;  %7452 = vrot.lane.b32.xlu1 %v11709_v7, %s9788_s12  ;;  %v11878_v15 = vsel %vm2845_vm2, %v7656_v17, %v7658_v10  ;;  %v11882_v40 = vsel %vm7272_vm5, %v11853_v38, %v7734_v52 }
 0x58f   : > { %v11884_v2 = vpop.f32.mrb[36].mxu1 }
 0x590   : > { %7214 = vst [vmem:[#allocation4 + $0x140] sm:$0xff] %v11884_v2  ;;  %v7156_v35 = vpop.f32.mrb[37].mxu1  ;;  %7668 = vrot.lane.b32.xlu1 %v11709_v7, %s9791_s19  ;;  %7454 = vrot.lane.b32.xlu0 %v11717_v57, %s9788_s12  ;;  %v7736_v11 = vrot.slane %v11884_v2, 7 }
 0x591   : > { %7215 = vst.msk [vmem:[#allocation4 + $0x148] sm:$0xff] %vm7174_vm4, %v7156_v35  ;;  %v11893_v19 = vpop.f32.mrb[38].mxu1 }
 0x592   : > { %7216 = vst [vmem:[#allocation4 + $0x150] sm:$0xff] %v11893_v19  ;;  %v11899_v44 = vsel %vm7272_vm5, %v7734_v52, %v7736_v11  ;;  %v7160_v7 = vpop.f32.mrb[39].mxu1 }
 0x593   : > { %7217 = vst.msk [vmem:[#allocation4 + $0x158] sm:$0xff] %vm7174_vm4, %v7160_v7 }
 0x594   : > { %7670 = vrot.lane.b32.xlu0 %v11717_v57, %s9791_s19  ;;  %7530 = vrot.lane.b32.xlu1 %v11720_v14, %s9790_s18  ;;  %v7341_v57 = vpop.permute.xlu0 %7340 }
 0x597   : > { %v7164_v32 = vpop.f32.mrb[40].mxu1 }
 0x598   : > { %7746 = vrot.lane.b32.xlu1 %v11720_v14, %s9793_s25  ;;  %7356 = vrot.lane.b32.xlu0 %v11722_v47, %s9787_s16  ;;  %v7166_v37 = vpop.f32.mrb[41].mxu1  ;;  %v7223_v32 = vld [vmem:[%s12277_s7 + $0x8] sm:$0xff] }
 0x599   : > { %7219 = vst.msk [vmem:[#allocation4 + $0x168] sm:$0xff] %vm7174_vm4, %v7166_v37 }
 0x59c   : > { %7598 = vrot.lane.b32.xlu0 %v11722_v47, %s9789_s17  ;;  %7358 = vrot.lane.b32.xlu1 %v11729_v34, %s9787_s16 }
 0x5a0   : > { %7814 = vrot.lane.b32.xlu0 %v11722_v47, %s9792_s23  ;;  %7600 = vrot.lane.b32.xlu1 %v11729_v34, %s9789_s17  ;;  %v7343_v47 = vpop.permute.xlu0 %7342 }
 0x5a4   : > { %7532 = vrot.lane.b32.xlu0 %v11732_v39, %s9790_s18  ;;  %7816 = vrot.lane.b32.xlu1 %v11729_v34, %s9792_s23  ;;  %v7443_v34 = vpop.permute.xlu0 %7442 }
 0x5a8   : > { %7748 = vrot.lane.b32.xlu0 %v11732_v39, %s9793_s25  ;;  %7456 = vrot.lane.b32.xlu1 %v11735_v5, %s9788_s12 }
 0x5ac   : > { %7672 = vrot.lane.b32.xlu1 %v11735_v5, %s9791_s19  ;;  %7458 = vrot.lane.b32.xlu0 %v11744_v63, %s9788_s12 }
 0x5b0   : > { %7674 = vrot.lane.b32.xlu0 %v11744_v63, %s9791_s19  ;;  %7534 = vrot.lane.b32.xlu1 %v11747_v3, %s9790_s18 }
 0x5b4   : > { %7750 = vrot.lane.b32.xlu1 %v11747_v3, %s9793_s25  ;;  %7360 = vrot.lane.b32.xlu0 %v11749_v36, %s9787_s16 }
 0x5b8   : > { %7602 = vrot.lane.b32.xlu0 %v11749_v36, %s9789_s17  ;;  %7362 = vrot.lane.b32.xlu1 %v11758_v4, %s9787_s16 }
 0x5bc   : > { %7818 = vrot.lane.b32.xlu0 %v11749_v36, %s9792_s23  ;;  %7604 = vrot.lane.b32.xlu1 %v11758_v4, %s9789_s17 }
 0x5c0   : > { %7536 = vrot.lane.b32.xlu0 %v11761_v24, %s9790_s18  ;;  %7820 = vrot.lane.b32.xlu1 %v11758_v4, %s9792_s23  ;;  %v7273_v4 = vrot.slane %v7238_v45, 7  ;;  %v7871_v45 = vld [vmem:[#allocation4 + $0x78] sm:$0xff] }
 0x5c2   : > { %v7587_v5 = vpop.permute.xlu0 %7586  ;;  %v11951_v63 = vpop.permute.xlu1 %7344 }
 0x5c4   : > { %7752 = vrot.lane.b32.xlu0 %v11761_v24, %s9793_s25  ;;  %7460 = vrot.lane.b32.xlu1 %v11764_v56, %s9788_s12 }
 0x5c6   : > { %v7521_v36 = vpop.permute.xlu0 %7520  ;;  %v11957_v43 = vpop.permute.xlu1 %7346 }
 0x5c8   : > { %7676 = vrot.lane.b32.xlu1 %v11764_v56, %s9791_s19  ;;  %7462 = vrot.lane.b32.xlu0 %v11773_v27, %s9788_s12  ;;  %v7275_v56 = vsel %vm7272_vm5, %v7273_v4, %v7274_v46  ;;  %v7870_v4 = vld [vmem:[#allocation4 + $0x68] sm:$0xfe] }
 0x5ca   : > { %v7589_v18 = vpop.permute.xlu1 %7588  ;;  %v11963_v25 = vpop.permute.xlu0 %7446 }
 0x5cc   : > { %7678 = vrot.lane.b32.xlu0 %v11773_v27, %s9791_s19  ;;  %7538 = vrot.lane.b32.xlu1 %v11776_v50, %s9790_s18  ;;  %v7322_v27 = vadd.f32 %v7275_v56, %v7222_v59  ;;  %v7905_v56 = vrot.slane %v7871_v45, 1 }
 0x5ce   : > { %v7445_v16 = vpop.permute.xlu1 %7444  ;;  %v7663_v41 = vpop.permute.xlu0 %7662  ;;  %v7388_v1 = vadd.f32 %v7341_v57, %v7322_v27  ;;  %v7323_v57 = vadd.f32 %v11618_v21, %v7223_v32 }
 0x5d0   : > { %7754 = vrot.lane.b32.xlu1 %v11776_v50, %s9793_s25  ;;  %7364 = vrot.lane.b32.xlu0 %v11778_v13, %s9787_s16  ;;  %v7490_v8 = vadd.f32 %v7443_v34, %v7388_v1  ;;  %v7389_v1 = vadd.f32 %v7343_v47, %v7323_v57 }
 0x5d2   : > { %v7523_v22 = vpop.permute.xlu1 %7522  ;;  %v11979_v55 = vpop.permute.xlu0 %7348  ;;  %v7568_v7 = vadd.f32 %v7521_v36, %v7490_v8  ;;  %v7904_v8 = vrot.slane %v7870_v4, 1  ;;  %v7491_v21 = vadd.f32 %v7445_v16, %v7389_v1 }
 0x5d4   : > { %7606 = vrot.lane.b32.xlu0 %v11778_v13, %s9789_s17  ;;  %7366 = vrot.lane.b32.xlu1 %v11786_v48, %s9787_s16  ;;  %v7634_v34 = vadd.f32 %v7587_v5, %v7568_v7  ;;  %v7569_v32 = vadd.f32 %v7523_v22, %v7491_v21 }
 0x5d6   : > { %v11985_v46 = vpop.permute.xlu0 %7590  ;;  %v11987_v17 = vpop.permute.xlu1 %7350  ;;  %v7710_v36 = vadd.f32 %v7663_v41, %v7634_v34  ;;  %v7906_v41 = vsel %vm2845_vm2, %v7904_v8, %v7905_v56  ;;  %v7872_v34 = vld [vmem:[#allocation4 + $0x88] sm:$0xff] }
 0x5d8   : > { %7822 = vrot.lane.b32.xlu0 %v11778_v13, %s9792_s23  ;;  %7608 = vrot.lane.b32.xlu1 %v11786_v48, %s9789_s17 }
 0x5da   : > { %v7807_v52 = vpop.permute.xlu0 %7806  ;;  %v11993_v35 = vpop.permute.xlu1 %7592 }
 0x5dc   : > { %7540 = vrot.lane.b32.xlu0 %v11789_v61, %s9790_s18  ;;  %7824 = vrot.lane.b32.xlu1 %v11786_v48, %s9792_s23 }
 0x5de   : > { %v7525_v13 = vpop.permute.xlu0 %7524  ;;  %v7809_v37 = vpop.permute.xlu1 %7808 }
 0x5e0   : > { %7756 = vrot.lane.b32.xlu0 %v11789_v61, %s9793_s25  ;;  %7464 = vrot.lane.b32.xlu1 %v11792_v33, %s9788_s12 }
 0x5e2   : > { %v7741_v59 = vpop.permute.xlu0 %7740  ;;  %v12007_v27 = vpop.permute.xlu1 %7448 }
 0x5e3   : > { %v7788_v48 = vadd.f32 %v7741_v59, %v7710_v36  ;;  %v7907_v36 = vrot.slane %v7872_v34, 1  ;;  %v7873_v34 = vld [vmem:[#allocation4 + $0x98] sm:$0xff] }
 0x5e4   : > { %7680 = vrot.lane.b32.xlu1 %v11792_v33, %s9791_s19  ;;  %7466 = vrot.lane.b32.xlu0 %v11802_v42, %s9788_s12 }
 0x5e5   : > { %v7854_v5 = vadd.f32 %v7807_v52, %v7788_v48  ;;  %v7635_v52 = vadd.f32 %v7589_v18, %v7569_v32  ;;  %v7229_v18 = vld [vmem:[%s12277_s7 + $0x38] sm:$0xff]  ;;  %v7908_v21 = vsel %vm2845_vm2, %v7905_v56, %v7907_v36 }
 0x5e6   : > { %v7665_v47 = vpop.permute.xlu1 %7664  ;;  %v12020_v7 = vpop.permute.xlu0 %7450  ;;  %v7329_v8 = vadd.f32 %v11720_v14, %v7229_v18 }
 0x5e7   : > { %v7953_v57 = vadd.f32 %v7906_v41, %v7854_v5  ;;  %v7711_v22 = vadd.f32 %v7665_v47, %v7635_v52 }
 0x5e8   : > { %7682 = vrot.lane.b32.xlu0 %v11802_v42, %s9791_s19  ;;  %7542 = vrot.lane.b32.xlu1 %v11805_v60, %s9790_s18  ;;  %v7224_v42 = vld [vmem:[%s12277_s7 + $0x10] sm:$0xff] }
 0x5e9   : > { %7969 = vst.msk [vmem:[%s12017_s20] sm:$0xff] %vm7174_vm4, %v7953_v57  ;;  %v7324_v1 = vadd.f32 %v11667_v30, %v7224_v42 }
 0x5ea   : > { %v7667_v33 = vpop.permute.xlu0 %7666  ;;  %v7527_v16 = vpop.permute.xlu1 %7526 }
 0x5eb   : > { %v7390_v47 = vadd.f32 %v11951_v63, %v7324_v1 }
 0x5ec   : > { %7758 = vrot.lane.b32.xlu1 %v11805_v60, %s9793_s25  ;;  %7368 = vrot.lane.b32.xlu0 %v11807_v9, %s9787_s16 }
 0x5ed   : > { %v7492_v30 = vadd.f32 %v11963_v25, %v7390_v47 }
 0x5ee   : > { %v7743_v45 = vpop.permute.xlu1 %7742  ;;  %v12035_v4 = vpop.permute.xlu0 %7352 }
 0x5ef   : > { %v7789_v59 = vadd.f32 %v7743_v45, %v7711_v22  ;;  %v7570_v56 = vadd.f32 %v7525_v13, %v7492_v30 }
 0x5f0   : > { %7610 = vrot.lane.b32.xlu0 %v11807_v9, %s9789_s17  ;;  %7370 = vrot.lane.b32.xlu1 %v11818_v26, %s9787_s16 }
 0x5f1   : > { %v7855_v48 = vadd.f32 %v7809_v37, %v7789_v59  ;;  %v7636_v25 = vadd.f32 %v11985_v46, %v7570_v56 }
 0x5f2   : > { %v12047_v5 = vpop.permute.xlu0 %7594  ;;  %v7355_v41 = vpop.permute.xlu1 %7354 }
 0x5f3   : > { %v7954_v32 = vadd.f32 %v7908_v21, %v7855_v48  ;;  %v12050_v57 = vadd.f32 %v7355_v41, %v7329_v8  ;;  %v7712_v22 = vadd.f32 %v7667_v33, %v7636_v25  ;;  %v7874_v41 = vld [vmem:[#allocation4 + $0xa8] sm:$0xff] }
 0x5f4   : > { %7826 = vrot.lane.b32.xlu0 %v11807_v9, %s9792_s23  ;;  %7612 = vrot.lane.b32.xlu1 %v11818_v26, %s9789_s17  ;;  %v7225_v9 = vld [vmem:[%s12277_s7 + $0x18] sm:$0xff] }
 0x5f5   : > { %7970 = vst.msk [vmem:[%s12017_s20 + $0x8] sm:$0xff] %vm7174_vm4, %v7954_v32  ;;  %v7325_v13 = vadd.f32 %v11673_v51, %v7225_v9 }
 0x5f6   : > { %v7811_v14 = vpop.permute.xlu0 %7810  ;;  %v12059_v37 = vpop.permute.xlu1 %7596 }
 0x5f7   : > { %v7391_v18 = vadd.f32 %v11957_v43, %v7325_v13 }
 0x5f8   : > { %7544 = vrot.lane.b32.xlu0 %v11823_v12, %s9790_s18  ;;  %7828 = vrot.lane.b32.xlu1 %v11818_v26, %s9792_s23  ;;  %v7909_v26 = vrot.slane %v7873_v34, 1 }
 0x5f9   : > { %v7493_v46 = vadd.f32 %v12007_v27, %v7391_v18  ;;  %v7168_v18 = vpop.f32.mrb[42].mxu1 }
 0x5fa   : > { %v7529_v63 = vpop.permute.xlu0 %7528  ;;  %v7813_v52 = vpop.permute.xlu1 %7812  ;;  %v7910_v51 = vsel %vm2845_vm2, %v7907_v36, %v7909_v26  ;;  %v7226_v36 = vld [vmem:[%s12277_s7 + $0x20] sm:$0xff] }
 0x5fb   : > { %v7571_v8 = vadd.f32 %v7527_v16, %v7493_v46 }
 0x5fc   : > { %7760 = vrot.lane.b32.xlu0 %v11823_v12, %s9793_s25  ;;  %7468 = vrot.lane.b32.xlu1 %v11826_v28, %s9788_s12 }
 0x5fd   : > { %v7637_v27 = vadd.f32 %v11993_v35, %v7571_v8  ;;  %v7326_v35 = vadd.f32 %v11680_v23, %v7226_v36 }
 0x5fe   : > { %v7745_v42 = vpop.permute.xlu0 %7744  ;;  %v12074_v45 = vpop.permute.xlu1 %7452 }
 0x5ff   : > { %v7790_v59 = vadd.f32 %v7745_v42, %v7712_v22  ;;  %v7392_v34 = vadd.f32 %v11979_v55, %v7326_v35  ;;  %v7508_v55 = vld [vmem:[#allocation4 + $0x130] sm:$0x7f] }
 0x600   : > { %7684 = vrot.lane.b32.xlu1 %v11826_v28, %s9791_s19  ;;  %7470 = vrot.lane.b32.xlu0 %v11839_v31, %s9788_s12 }
 0x601   : > { %v7856_v1 = vadd.f32 %v7811_v14, %v7790_v59  ;;  %v7170_v59 = vpop.f32.mrb[43].mxu1 }
 0x602   : > { %v7669_v33 = vpop.permute.xlu1 %7668  ;;  %v12083_v48 = vpop.permute.xlu0 %7454 }
 0x603   : > { %v7955_v21 = vadd.f32 %v7910_v51, %v7856_v1  ;;  %v7713_v16 = vadd.f32 %v7669_v33, %v7637_v27  ;;  %v7518_v33 = vrot.slane %v7508_v55, 7 }
 0x604   : > { %7546 = vrot.lane.b32.xlu1 %v11843_v20, %s9790_s18  ;;  %7686 = vrot.lane.b32.xlu0 %v11839_v31, %s9791_s19  ;;  %v7911_v31 = vrot.slane %v7874_v41, 1 }
 0x605   : > { %7971 = vst.msk [vmem:[%s12017_s20 + $0x10] sm:$0xff] %vm7174_vm4, %v7955_v21 }
 0x606   : > { %v7671_v28 = vpop.permute.xlu0 %7670  ;;  %v7531_v43 = vpop.permute.xlu1 %7530  ;;  %v7912_v56 = vsel %vm2845_vm2, %v7909_v26, %v7911_v31 }
 0x608   : > { %7762 = vrot.lane.b32.xlu1 %v11843_v20, %s9793_s25  ;;  %7614 = vrot.lane.b32.xlu0 %v11845_v29, %s9789_s17  ;;  %v7405_v20 = vld [vmem:[#allocation4 + $0x120] sm:$0x1] }
 0x609   : > { %v7440_v22 = vrot.slane %v7405_v20, 1 }
 0x60a   : > { %v7747_v47 = vpop.permute.xlu1 %7746  ;;  %v12099_v32 = vpop.permute.xlu0 %7356 }
 0x60b   : > { %v7791_v30 = vadd.f32 %v7747_v47, %v7713_v16  ;;  %v7441_v26 = vsel %vm2845_vm2, %v11829_v0, %v7440_v22 }
 0x60c   : > { %7830 = vrot.lane.b32.xlu0 %v11845_v29, %s9792_s23  ;;  %7616 = vrot.lane.b32.xlu1 %v11857_v62, %s9789_s17  ;;  %v7494_v29 = vadd.f32 %v12020_v7, %v7392_v34  ;;  %v7227_v7 = vld [vmem:[%s12277_s7 + $0x28] sm:$0xff] }
 0x60d   : > { %v7857_v14 = vadd.f32 %v7813_v52, %v7791_v30  ;;  %v7327_v0 = vadd.f32 %v11693_v53, %v7227_v7 }
 0x60e   : > { %v12107_v9 = vpop.permute.xlu0 %7598  ;;  %v12109_v25 = vpop.permute.xlu1 %7358  ;;  %v7572_v42 = vadd.f32 %v7529_v63, %v7494_v29  ;;  %v7875_v63 = vld [vmem:[#allocation4 + $0xb8] sm:$0xff] }
 0x60f   : > { %v7956_v13 = vadd.f32 %v7912_v56, %v7857_v14  ;;  %v7913_v21 = vrot.slane %v7875_v63, 1  ;;  %v7393_v41 = vadd.f32 %v11987_v17, %v7327_v0  ;;  %v7877_v63 = vld [vmem:[#allocation4 + $0xd8] sm:$0xff] }
 0x610   : > { %7548 = vrot.lane.b32.xlu0 %v11864_v58, %s9790_s18  ;;  %7832 = vrot.lane.b32.xlu1 %v11857_v62, %s9792_s23  ;;  %v7638_v51 = vadd.f32 %v12047_v5, %v7572_v42  ;;  %v7519_v5 = vsel %vm7272_vm5, %v11853_v38, %v7518_v33  ;;  %v7728_v38 = vld [vmem:[#allocation4 + $0x150] sm:$0x7f]  ;;  %v7917_v0 = vrot.slane %v7877_v63, 1 }
 0x611   : > { %7972 = vst.msk [vmem:[%s12017_s20 + $0x18] sm:$0xff] %vm7174_vm4, %v7956_v13  ;;  %v7738_v14 = vrot.slane %v7728_v38, 7 }
 0x612   : > { %v7815_v23 = vpop.permute.xlu0 %7814  ;;  %v12119_v52 = vpop.permute.xlu1 %7600 }
 0x613   : > { %v7739_v62 = vsel %vm7272_vm5, %v7736_v11, %v7738_v14 }
 0x614   : > { %7764 = vrot.lane.b32.xlu0 %v11864_v58, %s9793_s25  ;;  %7472 = vrot.lane.b32.xlu1 %v7441_v26, %s9788_s12  ;;  %v7714_v58 = vadd.f32 %v7671_v28, %v7638_v51  ;;  %v7914_v28 = vsel %vm2845_vm2, %v7911_v31, %v7913_v21 }
 0x616   : > { %v7533_v46 = vpop.permute.xlu0 %7532  ;;  %v7817_v1 = vpop.permute.xlu1 %7816 }
 0x618   : > { %7688 = vrot.lane.b32.xlu1 %v11868_v54, %s9791_s19  ;;  %7690 = vrot.lane.b32.xlu0 %v11878_v15, %s9791_s19  ;;  %v7651_v54 = vld [vmem:[#allocation4 + $0x140] sm:$0x1]  ;;  %v7495_v15 = vadd.f32 %v12074_v45, %v7393_v41 }
 0x619   : > { %v7660_v20 = vrot.slane %v7651_v54, 1 }
 0x61a   : > { %v7749_v8 = vpop.permute.xlu0 %7748  ;;  %v7457_v27 = vpop.permute.xlu1 %7456  ;;  %v7573_v17 = vadd.f32 %v7531_v43, %v7495_v15  ;;  %v7876_v43 = vld [vmem:[#allocation4 + $0xc8] sm:$0xff] }
 0x61b   : > { %v7792_v16 = vadd.f32 %v7749_v8, %v7714_v58  ;;  %v7661_v31 = vsel %vm2845_vm2, %v7658_v10, %v7660_v20  ;;  %v7915_v13 = vrot.slane %v7876_v43, 1 }
 0x61c   : > { %7550 = vrot.lane.b32.xlu1 %v7519_v5, %s9790_s18  ;;  %7768 = vrot.lane.b32.xlu0 %v11899_v44, %s9793_s25  ;;  %v7639_v35 = vadd.f32 %v12059_v37, %v7573_v17 }
 0x61d   : > { %v7858_v53 = vadd.f32 %v7815_v23, %v7792_v16  ;;  %v7916_v23 = vsel %vm2845_vm2, %v7913_v21, %v7915_v13  ;;  %v7918_v21 = vsel %vm2845_vm2, %v7915_v13, %v7917_v0 }
 0x61e   : > { %v7673_v36 = vpop.permute.xlu1 %7672  ;;  %v12143_v47 = vpop.permute.xlu0 %7458 }
 0x61f   : > { %v7957_v30 = vadd.f32 %v7914_v28, %v7858_v53  ;;  %v7715_v56 = vadd.f32 %v7673_v36, %v7639_v35  ;;  %v7878_v53 = vld [vmem:[#allocation4 + $0xe8] sm:$0xff] }
 0x620   : > { %7766 = vrot.lane.b32.xlu1 %v11882_v40, %s9793_s25  ;;  %7834 = vrot.lane.b32.xlu0 %v11884_v2, %s9792_s23  ;;  %v7228_v40 = vld [vmem:[%s12277_s7 + $0x30] sm:$0xff]  ;;  %v7919_v36 = vrot.slane %v7878_v53, 1 }
 0x621   : > { %7973 = vst.msk [vmem:[%s12017_s20 + $0x20] sm:$0xff] %vm7174_vm4, %v7957_v30  ;;  %v7328_v10 = vadd.f32 %v11706_v6, %v7228_v40 }
 0x622   : > { %v7675_v44 = vpop.permute.xlu0 %7674  ;;  %v7535_v45 = vpop.permute.xlu1 %7534 }
 0x623   : > { %v7394_v55 = vadd.f32 %v12035_v4, %v7328_v10 }
 0x624   : > { %7692 = vrot.lane.b32.xlu1 %v7661_v31, %s9791_s19 }
 0x625   : > { %v7496_v2 = vadd.f32 %v12083_v48, %v7394_v55 }
 0x626   : > { %v7751_v34 = vpop.permute.xlu1 %7750  ;;  %v12159_v22 = vpop.permute.xlu0 %7360 }
 0x627   : > { %v7793_v29 = vadd.f32 %v7751_v34, %v7715_v56  ;;  %v7574_v6 = vadd.f32 %v7533_v46, %v7496_v2 }
 0x628   : > { %7770 = vrot.lane.b32.xlu1 %v7739_v62, %s9793_s25  ;;  %v7879_v62 = vld [vmem:[#allocation4 + $0xf8] sm:$0xff] }
 0x629   : > { %v7859_v37 = vadd.f32 %v7817_v1, %v7793_v29  ;;  %v7640_v51 = vadd.f32 %v12107_v9, %v7574_v6 }
 0x62a   : > { %v7603_v42 = vpop.permute.xlu0 %7602  ;;  %v12167_v26 = vpop.permute.xlu1 %7362 }
 0x62b   : > { %v7958_v18 = vadd.f32 %v7916_v23, %v7859_v37  ;;  %v7716_v33 = vadd.f32 %v7675_v44, %v7640_v51  ;;  %v7920_v44 = vsel %vm2845_vm2, %v7917_v0, %v7919_v36 }
 0x62c   : > { %7836 = vrot.lane.b32.xlu1 %v11893_v19, %s9792_s23  ;;  %v7497_v19 = vadd.f32 %v7457_v27, %v12050_v57  ;;  %v7230_v57 = vld [vmem:[%s12277_s7 + $0x40] sm:$0xff] }
 0x62d   : > { %7974 = vst.msk [vmem:[%s12017_s20 + $0x28] sm:$0xff] %vm7174_vm4, %v7958_v18  ;;  %v7330_v20 = vadd.f32 %v11732_v39, %v7230_v57  ;;  %v7231_v39 = vld [vmem:[%s12277_s7 + $0x48] sm:$0xff] }
 0x62e   : > { %v7819_v11 = vpop.permute.xlu0 %7818  ;;  %v12175_v59 = vpop.permute.xlu1 %7604  ;;  %v7575_v46 = vadd.f32 %v7535_v45, %v7497_v19 }
 0x630   : > { %v7641_v15 = vadd.f32 %v12119_v52, %v7575_v46  ;;  %v7396_v52 = vadd.f32 %v12099_v32, %v7330_v20  ;;  %v7331_v32 = vadd.f32 %v11747_v3, %v7231_v39  ;;  %v7881_v20 = vld [vmem:[#allocation4 + $0x118] sm:$0xff] }
 0x632   : > { %v7537_v7 = vpop.permute.xlu0 %7536  ;;  %v7821_v1 = vpop.permute.xlu1 %7820  ;;  %v7498_v43 = vadd.f32 %v12143_v47, %v7396_v52  ;;  %v7921_v47 = vrot.slane %v7879_v62, 1  ;;  %v7397_v55 = vadd.f32 %v12109_v25, %v7331_v32  ;;  %v7232_v25 = vld [vmem:[%s12277_s7 + $0x50] sm:$0xff] }
 0x634   : > { %v7576_v40 = vadd.f32 %v7537_v7, %v7498_v43  ;;  %v7922_v6 = vsel %vm2845_vm2, %v7919_v36, %v7921_v47 }
 0x636   : > { %v7753_v4 = vpop.permute.xlu0 %7752  ;;  %v7461_v58 = vpop.permute.xlu1 %7460  ;;  %v7642_v29 = vadd.f32 %v7603_v42, %v7576_v40 }
 0x637   : > { %v7794_v8 = vadd.f32 %v7753_v4, %v7716_v33  ;;  %v7499_v2 = vadd.f32 %v7461_v58, %v7397_v55  ;;  %v7880_v4 = vld [vmem:[#allocation4 + $0x108] sm:$0xff] }
 0x639   : > { %v7860_v48 = vadd.f32 %v7819_v11, %v7794_v8  ;;  %v7923_v8 = vrot.slane %v7880_v4, 1 }
 0x63a   : > { %v7677_v41 = vpop.permute.xlu1 %7676  ;;  %v12180_v16 = vpop.permute.xlu0 %7462 }
 0x63b   : > { %v7959_v5 = vadd.f32 %v7918_v21, %v7860_v48  ;;  %v7717_v28 = vadd.f32 %v7677_v41, %v7641_v15  ;;  %v7332_v21 = vadd.f32 %v11761_v24, %v7232_v25  ;;  %v7924_v46 = vsel %vm2845_vm2, %v7921_v47, %v7923_v8  ;;  %v7233_v24 = vld [vmem:[%s12277_s7 + $0x58] sm:$0xff] }
 0x63c   : > { %v7883_v25 = vld [vmem:[#allocation4 + $0x138] sm:$0xff] }
 0x63d   : > { %7975 = vst.msk [vmem:[%s12017_s20 + $0x30] sm:$0xff] %vm7174_vm4, %v7959_v5 }
 0x63e   : > { %v7679_v54 = vpop.permute.xlu0 %7678  ;;  %v7539_v9 = vpop.permute.xlu1 %7538 }
 0x63f   : > { %v7718_v10 = vadd.f32 %v7679_v54, %v7642_v29  ;;  %v7577_v51 = vadd.f32 %v7539_v9, %v7499_v2 }
 0x641   : > { %v7643_v3 = vadd.f32 %v12175_v59, %v7577_v51  ;;  %v7398_v59 = vadd.f32 %v12159_v22, %v7332_v21  ;;  %v7333_v22 = vadd.f32 %v11776_v50, %v7233_v24  ;;  %v7234_v50 = vld [vmem:[%s12277_s7 + $0x60] sm:$0xff] }
 0x642   : > { %v7755_v27 = vpop.permute.xlu1 %7754  ;;  %v12188_v17 = vpop.permute.xlu0 %7364 }
 0x643   : > { %v7795_v30 = vadd.f32 %v7755_v27, %v7717_v28  ;;  %v7500_v15 = vadd.f32 %v12180_v16, %v7398_v59  ;;  %v7925_v16 = vrot.slane %v7881_v20, 1  ;;  %v7237_v20 = vld [vmem:[%s12277_s7 + $0x78] sm:$0xff] }
 0x645   : > { %v7861_v38 = vadd.f32 %v7821_v1, %v7795_v30  ;;  %v7926_v39 = vsel %vm2845_vm2, %v7923_v8, %v7925_v16 }
 0x646   : > { %v7607_v45 = vpop.permute.xlu0 %7606  ;;  %v12192_v35 = vpop.permute.xlu1 %7366 }
 0x647   : > { %v7960_v31 = vadd.f32 %v7920_v44, %v7861_v38 }
 0x649   : > { %7976 = vst.msk [vmem:[%s12017_s20 + $0x38] sm:$0xff] %vm7174_vm4, %v7960_v31  ;;  %v7399_v31 = vadd.f32 %v12167_v26, %v7333_v22  ;;  %v7882_v26 = vld [vmem:[#allocation4 + $0x128] sm:$0xff] }
 0x64a   : > { %v7823_v14 = vpop.permute.xlu0 %7822  ;;  %v12198_v56 = vpop.permute.xlu1 %7608  ;;  %v7927_v55 = vrot.slane %v7882_v26, 1 }
 0x64c   : > { %v7928_v51 = vsel %vm2845_vm2, %v7925_v16, %v7927_v55 }
 0x64e   : > { %v7541_v34 = vpop.permute.xlu0 %7540  ;;  %v7825_v13 = vpop.permute.xlu1 %7824 }
 0x64f   : > { %v7578_v57 = vadd.f32 %v7541_v34, %v7500_v15 }
 0x651   : > { %v7644_v30 = vadd.f32 %v7607_v45, %v7578_v57 }
 0x652   : > { %v7757_v37 = vpop.permute.xlu0 %7756  ;;  %v7465_v23 = vpop.permute.xlu1 %7464 }
 0x653   : > { %v7796_v18 = vadd.f32 %v7757_v37, %v7718_v10  ;;  %v7334_v37 = vadd.f32 %v11789_v61, %v7234_v50  ;;  %v7235_v61 = vld [vmem:[%s12277_s7 + $0x68] sm:$0xff] }
 0x655   : > { %v7862_v11 = vadd.f32 %v7823_v14, %v7796_v18  ;;  %v7501_v14 = vadd.f32 %v7465_v23, %v7399_v31  ;;  %v7400_v2 = vadd.f32 %v12188_v17, %v7334_v37 }
 0x656   : > { %v7681_v7 = vpop.permute.xlu1 %7680  ;;  %v7467_v1 = vpop.permute.xlu0 %7466 }
 0x657   : > { %v7961_v63 = vadd.f32 %v7922_v6, %v7862_v11  ;;  %v7719_v0 = vadd.f32 %v7681_v7, %v7643_v3  ;;  %v7502_v6 = vadd.f32 %v7467_v1, %v7400_v2 }
 0x659   : > { %7977 = vst.msk [vmem:[%s12017_s20 + $0x40] sm:$0xff] %vm7174_vm4, %v7961_v63 }
 0x65a   : > { %v7683_v42 = vpop.permute.xlu0 %7682  ;;  %v7543_v33 = vpop.permute.xlu1 %7542 }
 0x65b   : > { %v7720_v38 = vadd.f32 %v7683_v42, %v7644_v30  ;;  %v7579_v29 = vadd.f32 %v7543_v33, %v7501_v14  ;;  %v7884_v14 = vld [vmem:[#allocation4 + $0x148] sm:$0xff] }
 0x65d   : > { %v7645_v10 = vadd.f32 %v12198_v56, %v7579_v29  ;;  %v7236_v56 = vld [vmem:[%s12277_s7 + $0x70] sm:$0xff] }
 0x65e   : > { %v7759_v58 = vpop.permute.xlu1 %7758  ;;  %v7369_v19 = vpop.permute.xlu0 %7368  ;;  %v7336_v1 = vadd.f32 %v11823_v12, %v7236_v56 }
 0x65f   : > { %v7797_v48 = vadd.f32 %v7759_v58, %v7719_v0  ;;  %v7335_v58 = vadd.f32 %v11805_v60, %v7235_v61 }
 0x660   : > { %v7402_v8 = vadd.f32 %v7369_v19, %v7336_v1 }
 0x661   : > { %v7863_v41 = vadd.f32 %v7825_v13, %v7797_v48  ;;  %v7254_v48 = vld [vmem:[#allocation4 + $0x110] sm:$0x7f] }
 0x662   : > { %v7611_v5 = vpop.permute.xlu0 %7610  ;;  %v12214_v54 = vpop.permute.xlu1 %7370  ;;  %v7304_v57 = vrot.slane %v7254_v48, 7 }
 0x663   : > { %v7962_v9 = vadd.f32 %v7924_v46, %v7863_v41  ;;  %v7929_v46 = vrot.slane %v7883_v25, 1 }
 0x664   : > { %v7305_v22 = vsel %vm7272_vm5, %v11814_v49, %v7304_v57  ;;  %v7931_v49 = vrot.slane %v7884_v14, 1 }
 0x665   : > { %7978 = vst.msk [vmem:[%s12017_s20 + $0x48] sm:$0xff] %vm7174_vm4, %v7962_v9  ;;  %v7401_v9 = vadd.f32 %v12192_v35, %v7335_v58  ;;  %v7930_v12 = vsel %vm2845_vm2, %v7927_v55, %v7929_v46 }
 0x666   : > { %v7827_v53 = vpop.permute.xlu0 %7826  ;;  %v12220_v28 = vpop.permute.xlu1 %7612 }
 0x66a   : > { %v7545_v27 = vpop.permute.xlu0 %7544  ;;  %v7829_v36 = vpop.permute.xlu1 %7828 }
 0x66b   : > { %v7580_v33 = vadd.f32 %v7545_v27, %v7502_v6 }
 0x66d   : > { %v7646_v0 = vadd.f32 %v7611_v5, %v7580_v33 }
 0x66e   : > { %v7761_v44 = vpop.permute.xlu0 %7760  ;;  %v7469_v52 = vpop.permute.xlu1 %7468 }
 0x66f   : > { %v7798_v43 = vadd.f32 %v7761_v44, %v7720_v38  ;;  %v7503_v24 = vadd.f32 %v7469_v52, %v7401_v9  ;;  %v7885_v38 = vld [vmem:[#allocation4 + $0x158] sm:$0xff]  ;;  %v7337_v52 = vadd.f32 %v7305_v22, %v7237_v20 }
 0x671   : > { %v7864_v40 = vadd.f32 %v7827_v53, %v7798_v43 }
 0x672   : > { %v7685_v34 = vpop.permute.xlu1 %7684  ;;  %v7471_v13 = vpop.permute.xlu0 %7470 }
 0x673   : > { %v7963_v62 = vadd.f32 %v7926_v39, %v7864_v40  ;;  %v7721_v47 = vadd.f32 %v7685_v34, %v7645_v10  ;;  %v7504_v15 = vadd.f32 %v7471_v13, %v7402_v8  ;;  %v7933_v40 = vrot.slane %v7885_v38, 1 }
 0x674   : > { %v7403_v39 = vadd.f32 %v12214_v54, %v7337_v52 }
 0x675   : > { %7979 = vst.msk [vmem:[%s12017_s20 + $0x50] sm:$0xff] %vm7174_vm4, %v7963_v62  ;;  %v7934_v10 = vsel %vm2845_vm2, %v7931_v49, %v7933_v40 }
 0x676   : > { %v7547_v45 = vpop.permute.xlu1 %7546  ;;  %v7687_v32 = vpop.permute.xlu0 %7686 }
 0x677   : > { %v7722_v21 = vadd.f32 %v7687_v32, %v7646_v0  ;;  %v7581_v60 = vadd.f32 %v7547_v45, %v7503_v24 }
 0x679   : > { %v7647_v31 = vadd.f32 %v12220_v28, %v7581_v60 }
 0x67a   : > { %v7763_v23 = vpop.permute.xlu1 %7762  ;;  %v7615_v18 = vpop.permute.xlu0 %7614 }
 0x67b   : > { %v7799_v11 = vadd.f32 %v7763_v23, %v7721_v47  ;;  %v7932_v47 = vsel %vm2845_vm2, %v7929_v46, %v7931_v49 }
 0x67d   : > { %v7865_v7 = vadd.f32 %v7829_v36, %v7799_v11 }
 0x67e   : > { %v7831_v63 = vpop.permute.xlu0 %7830  ;;  %v7617_v42 = vpop.permute.xlu1 %7616 }
 0x67f   : > { %v7964_v3 = vadd.f32 %v7928_v51, %v7865_v7 }
 0x681   : > { %7980 = vst.msk [vmem:[%s12017_s20 + $0x58] sm:$0xff] %vm7174_vm4, %v7964_v3 }
 0x682   : > { %v7549_v17 = vpop.permute.xlu0 %7548  ;;  %v7833_v4 = vpop.permute.xlu1 %7832 }
 0x683   : > { %v7582_v27 = vadd.f32 %v7549_v17, %v7504_v15 }
 0x685   : > { %v7648_v35 = vadd.f32 %v7615_v18, %v7582_v27  ;;  %v7886_v18 = vld [vmem:[#allocation4 + $0x168] sm:$0x1] }
 0x686   : > { %v7765_v41 = vpop.permute.xlu0 %7764  ;;  %v7473_v59 = vpop.permute.xlu1 %7472  ;;  %v7935_v6 = vrot.slane %v7886_v18, 1 }
 0x687   : > { %v7800_v53 = vadd.f32 %v7765_v41, %v7722_v21  ;;  %v7505_v50 = vadd.f32 %v7473_v59, %v7403_v39 }
 0x688   : > { %v7936_v33 = vsel %vm2845_vm2, %v7933_v40, %v7935_v6 }
 0x689   : > { %v7866_v36 = vadd.f32 %v7831_v63, %v7800_v53 }
 0x68a   : > { %v7689_v5 = vpop.permute.xlu1 %7688  ;;  %v7691_v30 = vpop.permute.xlu0 %7690 }
 0x68b   : > { %v7965_v19 = vadd.f32 %v7930_v12, %v7866_v36  ;;  %v7724_v43 = vadd.f32 %v7691_v30, %v7648_v35  ;;  %v7723_v34 = vadd.f32 %v7689_v5, %v7647_v31 }
 0x68d   : > { %7981 = vst.msk [vmem:[%s12017_s20 + $0x60] sm:$0xff] %vm7174_vm4, %v7965_v19 }
 0x68e   : > { %v7551_v44 = vpop.permute.xlu1 %7550  ;;  %v7769_v16 = vpop.permute.xlu0 %7768 }
 0x68f   : > { %v7802_v13 = vadd.f32 %v7769_v16, %v7724_v43  ;;  %v7583_v26 = vadd.f32 %v7551_v44, %v7505_v50 }
 0x691   : > { %v7649_v55 = vadd.f32 %v7617_v42, %v7583_v26 }
 0x692   : > { %v7767_v29 = vpop.permute.xlu1 %7766  ;;  %v7835_v62 = vpop.permute.xlu0 %7834 }
 0x693   : > { %v7801_v45 = vadd.f32 %v7767_v29, %v7723_v34  ;;  %v7868_v32 = vadd.f32 %v7835_v62, %v7802_v13 }
 0x695   : > { %v7867_v37 = vadd.f32 %v7833_v4, %v7801_v45  ;;  %v7967_v28 = vadd.f32 %v7934_v10, %v7868_v32 }
 0x696   : > { %v7693_v23 = vpop.permute.xlu1 %7692 }
 0x697   : > { %v7966_v54 = vadd.f32 %v7932_v47, %v7867_v37  ;;  %7983 = vst.msk [vmem:[%s12017_s20 + $0x70] sm:$0xff] %vm7174_vm4, %v7967_v28  ;;  %v7725_v11 = vadd.f32 %v7693_v23, %v7649_v55 }
 0x699   : > { %7982 = vst.msk [vmem:[%s12017_s20 + $0x68] sm:$0xff] %vm7174_vm4, %v7966_v54 }
 0x69a   : > { %v7771_v2 = vpop.permute.xlu1 %7770 }
 0x69b   : > { %v7803_v7 = vadd.f32 %v7771_v2, %v7725_v11 }
 0x69e   : > { %v7837_v51 = vpop.permute.xlu1 %7836 }
 0x69f   : > { %v7869_v63 = vadd.f32 %v7837_v51, %v7803_v7 }
 0x6a1   : > { %v7968_v3 = vadd.f32 %v7936_v33, %v7869_v63 }
 0x6a3   : > { %7984 = vst.msk [vmem:[%s12017_s20 + $0x78] sm:$0xff] %vm7174_vm4, %v7968_v3 }
 0x6a4 PF: > { %s21_s27 = sadd.s32 1, %s9775_s27  }
 0x6a5   : > { %p18_p6 = scmp.ge.s32.totalorder %s21_s27, 4  }
 0x6a7   :  { %20 = sbr.rel (!%p18_p6) target bundleno = 3 (0x3), region = 116 }
 0x6ae   :  { %8006 = vsyncpa [#allocation6], 1 }
 0x6af   :  { %8008 = vsyncpa [#allocation6 + $0x1], 1 }
 0x6b0   :  { %8009 = vsyncpa [#allocation8], 1 }
 0x6b1   :  { %8010 = vsyncpa [#allocation11], 1 }

</bundles_post_ra>
